<compile_context>
chip_gen: v7x
topology: tpu7x:2x2x1
jax: 0.10.0
libtpu: 0.0.40
codegen_flags: <defaults>
</compile_context>

<pallas_src>
import functools

import jax
import jax.numpy as jnp
from jax.experimental import pallas as pl
from jax.experimental.pallas import tpu as pltpu

C_FEAT = 2048        # ResNet-50 backbone output channels
HIDDEN = 1024        # fc hidden width
NUM_CLASSES = 8      # num_classes for the synthetic example
BN_EPS = 1e-5        # nn.BatchNorm1d default eps


def _classifier_kernel(inv_bbox, f_ref, w1_ref, b1_ref, w2_ref, b2_ref,
                       o_ref, acc_ref):
    """Grid = (batch_tiles, bbox).  bbox is the reduction (accumulator) axis.

    f_ref : (bt, H*W, C)  bf16 feature tile for one bounding box (bbox squeezed)
    w1_ref: (C, HIDDEN)   bf16, BatchNorm folded in
    b1_ref: (1, HIDDEN)   f32,  BatchNorm folded in
    w2_ref: (HIDDEN, P)   f32,  P = lane-padded num_classes (128)
    b2_ref: (1, P)        f32
    o_ref : (bt, P)       f32 output tile (resident across the bbox axis)
    acc_ref: (bt, C)      f32 running sum of per-bbox max-pooled features
    """
    j = pl.program_id(1)

    # AdaptiveMaxPool2d((1,1)): max over all spatial positions of this bbox.
    # Cast to f32 inside the kernel (v5e VPU has no bf16 path); DMA stays bf16.
    pooled = jnp.max(f_ref[...].astype(jnp.float32), axis=1)          # (bt, C)

    @pl.when(j == 0)
    def _():
        acc_ref[...] = jnp.zeros_like(acc_ref)

    acc_ref[...] += pooled

    @pl.when(j == pl.num_programs(1) - 1)
    def _():
        # mean over bounding boxes
        x = (acc_ref[...] * inv_bbox).astype(jnp.bfloat16)            # (bt, C)

        # Linear(2048 -> 1024) with inference BatchNorm folded in.
        # bf16 MXU inputs, f32 accumulation.
        h = jnp.dot(x, w1_ref[...], preferred_element_type=jnp.float32)
        h = h + b1_ref[...]

        # ReLU; Dropout(0.5) is identity in inference mode.
        h = jnp.maximum(h, 0.0)

        # Linear(1024 -> num_classes), lane-padded to P=128 columns.
        o_ref[...] = (jnp.dot(h, w2_ref[...],
                              preferred_element_type=jnp.float32)
                      + b2_ref[...])


def make_params(key, num_classes=NUM_CLASSES):
    """Deterministic synthetic parameters with PyTorch-compatible shapes."""
    k1, k2, k3, k4, k5, k6, k7, k8 = jax.random.split(key, 8)
    # nn.Linear(2048, 1024): weight (1024, 2048), bias (1024,)
    w1 = jax.random.normal(k1, (HIDDEN, C_FEAT), jnp.float32) * 0.02
    b1 = jax.random.normal(k2, (HIDDEN,), jnp.float32) * 0.01
    # nn.BatchNorm1d(1024): gamma, beta, running_mean, running_var (1024,)
    gamma = 0.5 + jax.random.uniform(k3, (HIDDEN,), jnp.float32)
    beta = jax.random.normal(k4, (HIDDEN,), jnp.float32) * 0.01
    rm = jax.random.normal(k5, (HIDDEN,), jnp.float32) * 0.1
    rv = 0.5 + jax.random.uniform(k6, (HIDDEN,), jnp.float32)
    # nn.Linear(1024, num_classes): weight (num_classes, 1024), bias (num_classes,)
    w2 = jax.random.normal(k7, (num_classes, HIDDEN), jnp.float32) * 0.02
    b2 = jax.random.normal(k8, (num_classes,), jnp.float32) * 0.01
    return dict(w1=w1, b1=b1, gamma=gamma, beta=beta, rm=rm, rv=rv, w2=w2, b2=b2)


def classifier_forward(feats, params):
    """feats: (batch, bbox, H*W, C) backbone feature maps, channels-last (bf16)."""
    batch, bbox, hw, c = feats.shape
    assert c == C_FEAT
    num_classes = params["w2"].shape[0]

    # ---- host-side parameter prep ------------------------------------------
    # Fold inference BatchNorm into the first Linear:
    #   W1' = W1 * diag(gamma / sqrt(rv + eps));  b1' = (b1 - rm)*s + beta
    scale = params["gamma"] * jax.lax.rsqrt(params["rv"] + BN_EPS)      # (1024,)
    w1_folded = (params["w1"] * scale[:, None]).T.astype(jnp.bfloat16)  # (2048,1024)
    b1_folded = ((params["b1"] - params["rm"]) * scale + params["beta"])
    b1_folded = b1_folded.reshape(1, HIDDEN).astype(jnp.float32)

    # Pad the classifier head to a lane-dense output (multiple of 128 lanes).
    out_pad = max(128, ((num_classes + 127) // 128) * 128)
    w2_t = jnp.zeros((HIDDEN, out_pad), jnp.float32)
    w2_t = w2_t.at[:, :num_classes].set(params["w2"].T.astype(jnp.float32))
    b2_p = jnp.zeros((1, out_pad), jnp.float32)
    b2_p = b2_p.at[:, :num_classes].set(params["b2"].astype(jnp.float32))

    # ---- batch tiling -------------------------------------------------------
    bt = batch
    for cand in (256, 128, 64, 32, 16, 8):
        if batch % cand == 0:
            bt = cand
            break
    n_bt = batch // bt

    # ---- VMEM budget (fits v7x's 64 MiB physical VMEM) ----------------------
    feat_item = feats.dtype.itemsize
    tile_bytes = bt * hw * c * feat_item                     # one feature tile
    resident = (C_FEAT * HIDDEN * 2                          # W1 (bf16)
                + HIDDEN * 4                                 # b1
                + HIDDEN * out_pad * 4 + out_pad * 4         # W2, b2
                + bt * C_FEAT * 4                            # accumulator
                + bt * out_pad * 4)                          # output tile
    vmem_bytes = 2 * tile_bytes + 2 * resident + (4 << 20)   # x2 dbl-buffer + margin
    vmem_bytes = int(max(min(vmem_bytes, 48 << 20), 8 << 20))

    # ---- cost hint for XLA scheduling ---------------------------------------
    cost = pl.CostEstimate(
        flops=2 * batch * (C_FEAT * HIDDEN + HIDDEN * out_pad),
        transcendentals=0,
        bytes_accessed=(feats.size * feat_item
                        + C_FEAT * HIDDEN * 2
                        + HIDDEN * out_pad * 4
                        + batch * out_pad * 4),
    )

    kernel = functools.partial(_classifier_kernel, 1.0 / float(bbox))

    out = pl.pallas_call(
        kernel,
        out_shape=jax.ShapeDtypeStruct((batch, out_pad), jnp.float32),
        grid_spec=pltpu.PrefetchScalarGridSpec(
            num_scalar_prefetch=0,
            grid=(n_bt, bbox),
            in_specs=[
                # streamed feature tile: (bt, 1, H*W, C) with bbox squeezed
                pl.BlockSpec((bt, None, hw, c), lambda i, j: (i, j, 0, 0)),
                # resident weights: constant block index -> DMA'd once
                pl.BlockSpec((C_FEAT, HIDDEN), lambda i, j: (0, 0)),
                pl.BlockSpec((1, HIDDEN), lambda i, j: (0, 0)),
                pl.BlockSpec((HIDDEN, out_pad), lambda i, j: (0, 0)),
                pl.BlockSpec((1, out_pad), lambda i, j: (0, 0)),
            ],
            out_specs=pl.BlockSpec((bt, out_pad), lambda i, j: (i, 0)),
            scratch_shapes=[pltpu.VMEM((bt, C_FEAT), jnp.float32)],
        ),
        compiler_params=pltpu.CompilerParams(
            dimension_semantics=("parallel", "arbitrary"),
            vmem_limit_bytes=vmem_bytes,
        ),
        cost_estimate=cost,
    )(feats, w1_folded, b1_folded, w2_t, b2_p)

    return out[:, :num_classes]


def reference_forward(feats, params):
    """Pure-JAX reference matching the PyTorch forward (inference mode).

    Consumes the same channels-last (batch, bbox, H*W, C) backbone features.
    """
    f = feats.astype(jnp.float32)
    pooled = jnp.max(f, axis=2)                 # AdaptiveMaxPool2d((1,1)) -> (B,BB,C)
    x = jnp.mean(pooled, axis=1)                # mean over bounding boxes -> (B,C)
    h = x @ params["w1"].T + params["b1"]
    h = (h - params["rm"]) / jnp.sqrt(params["rv"] + BN_EPS)
    h = h * params["gamma"] + params["beta"]
    h = jnp.maximum(h, 0.0)
    return h @ params["w2"].T + params["b2"]


if __name__ == "__main__":
    key = jax.random.PRNGKey(0)
    k_x, k_p = jax.random.split(key)

    # Small example: batch=2, bounding_box=3, backbone feature maps 2048 x 4 x 4,
    # consumed in the backbone's native channels-last layout (B, BB, H*W, C) bf16.
    batch, bbox, hh, ww = 2, 3, 4, 4
    x_feats = jax.random.normal(
        k_x, (batch, bbox, hh * ww, C_FEAT), jnp.float32).astype(jnp.bfloat16)

    params = make_params(k_p, NUM_CLASSES)

    out = classifier_forward(x_feats, params)
    out = jax.block_until_ready(out)
    assert out.shape == (batch, NUM_CLASSES)

    ref = reference_forward(x_feats, params)
    assert jnp.allclose(out, ref, rtol=2e-2, atol=2e-2), "mismatch vs reference"

    print("KERNEL_OK")
</pallas_src>

<mosaic_0001>
module attributes {stable_mosaic.version = 11 : i64} {
  func.func @_classifier_kernel(%arg0: i32, %arg1: i32, %arg2: memref<2x1x16x2048xbf16, #tpu.memory_space<vmem>>, %arg3: memref<2048x1024xbf16, #tpu.memory_space<vmem>>, %arg4: memref<1x1024xf32, #tpu.memory_space<vmem>>, %arg5: memref<1024x128xf32, #tpu.memory_space<vmem>>, %arg6: memref<1x128xf32, #tpu.memory_space<vmem>>, %arg7: memref<2x128xf32, #tpu.memory_space<vmem>>, %arg8: memref<2x2048xf32, #tpu.memory_space<vmem>>) attributes {dimension_semantics = [#tpu.dimension_semantics<parallel>, #tpu.dimension_semantics<arbitrary>], iteration_bounds = array<i64: 1, 3>, scalar_prefetch = 0 : i64, scratch_operands = 1 : i64, tpu.core_type = #tpu.core_type<tc>, window_params = [{transform_indices = @transform_0, window_bounds = array<i64: 2, 1, 16, 2048>}, {pipeline_mode = #tpu.pipeline_mode<synchronous>, transform_indices = @transform_1, window_bounds = array<i64: 2048, 1024>}, {pipeline_mode = #tpu.pipeline_mode<synchronous>, transform_indices = @transform_2, window_bounds = array<i64: 1, 1024>}, {pipeline_mode = #tpu.pipeline_mode<synchronous>, transform_indices = @transform_3, window_bounds = array<i64: 1024, 128>}, {pipeline_mode = #tpu.pipeline_mode<synchronous>, transform_indices = @transform_4, window_bounds = array<i64: 1, 128>}, {transform_indices = @transform_5, window_bounds = array<i64: 2, 128>}]} {
    %c0 = arith.constant 0 : index
    %c0_0 = arith.constant 0 : index
    %c0_1 = arith.constant 0 : index
    %c0_2 = arith.constant 0 : index
    %0 = vector.load %arg2[%c0, %c0_0, %c0_1, %c0_2] : memref<2x1x16x2048xbf16, #tpu.memory_space<vmem>>, vector<2x1x16x2048xbf16>
    %1 = vector.shape_cast %0 : vector<2x1x16x2048xbf16> to vector<2x16x2048xbf16>
    %2 = arith.extf %1 : vector<2x16x2048xbf16> to vector<2x16x2048xf32>
    %cst = arith.constant dense<0xFF800000> : vector<2x2048xf32>
    %3 = vector.multi_reduction <maximumf>, %2, %cst [1] : vector<2x16x2048xf32> to vector<2x2048xf32>
    %c0_i32 = arith.constant 0 : i32
    %4 = arith.cmpi eq, %arg1, %c0_i32 : i32
    %5 = arith.extui %4 : i1 to i32
    %c0_i32_3 = arith.constant 0 : i32
    %6 = arith.cmpi ne, %5, %c0_i32_3 : i32
    scf.if %6 {
      %cst_9 = arith.constant 0.000000e+00 : f32
      %13 = vector.broadcast %cst_9 : f32 to vector<2x2048xf32>
      %c0_10 = arith.constant 0 : index
      %c0_11 = arith.constant 0 : index
      %14 = vector.load %arg8[%c0_10, %c0_11] : memref<2x2048xf32, #tpu.memory_space<vmem>>, vector<2x2048xf32>
      tpu.vector_store %arg8[%c0_10, %c0_11], %13 {strides = array<i32>} : memref<2x2048xf32, #tpu.memory_space<vmem>>, vector<2x2048xf32>,
    } else {
    }
    %c0_4 = arith.constant 0 : index
    %c0_5 = arith.constant 0 : index
    %7 = vector.load %arg8[%c0_4, %c0_5] : memref<2x2048xf32, #tpu.memory_space<vmem>>, vector<2x2048xf32>
    %8 = arith.addf %7, %3 : vector<2x2048xf32>
    %c0_6 = arith.constant 0 : index
    %c0_7 = arith.constant 0 : index
    %9 = vector.load %arg8[%c0_6, %c0_7] : memref<2x2048xf32, #tpu.memory_space<vmem>>, vector<2x2048xf32>
    tpu.vector_store %arg8[%c0_6, %c0_7], %8 {strides = array<i32>} : memref<2x2048xf32, #tpu.memory_space<vmem>>, vector<2x2048xf32>,
    %c2_i32 = arith.constant 2 : i32
    %10 = arith.cmpi eq, %arg1, %c2_i32 : i32
    %11 = arith.extui %10 : i1 to i32
    %c0_i32_8 = arith.constant 0 : i32
    %12 = arith.cmpi ne, %11, %c0_i32_8 : i32
    scf.if %12 {
      %c0_9 = arith.constant 0 : index
      %c0_10 = arith.constant 0 : index
      %13 = vector.load %arg8[%c0_9, %c0_10] : memref<2x2048xf32, #tpu.memory_space<vmem>>, vector<2x2048xf32>
      %cst_11 = arith.constant 0.333333343 : f32
      %14 = vector.broadcast %cst_11 : f32 to vector<2x2048xf32>
      %15 = arith.mulf %13, %14 : vector<2x2048xf32>
      %16 = arith.truncf %15 : vector<2x2048xf32> to vector<2x2048xbf16>
      %c0_12 = arith.constant 0 : index
      %c0_13 = arith.constant 0 : index
      %17 = vector.load %arg3[%c0_12, %c0_13] : memref<2048x1024xbf16, #tpu.memory_space<vmem>>, vector<2048x1024xbf16>
      %cst_14 = arith.constant dense<0.000000e+00> : vector<2x1024xf32>
      %18 = tpu.matmul %16, %17, %cst_14 {dimension_numbers = #tpu.dot_dimension_numbers<[1], [0], [0], [1], [0, 0, 1, 1], [], []>} : vector<2x2048xbf16>, vector<2048x1024xbf16>, vector<2x1024xf32> -> vector<2x1024xf32>
      %c0_15 = arith.constant 0 : index
      %c0_16 = arith.constant 0 : index
      %19 = vector.load %arg4[%c0_15, %c0_16] : memref<1x1024xf32, #tpu.memory_space<vmem>>, vector<1x1024xf32>
      %20 = vector.broadcast %19 : vector<1x1024xf32> to vector<2x1024xf32>
      %21 = arith.addf %18, %20 : vector<2x1024xf32>
      %cst_17 = arith.constant 0.000000e+00 : f32
      %22 = vector.broadcast %cst_17 : f32 to vector<2x1024xf32>
      %23 = arith.maximumf %21, %22 : vector<2x1024xf32>
      %c0_18 = arith.constant 0 : index
      %c0_19 = arith.constant 0 : index
      %24 = vector.load %arg5[%c0_18, %c0_19] : memref<1024x128xf32, #tpu.memory_space<vmem>>, vector<1024x128xf32>
      %cst_20 = arith.constant dense<0.000000e+00> : vector<2x128xf32>
      %25 = tpu.matmul %23, %24, %cst_20 {dimension_numbers = #tpu.dot_dimension_numbers<[1], [0], [0], [1], [0, 0, 1, 1], [], []>} : vector<2x1024xf32>, vector<1024x128xf32>, vector<2x128xf32> -> vector<2x128xf32>
      %c0_21 = arith.constant 0 : index
      %c0_22 = arith.constant 0 : index
      %26 = vector.load %arg6[%c0_21, %c0_22] : memref<1x128xf32, #tpu.memory_space<vmem>>, vector<1x128xf32>
      %27 = vector.broadcast %26 : vector<1x128xf32> to vector<2x128xf32>
      %28 = arith.addf %25, %27 : vector<2x128xf32>
      %c0_23 = arith.constant 0 : index
      %c0_24 = arith.constant 0 : index
      %29 = vector.load %arg7[%c0_23, %c0_24] : memref<2x128xf32, #tpu.memory_space<vmem>>, vector<2x128xf32>
      tpu.vector_store %arg7[%c0_23, %c0_24], %28 {strides = array<i32>} : memref<2x128xf32, #tpu.memory_space<vmem>>, vector<2x128xf32>,
    } else {
    }
    return
  }
  func.func @transform_0(%arg0: i32, %arg1: i32) -> (i32, i32, i32, i32) {
    %c0_i32 = arith.constant 0 : i32
    %c0_i32_0 = arith.constant 0 : i32
    %c0_i32_1 = arith.constant 0 : i32
    return %arg0, %arg1, %c0_i32, %c0_i32_0 : i32, i32, i32, i32
  }
  func.func @transform_1(%arg0: i32, %arg1: i32) -> (i32, i32) {
    %c0_i32 = arith.constant 0 : i32
    %c0_i32_0 = arith.constant 0 : i32
    %c0_i32_1 = arith.constant 0 : i32
    return %c0_i32, %c0_i32_0 : i32, i32
  }
  func.func @transform_2(%arg0: i32, %arg1: i32) -> (i32, i32) {
    %c0_i32 = arith.constant 0 : i32
    %c0_i32_0 = arith.constant 0 : i32
    %c0_i32_1 = arith.constant 0 : i32
    return %c0_i32, %c0_i32_0 : i32, i32
  }
  func.func @transform_3(%arg0: i32, %arg1: i32) -> (i32, i32) {
    %c0_i32 = arith.constant 0 : i32
    %c0_i32_0 = arith.constant 0 : i32
    %c0_i32_1 = arith.constant 0 : i32
    return %c0_i32, %c0_i32_0 : i32, i32
  }
  func.func @transform_4(%arg0: i32, %arg1: i32) -> (i32, i32) {
    %c0_i32 = arith.constant 0 : i32
    %c0_i32_0 = arith.constant 0 : i32
    %c0_i32_1 = arith.constant 0 : i32
    return %c0_i32, %c0_i32_0 : i32, i32
  }
  func.func @transform_5(%arg0: i32, %arg1: i32) -> (i32, i32) {
    %c0_i32 = arith.constant 0 : i32
    %c0_i32_0 = arith.constant 0 : i32
    return %arg0, %c0_i32 : i32, i32
  }
}

</mosaic_0001>

<bundles_post_ra>
// kernel: tpu_custom_call.1
= control target key start
LH: loop header
LB: loop body
LE: loop exit
PB: predicated region body
PF: predicated region fallthrough
CT: control target
= control target key end

     0   :  { %s11667_s0 = inlined_call_operand.hbm [shape: bf16[2,3,16,2048], index: 0, kind: input, shape index: {}]   ;;  %s11668_s1 = inlined_call_operand.hbm [shape: bf16[2048,1024], index: 1, kind: input, shape index: {}]   ;;  %s11669_s2 = inlined_call_operand.hbm [shape: f32[1,1024], index: 2, kind: input, shape index: {}]   ;;  %s11670_s3 = inlined_call_operand.hbm [shape: f32[1024,128], index: 3, kind: input, shape index: {}]   ;;  %s11671_s4 = inlined_call_operand.hbm [shape: f32[1,128], index: 4, kind: input, shape index: {}]   ;;  %s11672_s5 = inlined_call_operand.hbm [shape: f32[2,128], index: 5, kind: output, shape index: {}]  }
   0x1   :  { %11681 = sst [smem:[#allocation22_spill]] %s11668_s1 }
   0x2   :  { %11682 = sst [smem:[#allocation23_spill]] %s11672_s5 }
   0x3   :  { %10 = vsyncpa [#allocation4], 0 }
   0x4   :  { %12 = vsyncpa [#allocation4 + $0x1], 0 }
   0x5   :  { %13 = vsyncpa [#allocation7], 0 }
   0x6   :  { %14 = vsyncpa [#allocation10], 0 }
   0x7   :  { %15 = vsyncpa [#allocation5], 0  ;;  %s10832_s18 = smov 0   ;;  %s10834_s19 = smov 0  }
   0x8   :  { %s10836_s20 = smov 0   ;;  %s10838_s21 = smov 0  }
   0x9   :  { %s10840_s22 = smov 0   ;;  %s10842_s23 = smov 0  }
   0xa LB: > { %s11678_s24 = sadd.s32 4294967295, %s10783_s23   ;;  %s30_s25 = sadd.s32 1, %s10779_s22  ;;  %s10783_s23 = sphi %s10842_s23, %s21_s23   ;;  %s10779_s22 = sphi %s10840_s22, %s11749_s22   ;;  %s10775_s21 = sphi %s10838_s21, %s11748_s21   ;;  %s10771_s20 = sphi %s10836_s20, %s11747_s20   ;;  %s10767_s19 = sphi %s10834_s19, %s11746_s19   ;;  %s10763_s18 = sphi %s10832_s18, %s11745_s18  }
   0xb   : > { %p31_p0 = scmp.ge.s32.totalorder %s30_s25, 3  ;;  %s42_s26 = sadd.s32 1, %s10771_s20 }
   0xc   : > { %p49_p1 = scmp.ne.s32.totalorder %s10771_s20, %s10767_s19  ;;  %p50_p2 = scmp.eq.s32.totalorder %s10783_s23, 0 }
   0xd   : > { %s11751_s25 = smov (%p31_p0, %s30_s25), 0  ;;  %p55_p4 = scmp.ne.s32.totalorder %s10767_s19, %s10763_s18 }
   0xe   : > { %11683 = sst [smem:[#allocation20_spill]] %s11751_s25  ;;  %p10868_p3 = por %p50_p2, %p49_p1 }
   0xf   : > { %s38_s28 = ssub.s32 %s10779_s22, %s11751_s25  ;;  %p10877_p5 = scmp.eq.s32.totalorder %s11678_s24, 0 }
  0x10   : > { %s11684_s27 = scalar_select %p10868_p3, 1, 0 }
  0x11   : > { %s11685_s29 = scalar_select %p10877_p5, 1, 0 }
  0x12   : > { %p40_p6 = scmp.eq.s32.totalorder %s38_s28, 0  ;;  %p9029_p7 = scmp.ge.s32.totalorder %s10783_s23, 1 }
  0x13   : > { %p10884_p8 = por %p10877_p5, %p55_p4  ;;  %p176_p9 = scmp.lt.s32.totalorder %s10783_s23, 4 }
  0x14   : > { %s10890_s6 = scalar_select %p40_p6, %s10771_s20, %s42_s26  }
  0x15   : > { %s11686_s30 = scalar_select %p10884_p8, 1, 0 }
  0x16   : > { %11687 = sst [smem:[#allocation21_spill]] %s10890_s6  ;;  %p10892_p10 = pnand %p9029_p7, %p176_p9 }
  0x17   : > { %s10785_s8 = smov [#allocation6]   ;;  %s10786_s11 = smov [#allocation9]  }
  0x18   : > { %s11688_s7 = scalar_select %p10892_p10, 1, 0 }
  0x19   : > { %p10495_p11 = pneg %p10892_p10  ;;  %s188_s9 = sshll.u32 %s10785_s8, 4  ;;  %s189_s9 = int_to_ptr.vmem [resolvable:$true] %s188_s9 }
  0x1a   : > { %s212_s12 = sshll.u32 %s10786_s11, 4  ;;  %s11690_s1 = sld [smem:[#allocation22_spill]]  ;;  %s10904_s12 = int_to_ptr.vmem [resolvable:$true] %s212_s12 }
  0x1b   : > { %p10900_p12 = pnand %p10495_p11, %p10877_p5 }
  0x1d   : > { %p10914_p0 = pneg %p10900_p12 }
  0x20   : > { %s10583_s15 = scalar_lea.hbm %s11690_s1, 131072 }
  0x21   : > { %p10584_p13 = scmp.ne.s32.totalorder %s11690_s1, %s10583_s15  ;;  %p10590_p4 = scmp.lt.u32.totalorder %s10583_s15, %s11690_s1 }
  0x23   : > { %p10586_p1 = pnand %p10914_p0, %p10584_p13 }
  0x25   : > { %p10587_p2 = pneg %p10586_p1 }
  0x27   : > { %p10592_p6 = pnand %p10590_p4, %p10587_p2 }
  0x29   : > { %10595 = shalt.err (!%p10592_p6)
}
  0x2a   : > { %s10596_s8 = scalar_lea.vmem %s189_s9, 131072  ;;  %p10604_p5 = scmp.lt.s32.totalorder %s189_s9, %s189_s9 }
  0x2b   : > { %p10597_p7 = scmp.ne.s32.totalorder %s189_s9, %s10596_s8  ;;  %p10605_p8 = scmp.lt.s32.totalorder %s10596_s8, %s10596_s8 }
  0x2d   : > { %p10599_p9 = pnand %p10597_p7, %p10914_p0  ;;  %p10606_p10 = por %p10605_p8, %p10604_p5 }
  0x2f   : > { %p10600_p11 = pneg %p10599_p9 }
  0x31   : > { %p10607_p3 = pnand %p10606_p10, %p10600_p11 }
  0x33   : > { %10610 = shalt.err (!%p10607_p3)
}
  0x34   : > { %s10787_s11 = smov 512   ;;  %s10788_s13 = smov 32  }
  0x35   : > { %10498 = dma.hbm_to_vmem [thread:$0]  (!%p10900_p12), %s11690_s1, 131072, %s189_s9, [#allocation7], %s10787_s11, %s10787_s11, %s10788_s13  }
  0x36   : > { %s10611_s26 = scalar_lea.hbm %s11670_s3, 16384 }
  0x37   : > { %p10612_p13 = scmp.ne.s32.totalorder %s11670_s3, %s10611_s26  ;;  %p10618_p8 = scmp.lt.u32.totalorder %s10611_s26, %s11670_s3 }
  0x39   : > { %p10614_p5 = pnand %p10612_p13, %p10914_p0 }
  0x3b   : > { %p10615_p3 = pneg %p10614_p5 }
  0x3d   : > { %p10620_p10 = pnand %p10618_p8, %p10615_p3 }
  0x3f   : > { %10623 = shalt.err (!%p10620_p10)
}
  0x40   : > { %s10624_s9 = scalar_lea.vmem %s10904_s12, 16384  ;;  %p10632_p6 = scmp.lt.s32.totalorder %s10904_s12, %s10904_s12 }
  0x41   : > { %p10625_p1 = scmp.ne.s32.totalorder %s10904_s12, %s10624_s9  ;;  %p10633_p7 = scmp.lt.s32.totalorder %s10624_s9, %s10624_s9 }
  0x43   : > { %p10627_p2 = pnand %p10625_p1, %p10914_p0  ;;  %p10634_p9 = por %p10633_p7, %p10632_p6 }
  0x45   : > { %p10628_p4 = pneg %p10627_p2 }
  0x47   : > { %p10635_p11 = pnand %p10634_p9, %p10628_p4 }
  0x49   : > { %10638 = shalt.err (!%p10635_p11)
}
  0x4a   : > { %s10789_s24 = smov 128   ;;  %s10790_s25 = smov 8  }
  0x4b   : > { %10504 = dma.hbm_to_vmem [thread:$0]  (!%p10900_p12), %s11670_s3, 16384, %s10904_s12, [#allocation10], %s10789_s24, %s10789_s24, %s10790_s25  }
  0x4c   : > { %s10791_s14 = smov [#allocation8]   ;;  %s10792_s16 = smov [#allocation11]  }
  0x4d   : > { %s202_s15 = sshll.u32 %s10791_s14, 4  ;;  %s226_s17 = sshll.u32 %s10792_s16, 4  ;;  %s203_s15 = int_to_ptr.vmem [resolvable:$true] %s202_s15  ;;  %s227_s17 = int_to_ptr.vmem [resolvable:$true] %s226_s17 }
  0x4e   : > { %s10639_s8 = scalar_lea.hbm %s11669_s2, 128 }
  0x4f   : > { %p10640_p13 = scmp.ne.s32.totalorder %s11669_s2, %s10639_s8  ;;  %p10646_p8 = scmp.lt.u32.totalorder %s10639_s8, %s11669_s2 }
  0x51   : > { %p10642_p5 = pnand %p10640_p13, %p10914_p0 }
  0x53   : > { %p10643_p3 = pneg %p10642_p5 }
  0x55   : > { %p10648_p10 = pnand %p10646_p8, %p10643_p3 }
  0x57   : > { %10651 = shalt.err (!%p10648_p10)
}
  0x58   : > { %s10652_s12 = scalar_lea.vmem %s203_s15, 128  ;;  %p10660_p6 = scmp.lt.s32.totalorder %s203_s15, %s203_s15 }
  0x59   : > { %p10653_p1 = scmp.ne.s32.totalorder %s203_s15, %s10652_s12  ;;  %p10661_p7 = scmp.lt.s32.totalorder %s10652_s12, %s10652_s12 }
  0x5b   : > { %p10655_p2 = pnand %p10653_p1, %p10914_p0  ;;  %p10662_p9 = por %p10661_p7, %p10660_p6 }
  0x5d   : > { %p10656_p4 = pneg %p10655_p2 }
  0x5f   : > { %p10663_p11 = pnand %p10662_p9, %p10656_p4 }
  0x61   : > { %10666 = shalt.err (!%p10663_p11)
}
  0x62   : > { %10501 = dma.hbm_to_vmem [thread:$0]  (!%p10900_p12), %s11669_s2, 128, %s203_s15, [#allocation7]  }
  0x63   : > { %s10667_s25 = scalar_lea.hbm %s11671_s4, 16 }
  0x64   : > { %p10668_p13 = scmp.ne.s32.totalorder %s11671_s4, %s10667_s25  ;;  %p10674_p8 = scmp.lt.u32.totalorder %s10667_s25, %s11671_s4 }
  0x66   : > { %p10670_p5 = pnand %p10668_p13, %p10914_p0 }
  0x68   : > { %p10671_p3 = pneg %p10670_p5 }
  0x6a   : > { %p10676_p10 = pnand %p10674_p8, %p10671_p3 }
  0x6c   : > { %10679 = shalt.err (!%p10676_p10)
}
  0x6d   : > { %s10680_s26 = scalar_lea.vmem %s227_s17, 16  ;;  %s10687_s15 = scalar_lea.vmem %s227_s17, 32 }
  0x6e   : > { %p10681_p1 = scmp.ne.s32.totalorder %s227_s17, %s10680_s26  ;;  %p10688_p6 = scmp.lt.s32.totalorder %s227_s17, %s227_s17 }
  0x6f   : > { %p10689_p7 = scmp.lt.s32.totalorder %s10687_s15, %s10680_s26 }
  0x70   : > { %p10683_p2 = pnand %p10681_p1, %p10914_p0 }
  0x71   : > { %p10690_p9 = por %p10689_p7, %p10688_p6 }
  0x72   : > { %p10684_p4 = pneg %p10683_p2 }
  0x74   : > { %p10691_p11 = pnand %p10690_p9, %p10684_p4 }
  0x76   : > { %10694 = shalt.err (!%p10691_p11)
}
  0x77   : > { %10507 = dma.hbm_to_vmem [thread:$0]  (!%p10900_p12), %s11671_s4, 16, %s227_s17, [#allocation10]  }
  0x78   : > { %p9034_p13 = scmp.ge.s32.totalorder %s10783_s23, 3 }
  0x7a   : > { %233 = sbr.rel (%p9034_p13) target bundleno = 144 (0x90), region = 32 }
  0x81   : > { %s237_s18 = sand.u32 1, %s10771_s20   ;;  %s10077_s9 = sshll.u32 %s10779_s22, 11 }
  0x82   : > { %s9035_s12 = sshll.u32 %s237_s18, 8  ;;  %s250_s24 = scalar_lea.hbm %s11667_s0, %s10077_s9 }
  0x83   : > { %p11692_p0 = scmp.ne.s32.totalorder %s11684_s27, 0  ;;  %s241_s5 = scalar_lea.vmem [#allocation3], %s9035_s12 }
  0x84   : > { %s263_s6 = sshll.u32 %s241_s5, 4  ;;  %s10793_s11 = smov 6144   ;;  %s264_s6 = int_to_ptr.vmem [resolvable:$true] %s263_s6 }
  0x85   : > { %s10474_s17 = scalar_select %p11692_p0, [#allocation0], [#allocation15] }
  0x86   : > { %10475 = sst [smem:[#allocation14]] (%p11692_p0), %s10793_s11  ;;  %s10794_s13 = smov 2048  }
  0x87   : > { %s255_s25 = sld [smem:[%s10474_s17]]   ;;  %s10795_s14 = smov 2  }
  0x88   : > { %10476 = sst [smem:[#allocation14 + $0x1]] (%p11692_p0), %s10794_s13  ;;  %s10796_s16 = smov 1024  }
  0x89   : > { %10477 = sst [smem:[#allocation14 + $0x2]] (%p11692_p0), %s10795_s14  ;;  %s10797_s15 = smov 64  }
  0x8a   : > { %10478 = sst [smem:[#allocation14 + $0x3]] (%p11692_p0), %s10796_s16  ;;  %s238_s8 = scalar_lea.sflag [#allocation4], %s237_s18 }
  0x8b   : > { %10479 = sst [smem:[#allocation14 + $0x4]] (%p11692_p0), %s10796_s16  ;;  %s10798_s9 = smov [#allocation13]  }
  0x8c   : > { %10480 = sst [smem:[#allocation14 + $0x5]] (%p11692_p0), %s10797_s15 }
  0x8d   : > { %s9038_s26 = sshll.u32 %s255_s25, 26 }
  0x8e   : > { %s9039_s28 = sadd.s32 134217728, %s9038_s26 }
  0x8f   : > { %10481 = dma.general (%p11692_p0), %s250_s24, 4096, %s264_s6, %s238_s8, %s10798_s9, [#allocation14], %s9039_s28, 0  }
  0x90 PF: > { %p11693_p12 = scmp.ne.s32.totalorder %s11688_s7, 0 }
  0x91   : > { %s290_s12 = sand.u32 (!%p11693_p12), 1, %s10767_s19   ;;  %p11694_p5 = scmp.ne.s32.totalorder (!%p11693_p12), %s11686_s30, 0 }
  0x92   : > { %288 = sbr.rel (%p11693_p12) target bundleno = 1743 (0x6cf), region = 40  ;;  %s9041_s1 = sshll.u32 (!%p11693_p12), %s290_s12, 8 }
  0x93   : > { %s291_s10 = scalar_lea.sflag (!%p11693_p12), [#allocation4], %s290_s12  ;;  %s11014_s17 = scalar_lea.vmem (!%p11693_p12), [#allocation3], %s9041_s1 }
  0x99   : > { %10746 = dma.done.wait (%p11694_p5), %s291_s10, 4096  }
  0x9a   : > { %10748 = vsyncadd (%p11694_p5), %s291_s10, 4294963200  ;;  %p11695_p3 = scmp.ne.s32.totalorder %s11685_s29, 0 }
  0x9c   : > { %10750 = dma.done.wait (%p11695_p3), [#allocation7], 131200  }
  0x9d   : > { %10752 = vsyncadd (%p11695_p3), [#allocation7], 4294836096 }
  0x9e   : > { %10754 = dma.done.wait (%p11695_p3), [#allocation10], 16400  }
  0x9f   : > { %10756 = vsyncadd (%p11695_p3), [#allocation10], 4294950896  ;;  %v11029_v0 = vld [vmem:[%s11014_s17] sm:$0xff]  ;;  %v11032_v1 = vld [vmem:[%s11014_s17 + $0x8] sm:$0xff]  ;;  %p9046_p8 = scmp.ne.s32.totalorder %s10775_s21, 0 }
  0xa0   : > { %v11035_v2 = vld [vmem:[%s11014_s17 + $0x10] sm:$0xff]  ;;  %v11038_v3 = vld [vmem:[%s11014_s17 + $0x18] sm:$0xff]  ;;  %v11041_v4 = vld [vmem:[%s11014_s17 + $0x20] sm:$0xff]  ;;  %v365_v6 = vunpack.c.l.bf16 %v11029_v0  ;;  %v366_v7 = vunpack.c.h.bf16 %v11029_v0  ;;  %v367_v8 = vunpack.c.l.bf16 %v11032_v1  ;;  %v368_v9 = vunpack.c.h.bf16 %v11032_v1 }
  0xa1   : > { %v11044_v5 = vld [vmem:[%s11014_s17 + $0x28] sm:$0xff]  ;;  %v11051_v10 = vld [vmem:[%s11014_s17 + $0x30] sm:$0xff]  ;;  %v11054_v11 = vld [vmem:[%s11014_s17 + $0x38] sm:$0xff]  ;;  %v369_v13 = vunpack.c.l.bf16 %v11035_v2  ;;  %v370_v14 = vunpack.c.h.bf16 %v11035_v2  ;;  %v371_v15 = vunpack.c.l.bf16 %v11038_v3  ;;  %v372_v16 = vunpack.c.h.bf16 %v11038_v3 }
  0xa2   : > { %v11057_v12 = vld [vmem:[%s11014_s17 + $0x40] sm:$0xff]  ;;  %v11064_v17 = vld [vmem:[%s11014_s17 + $0x48] sm:$0xff]  ;;  %v11067_v18 = vld [vmem:[%s11014_s17 + $0x50] sm:$0xff]  ;;  %v373_v20 = vunpack.c.l.bf16 %v11041_v4  ;;  %v374_v21 = vunpack.c.h.bf16 %v11041_v4  ;;  %v11703_v4 = vunpack.c.h.bf16 %v11051_v10 }
  0xa3   : > { %v11070_v19 = vld [vmem:[%s11014_s17 + $0x58] sm:$0xff]  ;;  %v11077_v24 = vld [vmem:[%s11014_s17 + $0x60] sm:$0xff]  ;;  %v11080_v25 = vld [vmem:[%s11014_s17 + $0x68] sm:$0xff]  ;;  %v381_v32 = vunpack.c.l.bf16 %v11057_v12  ;;  %v382_v33 = vunpack.c.h.bf16 %v11057_v12  ;;  %v383_v34 = vunpack.c.l.bf16 %v11064_v17  ;;  %v384_v35 = vunpack.c.h.bf16 %v11064_v17 }
  0xa4   : > { %v11087_v30 = vld [vmem:[%s11014_s17 + $0x70] sm:$0xff]  ;;  %v11090_v31 = vld [vmem:[%s11014_s17 + $0x78] sm:$0xff]  ;;  %v11097_v36 = vld [vmem:[%s11014_s17 + $0x80] sm:$0xff]  ;;  %v385_v38 = vunpack.c.l.bf16 %v11067_v18  ;;  %v386_v39 = vunpack.c.h.bf16 %v11067_v18  ;;  %v387_v40 = vunpack.c.l.bf16 %v11070_v19  ;;  %v388_v41 = vunpack.c.h.bf16 %v11070_v19 }
  0xa5   : > { %v11100_v37 = vld [vmem:[%s11014_s17 + $0x88] sm:$0xff]  ;;  %v11107_v42 = vld [vmem:[%s11014_s17 + $0x90] sm:$0xff]  ;;  %v11110_v43 = vld [vmem:[%s11014_s17 + $0x98] sm:$0xff]  ;;  %v389_v44 = vunpack.c.l.bf16 %v11077_v24  ;;  %v390_v45 = vunpack.c.h.bf16 %v11077_v24  ;;  %v429_v52 = vmax.f32 %v365_v6, %v381_v32  ;;  %v436_v29 = vmax.f32 %v366_v7, %v382_v33 }
  0xa6   : > { %v11117_v48 = vld [vmem:[%s11014_s17 + $0xa0] sm:$0xff]  ;;  %v11120_v49 = vld [vmem:[%s11014_s17 + $0xa8] sm:$0xff]  ;;  %v11127_v54 = vld [vmem:[%s11014_s17 + $0xb0] sm:$0xff]  ;;  %v443_v58 = vmax.f32 %v367_v8, %v383_v34  ;;  %v450_v19 = vmax.f32 %v368_v9, %v384_v35  ;;  %v457_v18 = vmax.f32 %v369_v13, %v385_v38  ;;  %v464_v6 = vmax.f32 %v370_v14, %v386_v39 }
  0xa7   : > { %v11130_v55 = vld [vmem:[%s11014_s17 + $0xb8] sm:$0xff]  ;;  %v11137_v60 = vld [vmem:[%s11014_s17 + $0xc0] sm:$0xff]  ;;  %v11140_v61 = vld [vmem:[%s11014_s17 + $0xc8] sm:$0xff]  ;;  %v471_v0 = vmax.f32 %v371_v15, %v387_v40  ;;  %v478_v7 = vmax.f32 %v372_v16, %v388_v41  ;;  %v430_v12 = vrot.slane %v429_v52, 4  ;;  %v437_v32 = vrot.slane %v436_v29, 4 }
  0xa8   : > { %v11147_v57 = vld [vmem:[%s11014_s17 + $0xd0] sm:$0xff]  ;;  %v11150_v56 = vld [vmem:[%s11014_s17 + $0xd8] sm:$0xff]  ;;  %v11157_v53 = vld [vmem:[%s11014_s17 + $0xe0] sm:$0xff]  ;;  %v444_v8 = vrot.slane %v443_v58, 4  ;;  %v451_v33 = vrot.slane %v450_v19, 4  ;;  %v458_v17 = vrot.slane %v457_v18, 4  ;;  %v11702_v24 = vunpack.c.h.bf16 %v11087_v30 }
  0xa9   : > { %v11160_v63 = vld [vmem:[%s11014_s17 + $0xe8] sm:$0xff]  ;;  %v11167_v27 = vld [vmem:[%s11014_s17 + $0xf0] sm:$0xff]  ;;  %v11170_v59 = vld [vmem:[%s11014_s17 + $0xf8] sm:$0xff]  ;;  %v465_v34 = vrot.slane %v464_v6, 4  ;;  %v472_v1 = vrot.slane %v471_v0, 4  ;;  %v479_v9 = vrot.slane %v478_v7, 4  ;;  %v431_v35 = vmax.f32 %v429_v52, %v430_v12 }
  0xaa   : > { %v438_v51 = vmax.f32 %v436_v29, %v437_v32  ;;  %v445_v13 = vmax.f32 %v443_v58, %v444_v8  ;;  %v452_v38 = vmax.f32 %v450_v19, %v451_v33  ;;  %v459_v2 = vmax.f32 %v457_v18, %v458_v17 }
  0xab   : > { %v466_v14 = vmax.f32 %v464_v6, %v465_v34  ;;  %v473_v39 = vmax.f32 %v471_v0, %v472_v1  ;;  %v480_v62 = vmax.f32 %v478_v7, %v479_v9  ;;  %v432_v15 = vrot.slane %v431_v35, 2 }
  0xac   : > { %v439_v40 = vrot.slane %v438_v51, 2  ;;  %v446_v3 = vrot.slane %v445_v13, 2  ;;  %v453_v16 = vrot.slane %v452_v38, 2  ;;  %v460_v41 = vrot.slane %v459_v2, 2 }
  0xad   : > { %v467_v50 = vrot.slane %v466_v14, 2  ;;  %v474_v26 = vrot.slane %v473_v39, 2  ;;  %v481_v28 = vrot.slane %v480_v62, 2  ;;  %v433_v23 = vmax.f32 %v431_v35, %v432_v15 }
  0xae   : > { %v440_v47 = vmax.f32 %v438_v51, %v439_v40  ;;  %v447_v22 = vmax.f32 %v445_v13, %v446_v3  ;;  %v454_v46 = vmax.f32 %v452_v38, %v453_v16  ;;  %v461_v52 = vmax.f32 %v459_v2, %v460_v41 }
  0xaf   : > { %v468_v29 = vmax.f32 %v466_v14, %v467_v50  ;;  %v475_v58 = vmax.f32 %v473_v39, %v474_v26  ;;  %v482_v19 = vmax.f32 %v480_v62, %v481_v28  ;;  %v434_v18 = vrot.slane %v433_v23, 1 }
  0xb0   : > { %v441_v6 = vrot.slane %v440_v47, 1  ;;  %v448_v0 = vrot.slane %v447_v22, 1  ;;  %v455_v7 = vrot.slane %v454_v46, 1  ;;  %v462_v12 = vrot.slane %v461_v52, 1 }
  0xb1   : > { %v469_v32 = vrot.slane %v468_v29, 1  ;;  %v476_v8 = vrot.slane %v475_v58, 1  ;;  %v483_v33 = vrot.slane %v482_v19, 1  ;;  %v11212_v17 = vmax.f32 %v433_v23, %v434_v18 }
  0xb2   : > { %v11214_v34 = vmax.f32 %v440_v47, %v441_v6  ;;  %v11216_v1 = vmax.f32 %v447_v22, %v448_v0  ;;  %v11218_v51 = vmax.f32 %v454_v46, %v455_v7  ;;  %v11220_v9 = vmax.f32 %v461_v52, %v462_v12 }
  0xb3   : > { %v11222_v26 = vmax.f32 %v468_v29, %v469_v32  ;;  %v11224_v28 = vmax.f32 %v475_v58, %v476_v8  ;;  %v11226_v50 = vmax.f32 %v482_v19, %v483_v33  ;;  %v485_v23 = vmax.f32 %v373_v20, %v389_v44 }
  0xb4   : > { %v492_v22 = vmax.f32 %v374_v21, %v390_v45  ;;  %v11696_v46 = vunpack.c.l.bf16 %v11080_v25  ;;  %v11697_v47 = vunpack.c.l.bf16 %v11044_v5  ;;  %v11698_v35 = vunpack.c.h.bf16 %v11080_v25 }
  0xb5   : > { %v11699_v13 = vunpack.c.h.bf16 %v11044_v5  ;;  %v11700_v2 = vunpack.c.l.bf16 %v11087_v30  ;;  %v11701_v14 = vunpack.c.l.bf16 %v11051_v10  ;;  %v520_v21 = vmax.f32 %v11703_v4, %v11702_v24 }
  0xb6   : > { %v499_v62 = vmax.f32 %v11697_v47, %v11696_v46  ;;  %v11704_v44 = vunpack.c.l.bf16 %v11090_v31  ;;  %v11705_v45 = vunpack.c.l.bf16 %v11054_v11  ;;  %v11706_v25 = vunpack.c.h.bf16 %v11090_v31 }
  0xb7   : > { %v506_v38 = vmax.f32 %v11699_v13, %v11698_v35  ;;  %v513_v20 = vmax.f32 %v11701_v14, %v11700_v2  ;;  %v11707_v5 = vunpack.c.h.bf16 %v11054_v11  ;;  %v486_v40 = vrot.slane %v485_v23, 4 }
  0xb8   : > { %v527_v39 = vmax.f32 %v11705_v45, %v11704_v44  ;;  %v493_v3 = vrot.slane %v492_v22, 4  ;;  %v500_v16 = vrot.slane %v499_v62, 4  ;;  %v521_v29 = vrot.slane %v520_v21, 4 }
  0xb9   : > { %v534_v15 = vmax.f32 %v11707_v5, %v11706_v25  ;;  %v507_v41 = vrot.slane %v506_v38, 4  ;;  %v514_v52 = vrot.slane %v513_v20, 4  ;;  %v487_v10 = vmax.f32 %v485_v23, %v486_v40 }
  0xba   : > { %v528_v30 = vrot.slane %v527_v39, 4  ;;  %v494_v19 = vmax.f32 %v492_v22, %v493_v3  ;;  %v501_v18 = vmax.f32 %v499_v62, %v500_v16  ;;  %v522_v7 = vmax.f32 %v520_v21, %v521_v29 }
  0xbb   : > { %v535_v58 = vrot.slane %v534_v15, 4  ;;  %v508_v6 = vmax.f32 %v506_v38, %v507_v41  ;;  %v515_v0 = vmax.f32 %v513_v20, %v514_v52  ;;  %v488_v31 = vrot.slane %v487_v10, 2 }
  0xbc   : > { %v529_v12 = vmax.f32 %v527_v39, %v528_v30  ;;  %v495_v8 = vrot.slane %v494_v19, 2  ;;  %v502_v11 = vrot.slane %v501_v18, 2  ;;  %v523_v47 = vrot.slane %v522_v7, 2 }
  0xbd   : > { %v536_v32 = vmax.f32 %v534_v15, %v535_v58  ;;  %v509_v33 = vrot.slane %v508_v6, 2  ;;  %v516_v46 = vrot.slane %v515_v0, 2  ;;  %v489_v2 = vmax.f32 %v487_v10, %v488_v31 }
  0xbe   : > { %v530_v35 = vrot.slane %v529_v12, 2  ;;  %v496_v14 = vmax.f32 %v494_v19, %v495_v8  ;;  %v503_v24 = vmax.f32 %v501_v18, %v502_v11  ;;  %v524_v22 = vmax.f32 %v522_v7, %v523_v47 }
  0xbf   : > { %v537_v13 = vrot.slane %v536_v32, 2  ;;  %v510_v4 = vmax.f32 %v508_v6, %v509_v33  ;;  %v517_v23 = vmax.f32 %v515_v0, %v516_v46  ;;  %v490_v20 = vrot.slane %v489_v2, 1 }
  0xc0   : > { %v531_v62 = vmax.f32 %v529_v12, %v530_v35  ;;  %v497_v21 = vrot.slane %v496_v14, 1  ;;  %v504_v44 = vrot.slane %v503_v24, 1  ;;  %v525_v25 = vrot.slane %v524_v22, 1 }
  0xc1   : > { %v538_v38 = vmax.f32 %v536_v32, %v537_v13  ;;  %v511_v45 = vrot.slane %v510_v4, 1  ;;  %v518_v39 = vrot.slane %v517_v23, 1  ;;  %v11260_v40 = vmax.f32 %v489_v2, %v490_v20 }
  0xc2   : > { %v532_v5 = vrot.slane %v531_v62, 1  ;;  %v11262_v3 = vmax.f32 %v496_v14, %v497_v21  ;;  %v11264_v16 = vmax.f32 %v503_v24, %v504_v44  ;;  %v11270_v29 = vmax.f32 %v524_v22, %v525_v25 }
  0xc3   : > { %v539_v15 = vrot.slane %v538_v38, 1  ;;  %v11266_v41 = vmax.f32 %v510_v4, %v511_v45  ;;  %v11268_v52 = vmax.f32 %v517_v23, %v518_v39  ;;  %v11708_v10 = vunpack.c.l.bf16 %v11137_v60 }
  0xc4   : > { %v11272_v30 = vmax.f32 %v531_v62, %v532_v5  ;;  %v11709_v19 = vunpack.c.l.bf16 %v11097_v36  ;;  %v11710_v6 = vunpack.c.h.bf16 %v11137_v60  ;;  %v11711_v0 = vunpack.c.h.bf16 %v11097_v36 }
  0xc5   : > { %v11274_v58 = vmax.f32 %v538_v38, %v539_v15  ;;  %v11712_v12 = vunpack.c.l.bf16 %v11140_v61  ;;  %v11713_v32 = vunpack.c.l.bf16 %v11100_v37  ;;  %v11714_v8 = vunpack.c.h.bf16 %v11140_v61 }
  0xc6   : > { %v541_v18 = vmax.f32 %v11709_v19, %v11708_v10  ;;  %v548_v7 = vmax.f32 %v11711_v0, %v11710_v6  ;;  %v11715_v11 = vunpack.c.h.bf16 %v11100_v37  ;;  %v11716_v46 = vunpack.c.l.bf16 %v11147_v57 }
  0xc7   : > { %v555_v31 = vmax.f32 %v11713_v32, %v11712_v12  ;;  %v11717_v47 = vunpack.c.l.bf16 %v11107_v42  ;;  %v11718_v60 = vunpack.c.h.bf16 %v11147_v57  ;;  %v11719_v36 = vunpack.c.h.bf16 %v11107_v42 }
  0xc8   : > { %v562_v33 = vmax.f32 %v11715_v11, %v11714_v8  ;;  %v11720_v2 = vunpack.c.l.bf16 %v11150_v56  ;;  %v11721_v14 = vunpack.c.l.bf16 %v11110_v43  ;;  %v11722_v61 = vunpack.c.h.bf16 %v11150_v56 }
  0xc9   : > { %v569_v35 = vmax.f32 %v11717_v47, %v11716_v46  ;;  %v576_v13 = vmax.f32 %v11719_v36, %v11718_v60  ;;  %v11723_v37 = vunpack.c.h.bf16 %v11110_v43  ;;  %v542_v23 = vrot.slane %v541_v18, 4 }
  0xca   : > { %v583_v24 = vmax.f32 %v11721_v14, %v11720_v2  ;;  %v549_v22 = vrot.slane %v548_v7, 4  ;;  %v556_v62 = vrot.slane %v555_v31, 4  ;;  %v563_v38 = vrot.slane %v562_v33, 4 }
  0xcb   : > { %v590_v4 = vmax.f32 %v11723_v37, %v11722_v61  ;;  %v570_v20 = vrot.slane %v569_v35, 4  ;;  %v577_v21 = vrot.slane %v576_v13, 4  ;;  %v543_v42 = vmax.f32 %v541_v18, %v542_v23 }
  0xcc   : > { %v584_v57 = vrot.slane %v583_v24, 4  ;;  %v550_v45 = vmax.f32 %v548_v7, %v549_v22  ;;  %v557_v39 = vmax.f32 %v555_v31, %v556_v62  ;;  %v564_v25 = vmax.f32 %v562_v33, %v563_v38 }
  0xcd   : > { %v591_v44 = vrot.slane %v590_v4, 4  ;;  %v571_v5 = vmax.f32 %v569_v35, %v570_v20  ;;  %v578_v15 = vmax.f32 %v576_v13, %v577_v21  ;;  %v544_v56 = vrot.slane %v543_v42, 2 }
  0xce   : > { %v585_v10 = vmax.f32 %v583_v24, %v584_v57  ;;  %v551_v6 = vrot.slane %v550_v45, 2  ;;  %v558_v43 = vrot.slane %v557_v39, 2  ;;  %v565_v0 = vrot.slane %v564_v25, 2 }
  0xcf   : > { %v592_v19 = vmax.f32 %v590_v4, %v591_v44  ;;  %v572_v12 = vrot.slane %v571_v5, 2  ;;  %v579_v32 = vrot.slane %v578_v15, 2  ;;  %v545_v46 = vmax.f32 %v543_v42, %v544_v56 }
  0xd0   : > { %v586_v8 = vrot.slane %v585_v10, 2  ;;  %v552_v47 = vmax.f32 %v550_v45, %v551_v6  ;;  %v559_v60 = vmax.f32 %v557_v39, %v558_v43  ;;  %v566_v36 = vmax.f32 %v564_v25, %v565_v0 }
  0xd1   : > { %v593_v11 = vrot.slane %v592_v19, 2  ;;  %v573_v18 = vmax.f32 %v571_v5, %v572_v12  ;;  %v580_v7 = vmax.f32 %v578_v15, %v579_v32  ;;  %v546_v35 = vrot.slane %v545_v46, 1 }
  0xd2   : > { %v587_v31 = vmax.f32 %v585_v10, %v586_v8  ;;  %v553_v13 = vrot.slane %v552_v47, 1  ;;  %v560_v2 = vrot.slane %v559_v60, 1  ;;  %v567_v14 = vrot.slane %v566_v36, 1 }
  0xd3   : > { %v594_v33 = vmax.f32 %v592_v19, %v593_v11  ;;  %v574_v24 = vrot.slane %v573_v18, 1  ;;  %v581_v61 = vrot.slane %v580_v7, 1  ;;  %v11308_v23 = vmax.f32 %v545_v46, %v546_v35 }
  0xd4   : > { %v588_v37 = vrot.slane %v587_v31, 1  ;;  %v11310_v22 = vmax.f32 %v552_v47, %v553_v13  ;;  %v11312_v62 = vmax.f32 %v559_v60, %v560_v2  ;;  %v11314_v38 = vmax.f32 %v566_v36, %v567_v14 }
  0xd5   : > { %v595_v4 = vrot.slane %v594_v33, 1  ;;  %v11316_v20 = vmax.f32 %v573_v18, %v574_v24  ;;  %v11318_v21 = vmax.f32 %v580_v7, %v581_v61  ;;  %v11724_v42 = vunpack.c.l.bf16 %v11157_v53 }
  0xd6   : > { %v11320_v57 = vmax.f32 %v587_v31, %v588_v37  ;;  %v11725_v45 = vunpack.c.l.bf16 %v11117_v48  ;;  %v11726_v25 = vunpack.c.h.bf16 %v11157_v53  ;;  %v11727_v5 = vunpack.c.h.bf16 %v11117_v48 }
  0xd7   : > { %v11322_v44 = vmax.f32 %v594_v33, %v595_v4  ;;  %v11728_v10 = vunpack.c.l.bf16 %v11160_v63  ;;  %v11729_v19 = vunpack.c.l.bf16 %v11120_v49  ;;  %v11730_v6 = vunpack.c.h.bf16 %v11160_v63 }
  0xd8   : > { %v597_v39 = vmax.f32 %v11725_v45, %v11724_v42  ;;  %v604_v15 = vmax.f32 %v11727_v5, %v11726_v25  ;;  %v11731_v43 = vunpack.c.h.bf16 %v11120_v49  ;;  %v11732_v12 = vunpack.c.l.bf16 %v11167_v27 }
  0xd9   : > { %v611_v56 = vmax.f32 %v11729_v19, %v11728_v10  ;;  %v11733_v32 = vunpack.c.l.bf16 %v11127_v54  ;;  %v11734_v53 = vunpack.c.h.bf16 %v11167_v27  ;;  %v11735_v48 = vunpack.c.h.bf16 %v11127_v54 }
  0xda   : > { %v618_v0 = vmax.f32 %v11731_v43, %v11730_v6  ;;  %v11736_v46 = vunpack.c.l.bf16 %v11170_v59  ;;  %v11737_v47 = vunpack.c.l.bf16 %v11130_v55  ;;  %v11738_v63 = vunpack.c.h.bf16 %v11170_v59 }
  0xdb   : > { %v625_v8 = vmax.f32 %v11733_v32, %v11732_v12  ;;  %v632_v11 = vmax.f32 %v11735_v48, %v11734_v53  ;;  %v11739_v49 = vunpack.c.h.bf16 %v11130_v55  ;;  %v598_v18 = vrot.slane %v597_v39, 4 }
  0xdc   : > { %v639_v60 = vmax.f32 %v11737_v47, %v11736_v46  ;;  %v605_v7 = vrot.slane %v604_v15, 4  ;;  %v612_v31 = vrot.slane %v611_v56, 4  ;;  %v619_v33 = vrot.slane %v618_v0, 4 }
  0xdd   : > { %v646_v36 = vmax.f32 %v11739_v49, %v11738_v63  ;;  %v626_v35 = vrot.slane %v625_v8, 4  ;;  %v633_v13 = vrot.slane %v632_v11, 4  ;;  %v599_v54 = vmax.f32 %v597_v39, %v598_v18 }
  0xde   : > { %v640_v27 = vrot.slane %v639_v60, 4  ;;  %v606_v14 = vmax.f32 %v604_v15, %v605_v7  ;;  %v613_v24 = vmax.f32 %v611_v56, %v612_v31  ;;  %v620_v61 = vmax.f32 %v618_v0, %v619_v33 }
  0xdf   : > { %v647_v2 = vrot.slane %v646_v36, 4  ;;  %v627_v37 = vmax.f32 %v625_v8, %v626_v35  ;;  %v634_v4 = vmax.f32 %v632_v11, %v633_v13  ;;  %v600_v59 = vrot.slane %v599_v54, 2 }
  0xe0   : > { %v641_v42 = vmax.f32 %v639_v60, %v640_v27  ;;  %v607_v25 = vrot.slane %v606_v14, 2  ;;  %v614_v55 = vrot.slane %v613_v24, 2  ;;  %v621_v5 = vrot.slane %v620_v61, 2 }
  0xe1   : > { %v648_v45 = vmax.f32 %v646_v36, %v647_v2  ;;  %v628_v10 = vrot.slane %v627_v37, 2  ;;  %v635_v19 = vrot.slane %v634_v4, 2  ;;  %v601_v12 = vmax.f32 %v599_v54, %v600_v59 }
  0xe2   : > { %v642_v6 = vrot.slane %v641_v42, 2  ;;  %v608_v32 = vmax.f32 %v606_v14, %v607_v25  ;;  %v615_v53 = vmax.f32 %v613_v24, %v614_v55  ;;  %v622_v48 = vmax.f32 %v620_v61, %v621_v5 }
  0xe3   : > { %v649_v43 = vrot.slane %v648_v45, 2  ;;  %v629_v39 = vmax.f32 %v627_v37, %v628_v10  ;;  %v636_v15 = vmax.f32 %v634_v4, %v635_v19  ;;  %v602_v8 = vrot.slane %v601_v12, 1  ;;  %656 = sbr.rel (%p9046_p8) target bundleno = 234 (0xea), region = 64 }
  0xe4   : > { %v643_v56 = vmax.f32 %v641_v42, %v642_v6  ;;  %v609_v11 = vrot.slane %v608_v32, 1  ;;  %v616_v46 = vrot.slane %v615_v53, 1  ;;  %v623_v47 = vrot.slane %v622_v48, 1 }
  0xe5   : > { %v650_v0 = vmax.f32 %v648_v45, %v649_v43  ;;  %v630_v60 = vrot.slane %v629_v39, 1  ;;  %v637_v63 = vrot.slane %v636_v15, 1  ;;  %v603_v18 = vmax.f32 %v601_v12, %v602_v8 }
  0xe6   : > { %v644_v49 = vrot.slane %v643_v56, 1  ;;  %v610_v7 = vmax.f32 %v608_v32, %v609_v11  ;;  %v617_v31 = vmax.f32 %v615_v53, %v616_v46  ;;  %v624_v33 = vmax.f32 %v622_v48, %v623_v47 }
  0xe7   : > { %v651_v36 = vrot.slane %v650_v0, 1  ;;  %v631_v35 = vmax.f32 %v629_v39, %v630_v60  ;;  %v638_v13 = vmax.f32 %v636_v15, %v637_v63  ;;  %v10799_v54 = vmov (!%p9046_p8), 0.0  }
  0xe8   : > { %v645_v27 = vmax.f32 %v643_v56, %v644_v49  ;;  %657 = vst [vmem:[#allocation2] sm:$0xff] (!%p9046_p8), %v10799_v54  ;;  %658 = vst [vmem:[#allocation2 + $0x8] sm:$0xff] (!%p9046_p8), %v10799_v54 }
  0xe9   : > { %v652_v2 = vmax.f32 %v650_v0, %v651_v36  ;;  %659 = vst [vmem:[#allocation2 + $0x10] sm:$0xff] (!%p9046_p8), %v10799_v54  ;;  %660 = vst [vmem:[#allocation2 + $0x18] sm:$0xff] (!%p9046_p8), %v10799_v54 }
  0xea PF: > { %v702_v14 = vlaneseq  ;;  %v697_v24 = vcombine.low %v11212_v17, %v11214_v34  ;;  %v10800_v61 = vmov 1983009808   ;;  %v698_v4 = vcombine.low %v11216_v1, %v11218_v51  ;;  %p9047_p10 = scmp.ne.s32.totalorder %s10775_s21, 2 }
  0xeb   : > { %v700_v37 = vunpack.c.l.s4 %v10800_v61  ;;  %v765_v45 = vcombine.low %v11308_v23, %v11310_v22  ;;  %v766_v59 = vcombine.low %v11312_v62, %v11314_v38  ;;  %vm838_vm0 = vcmask 1041409  }
  0xec   : > { %v11361_v42 = vshrl.u32 %v702_v14, 7  ;;  %vm840_vm1 = vcmask 1043459   ;;  %v714_v55 = vcombine.low %v11220_v9, %v11222_v26  ;;  %vm842_vm2 = vcmask 1045509  }
  0xed   : > { %v701_v25 = vunpack.c.0.s8 %v700_v37  ;;  %v715_v17 = vcombine.low %v11224_v28, %v11226_v50  ;;  %v782_v34 = vcombine.low %v11316_v20, %v11318_v21  ;;  %v783_v1 = vcombine.low %v11320_v57, %v11322_v44 }
  0xee   : > { %v731_v51 = vcombine.low %v11260_v40, %v11262_v3  ;;  %v732_v22 = vcombine.low %v11264_v16, %v11266_v41  ;;  %v799_v9 = vcombine.low %v603_v18, %v610_v7  ;;  %v800_v26 = vcombine.low %v617_v31, %v624_v33 }
  0xef   : > { %v11378_v23 = vsub.s32 %v701_v25, %v11361_v42  ;;  %v748_v28 = vcombine.low %v11268_v52, %v11270_v29  ;;  %v749_v50 = vcombine.low %v11272_v30, %v11274_v58  ;;  %v816_v62 = vcombine.low %v631_v35, %v638_v13  ;;  %v661_v11 = vld [vmem:[#allocation2] sm:$0xff]  ;;  %v662_v36 = vld [vmem:[#allocation2 + $0x8] sm:$0xff] }
  0xf0   : > { %v817_v38 = vcombine.low %v645_v27, %v652_v2  ;;  %vm844_vm3 = vcmask 1047559   ;;  %v663_v2 = vld [vmem:[#allocation2 + $0x10] sm:$0xff] }
  0xf1   : > { %v705_v20 = vrot.slane %v697_v24, %v11378_v23  ;;  %v712_v40 = vrot.slane %v698_v4, %v11378_v23  ;;  %v773_v3 = vrot.slane %v765_v45, %v11378_v23  ;;  %v780_v21 = vrot.slane %v766_v59, %v11378_v23  ;;  %v664_v4 = vld [vmem:[#allocation2 + $0x18] sm:$0xff] }
  0xf2   : > { %v722_v16 = vrot.slane %v714_v55, %v11378_v23  ;;  %v729_v41 = vrot.slane %v715_v17, %v11378_v23  ;;  %v790_v57 = vrot.slane %v782_v34, %v11378_v23  ;;  %v797_v52 = vrot.slane %v783_v1, %v11378_v23  ;;  %v995_v34 = vld [vmem:[#allocation6] sm:$0xff] (!%p9047_p10) }
  0xf3   : > { %v713_v29 = vcombine.low %v705_v20, %v712_v40  ;;  %v781_v30 = vcombine.low %v773_v3, %v780_v21  ;;  %v739_v58 = vrot.slane %v731_v51, %v11378_v23  ;;  %v746_v44 = vrot.slane %v732_v22, %v11378_v23  ;;  %v999_v1 = vld [vmem:[#allocation6 + $0x20] sm:$0xff] (!%p9047_p10)  ;;  %v996_v51 = vld [vmem:[#allocation6 + $0x8] sm:$0xff] (!%p9047_p10) }
  0xf4   : > { %v730_v5 = vcombine.low %v722_v16, %v729_v41  ;;  %v798_v10 = vcombine.low %v790_v57, %v797_v52  ;;  %v807_v19 = vrot.slane %v799_v9, %v11378_v23  ;;  %v814_v6 = vrot.slane %v800_v26, %v11378_v23  ;;  %v1000_v9 = vld [vmem:[#allocation6 + $0x28] sm:$0xff] (!%p9047_p10)  ;;  %v1011_v21 = vld [vmem:[#allocation6 + $0x80] sm:$0xff] (!%p9047_p10) }
  0xf5   : > { %v837_v43 = vrot.slane %v781_v30, 7  ;;  %v747_v12 = vcombine.low %v739_v58, %v746_v44  ;;  %v756_v32 = vrot.slane %v748_v28, %v11378_v23  ;;  %v763_v53 = vrot.slane %v749_v50, %v11378_v23  ;;  %v1003_v28 = vld [vmem:[#allocation6 + $0x40] sm:$0xff] (!%p9047_p10)  ;;  %v1004_v40 = vld [vmem:[#allocation6 + $0x48] sm:$0xff] (!%p9047_p10) }
  0xf6   : > { %v848_v48 = vrot.slane %v798_v10, 7  ;;  %v815_v39 = vcombine.low %v807_v19, %v814_v6  ;;  %v824_v15 = vrot.slane %v816_v62, %v11378_v23  ;;  %v831_v56 = vrot.slane %v817_v38, %v11378_v23  ;;  %v1007_v50 = vld [vmem:[#allocation6 + $0x60] sm:$0xff] (!%p9047_p10)  ;;  %v1008_v3 = vld [vmem:[#allocation6 + $0x68] sm:$0xff] (!%p9047_p10) }
  0xf7   : > { %v839_v0 = vsel %vm838_vm0, %v837_v43, %v713_v29  ;;  %v764_v8 = vcombine.low %v756_v32, %v763_v53  ;;  %v9049_v22 = vcombine.high (!%p9047_p10), %v995_v34, %v999_v1  ;;  %v9048_v26 = vcombine.low (!%p9047_p10), %v995_v34, %v999_v1  ;;  %v1015_v41 = vld [vmem:[#allocation6 + $0xa0] sm:$0xff] (!%p9047_p10)  ;;  %v1012_v57 = vld [vmem:[#allocation6 + $0x88] sm:$0xff] (!%p9047_p10) }
  0xf8   : > { %v841_v46 = vsel %vm840_vm1, %v837_v43, %v839_v0  ;;  %v849_v47 = vsel %vm838_vm0, %v848_v48, %v730_v5  ;;  %v855_v60 = vrot.slane %v815_v39, 7  ;;  %v832_v63 = vcombine.low %v824_v15, %v831_v56  ;;  %v1016_v52 = vld [vmem:[#allocation6 + $0xa8] sm:$0xff] (!%p9047_p10)  ;;  %v1019_v5 = vld [vmem:[#allocation6 + $0xc0] sm:$0xff] (!%p9047_p10) }
  0xf9   : > { %v843_v49 = vsel %vm842_vm2, %v837_v43, %v841_v46  ;;  %v850_v18 = vsel %vm840_vm1, %v848_v48, %v849_v47  ;;  %v9051_v62 = vcombine.high (!%p9047_p10), %v996_v51, %v1000_v9  ;;  %v9050_v38 = vcombine.low (!%p9047_p10), %v996_v51, %v1000_v9  ;;  %7181 = vmatprep.subr.bf16.mxu0 (!%p9047_p10), %v9049_v22  ;;  %v1023_v10 = vld [vmem:[#allocation6 + $0xe0] sm:$0xff] (!%p9047_p10)  ;;  %v1020_v19 = vld [vmem:[#allocation6 + $0xc8] sm:$0xff] (!%p9047_p10) }
  0xfa   : > { %v845_v7 = vsel %vm844_vm3, %v837_v43, %v843_v49  ;;  %v851_v31 = vsel %vm842_vm2, %v848_v48, %v850_v18  ;;  %v856_v33 = vsel %vm838_vm0, %v855_v60, %v747_v12  ;;  %v862_v35 = vrot.slane %v832_v63, 7  ;;  %7182 = vmatpush1.bf16.msra.mxu0 (!%p9047_p10), %v9048_v26  ;;  %v1024_v6 = vld [vmem:[#allocation6 + $0xe8] sm:$0xff] (!%p9047_p10)  ;;  %v1031_v39 = vld [vmem:[#allocation6 + $0x120] sm:$0xff] (!%p9047_p10) }
  0xfb   : > { %v871_v13 = vadd.f32 %v845_v7, %v661_v11  ;;  %v852_v27 = vsel %vm844_vm3, %v848_v48, %v851_v31  ;;  %v857_v54 = vsel %vm840_vm1, %v855_v60, %v856_v33  ;;  %v9057_v20 = vcombine.high (!%p9047_p10), %v1003_v28, %v1007_v50  ;;  %7509 = vmatprep.subr.bf16.mxu1 (!%p9047_p10), %v9051_v62  ;;  %v1027_v48 = vld [vmem:[#allocation6 + $0x100] sm:$0xff] (!%p9047_p10)  ;;  %v1028_v15 = vld [vmem:[#allocation6 + $0x108] sm:$0xff] (!%p9047_p10) }
  0xfc   : > { %v872_v14 = vadd.f32 %v852_v27, %v662_v36  ;;  %v858_v24 = vsel %vm842_vm2, %v855_v60, %v857_v54  ;;  %v863_v61 = vsel %vm838_vm0, %v862_v35, %v764_v8  ;;  %882 = sbr.rel (%p9047_p10) target bundleno = 1712 (0x6b0), region = 68  ;;  %v9059_v16 = vcombine.high (!%p9047_p10), %v1004_v40, %v1008_v3  ;;  %7510 = vmatpush1.bf16.msra.mxu1 (!%p9047_p10), %v9050_v38  ;;  %v1032_v56 = vld [vmem:[#allocation6 + $0x128] sm:$0xff] (!%p9047_p10)  ;;  %v1035_v47 = vld [vmem:[#allocation6 + $0x140] sm:$0xff] (!%p9047_p10) }
  0xfd   : > { %875 = vst [vmem:[#allocation2] sm:$0xff] %v871_v13  ;;  %v859_v37 = vsel %vm844_vm3, %v855_v60, %v858_v24  ;;  %v864_v45 = vsel %vm840_vm1, %v862_v35, %v863_v61  ;;  %v9056_v29 = vcombine.low (!%p9047_p10), %v1003_v28, %v1007_v50  ;;  %7183 = vmatprep.subr.bf16.mxu0 (!%p9047_p10), %v9057_v20  ;;  %v1039_v60 = vld [vmem:[#allocation6 + $0x160] sm:$0xff] (!%p9047_p10)  ;;  %v1036_v63 = vld [vmem:[#allocation6 + $0x148] sm:$0xff] (!%p9047_p10) }
  0xfe   : > { %876 = vst [vmem:[#allocation2 + $0x8] sm:$0xff] %v872_v14  ;;  %v873_v59 = vadd.f32 %v859_v37, %v663_v2  ;;  %v865_v25 = vsel %vm842_vm2, %v862_v35, %v864_v45  ;;  %v9058_v30 = vcombine.low (!%p9047_p10), %v1004_v40, %v1008_v3  ;;  %v9065_v58 = vcombine.high (!%p9047_p10), %v1011_v21, %v1015_v41  ;;  %v1040_v49 = vld [vmem:[#allocation6 + $0x168] sm:$0xff] (!%p9047_p10)  ;;  %v1043_v33 = vld [vmem:[#allocation6 + $0x180] sm:$0xff] (!%p9047_p10) }
  0xff   : > { %v866_v55 = vsel %vm844_vm3, %v862_v35, %v865_v25  ;;  %7511 = vmatprep.subr.bf16.mxu1 (!%p9047_p10), %v9059_v16  ;;  %v9067_v44 = vcombine.high (!%p9047_p10), %v1012_v57, %v1016_v52  ;;  %7184 = vmatpush1.bf16.msra.mxu0 (!%p9047_p10), %v9056_v29  ;;  %v9064_v43 = vcombine.low (!%p9047_p10), %v1011_v21, %v1015_v41  ;;  %v1047_v35 = vld [vmem:[#allocation6 + $0x1a0] sm:$0xff] (!%p9047_p10)  ;;  %v1044_v13 = vld [vmem:[#allocation6 + $0x188] sm:$0xff] (!%p9047_p10) }
 0x100   : > { %877 = vst [vmem:[#allocation2 + $0x10] sm:$0xff] %v873_v59  ;;  %v874_v17 = vadd.f32 %v866_v55, %v664_v4  ;;  %7512 = vmatpush1.bf16.msra.mxu1 (!%p9047_p10), %v9058_v30  ;;  %7185 = vmatprep.subr.bf16.mxu0 (!%p9047_p10), %v9065_v58  ;;  %v9066_v12 = vcombine.low (!%p9047_p10), %v1012_v57, %v1016_v52  ;;  %v1048_v27 = vld [vmem:[#allocation6 + $0x1a8] sm:$0xff] (!%p9047_p10)  ;;  %v1051_v37 = vld [vmem:[#allocation6 + $0x1c0] sm:$0xff] (!%p9047_p10) }
 0x101   : > { %v9073_v32 = vcombine.high (!%p9047_p10), %v1019_v5, %v1023_v10  ;;  %7513 = vmatprep.subr.bf16.mxu1 (!%p9047_p10), %v9067_v44  ;;  %v9075_v53 = vcombine.high (!%p9047_p10), %v1020_v19, %v1024_v6  ;;  %v9072_v0 = vcombine.low (!%p9047_p10), %v1019_v5, %v1023_v10  ;;  %v9074_v8 = vcombine.low (!%p9047_p10), %v1020_v19, %v1024_v6  ;;  %v1055_v4 = vld [vmem:[#allocation6 + $0x1e0] sm:$0xff] (!%p9047_p10)  ;;  %v1052_v59 = vld [vmem:[#allocation6 + $0x1c8] sm:$0xff] (!%p9047_p10) }
 0x102   : > { %878 = vst [vmem:[#allocation2 + $0x18] sm:$0xff] %v874_v17  ;;  %v9081_v11 = vcombine.high (!%p9047_p10), %v1027_v48, %v1031_v39  ;;  %v9083_v46 = vcombine.high (!%p9047_p10), %v1028_v15, %v1032_v56  ;;  %v9080_v36 = vcombine.low (!%p9047_p10), %v1027_v48, %v1031_v39  ;;  %v9082_v18 = vcombine.low (!%p9047_p10), %v1028_v15, %v1032_v56  ;;  %v1056_v25 = vld [vmem:[#allocation6 + $0x1e8] sm:$0xff] (!%p9047_p10)  ;;  %v1059_v22 = vld [vmem:[#allocation6 + $0x200] sm:$0xff] (!%p9047_p10) }
 0x103   : > { %7186 = vmatpush1.bf16.msra.mxu0 %v9064_v43  ;;  %v9089_v7 = vcombine.high %v1035_v47, %v1039_v60  ;;  %v9091_v31 = vcombine.high %v1036_v63, %v1040_v49  ;;  %v9088_v2 = vcombine.low %v1035_v47, %v1039_v60  ;;  %v9090_v54 = vcombine.low %v1036_v63, %v1040_v49  ;;  %v1063_v9 = vld [vmem:[#allocation6 + $0x220] sm:$0xff]  ;;  %v1060_v28 = vld [vmem:[#allocation6 + $0x208] sm:$0xff] }
 0x104   : > { %7514 = vmatpush1.bf16.msra.mxu1 %v9066_v12  ;;  %7187 = vmatprep.subr.bf16.mxu0 %v9073_v32  ;;  %v9097_v14 = vcombine.high %v1043_v33, %v1047_v35  ;;  %v883_v24 = vld [vmem:[#allocation2] sm:$0xff]  ;;  %v9099_v61 = vcombine.high %v1044_v13, %v1048_v27  ;;  %v9096_v55 = vcombine.low %v1043_v33, %v1047_v35  ;;  %v1064_v50 = vld [vmem:[#allocation6 + $0x228] sm:$0xff] }
 0x105   : > { %7515 = vmatprep.subr.bf16.mxu1 %v9075_v53  ;;  %v11419_v45 = vmul.f32 0.33333334, %v883_v24  ;;  %v9098_v34 = vcombine.low %v1044_v13, %v1048_v27  ;;  %v9105_v1 = vcombine.high %v1051_v37, %v1055_v4  ;;  %v9107_v51 = vcombine.high %v1052_v59, %v1056_v25  ;;  %v1067_v21 = vld [vmem:[#allocation6 + $0x240] sm:$0xff]  ;;  %v1068_v41 = vld [vmem:[#allocation6 + $0x248] sm:$0xff] }
 0x106   : > { %v9104_v62 = vcombine.low %v1051_v37, %v1055_v4  ;;  %v9106_v20 = vcombine.low %v1052_v59, %v1056_v25  ;;  %v9113_v40 = vcombine.high %v1059_v22, %v1063_v9  ;;  %v9115_v3 = vcombine.high %v1060_v28, %v1064_v50  ;;  %v1071_v16 = vld [vmem:[#allocation6 + $0x260] sm:$0xff]  ;;  %v1072_v57 = vld [vmem:[#allocation6 + $0x268] sm:$0xff] }
 0x107   : > { %7188 = vmatpush1.bf16.msra.mxu0 %v9072_v0  ;;  %v11423_v17 = vrot.slane %v11419_v45, %v11378_v23  ;;  %v9112_v52 = vcombine.low %v1059_v22, %v1063_v9  ;;  %v9114_v29 = vcombine.low %v1060_v28, %v1064_v50  ;;  %v9121_v30 = vcombine.high %v1067_v21, %v1071_v16  ;;  %v1075_v44 = vld [vmem:[#allocation6 + $0x280] sm:$0xff]  ;;  %v1076_v10 = vld [vmem:[#allocation6 + $0x288] sm:$0xff] }
 0x108   : > { %7516 = vmatpush1.bf16.msra.mxu1 %v9074_v8  ;;  %7189 = vmatprep.subr.bf16.mxu0 %v9081_v11  ;;  %v9123_v58 = vcombine.high %v1068_v41, %v1072_v57  ;;  %v1079_v5 = vld [vmem:[#allocation6 + $0x2a0] sm:$0xff]  ;;  %v1080_v19 = vld [vmem:[#allocation6 + $0x2a8] sm:$0xff]  ;;  %v9120_v6 = vcombine.low %v1067_v21, %v1071_v16  ;;  %v9122_v43 = vcombine.low %v1068_v41, %v1072_v57 }
 0x109   : > { %7517 = vmatprep.subr.bf16.mxu1 %v9083_v46  ;;  %v910_v26 = vcombine.high %v11423_v17, %v11423_v17  ;;  %v9129_v12 = vcombine.high %v1075_v44, %v1079_v5  ;;  %v9131_v32 = vcombine.high %v1076_v10, %v1080_v19  ;;  %v1083_v53 = vld [vmem:[#allocation6 + $0x2c0] sm:$0xff]  ;;  %v1084_v39 = vld [vmem:[#allocation6 + $0x2c8] sm:$0xff]  ;;  %v9128_v56 = vcombine.low %v1075_v44, %v1079_v5 }
 0x10a   : > { %v1087_v48 = vld [vmem:[#allocation6 + $0x2e0] sm:$0xff]  ;;  %v1088_v15 = vld [vmem:[#allocation6 + $0x2e8] sm:$0xff]  ;;  %v9130_v0 = vcombine.low %v1076_v10, %v1080_v19  ;;  %v895_v22 = vcombine.high %v11419_v45, %v11419_v45  ;;  %v11440_v5 = vpack.c.bf16 %v11423_v17, %v11423_v17 }
 0x10b   : > { %7190 = vmatpush1.bf16.msra.mxu0 %v9080_v36  ;;  %v11427_v38 = vpack.c.bf16 %v910_v26, %v910_v26  ;;  %v9137_v8 = vcombine.high %v1083_v53, %v1087_v48  ;;  %v9139_v11 = vcombine.high %v1084_v39, %v1088_v15  ;;  %v1091_v46 = vld [vmem:[#allocation6 + $0x300] sm:$0xff]  ;;  %v1092_v60 = vld [vmem:[#allocation6 + $0x308] sm:$0xff]  ;;  %v9136_v49 = vcombine.low %v1083_v53, %v1087_v48 }
 0x10c   : > { %7518 = vmatpush1.bf16.msra.mxu1 %v9082_v18  ;;  %7191 = vmatprep.subr.bf16.mxu0 %v9089_v7  ;;  %v1095_v47 = vld [vmem:[#allocation6 + $0x320] sm:$0xff]  ;;  %v1096_v63 = vld [vmem:[#allocation6 + $0x328] sm:$0xff]  ;;  %v9138_v36 = vcombine.low %v1084_v39, %v1088_v15  ;;  %v11434_v21 = vrot.slane %v895_v22, %v11378_v23 }
 0x10d   : > { %7519 = vmatprep.subr.bf16.mxu1 %v9091_v31  ;;  %7213 = vmatprep.mubr.bf16.mxu0 %v11427_v38  ;;  %v9145_v18 = vcombine.high %v1091_v46, %v1095_v47  ;;  %v9147_v7 = vcombine.high %v1092_v60, %v1096_v63  ;;  %v1099_v31 = vld [vmem:[#allocation6 + $0x340] sm:$0xff]  ;;  %v1100_v35 = vld [vmem:[#allocation6 + $0x348] sm:$0xff]  ;;  %v9144_v27 = vcombine.low %v1091_v46, %v1095_v47 }
 0x10e   : > { %7541 = vmatprep.mubr.bf16.mxu1 %v11427_v38  ;;  %v1103_v33 = vld [vmem:[#allocation6 + $0x360] sm:$0xff]  ;;  %v1104_v13 = vld [vmem:[#allocation6 + $0x368] sm:$0xff]  ;;  %v911_v44 = vcombine.high %v11434_v21, %v11434_v21 }
 0x10f   : > { %7192 = vmatpush1.bf16.msra.mxu0 %v9088_v2  ;;  %v9146_v2 = vcombine.low %v1092_v60, %v1096_v63  ;;  %v1107_v24 = vld [vmem:[#allocation6 + $0x380] sm:$0xff]  ;;  %v1108_v37 = vld [vmem:[#allocation6 + $0x388] sm:$0xff]  ;;  %v9152_v59 = vcombine.low %v1099_v31, %v1103_v33  ;;  %v9154_v25 = vcombine.low %v1100_v35, %v1104_v13 }
 0x110   : > { %7520 = vmatpush1.bf16.msra.mxu1 %v9090_v54  ;;  %7193 = vmatprep.subr.bf16.mxu0 %v9097_v14  ;;  %v9153_v54 = vcombine.high %v1099_v31, %v1103_v33  ;;  %v9155_v14 = vcombine.high %v1100_v35, %v1104_v13  ;;  %v1112_v4 = vld [vmem:[#allocation6 + $0x3a8] sm:$0xff]  ;;  %v1139_v53 = vld [vmem:[#allocation6 + $0x480] sm:$0xff]  ;;  %v11442_v39 = vpack.c.bf16 %v911_v44, %v911_v44 }
 0x111   : > { %7521 = vmatprep.subr.bf16.mxu1 %v9099_v61  ;;  %v1111_v61 = vld [vmem:[#allocation6 + $0x3a0] sm:$0xff]  ;;  %v1116_v9 = vld [vmem:[#allocation6 + $0x3c8] sm:$0xff]  ;;  %v9162_v50 = vcombine.low %v1108_v37, %v1112_v4 }
 0x112   : > { %v1120_v26 = vld [vmem:[#allocation6 + $0x3e8] sm:$0xff]  ;;  %v9160_v28 = vcombine.low %v1107_v24, %v1111_v61  ;;  %v1143_v48 = vld [vmem:[#allocation6 + $0x4a0] sm:$0xff] }
 0x113   : > { %7194 = vmatpush1.bf16.msra.mxu0 %v9096_v55  ;;  %v9161_v55 = vcombine.high %v1107_v24, %v1111_v61  ;;  %v1124_v16 = vld [vmem:[#allocation6 + $0x408] sm:$0xff]  ;;  %v9170_v45 = vcombine.low %v1116_v9, %v1120_v26  ;;  %v1147_v46 = vld [vmem:[#allocation6 + $0x4c0] sm:$0xff] }
 0x114   : > { %7522 = vmatpush1.bf16.msra.mxu1 %v9098_v34  ;;  %7195 = vmatprep.subr.bf16.mxu0 %v9105_v1  ;;  %v9163_v34 = vcombine.high %v1108_v37, %v1112_v4  ;;  %v1115_v1 = vld [vmem:[#allocation6 + $0x3c0] sm:$0xff]  ;;  %v1128_v41 = vld [vmem:[#allocation6 + $0x428] sm:$0xff] }
 0x115   : > { %7523 = vmatprep.subr.bf16.mxu1 %v9107_v51  ;;  %v1119_v51 = vld [vmem:[#allocation6 + $0x3e0] sm:$0xff]  ;;  %v1132_v10 = vld [vmem:[#allocation6 + $0x448] sm:$0xff] }
 0x116   : > { %v9168_v57 = vcombine.low %v1115_v1, %v1119_v51  ;;  %v1136_v19 = vld [vmem:[#allocation6 + $0x468] sm:$0xff]  ;;  %v1151_v47 = vld [vmem:[#allocation6 + $0x4e0] sm:$0xff] }
 0x117   : > { %7196 = vmatpush1.bf16.msra.mxu0 %v9104_v62  ;;  %v9169_v62 = vcombine.high %v1115_v1, %v1119_v51  ;;  %v1140_v15 = vld [vmem:[#allocation6 + $0x488] sm:$0xff]  ;;  %v1155_v31 = vld [vmem:[#allocation6 + $0x500] sm:$0xff] }
 0x118   : > { %7524 = vmatpush1.bf16.msra.mxu1 %v9106_v20  ;;  %7197 = vmatprep.subr.bf16.mxu0 %v9113_v40  ;;  %v9171_v20 = vcombine.high %v1116_v9, %v1120_v26  ;;  %v1123_v40 = vld [vmem:[#allocation6 + $0x400] sm:$0xff]  ;;  %v1148_v60 = vld [vmem:[#allocation6 + $0x4c8] sm:$0xff] }
 0x119   : > { %7525 = vmatprep.subr.bf16.mxu1 %v9115_v3  ;;  %v1127_v3 = vld [vmem:[#allocation6 + $0x420] sm:$0xff]  ;;  %v1152_v63 = vld [vmem:[#allocation6 + $0x4e8] sm:$0xff] }
 0x11a   : > { %v1159_v33 = vld [vmem:[#allocation6 + $0x520] sm:$0xff]  ;;  %v1156_v35 = vld [vmem:[#allocation6 + $0x508] sm:$0xff] }
 0x11b   : > { %7198 = vmatpush1.bf16.msra.mxu0 %v9112_v52  ;;  %v9177_v52 = vcombine.high %v1123_v40, %v1127_v3  ;;  %v1160_v13 = vld [vmem:[#allocation6 + $0x528] sm:$0xff]  ;;  %v1163_v24 = vld [vmem:[#allocation6 + $0x540] sm:$0xff] }
 0x11c   : > { %7526 = vmatpush1.bf16.msra.mxu1 %v9114_v29  ;;  %7199 = vmatprep.subr.bf16.mxu0 %v9121_v30  ;;  %v9179_v29 = vcombine.high %v1124_v16, %v1128_v41  ;;  %v1131_v30 = vld [vmem:[#allocation6 + $0x440] sm:$0xff]  ;;  %v1164_v37 = vld [vmem:[#allocation6 + $0x548] sm:$0xff] }
 0x11d   : > { %7527 = vmatprep.subr.bf16.mxu1 %v9123_v58  ;;  %v1135_v58 = vld [vmem:[#allocation6 + $0x460] sm:$0xff]  ;;  %v1168_v4 = vld [vmem:[#allocation6 + $0x568] sm:$0xff] }
 0x11e   : > { %v9184_v17 = vcombine.low %v1131_v30, %v1135_v58  ;;  %v1167_v61 = vld [vmem:[#allocation6 + $0x560] sm:$0xff]  ;;  %v1172_v22 = vld [vmem:[#allocation6 + $0x588] sm:$0xff] }
 0x11f   : > { %7200 = vmatpush1.bf16.msra.mxu0 %v9120_v6  ;;  %v9176_v6 = vcombine.low %v1123_v40, %v1127_v3  ;;  %v1171_v1 = vld [vmem:[#allocation6 + $0x580] sm:$0xff]  ;;  %v1176_v9 = vld [vmem:[#allocation6 + $0x5a8] sm:$0xff]  ;;  %v9216_v26 = vcombine.low %v1163_v24, %v1167_v61 }
 0x120   : > { %7528 = vmatpush1.bf16.msra.mxu1 %v9122_v43  ;;  %7201 = vmatprep.subr.bf16.mxu0 %v9129_v12  ;;  %v9178_v43 = vcombine.low %v1124_v16, %v1128_v41  ;;  %v9185_v12 = vcombine.high %v1131_v30, %v1135_v58  ;;  %v1175_v51 = vld [vmem:[#allocation6 + $0x5a0] sm:$0xff]  ;;  %v1180_v3 = vld [vmem:[#allocation6 + $0x5c8] sm:$0xff] }
 0x121   : > { %7529 = vmatprep.subr.bf16.mxu1 %v9131_v32  ;;  %v9187_v32 = vcombine.high %v1132_v10, %v1136_v19  ;;  %v1183_v40 = vld [vmem:[#allocation6 + $0x5e0] sm:$0xff]  ;;  %v1184_v16 = vld [vmem:[#allocation6 + $0x5e8] sm:$0xff]  ;;  %v9224_v41 = vcombine.low %v1171_v1, %v1175_v51 }
 0x122   : > { %v1191_v30 = vld [vmem:[#allocation6 + $0x620] sm:$0xff]  ;;  %v1188_v58 = vld [vmem:[#allocation6 + $0x608] sm:$0xff] }
 0x123   : > { %7202 = vmatpush1.bf16.msra.mxu0 %v9128_v56  ;;  %v1144_v56 = vld [vmem:[#allocation6 + $0x4a8] sm:$0xff] }
 0x124   : > { %7530 = vmatpush1.bf16.msra.mxu1 %v9130_v0  ;;  %7203 = vmatprep.subr.bf16.mxu0 %v9137_v8  ;;  %v9186_v0 = vcombine.low %v1132_v10, %v1136_v19  ;;  %v9193_v8 = vcombine.high %v1139_v53, %v1143_v48  ;;  %v1192_v44 = vld [vmem:[#allocation6 + $0x628] sm:$0xff]  ;;  %v9234_v19 = vcombine.low %v1180_v3, %v1184_v16 }
 0x125   : > { %7531 = vmatprep.subr.bf16.mxu1 %v9139_v11  ;;  %v9195_v11 = vcombine.high %v1140_v15, %v1144_v56 }
 0x127   : > { %7204 = vmatpush1.bf16.msra.mxu0 %v9136_v49  ;;  %v9192_v49 = vcombine.low %v1139_v53, %v1143_v48  ;;  %v1196_v53 = vld [vmem:[#allocation6 + $0x648] sm:$0xff] }
 0x128   : > { %7532 = vmatpush1.bf16.msra.mxu1 %v9138_v36  ;;  %7205 = vmatprep.subr.bf16.mxu0 %v9145_v18  ;;  %v9194_v36 = vcombine.low %v1140_v15, %v1144_v56  ;;  %v9201_v18 = vcombine.high %v1147_v46, %v1151_v47  ;;  %v1200_v48 = vld [vmem:[#allocation6 + $0x668] sm:$0xff]  ;;  %v9242_v56 = vcombine.low %v1188_v58, %v1192_v44 }
 0x129   : > { %7533 = vmatprep.subr.bf16.mxu1 %v9147_v7  ;;  %v9203_v7 = vcombine.high %v1148_v60, %v1152_v63 }
 0x12b   : > { %7206 = vmatpush1.bf16.msra.mxu0 %v9144_v27  ;;  %v9200_v27 = vcombine.low %v1147_v46, %v1151_v47  ;;  %v1204_v46 = vld [vmem:[#allocation6 + $0x688] sm:$0xff] }
 0x12c   : > { %7534 = vmatpush1.bf16.msra.mxu1 %v9146_v2  ;;  %7207 = vmatprep.subr.bf16.mxu0 %v9153_v54  ;;  %v9202_v2 = vcombine.low %v1148_v60, %v1152_v63  ;;  %v9209_v54 = vcombine.high %v1155_v31, %v1159_v33  ;;  %v1208_v47 = vld [vmem:[#allocation6 + $0x6a8] sm:$0xff]  ;;  %v9250_v63 = vcombine.low %v1196_v53, %v1200_v48 }
 0x12d   : > { %7535 = vmatprep.subr.bf16.mxu1 %v9155_v14  ;;  %v9211_v14 = vcombine.high %v1156_v35, %v1160_v13 }
 0x12f   : > { %7208 = vmatpush1.bf16.msra.mxu0 %v9152_v59  ;;  %v9208_v59 = vcombine.low %v1155_v31, %v1159_v33  ;;  %v1212_v31 = vld [vmem:[#allocation6 + $0x6c8] sm:$0xff] }
 0x130   : > { %7536 = vmatpush1.bf16.msra.mxu1 %v9154_v25  ;;  %7209 = vmatprep.subr.bf16.mxu0 %v9161_v55  ;;  %v9210_v25 = vcombine.low %v1156_v35, %v1160_v13  ;;  %v9217_v55 = vcombine.high %v1163_v24, %v1167_v61  ;;  %v1216_v33 = vld [vmem:[#allocation6 + $0x6e8] sm:$0xff]  ;;  %v9258_v13 = vcombine.low %v1204_v46, %v1208_v47 }
 0x131   : > { %7537 = vmatprep.subr.bf16.mxu1 %v9163_v34  ;;  %v9219_v34 = vcombine.high %v1164_v37, %v1168_v4  ;;  %v1220_v24 = vld [vmem:[#allocation6 + $0x708] sm:$0xff] }
 0x132   : > { %v1224_v61 = vld [vmem:[#allocation6 + $0x728] sm:$0xff] }
 0x133   : > { %7210 = vmatpush1.bf16.msra.mxu0 %v9160_v28  ;;  %v9218_v28 = vcombine.low %v1164_v37, %v1168_v4  ;;  %v9266_v4 = vcombine.low %v1212_v31, %v1216_v33 }
 0x134   : > { %7538 = vmatpush1.bf16.msra.mxu1 %v9162_v50  ;;  %7211 = vmatprep.subr.bf16.mxu0 %v9169_v62  ;;  %v9225_v50 = vcombine.high %v1171_v1, %v1175_v51  ;;  %v9227_v62 = vcombine.high %v1172_v22, %v1176_v9  ;;  %v1228_v1 = vld [vmem:[#allocation6 + $0x748] sm:$0xff] }
 0x135   : > { %7539 = vmatprep.subr.bf16.mxu1 %v9171_v20  ;;  %v1179_v20 = vld [vmem:[#allocation6 + $0x5c0] sm:$0xff]  ;;  %v1232_v51 = vld [vmem:[#allocation6 + $0x768] sm:$0xff] }
 0x136   : > { %v9232_v10 = vcombine.low %v1179_v20, %v1183_v40 }
 0x137   : > { %7212 = vmatpush1.bf16.msra.mxu0 %v9168_v57  ;;  %v9226_v57 = vcombine.low %v1172_v22, %v1176_v9  ;;  %v9274_v9 = vcombine.low %v1220_v24, %v1224_v61 }
 0x138   : > { %7540 = vmatpush1.bf16.msra.mxu1 %v9170_v45  ;;  %7222 = vmatprep.subr.bf16.mxu0 %v9177_v52  ;;  %v9233_v45 = vcombine.high %v1179_v20, %v1183_v40  ;;  %v9235_v52 = vcombine.high %v1180_v3, %v1184_v16  ;;  %v1236_v20 = vld [vmem:[#allocation6 + $0x788] sm:$0xff] }
 0x139   : > { %7550 = vmatprep.subr.bf16.mxu1 %v9179_v29  ;;  %v1187_v29 = vld [vmem:[#allocation6 + $0x600] sm:$0xff]  ;;  %v1240_v40 = vld [vmem:[#allocation6 + $0x7a8] sm:$0xff] }
 0x13a   : > { %7214 = vmatmul.mubr.bf16.vlgmr.msra.gmra.mrb[0].mxu0 %v11440_v5  ;;  %v9240_v15 = vcombine.low %v1187_v29, %v1191_v30  ;;  %v884_v3 = vld [vmem:[#allocation2 + $0x8] sm:$0xff] }
 0x13b   : > { %7223 = vmatpush1.bf16.msra.mxu0 %v9176_v6  ;;  %7542 = vmatmul.mubr.bf16.vlgmr.msra.gmra.mrb[0].mxu1 %v11440_v5  ;;  %v9241_v6 = vcombine.high %v1187_v29, %v1191_v30  ;;  %v1247_v29 = vld [vmem:[#allocation6 + $0x7e0] sm:$0xff]  ;;  %v11448_v30 = vmul.f32 0.33333334, %v884_v3 }
 0x13c   : > { %7551 = vmatpush1.bf16.msra.mxu1 %v9178_v43  ;;  %7224 = vmatprep.subr.bf16.mxu0 %v9185_v12  ;;  %v9243_v43 = vcombine.high %v1188_v58, %v1192_v44  ;;  %v1195_v12 = vld [vmem:[#allocation6 + $0x640] sm:$0xff]  ;;  %v1244_v58 = vld [vmem:[#allocation6 + $0x7c8] sm:$0xff] }
 0x13d   : > { %7552 = vmatprep.subr.bf16.mxu1 %v9187_v32  ;;  %7254 = vmatprep.mubr.bf16.mxu0 %v11442_v39  ;;  %v1199_v32 = vld [vmem:[#allocation6 + $0x660] sm:$0xff]  ;;  %v1248_v44 = vld [vmem:[#allocation6 + $0x7e8] sm:$0xff] }
 0x13e   : > { %7582 = vmatprep.mubr.bf16.mxu1 %v11442_v39  ;;  %v9248_v60 = vcombine.low %v1195_v12, %v1199_v32  ;;  %v1295_v3 = vld [vmem:[#allocation6 + $0x960] sm:$0xff] }
 0x13f   : > { %7225 = vmatpush1.bf16.msra.mxu0 %v9184_v17  ;;  %v9249_v17 = vcombine.high %v1195_v12, %v1199_v32  ;;  %v1251_v12 = vld [vmem:[#allocation6 + $0x800] sm:$0xff] }
 0x140   : > { %7553 = vmatpush1.bf16.msra.mxu1 %v9186_v0  ;;  %7226 = vmatprep.subr.bf16.mxu0 %v9193_v8  ;;  %v9251_v0 = vcombine.high %v1196_v53, %v1200_v48  ;;  %v1203_v8 = vld [vmem:[#allocation6 + $0x680] sm:$0xff]  ;;  %v11452_v53 = vrot.slane %v11448_v30, %v11378_v23  ;;  %v1252_v48 = vld [vmem:[#allocation6 + $0x808] sm:$0xff] }
 0x141   : > { %7554 = vmatprep.subr.bf16.mxu1 %v9195_v11  ;;  %v1207_v11 = vld [vmem:[#allocation6 + $0x6a0] sm:$0xff] }
 0x142   : > { %v9256_v35 = vcombine.low %v1203_v8, %v1207_v11  ;;  %v1255_v32 = vld [vmem:[#allocation6 + $0x820] sm:$0xff] }
 0x143   : > { %7227 = vmatpush1.bf16.msra.mxu0 %v9192_v49  ;;  %v9257_v49 = vcombine.high %v1203_v8, %v1207_v11  ;;  %v1259_v11 = vld [vmem:[#allocation6 + $0x840] sm:$0xff] }
 0x144   : > { %7555 = vmatpush1.bf16.msra.mxu1 %v9194_v36  ;;  %7228 = vmatprep.subr.bf16.mxu0 %v9201_v18  ;;  %v9259_v36 = vcombine.high %v1204_v46, %v1208_v47  ;;  %v1211_v18 = vld [vmem:[#allocation6 + $0x6c0] sm:$0xff]  ;;  %v927_v47 = vcombine.high %v11452_v53, %v11452_v53 }
 0x145   : > { %7556 = vmatprep.subr.bf16.mxu1 %v9203_v7  ;;  %v1215_v7 = vld [vmem:[#allocation6 + $0x6e0] sm:$0xff] }
 0x146   : > { %v9264_v37 = vcombine.low %v1211_v18, %v1215_v7  ;;  %v1263_v46 = vld [vmem:[#allocation6 + $0x860] sm:$0xff] }
 0x147   : > { %7229 = vmatpush1.bf16.msra.mxu0 %v9200_v27  ;;  %v9265_v27 = vcombine.high %v1211_v18, %v1215_v7  ;;  %v9313_v7 = vcombine.high %v1259_v11, %v1263_v46 }
 0x148   : > { %7557 = vmatpush1.bf16.msra.mxu1 %v9202_v2  ;;  %7230 = vmatprep.subr.bf16.mxu0 %v9209_v54  ;;  %v9267_v2 = vcombine.high %v1212_v31, %v1216_v33  ;;  %v1219_v54 = vld [vmem:[#allocation6 + $0x700] sm:$0xff] }
 0x149   : > { %7558 = vmatprep.subr.bf16.mxu1 %v9211_v14  ;;  %v1223_v14 = vld [vmem:[#allocation6 + $0x720] sm:$0xff] }
 0x14a   : > { %v9272_v22 = vcombine.low %v1219_v54, %v1223_v14  ;;  %v1267_v33 = vld [vmem:[#allocation6 + $0x880] sm:$0xff] }
 0x14b   : > { %7231 = vmatpush1.bf16.msra.mxu0 %v9208_v59  ;;  %v9273_v59 = vcombine.high %v1219_v54, %v1223_v14 }
 0x14c   : > { %7559 = vmatpush1.bf16.msra.mxu1 %v9210_v25  ;;  %7232 = vmatprep.subr.bf16.mxu0 %v9217_v55  ;;  %v9275_v25 = vcombine.high %v1220_v24, %v1224_v61  ;;  %v1227_v55 = vld [vmem:[#allocation6 + $0x740] sm:$0xff] }
 0x14d   : > { %7560 = vmatprep.subr.bf16.mxu1 %v9219_v34  ;;  %v1231_v34 = vld [vmem:[#allocation6 + $0x760] sm:$0xff] }
 0x14e   : > { %v9280_v16 = vcombine.low %v1227_v55, %v1231_v34  ;;  %v1275_v61 = vld [vmem:[#allocation6 + $0x8c0] sm:$0xff] }
 0x14f   : > { %7233 = vmatpush1.bf16.msra.mxu0 %v9216_v26  ;;  %v9281_v26 = vcombine.high %v1227_v55, %v1231_v34 }
 0x150   : > { %7561 = vmatpush1.bf16.msra.mxu1 %v9218_v28  ;;  %7234 = vmatprep.subr.bf16.mxu0 %v9225_v50  ;;  %v9283_v28 = vcombine.high %v1228_v1, %v1232_v51  ;;  %v1235_v50 = vld [vmem:[#allocation6 + $0x780] sm:$0xff] }
 0x151   : > { %7562 = vmatprep.subr.bf16.mxu1 %v9227_v62  ;;  %v1239_v62 = vld [vmem:[#allocation6 + $0x7a0] sm:$0xff] }
 0x153   : > { %7235 = vmatpush1.bf16.msra.mxu0 %v9224_v41  ;;  %v9282_v41 = vcombine.low %v1228_v1, %v1232_v51  ;;  %v1283_v51 = vld [vmem:[#allocation6 + $0x900] sm:$0xff] }
 0x154   : > { %7563 = vmatpush1.bf16.msra.mxu1 %v9226_v57  ;;  %7236 = vmatprep.subr.bf16.mxu0 %v9233_v45  ;;  %v9289_v57 = vcombine.high %v1235_v50, %v1239_v62  ;;  %v9291_v45 = vcombine.high %v1236_v20, %v1240_v40 }
 0x155   : > { %7564 = vmatprep.subr.bf16.mxu1 %v9235_v52  ;;  %v1243_v52 = vld [vmem:[#allocation6 + $0x7c0] sm:$0xff] }
 0x157   : > { %7237 = vmatpush1.bf16.msra.mxu0 %v9232_v10  ;;  %v9288_v10 = vcombine.low %v1235_v50, %v1239_v62 }
 0x158   : > { %7565 = vmatpush1.bf16.msra.mxu1 %v9234_v19  ;;  %7238 = vmatprep.subr.bf16.mxu0 %v9241_v6  ;;  %v9290_v19 = vcombine.low %v1236_v20, %v1240_v40  ;;  %v9297_v6 = vcombine.high %v1243_v52, %v1247_v29  ;;  %v1291_v40 = vld [vmem:[#allocation6 + $0x940] sm:$0xff] }
 0x159   : > { %7566 = vmatprep.subr.bf16.mxu1 %v9243_v43  ;;  %v9299_v43 = vcombine.high %v1244_v58, %v1248_v44 }
 0x15b   : > { %7239 = vmatpush1.bf16.msra.mxu0 %v9240_v15  ;;  %v1256_v15 = vld [vmem:[#allocation6 + $0x828] sm:$0xff] }
 0x15c   : > { %7567 = vmatpush1.bf16.msra.mxu1 %v9242_v56  ;;  %7240 = vmatprep.subr.bf16.mxu0 %v9249_v17  ;;  %v9296_v56 = vcombine.low %v1243_v52, %v1247_v29  ;;  %v9298_v17 = vcombine.low %v1244_v58, %v1248_v44  ;;  %v9307_v8 = vcombine.high %v1252_v48, %v1256_v15  ;;  %v1299_v58 = vld [vmem:[#allocation6 + $0x980] sm:$0xff] }
 0x15d   : > { %7568 = vmatprep.subr.bf16.mxu1 %v9251_v0  ;;  %v9305_v0 = vcombine.high %v1251_v12, %v1255_v32  ;;  %v9306_v18 = vcombine.low %v1252_v48, %v1256_v15  ;;  %v9345_v52 = vcombine.high %v1291_v40, %v1295_v3  ;;  %v1303_v44 = vld [vmem:[#allocation6 + $0x9a0] sm:$0xff] }
 0x15e   : > { %v1307_v48 = vld [vmem:[#allocation6 + $0x9c0] sm:$0xff] }
 0x15f   : > { %7241 = vmatpush1.bf16.msra.mxu0 %v9248_v60  ;;  %v11458_v60 = vpack.c.bf16 %v11434_v21, %v11434_v21  ;;  %v9312_v21 = vcombine.low %v1259_v11, %v1263_v46  ;;  %v1311_v15 = vld [vmem:[#allocation6 + $0x9e0] sm:$0xff] }
 0x160   : > { %7569 = vmatpush1.bf16.msra.mxu1 %v9250_v63  ;;  %7242 = vmatprep.subr.bf16.mxu0 %v9257_v49  ;;  %v1260_v63 = vld [vmem:[#allocation6 + $0x848] sm:$0xff]  ;;  %v9361_v11 = vcombine.high %v1307_v48, %v1311_v15 }
 0x161   : > { %7570 = vmatprep.subr.bf16.mxu1 %v9259_v36  ;;  %v1264_v49 = vld [vmem:[#allocation6 + $0x868] sm:$0xff]  ;;  %v9304_v36 = vcombine.low %v1251_v12, %v1255_v32  ;;  %v9353_v12 = vcombine.high %v1299_v58, %v1303_v44 }
 0x162   : > { %v9315_v31 = vcombine.high %v1260_v63, %v1264_v49  ;;  %v9314_v54 = vcombine.low %v1260_v63, %v1264_v49  ;;  %v1319_v63 = vld [vmem:[#allocation6 + $0xa20] sm:$0xff]  ;;  %v1316_v49 = vld [vmem:[#allocation6 + $0xa08] sm:$0xff] }
 0x163   : > { %7243 = vmatpush1.bf16.msra.mxu0 %v9256_v35  ;;  %v1271_v35 = vld [vmem:[#allocation6 + $0x8a0] sm:$0xff] }
 0x164   : > { %7571 = vmatpush1.bf16.msra.mxu1 %v9258_v13  ;;  %7244 = vmatprep.subr.bf16.mxu0 %v9265_v27  ;;  %v11460_v13 = vpack.c.bf16 %v927_v47, %v927_v47  ;;  %v1268_v27 = vld [vmem:[#allocation6 + $0x888] sm:$0xff]  ;;  %v9321_v14 = vcombine.high %v1267_v33, %v1271_v35  ;;  %v1315_v47 = vld [vmem:[#allocation6 + $0xa00] sm:$0xff] }
 0x165   : > { %7572 = vmatprep.subr.bf16.mxu1 %v9267_v2  ;;  %v1272_v2 = vld [vmem:[#allocation6 + $0x8a8] sm:$0xff] }
 0x166   : > { %v9323_v24 = vcombine.high %v1268_v27, %v1272_v2  ;;  %v9322_v55 = vcombine.low %v1268_v27, %v1272_v2  ;;  %v1327_v27 = vld [vmem:[#allocation6 + $0xa60] sm:$0xff]  ;;  %v1324_v2 = vld [vmem:[#allocation6 + $0xa48] sm:$0xff] }
 0x167   : > { %7245 = vmatpush1.bf16.msra.mxu0 %v9264_v37  ;;  %v1279_v37 = vld [vmem:[#allocation6 + $0x8e0] sm:$0xff] }
 0x168   : > { %7573 = vmatpush1.bf16.msra.mxu1 %v9266_v4  ;;  %7246 = vmatprep.subr.bf16.mxu0 %v9273_v59  ;;  %v1276_v4 = vld [vmem:[#allocation6 + $0x8c8] sm:$0xff]  ;;  %v9329_v34 = vcombine.high %v1275_v61, %v1279_v37 }
 0x169   : > { %7574 = vmatprep.subr.bf16.mxu1 %v9275_v25  ;;  %v1280_v59 = vld [vmem:[#allocation6 + $0x8e8] sm:$0xff]  ;;  %v9320_v25 = vcombine.low %v1267_v33, %v1271_v35  ;;  %v1323_v35 = vld [vmem:[#allocation6 + $0xa40] sm:$0xff] }
 0x16a   : > { %v9331_v1 = vcombine.high %v1276_v4, %v1280_v59  ;;  %v9330_v50 = vcombine.low %v1276_v4, %v1280_v59  ;;  %v1335_v4 = vld [vmem:[#allocation6 + $0xaa0] sm:$0xff]  ;;  %v1332_v59 = vld [vmem:[#allocation6 + $0xa88] sm:$0xff] }
 0x16b   : > { %7247 = vmatpush1.bf16.msra.mxu0 %v9272_v22  ;;  %v1287_v22 = vld [vmem:[#allocation6 + $0x920] sm:$0xff] }
 0x16c   : > { %7575 = vmatpush1.bf16.msra.mxu1 %v9274_v9  ;;  %7248 = vmatprep.subr.bf16.mxu0 %v9281_v26  ;;  %v1284_v9 = vld [vmem:[#allocation6 + $0x908] sm:$0xff]  ;;  %v9337_v62 = vcombine.high %v1283_v51, %v1287_v22 }
 0x16d   : > { %7576 = vmatprep.subr.bf16.mxu1 %v9283_v28  ;;  %v1288_v26 = vld [vmem:[#allocation6 + $0x928] sm:$0xff]  ;;  %v9328_v28 = vcombine.low %v1275_v61, %v1279_v37  ;;  %v1331_v37 = vld [vmem:[#allocation6 + $0xa80] sm:$0xff] }
 0x16e   : > { %v9339_v20 = vcombine.high %v1284_v9, %v1288_v26 }
 0x16f   : > { %7249 = vmatpush1.bf16.msra.mxu0 %v9280_v16  ;;  %v1292_v16 = vld [vmem:[#allocation6 + $0x948] sm:$0xff] }
 0x170   : > { %7577 = vmatpush1.bf16.msra.mxu1 %v9282_v41  ;;  %7250 = vmatprep.subr.bf16.mxu0 %v9289_v57  ;;  %v1296_v41 = vld [vmem:[#allocation6 + $0x968] sm:$0xff]  ;;  %v9336_v57 = vcombine.low %v1283_v51, %v1287_v22  ;;  %v1339_v22 = vld [vmem:[#allocation6 + $0xac0] sm:$0xff] }
 0x171   : > { %7578 = vmatprep.subr.bf16.mxu1 %v9291_v45  ;;  %v9338_v45 = vcombine.low %v1284_v9, %v1288_v26  ;;  %v9347_v29 = vcombine.high %v1292_v16, %v1296_v41  ;;  %v1343_v9 = vld [vmem:[#allocation6 + $0xae0] sm:$0xff]  ;;  %v1340_v26 = vld [vmem:[#allocation6 + $0xac8] sm:$0xff] }
 0x173   : > { %7251 = vmatpush1.bf16.msra.mxu0 %v9288_v10  ;;  %v1300_v10 = vld [vmem:[#allocation6 + $0x988] sm:$0xff] }
 0x174   : > { %7579 = vmatpush1.bf16.msra.mxu1 %v9290_v19  ;;  %7252 = vmatprep.subr.bf16.mxu0 %v9297_v6  ;;  %v1304_v19 = vld [vmem:[#allocation6 + $0x9a8] sm:$0xff]  ;;  %v9344_v6 = vcombine.low %v1291_v40, %v1295_v3  ;;  %v1347_v3 = vld [vmem:[#allocation6 + $0xb00] sm:$0xff] }
 0x175   : > { %7580 = vmatprep.subr.bf16.mxu1 %v9299_v43  ;;  %v9346_v43 = vcombine.low %v1292_v16, %v1296_v41  ;;  %v9355_v32 = vcombine.high %v1300_v10, %v1304_v19  ;;  %v1351_v16 = vld [vmem:[#allocation6 + $0xb20] sm:$0xff]  ;;  %v1348_v41 = vld [vmem:[#allocation6 + $0xb08] sm:$0xff] }
 0x177   : > { %7253 = vmatpush1.bf16.msra.mxu0 %v9296_v56  ;;  %v1308_v56 = vld [vmem:[#allocation6 + $0x9c8] sm:$0xff] }
 0x178   : > { %7581 = vmatpush1.bf16.msra.mxu1 %v9298_v17  ;;  %7263 = vmatprep.subr.bf16.mxu0 %v9305_v0  ;;  %v1312_v17 = vld [vmem:[#allocation6 + $0x9e8] sm:$0xff]  ;;  %v9352_v0 = vcombine.low %v1299_v58, %v1303_v44  ;;  %v1355_v44 = vld [vmem:[#allocation6 + $0xb40] sm:$0xff] }
 0x179   : > { %7591 = vmatprep.subr.bf16.mxu1 %v9307_v8  ;;  %v9354_v8 = vcombine.low %v1300_v10, %v1304_v19  ;;  %v9363_v46 = vcombine.high %v1308_v56, %v1312_v17  ;;  %v1359_v10 = vld [vmem:[#allocation6 + $0xb60] sm:$0xff]  ;;  %v1356_v19 = vld [vmem:[#allocation6 + $0xb48] sm:$0xff] }
 0x17a   : > { %7255 = vmatmul.mubr.bf16.vlgmr.msra.gmra.mrb[0].mxu0 %v11458_v60 }
 0x17b   : > { %7264 = vmatpush1.bf16.msra.mxu0 %v9304_v36  ;;  %7583 = vmatmul.mubr.bf16.vlgmr.msra.gmra.mrb[0].mxu1 %v11458_v60  ;;  %v1320_v36 = vld [vmem:[#allocation6 + $0xa28] sm:$0xff] }
 0x17c   : > { %7592 = vmatpush1.bf16.msra.mxu1 %v9306_v18  ;;  %7265 = vmatprep.subr.bf16.mxu0 %v9313_v7  ;;  %v9360_v18 = vcombine.low %v1307_v48, %v1311_v15  ;;  %v9362_v7 = vcombine.low %v1308_v56, %v1312_v17  ;;  %v9371_v33 = vcombine.high %v1316_v49, %v1320_v36  ;;  %v1363_v15 = vld [vmem:[#allocation6 + $0xb80] sm:$0xff]  ;;  %v1364_v17 = vld [vmem:[#allocation6 + $0xb88] sm:$0xff] }
 0x17d   : > { %7593 = vmatprep.subr.bf16.mxu1 %v9315_v31  ;;  %7295 = vmatprep.mubr.bf16.mxu0 %v11460_v13  ;;  %v9369_v31 = vcombine.high %v1315_v47, %v1319_v63  ;;  %v1367_v56 = vld [vmem:[#allocation6 + $0xba0] sm:$0xff] }
 0x17e   : > { %7623 = vmatprep.mubr.bf16.mxu1 %v11460_v13 }
 0x17f   : > { %7266 = vmatpush1.bf16.msra.mxu0 %v9312_v21  ;;  %v1328_v21 = vld [vmem:[#allocation6 + $0xa68] sm:$0xff] }
 0x180   : > { %7594 = vmatpush1.bf16.msra.mxu1 %v9314_v54  ;;  %7267 = vmatprep.subr.bf16.mxu0 %v9321_v14  ;;  %v9368_v54 = vcombine.low %v1315_v47, %v1319_v63  ;;  %v9370_v14 = vcombine.low %v1316_v49, %v1320_v36  ;;  %v9379_v61 = vcombine.high %v1324_v2, %v1328_v21  ;;  %v1371_v63 = vld [vmem:[#allocation6 + $0xbc0] sm:$0xff] }
 0x181   : > { %7595 = vmatprep.subr.bf16.mxu1 %v9323_v24  ;;  %v9377_v24 = vcombine.high %v1323_v35, %v1327_v27  ;;  %v1375_v49 = vld [vmem:[#allocation6 + $0xbe0] sm:$0xff]  ;;  %v912_v36 = vcombine.high %v11448_v30, %v11448_v30 }
 0x183   : > { %7268 = vmatpush1.bf16.msra.mxu0 %v9320_v25  ;;  %v1336_v25 = vld [vmem:[#allocation6 + $0xaa8] sm:$0xff] }
 0x184   : > { %7596 = vmatpush1.bf16.msra.mxu1 %v9322_v55  ;;  %7269 = vmatprep.subr.bf16.mxu0 %v9329_v34  ;;  %v9376_v55 = vcombine.low %v1323_v35, %v1327_v27  ;;  %v9378_v34 = vcombine.low %v1324_v2, %v1328_v21  ;;  %v9387_v51 = vcombine.high %v1332_v59, %v1336_v25  ;;  %v1379_v2 = vld [vmem:[#allocation6 + $0xc00] sm:$0xff] }
 0x185   : > { %7597 = vmatprep.subr.bf16.mxu1 %v9331_v1  ;;  %v9385_v1 = vcombine.high %v1331_v37, %v1335_v4  ;;  %v9425_v35 = vcombine.high %v1371_v63, %v1375_v49  ;;  %v1383_v21 = vld [vmem:[#allocation6 + $0xc20] sm:$0xff] }
 0x187   : > { %7270 = vmatpush1.bf16.msra.mxu0 %v9328_v28  ;;  %v1344_v28 = vld [vmem:[#allocation6 + $0xae8] sm:$0xff] }
 0x188   : > { %7598 = vmatpush1.bf16.msra.mxu1 %v9330_v50  ;;  %7271 = vmatprep.subr.bf16.mxu0 %v9337_v62  ;;  %v9384_v50 = vcombine.low %v1331_v37, %v1335_v4  ;;  %v9386_v62 = vcombine.low %v1332_v59, %v1336_v25  ;;  %v9395_v40 = vcombine.high %v1340_v26, %v1344_v28  ;;  %v1387_v59 = vld [vmem:[#allocation6 + $0xc40] sm:$0xff] }
 0x189   : > { %7599 = vmatprep.subr.bf16.mxu1 %v9339_v20  ;;  %v9393_v20 = vcombine.high %v1339_v22, %v1343_v9  ;;  %v9433_v37 = vcombine.high %v1379_v2, %v1383_v21  ;;  %v1391_v25 = vld [vmem:[#allocation6 + $0xc60] sm:$0xff] }
 0x18b   : > { %7272 = vmatpush1.bf16.msra.mxu0 %v9336_v57  ;;  %v1352_v57 = vld [vmem:[#allocation6 + $0xb28] sm:$0xff] }
 0x18c   : > { %7600 = vmatpush1.bf16.msra.mxu1 %v9338_v45  ;;  %7273 = vmatprep.subr.bf16.mxu0 %v9345_v52  ;;  %v9392_v45 = vcombine.low %v1339_v22, %v1343_v9  ;;  %v9394_v52 = vcombine.low %v1340_v26, %v1344_v28  ;;  %v9403_v58 = vcombine.high %v1348_v41, %v1352_v57 }
 0x18d   : > { %7601 = vmatprep.subr.bf16.mxu1 %v9347_v29  ;;  %v9401_v29 = vcombine.high %v1347_v3, %v1351_v16  ;;  %v9432_v22 = vcombine.low %v1379_v2, %v1383_v21  ;;  %v9441_v26 = vcombine.high %v1387_v59, %v1391_v25 }
 0x18f   : > { %7274 = vmatpush1.bf16.msra.mxu0 %v9344_v6  ;;  %v1360_v6 = vld [vmem:[#allocation6 + $0xb68] sm:$0xff] }
 0x190   : > { %7602 = vmatpush1.bf16.msra.mxu1 %v9346_v43  ;;  %7275 = vmatprep.subr.bf16.mxu0 %v9353_v12  ;;  %v9400_v43 = vcombine.low %v1347_v3, %v1351_v16  ;;  %v9402_v12 = vcombine.low %v1348_v41, %v1352_v57  ;;  %v9411_v48 = vcombine.high %v1356_v19, %v1360_v6  ;;  %v1400_v3 = vld [vmem:[#allocation6 + $0xca8] sm:$0xff] }
 0x191   : > { %7603 = vmatprep.subr.bf16.mxu1 %v9355_v32  ;;  %v9409_v32 = vcombine.high %v1355_v44, %v1359_v10 }
 0x193   : > { %7276 = vmatpush1.bf16.msra.mxu0 %v9352_v0  ;;  %v1368_v0 = vld [vmem:[#allocation6 + $0xba8] sm:$0xff] }
 0x194   : > { %7604 = vmatpush1.bf16.msra.mxu1 %v9354_v8  ;;  %7277 = vmatprep.subr.bf16.mxu0 %v9361_v11  ;;  %v9408_v8 = vcombine.low %v1355_v44, %v1359_v10  ;;  %v9410_v11 = vcombine.low %v1356_v19, %v1360_v6  ;;  %v9419_v47 = vcombine.high %v1364_v17, %v1368_v0 }
 0x195   : > { %7605 = vmatprep.subr.bf16.mxu1 %v9363_v46  ;;  %v9417_v46 = vcombine.high %v1363_v15, %v1367_v56 }
 0x197   : > { %7278 = vmatpush1.bf16.msra.mxu0 %v9360_v18  ;;  %v1372_v18 = vld [vmem:[#allocation6 + $0xbc8] sm:$0xff] }
 0x198   : > { %7606 = vmatpush1.bf16.msra.mxu1 %v9362_v7  ;;  %7279 = vmatprep.subr.bf16.mxu0 %v9369_v31  ;;  %v1376_v7 = vld [vmem:[#allocation6 + $0xbe8] sm:$0xff]  ;;  %v9416_v31 = vcombine.low %v1363_v15, %v1367_v56 }
 0x199   : > { %7607 = vmatprep.subr.bf16.mxu1 %v9371_v33  ;;  %v9418_v33 = vcombine.low %v1364_v17, %v1368_v0  ;;  %v9427_v27 = vcombine.high %v1372_v18, %v1376_v7  ;;  %v9426_v30 = vcombine.low %v1372_v18, %v1376_v7  ;;  %v1427_v7 = vld [vmem:[#allocation6 + $0xd80] sm:$0xff] }
 0x19b   : > { %7280 = vmatpush1.bf16.msra.mxu0 %v9368_v54  ;;  %v11469_v54 = vrot.slane %v912_v36, %v11378_v23 }
 0x19c   : > { %7608 = vmatpush1.bf16.msra.mxu1 %v9370_v14  ;;  %7281 = vmatprep.subr.bf16.mxu0 %v9377_v24  ;;  %v1380_v14 = vld [vmem:[#allocation6 + $0xc08] sm:$0xff] }
 0x19d   : > { %7609 = vmatprep.subr.bf16.mxu1 %v9379_v61  ;;  %v1384_v24 = vld [vmem:[#allocation6 + $0xc28] sm:$0xff]  ;;  %v9424_v61 = vcombine.low %v1371_v63, %v1375_v49 }
 0x19e   : > { %v9435_v4 = vcombine.high %v1380_v14, %v1384_v24  ;;  %v9434_v9 = vcombine.low %v1380_v14, %v1384_v24  ;;  %v1435_v24 = vld [vmem:[#allocation6 + $0xdc0] sm:$0xff] }
 0x19f   : > { %7282 = vmatpush1.bf16.msra.mxu0 %v9376_v55  ;;  %v928_v55 = vcombine.high %v11469_v54, %v11469_v54 }
 0x1a0   : > { %7610 = vmatpush1.bf16.msra.mxu1 %v9378_v34  ;;  %7283 = vmatprep.subr.bf16.mxu0 %v9385_v1  ;;  %v11475_v34 = vpack.c.bf16 %v11452_v53, %v11452_v53  ;;  %v1388_v1 = vld [vmem:[#allocation6 + $0xc48] sm:$0xff]  ;;  %v9440_v53 = vcombine.low %v1387_v59, %v1391_v25 }
 0x1a1   : > { %7611 = vmatprep.subr.bf16.mxu1 %v9387_v51  ;;  %v1392_v51 = vld [vmem:[#allocation6 + $0xc68] sm:$0xff] }
 0x1a2   : > { %v9443_v28 = vcombine.high %v1388_v1, %v1392_v51  ;;  %v9442_v16 = vcombine.low %v1388_v1, %v1392_v51  ;;  %v1443_v1 = vld [vmem:[#allocation6 + $0xe00] sm:$0xff] }
 0x1a3   : > { %7284 = vmatpush1.bf16.msra.mxu0 %v9384_v50  ;;  %v1395_v50 = vld [vmem:[#allocation6 + $0xc80] sm:$0xff] }
 0x1a4   : > { %7612 = vmatpush1.bf16.msra.mxu1 %v9386_v62  ;;  %7285 = vmatprep.subr.bf16.mxu0 %v9393_v20  ;;  %v1399_v62 = vld [vmem:[#allocation6 + $0xca0] sm:$0xff]  ;;  %v11477_v20 = vpack.c.bf16 %v928_v55, %v928_v55 }
 0x1a5   : > { %7613 = vmatprep.subr.bf16.mxu1 %v9395_v40  ;;  %v1396_v40 = vld [vmem:[#allocation6 + $0xc88] sm:$0xff]  ;;  %v9449_v41 = vcombine.high %v1395_v50, %v1399_v62  ;;  %v9448_v44 = vcombine.low %v1395_v50, %v1399_v62  ;;  %v1447_v51 = vld [vmem:[#allocation6 + $0xe20] sm:$0xff] }
 0x1a6   : > { %v9451_v57 = vcombine.high %v1396_v40, %v1400_v3  ;;  %v9450_v10 = vcombine.low %v1396_v40, %v1400_v3  ;;  %v9497_v50 = vcombine.high %v1443_v1, %v1447_v51  ;;  %v1451_v40 = vld [vmem:[#allocation6 + $0xe40] sm:$0xff] }
 0x1a7   : > { %7286 = vmatpush1.bf16.msra.mxu0 %v9392_v45  ;;  %v1403_v45 = vld [vmem:[#allocation6 + $0xcc0] sm:$0xff] }
 0x1a8   : > { %7614 = vmatpush1.bf16.msra.mxu1 %v9394_v52  ;;  %7287 = vmatprep.subr.bf16.mxu0 %v9401_v29  ;;  %v1407_v52 = vld [vmem:[#allocation6 + $0xce0] sm:$0xff]  ;;  %v1404_v29 = vld [vmem:[#allocation6 + $0xcc8] sm:$0xff] }
 0x1a9   : > { %7615 = vmatprep.subr.bf16.mxu1 %v9403_v58  ;;  %v1408_v58 = vld [vmem:[#allocation6 + $0xce8] sm:$0xff]  ;;  %v9457_v19 = vcombine.high %v1403_v45, %v1407_v52  ;;  %v9456_v15 = vcombine.low %v1403_v45, %v1407_v52  ;;  %v1455_v3 = vld [vmem:[#allocation6 + $0xe60] sm:$0xff] }
 0x1aa   : > { %v9459_v6 = vcombine.high %v1404_v29, %v1408_v58  ;;  %v9458_v56 = vcombine.low %v1404_v29, %v1408_v58  ;;  %v9505_v45 = vcombine.high %v1451_v40, %v1455_v3  ;;  %v1459_v29 = vld [vmem:[#allocation6 + $0xe80] sm:$0xff] }
 0x1ab   : > { %7288 = vmatpush1.bf16.msra.mxu0 %v9400_v43  ;;  %v1411_v43 = vld [vmem:[#allocation6 + $0xd00] sm:$0xff] }
 0x1ac   : > { %7616 = vmatpush1.bf16.msra.mxu1 %v9402_v12  ;;  %7289 = vmatprep.subr.bf16.mxu0 %v9409_v32  ;;  %v1415_v12 = vld [vmem:[#allocation6 + $0xd20] sm:$0xff]  ;;  %v1412_v32 = vld [vmem:[#allocation6 + $0xd08] sm:$0xff] }
 0x1ad   : > { %7617 = vmatprep.subr.bf16.mxu1 %v9411_v48  ;;  %v1416_v48 = vld [vmem:[#allocation6 + $0xd28] sm:$0xff]  ;;  %v9465_v17 = vcombine.high %v1411_v43, %v1415_v12  ;;  %v9464_v63 = vcombine.low %v1411_v43, %v1415_v12  ;;  %v1463_v58 = vld [vmem:[#allocation6 + $0xea0] sm:$0xff] }
 0x1ae   : > { %v9467_v0 = vcombine.high %v1412_v32, %v1416_v48  ;;  %v9466_v49 = vcombine.low %v1412_v32, %v1416_v48  ;;  %v9513_v43 = vcombine.high %v1459_v29, %v1463_v58  ;;  %v1467_v32 = vld [vmem:[#allocation6 + $0xec0] sm:$0xff] }
 0x1af   : > { %7290 = vmatpush1.bf16.msra.mxu0 %v9408_v8  ;;  %v1419_v8 = vld [vmem:[#allocation6 + $0xd40] sm:$0xff] }
 0x1b0   : > { %7618 = vmatpush1.bf16.msra.mxu1 %v9410_v11  ;;  %7291 = vmatprep.subr.bf16.mxu0 %v9417_v46  ;;  %v1423_v11 = vld [vmem:[#allocation6 + $0xd60] sm:$0xff]  ;;  %v1420_v46 = vld [vmem:[#allocation6 + $0xd48] sm:$0xff] }
 0x1b1   : > { %7619 = vmatprep.subr.bf16.mxu1 %v9419_v47  ;;  %v1424_v47 = vld [vmem:[#allocation6 + $0xd68] sm:$0xff]  ;;  %v9473_v36 = vcombine.high %v1419_v8, %v1423_v11  ;;  %v1471_v48 = vld [vmem:[#allocation6 + $0xee0] sm:$0xff] }
 0x1b2   : > { %v9475_v18 = vcombine.high %v1420_v46, %v1424_v47  ;;  %v9474_v2 = vcombine.low %v1420_v46, %v1424_v47  ;;  %v1475_v46 = vld [vmem:[#allocation6 + $0xf00] sm:$0xff] }
 0x1b3   : > { %7292 = vmatpush1.bf16.msra.mxu0 %v9416_v31  ;;  %v1431_v31 = vld [vmem:[#allocation6 + $0xda0] sm:$0xff] }
 0x1b4   : > { %7620 = vmatpush1.bf16.msra.mxu1 %v9418_v33  ;;  %7293 = vmatprep.subr.bf16.mxu0 %v9425_v35  ;;  %v1428_v33 = vld [vmem:[#allocation6 + $0xd88] sm:$0xff]  ;;  %v9481_v21 = vcombine.high %v1427_v7, %v1431_v31  ;;  %v1479_v47 = vld [vmem:[#allocation6 + $0xf20] sm:$0xff] }
 0x1b5   : > { %7621 = vmatprep.subr.bf16.mxu1 %v9427_v27  ;;  %v1432_v35 = vld [vmem:[#allocation6 + $0xda8] sm:$0xff]  ;;  %v9472_v27 = vcombine.low %v1419_v8, %v1423_v11  ;;  %v9521_v8 = vcombine.high %v1467_v32, %v1471_v48 }
 0x1b6   : > { %v9483_v14 = vcombine.high %v1428_v33, %v1432_v35  ;;  %v9482_v59 = vcombine.low %v1428_v33, %v1432_v35  ;;  %v1483_v33 = vld [vmem:[#allocation6 + $0xf40] sm:$0xff] }
 0x1b7   : > { %7294 = vmatpush1.bf16.msra.mxu0 %v9424_v61  ;;  %v1439_v61 = vld [vmem:[#allocation6 + $0xde0] sm:$0xff] }
 0x1b8   : > { %7622 = vmatpush1.bf16.msra.mxu1 %v9426_v30  ;;  %7304 = vmatprep.subr.bf16.mxu0 %v9433_v37  ;;  %v1436_v30 = vld [vmem:[#allocation6 + $0xdc8] sm:$0xff]  ;;  %v9489_v25 = vcombine.high %v1435_v24, %v1439_v61  ;;  %v1487_v35 = vld [vmem:[#allocation6 + $0xf60] sm:$0xff] }
 0x1b9   : > { %7632 = vmatprep.subr.bf16.mxu1 %v9435_v4  ;;  %v1440_v37 = vld [vmem:[#allocation6 + $0xde8] sm:$0xff]  ;;  %v9480_v4 = vcombine.low %v1427_v7, %v1431_v31  ;;  %v9529_v7 = vcombine.high %v1475_v46, %v1479_v47 }
 0x1ba   : > { %7296 = vmatmul.mubr.bf16.vlgmr.msra.gmra.mrb[0].mxu0 %v11475_v34  ;;  %v9491_v55 = vcombine.high %v1436_v30, %v1440_v37 }
 0x1bb   : > { %7305 = vmatpush1.bf16.msra.mxu0 %v9432_v22  ;;  %7624 = vmatmul.mubr.bf16.vlgmr.msra.gmra.mrb[0].mxu1 %v11475_v34  ;;  %v1444_v22 = vld [vmem:[#allocation6 + $0xe08] sm:$0xff] }
 0x1bc   : > { %7633 = vmatpush1.bf16.msra.mxu1 %v9434_v9  ;;  %7306 = vmatprep.subr.bf16.mxu0 %v9441_v26  ;;  %v1448_v9 = vld [vmem:[#allocation6 + $0xe28] sm:$0xff]  ;;  %v9488_v26 = vcombine.low %v1435_v24, %v1439_v61  ;;  %v9537_v24 = vcombine.high %v1483_v33, %v1487_v35 }
 0x1bd   : > { %7634 = vmatprep.subr.bf16.mxu1 %v9443_v28  ;;  %7336 = vmatprep.mubr.bf16.mxu0 %v11477_v20  ;;  %v9490_v28 = vcombine.low %v1436_v30, %v1440_v37  ;;  %v9499_v62 = vcombine.high %v1444_v22, %v1448_v9  ;;  %v1491_v30 = vld [vmem:[#allocation6 + $0xf80] sm:$0xff] }
 0x1be   : > { %7664 = vmatprep.mubr.bf16.mxu1 %v11477_v20  ;;  %v1495_v37 = vld [vmem:[#allocation6 + $0xfa0] sm:$0xff] }
 0x1bf   : > { %7307 = vmatpush1.bf16.msra.mxu0 %v9440_v53  ;;  %v1452_v53 = vld [vmem:[#allocation6 + $0xe48] sm:$0xff] }
 0x1c0   : > { %7635 = vmatpush1.bf16.msra.mxu1 %v9442_v16  ;;  %7308 = vmatprep.subr.bf16.mxu0 %v9449_v41  ;;  %v1456_v16 = vld [vmem:[#allocation6 + $0xe68] sm:$0xff]  ;;  %v9496_v41 = vcombine.low %v1443_v1, %v1447_v51  ;;  %v9545_v51 = vcombine.high %v1491_v30, %v1495_v37 }
 0x1c1   : > { %7636 = vmatprep.subr.bf16.mxu1 %v9451_v57  ;;  %v9498_v57 = vcombine.low %v1444_v22, %v1448_v9  ;;  %v9507_v52 = vcombine.high %v1452_v53, %v1456_v16  ;;  %v1499_v9 = vld [vmem:[#allocation6 + $0xfc0] sm:$0xff] }
 0x1c3   : > { %7309 = vmatpush1.bf16.msra.mxu0 %v9448_v44  ;;  %v1460_v44 = vld [vmem:[#allocation6 + $0xe88] sm:$0xff] }
 0x1c4   : > { %7637 = vmatpush1.bf16.msra.mxu1 %v9450_v10  ;;  %7310 = vmatprep.subr.bf16.mxu0 %v9457_v19  ;;  %v1464_v10 = vld [vmem:[#allocation6 + $0xea8] sm:$0xff]  ;;  %v9504_v19 = vcombine.low %v1451_v40, %v1455_v3  ;;  %v9544_v40 = vcombine.low %v1491_v30, %v1495_v37  ;;  %v1543_v30 = vld [vmem:[#allocation6 + $0x1120] sm:$0xff] }
 0x1c5   : > { %7638 = vmatprep.subr.bf16.mxu1 %v9459_v6  ;;  %v9506_v6 = vcombine.low %v1452_v53, %v1456_v16  ;;  %v9515_v12 = vcombine.high %v1460_v44, %v1464_v10  ;;  %v1540_v37 = vld [vmem:[#allocation6 + $0x1108] sm:$0xff] }
 0x1c7   : > { %7311 = vmatpush1.bf16.msra.mxu0 %v9456_v15  ;;  %v1468_v15 = vld [vmem:[#allocation6 + $0xec8] sm:$0xff] }
 0x1c8   : > { %7639 = vmatpush1.bf16.msra.mxu1 %v9458_v56  ;;  %7312 = vmatprep.subr.bf16.mxu0 %v9465_v17  ;;  %v1472_v56 = vld [vmem:[#allocation6 + $0xee8] sm:$0xff]  ;;  %v9512_v17 = vcombine.low %v1459_v29, %v1463_v58 }
 0x1c9   : > { %7640 = vmatprep.subr.bf16.mxu1 %v9467_v0  ;;  %v9514_v0 = vcombine.low %v1460_v44, %v1464_v10  ;;  %v9523_v11 = vcombine.high %v1468_v15, %v1472_v56  ;;  %v1512_v29 = vld [vmem:[#allocation6 + $0x1028] sm:$0xff] }
 0x1cb   : > { %7313 = vmatpush1.bf16.msra.mxu0 %v9464_v63  ;;  %v1476_v63 = vld [vmem:[#allocation6 + $0xf08] sm:$0xff] }
 0x1cc   : > { %7641 = vmatpush1.bf16.msra.mxu1 %v9466_v49  ;;  %7314 = vmatprep.subr.bf16.mxu0 %v9473_v36  ;;  %v1480_v49 = vld [vmem:[#allocation6 + $0xf28] sm:$0xff]  ;;  %v9520_v36 = vcombine.low %v1467_v32, %v1471_v48  ;;  %v11493_v32 = vpack.c.bf16 %v11469_v54, %v11469_v54 }
 0x1cd   : > { %7642 = vmatprep.subr.bf16.mxu1 %v9475_v18  ;;  %v9522_v18 = vcombine.low %v1468_v15, %v1472_v56  ;;  %v9531_v31 = vcombine.high %v1476_v63, %v1480_v49  ;;  %v1516_v48 = vld [vmem:[#allocation6 + $0x1048] sm:$0xff] }
 0x1ce   : > { %v1520_v15 = vld [vmem:[#allocation6 + $0x1068] sm:$0xff] }
 0x1cf   : > { %7315 = vmatpush1.bf16.msra.mxu0 %v9472_v27  ;;  %v1484_v27 = vld [vmem:[#allocation6 + $0xf48] sm:$0xff] }
 0x1d0   : > { %7643 = vmatpush1.bf16.msra.mxu1 %v9474_v2  ;;  %7316 = vmatprep.subr.bf16.mxu0 %v9481_v21  ;;  %v1488_v2 = vld [vmem:[#allocation6 + $0xf68] sm:$0xff]  ;;  %v9528_v21 = vcombine.low %v1475_v46, %v1479_v47  ;;  %v1527_v46 = vld [vmem:[#allocation6 + $0x10a0] sm:$0xff] }
 0x1d1   : > { %7644 = vmatprep.subr.bf16.mxu1 %v9483_v14  ;;  %v9530_v14 = vcombine.low %v1476_v63, %v1480_v49  ;;  %v9539_v61 = vcombine.high %v1484_v27, %v1488_v2  ;;  %v9538_v1 = vcombine.low %v1484_v27, %v1488_v2  ;;  %v1524_v63 = vld [vmem:[#allocation6 + $0x1088] sm:$0xff] }
 0x1d2   : > { %v1528_v49 = vld [vmem:[#allocation6 + $0x10a8] sm:$0xff] }
 0x1d3   : > { %7317 = vmatpush1.bf16.msra.mxu0 %v9480_v4  ;;  %v1492_v4 = vld [vmem:[#allocation6 + $0xf88] sm:$0xff] }
 0x1d4   : > { %7645 = vmatpush1.bf16.msra.mxu1 %v9482_v59  ;;  %7318 = vmatprep.subr.bf16.mxu0 %v9489_v25  ;;  %v1496_v59 = vld [vmem:[#allocation6 + $0xfa8] sm:$0xff]  ;;  %v885_v25 = vld [vmem:[#allocation2 + $0x10] sm:$0xff] }
 0x1d5   : > { %7646 = vmatprep.subr.bf16.mxu1 %v9491_v55  ;;  %v9536_v55 = vcombine.low %v1483_v33, %v1487_v35  ;;  %v9547_v22 = vcombine.high %v1492_v4, %v1496_v59  ;;  %v9546_v3 = vcombine.low %v1492_v4, %v1496_v59  ;;  %v1535_v33 = vld [vmem:[#allocation6 + $0x10e0] sm:$0xff]  ;;  %v1532_v35 = vld [vmem:[#allocation6 + $0x10c8] sm:$0xff] }
 0x1d6   : > { %v1536_v27 = vld [vmem:[#allocation6 + $0x10e8] sm:$0xff] }
 0x1d7   : > { %7319 = vmatpush1.bf16.msra.mxu0 %v9488_v26  ;;  %v1503_v26 = vld [vmem:[#allocation6 + $0xfe0] sm:$0xff]  ;;  %v1544_v4 = vld [vmem:[#allocation6 + $0x1128] sm:$0xff] }
 0x1d8   : > { %7647 = vmatpush1.bf16.msra.mxu1 %v9490_v28  ;;  %7320 = vmatprep.subr.bf16.mxu0 %v9497_v50  ;;  %v11483_v28 = vmul.f32 0.33333334, %v885_v25  ;;  %v1500_v50 = vld [vmem:[#allocation6 + $0xfc8] sm:$0xff]  ;;  %v9553_v53 = vcombine.high %v1499_v9, %v1503_v26  ;;  %v9552_v58 = vcombine.low %v1499_v9, %v1503_v26  ;;  %v9586_v25 = vcombine.low %v1532_v35, %v1536_v27 }
 0x1d9   : > { %7648 = vmatprep.subr.bf16.mxu1 %v9499_v62  ;;  %v1504_v62 = vld [vmem:[#allocation6 + $0xfe8] sm:$0xff] }
 0x1da   : > { %v9555_v16 = vcombine.high %v1500_v50, %v1504_v62  ;;  %v9554_v44 = vcombine.low %v1500_v50, %v1504_v62  ;;  %v1548_v9 = vld [vmem:[#allocation6 + $0x1148] sm:$0xff]  ;;  %v9594_v62 = vcombine.low %v1540_v37, %v1544_v4 }
 0x1db   : > { %7321 = vmatpush1.bf16.msra.mxu0 %v9496_v41  ;;  %v1507_v41 = vld [vmem:[#allocation6 + $0x1000] sm:$0xff]  ;;  %v1552_v26 = vld [vmem:[#allocation6 + $0x1168] sm:$0xff] }
 0x1dc   : > { %7649 = vmatpush1.bf16.msra.mxu1 %v9498_v57  ;;  %7322 = vmatprep.subr.bf16.mxu0 %v9505_v45  ;;  %v1511_v57 = vld [vmem:[#allocation6 + $0x1020] sm:$0xff]  ;;  %v11487_v45 = vrot.slane %v11483_v28, %v11378_v23 }
 0x1dd   : > { %7650 = vmatprep.subr.bf16.mxu1 %v9507_v52  ;;  %v1508_v52 = vld [vmem:[#allocation6 + $0x1008] sm:$0xff]  ;;  %v9561_v10 = vcombine.high %v1507_v41, %v1511_v57  ;;  %v9560_v56 = vcombine.low %v1507_v41, %v1511_v57 }
 0x1de   : > { %v1556_v41 = vld [vmem:[#allocation6 + $0x1188] sm:$0xff] }
 0x1df   : > { %7323 = vmatpush1.bf16.msra.mxu0 %v9504_v19  ;;  %v9563_v19 = vcombine.high %v1508_v52, %v1512_v29  ;;  %v1560_v57 = vld [vmem:[#allocation6 + $0x11a8] sm:$0xff] }
 0x1e0   : > { %7651 = vmatpush1.bf16.msra.mxu1 %v9506_v6  ;;  %7324 = vmatprep.subr.bf16.mxu0 %v9513_v43  ;;  %v1515_v6 = vld [vmem:[#allocation6 + $0x1040] sm:$0xff] }
 0x1e1   : > { %7652 = vmatprep.subr.bf16.mxu1 %v9515_v12  ;;  %v1519_v43 = vld [vmem:[#allocation6 + $0x1060] sm:$0xff]  ;;  %v944_v12 = vcombine.high %v11487_v45, %v11487_v45 }
 0x1e2   : > { %v9568_v54 = vcombine.low %v1515_v6, %v1519_v43 }
 0x1e3   : > { %7325 = vmatpush1.bf16.msra.mxu0 %v9512_v17  ;;  %v9562_v17 = vcombine.low %v1508_v52, %v1512_v29  ;;  %v11495_v47 = vpack.c.bf16 %v944_v12, %v944_v12  ;;  %v9602_v29 = vcombine.low %v1548_v9, %v1552_v26 }
 0x1e4   : > { %7653 = vmatpush1.bf16.msra.mxu1 %v9514_v0  ;;  %7326 = vmatprep.subr.bf16.mxu0 %v9521_v8  ;;  %v9569_v0 = vcombine.high %v1515_v6, %v1519_v43  ;;  %v9571_v8 = vcombine.high %v1516_v48, %v1520_v15  ;;  %v1564_v6 = vld [vmem:[#allocation6 + $0x11c8] sm:$0xff] }
 0x1e5   : > { %7654 = vmatprep.subr.bf16.mxu1 %v9523_v11  ;;  %v1523_v11 = vld [vmem:[#allocation6 + $0x1080] sm:$0xff]  ;;  %v1568_v43 = vld [vmem:[#allocation6 + $0x11e8] sm:$0xff] }
 0x1e6   : > { %v9576_v2 = vcombine.low %v1523_v11, %v1527_v46 }
 0x1e7   : > { %7327 = vmatpush1.bf16.msra.mxu0 %v9520_v36  ;;  %v9570_v36 = vcombine.low %v1516_v48, %v1520_v15  ;;  %v9610_v48 = vcombine.low %v1556_v41, %v1560_v57 }
 0x1e8   : > { %7655 = vmatpush1.bf16.msra.mxu1 %v9522_v18  ;;  %7328 = vmatprep.subr.bf16.mxu0 %v9529_v7  ;;  %v9577_v18 = vcombine.high %v1523_v11, %v1527_v46  ;;  %v9579_v7 = vcombine.high %v1524_v63, %v1528_v49  ;;  %v1576_v11 = vld [vmem:[#allocation6 + $0x1228] sm:$0xff] }
 0x1e9   : > { %7656 = vmatprep.subr.bf16.mxu1 %v9531_v31  ;;  %v1531_v31 = vld [vmem:[#allocation6 + $0x10c0] sm:$0xff] }
 0x1ea   : > { %v9584_v59 = vcombine.low %v1531_v31, %v1535_v33 }
 0x1eb   : > { %7329 = vmatpush1.bf16.msra.mxu0 %v9528_v21  ;;  %v9578_v21 = vcombine.low %v1524_v63, %v1528_v49  ;;  %v9618_v63 = vcombine.low %v1564_v6, %v1568_v43 }
 0x1ec   : > { %7657 = vmatpush1.bf16.msra.mxu1 %v9530_v14  ;;  %7330 = vmatprep.subr.bf16.mxu0 %v9537_v24  ;;  %v9585_v14 = vcombine.high %v1531_v31, %v1535_v33  ;;  %v9587_v24 = vcombine.high %v1532_v35, %v1536_v27  ;;  %v1584_v31 = vld [vmem:[#allocation6 + $0x1268] sm:$0xff] }
 0x1ed   : > { %7658 = vmatprep.subr.bf16.mxu1 %v9539_v61  ;;  %v1539_v61 = vld [vmem:[#allocation6 + $0x1100] sm:$0xff] }
 0x1ee   : > { %v9592_v50 = vcombine.low %v1539_v61, %v1543_v30 }
 0x1ef   : > { %7331 = vmatpush1.bf16.msra.mxu0 %v9536_v55  ;;  %v9593_v55 = vcombine.high %v1539_v61, %v1543_v30  ;;  %v1592_v61 = vld [vmem:[#allocation6 + $0x12a8] sm:$0xff] }
 0x1f0   : > { %7659 = vmatpush1.bf16.msra.mxu1 %v9538_v1  ;;  %7332 = vmatprep.subr.bf16.mxu0 %v9545_v51  ;;  %v9595_v1 = vcombine.high %v1540_v37, %v1544_v4  ;;  %v1547_v51 = vld [vmem:[#allocation6 + $0x1140] sm:$0xff] }
 0x1f1   : > { %7660 = vmatprep.subr.bf16.mxu1 %v9547_v22  ;;  %v1551_v22 = vld [vmem:[#allocation6 + $0x1160] sm:$0xff] }
 0x1f2   : > { %v9600_v52 = vcombine.low %v1547_v51, %v1551_v22 }
 0x1f3   : > { %7333 = vmatpush1.bf16.msra.mxu0 %v9544_v40  ;;  %v9601_v40 = vcombine.high %v1547_v51, %v1551_v22  ;;  %v1600_v51 = vld [vmem:[#allocation6 + $0x12e8] sm:$0xff] }
 0x1f4   : > { %7661 = vmatpush1.bf16.msra.mxu1 %v9546_v3  ;;  %7334 = vmatprep.subr.bf16.mxu0 %v9553_v53  ;;  %v9603_v3 = vcombine.high %v1548_v9, %v1552_v26  ;;  %v1555_v53 = vld [vmem:[#allocation6 + $0x1180] sm:$0xff] }
 0x1f5   : > { %7662 = vmatprep.subr.bf16.mxu1 %v9555_v16  ;;  %v1559_v16 = vld [vmem:[#allocation6 + $0x11a0] sm:$0xff] }
 0x1f6   : > { %v9608_v12 = vcombine.low %v1555_v53, %v1559_v16 }
 0x1f7   : > { %7335 = vmatpush1.bf16.msra.mxu0 %v9552_v58  ;;  %v9609_v58 = vcombine.high %v1555_v53, %v1559_v16  ;;  %v1608_v53 = vld [vmem:[#allocation6 + $0x1328] sm:$0xff] }
 0x1f8   : > { %7663 = vmatpush1.bf16.msra.mxu1 %v9554_v44  ;;  %7345 = vmatprep.subr.bf16.mxu0 %v9561_v10  ;;  %v9611_v44 = vcombine.high %v1556_v41, %v1560_v57  ;;  %v1563_v10 = vld [vmem:[#allocation6 + $0x11c0] sm:$0xff] }
 0x1f9   : > { %7673 = vmatprep.subr.bf16.mxu1 %v9563_v19  ;;  %v1567_v19 = vld [vmem:[#allocation6 + $0x11e0] sm:$0xff] }
 0x1fa   : > { %7337 = vmatmul.mubr.bf16.vlgmr.msra.gmra.mrb[0].mxu0 %v11493_v32  ;;  %v9617_v15 = vcombine.high %v1563_v10, %v1567_v19  ;;  %v9616_v46 = vcombine.low %v1563_v10, %v1567_v19  ;;  %v1616_v10 = vld [vmem:[#allocation6 + $0x1368] sm:$0xff] }
 0x1fb   : > { %7346 = vmatpush1.bf16.msra.mxu0 %v9560_v56  ;;  %7665 = vmatmul.mubr.bf16.vlgmr.msra.gmra.mrb[0].mxu1 %v11493_v32  ;;  %v9619_v56 = vcombine.high %v1564_v6, %v1568_v43 }
 0x1fc   : > { %7674 = vmatpush1.bf16.msra.mxu1 %v9562_v17  ;;  %7347 = vmatprep.subr.bf16.mxu0 %v9569_v0  ;;  %v1571_v17 = vld [vmem:[#allocation6 + $0x1200] sm:$0xff] }
 0x1fd   : > { %7675 = vmatprep.subr.bf16.mxu1 %v9571_v8  ;;  %7377 = vmatprep.mubr.bf16.mxu0 %v11495_v47  ;;  %v1575_v0 = vld [vmem:[#allocation6 + $0x1220] sm:$0xff]  ;;  %v1572_v8 = vld [vmem:[#allocation6 + $0x1208] sm:$0xff] }
 0x1fe   : > { %7705 = vmatprep.mubr.bf16.mxu1 %v11495_v47  ;;  %v9625_v49 = vcombine.high %v1571_v17, %v1575_v0  ;;  %v9624_v33 = vcombine.low %v1571_v17, %v1575_v0  ;;  %v9626_v35 = vcombine.low %v1572_v8, %v1576_v11  ;;  %v1624_v17 = vld [vmem:[#allocation6 + $0x13a8] sm:$0xff] }
 0x1ff   : > { %7348 = vmatpush1.bf16.msra.mxu0 %v9568_v54  ;;  %v9627_v54 = vcombine.high %v1572_v8, %v1576_v11 }
 0x200   : > { %7676 = vmatpush1.bf16.msra.mxu1 %v9570_v36  ;;  %7349 = vmatprep.subr.bf16.mxu0 %v9577_v18  ;;  %v1579_v36 = vld [vmem:[#allocation6 + $0x1240] sm:$0xff] }
 0x201   : > { %7677 = vmatprep.subr.bf16.mxu1 %v9579_v7  ;;  %v1583_v18 = vld [vmem:[#allocation6 + $0x1260] sm:$0xff]  ;;  %v1580_v7 = vld [vmem:[#allocation6 + $0x1248] sm:$0xff] }
 0x202   : > { %v9633_v27 = vcombine.high %v1579_v36, %v1583_v18  ;;  %v9632_v30 = vcombine.low %v1579_v36, %v1583_v18  ;;  %v9634_v37 = vcombine.low %v1580_v7, %v1584_v31  ;;  %v1628_v36 = vld [vmem:[#allocation6 + $0x13c8] sm:$0xff] }
 0x203   : > { %7350 = vmatpush1.bf16.msra.mxu0 %v9576_v2  ;;  %v9635_v2 = vcombine.high %v1580_v7, %v1584_v31  ;;  %v1632_v18 = vld [vmem:[#allocation6 + $0x13e8] sm:$0xff] }
 0x204   : > { %7678 = vmatpush1.bf16.msra.mxu1 %v9578_v21  ;;  %7351 = vmatprep.subr.bf16.mxu0 %v9585_v14  ;;  %v1587_v21 = vld [vmem:[#allocation6 + $0x1280] sm:$0xff] }
 0x205   : > { %7679 = vmatprep.subr.bf16.mxu1 %v9587_v24  ;;  %v1591_v14 = vld [vmem:[#allocation6 + $0x12a0] sm:$0xff]  ;;  %v1588_v24 = vld [vmem:[#allocation6 + $0x1288] sm:$0xff] }
 0x206   : > { %v9641_v4 = vcombine.high %v1587_v21, %v1591_v14  ;;  %v9640_v22 = vcombine.low %v1587_v21, %v1591_v14  ;;  %v9642_v9 = vcombine.low %v1588_v24, %v1592_v61  ;;  %v1636_v14 = vld [vmem:[#allocation6 + $0x1408] sm:$0xff] }
 0x207   : > { %7352 = vmatpush1.bf16.msra.mxu0 %v9584_v59  ;;  %v9643_v59 = vcombine.high %v1588_v24, %v1592_v61  ;;  %v1640_v24 = vld [vmem:[#allocation6 + $0x1428] sm:$0xff] }
 0x208   : > { %7680 = vmatpush1.bf16.msra.mxu1 %v9586_v25  ;;  %7353 = vmatprep.subr.bf16.mxu0 %v9593_v55  ;;  %v1595_v25 = vld [vmem:[#allocation6 + $0x12c0] sm:$0xff] }
 0x209   : > { %7681 = vmatprep.subr.bf16.mxu1 %v9595_v1  ;;  %v1599_v55 = vld [vmem:[#allocation6 + $0x12e0] sm:$0xff]  ;;  %v1596_v1 = vld [vmem:[#allocation6 + $0x12c8] sm:$0xff] }
 0x20a   : > { %v9649_v26 = vcombine.high %v1595_v25, %v1599_v55  ;;  %v9648_v16 = vcombine.low %v1595_v25, %v1599_v55  ;;  %v9650_v41 = vcombine.low %v1596_v1, %v1600_v51  ;;  %v11510_v55 = vpack.c.bf16 %v11487_v45, %v11487_v45 }
 0x20b   : > { %7354 = vmatpush1.bf16.msra.mxu0 %v9592_v50  ;;  %v9651_v50 = vcombine.high %v1596_v1, %v1600_v51  ;;  %v1644_v1 = vld [vmem:[#allocation6 + $0x1448] sm:$0xff] }
 0x20c   : > { %7682 = vmatpush1.bf16.msra.mxu1 %v9594_v62  ;;  %7355 = vmatprep.subr.bf16.mxu0 %v9601_v40  ;;  %v1603_v62 = vld [vmem:[#allocation6 + $0x1300] sm:$0xff]  ;;  %v1648_v51 = vld [vmem:[#allocation6 + $0x1468] sm:$0xff] }
 0x20d   : > { %7683 = vmatprep.subr.bf16.mxu1 %v9603_v3  ;;  %v1607_v40 = vld [vmem:[#allocation6 + $0x1320] sm:$0xff]  ;;  %v1604_v3 = vld [vmem:[#allocation6 + $0x1308] sm:$0xff] }
 0x20e   : > { %v9657_v57 = vcombine.high %v1603_v62, %v1607_v40  ;;  %v9656_v19 = vcombine.low %v1603_v62, %v1607_v40  ;;  %v9658_v6 = vcombine.low %v1604_v3, %v1608_v53  ;;  %v1651_v62 = vld [vmem:[#allocation6 + $0x1480] sm:$0xff] }
 0x20f   : > { %7356 = vmatpush1.bf16.msra.mxu0 %v9600_v52  ;;  %v9659_v52 = vcombine.high %v1604_v3, %v1608_v53  ;;  %v1655_v40 = vld [vmem:[#allocation6 + $0x14a0] sm:$0xff]  ;;  %v1652_v53 = vld [vmem:[#allocation6 + $0x1488] sm:$0xff] }
 0x210   : > { %7684 = vmatpush1.bf16.msra.mxu1 %v9602_v29  ;;  %7357 = vmatprep.subr.bf16.mxu0 %v9609_v58  ;;  %v1611_v29 = vld [vmem:[#allocation6 + $0x1340] sm:$0xff] }
 0x211   : > { %7685 = vmatprep.subr.bf16.mxu1 %v9611_v44  ;;  %v1615_v58 = vld [vmem:[#allocation6 + $0x1360] sm:$0xff]  ;;  %v1612_v44 = vld [vmem:[#allocation6 + $0x1348] sm:$0xff] }
 0x212   : > { %v9665_v43 = vcombine.high %v1611_v29, %v1615_v58  ;;  %v9664_v0 = vcombine.low %v1611_v29, %v1615_v58  ;;  %v9666_v8 = vcombine.low %v1612_v44, %v1616_v10  ;;  %v1659_v29 = vld [vmem:[#allocation6 + $0x14c0] sm:$0xff] }
 0x213   : > { %7358 = vmatpush1.bf16.msra.mxu0 %v9608_v12  ;;  %v9667_v12 = vcombine.high %v1612_v44, %v1616_v10  ;;  %v1663_v58 = vld [vmem:[#allocation6 + $0x14e0] sm:$0xff]  ;;  %v1660_v44 = vld [vmem:[#allocation6 + $0x14c8] sm:$0xff] }
 0x214   : > { %7686 = vmatpush1.bf16.msra.mxu1 %v9610_v48  ;;  %7359 = vmatprep.subr.bf16.mxu0 %v9617_v15  ;;  %v1619_v48 = vld [vmem:[#allocation6 + $0x1380] sm:$0xff]  ;;  %v1664_v10 = vld [vmem:[#allocation6 + $0x14e8] sm:$0xff] }
 0x215   : > { %7687 = vmatprep.subr.bf16.mxu1 %v9619_v56  ;;  %v1623_v15 = vld [vmem:[#allocation6 + $0x13a0] sm:$0xff]  ;;  %v1620_v56 = vld [vmem:[#allocation6 + $0x1388] sm:$0xff] }
 0x216   : > { %v9673_v11 = vcombine.high %v1619_v48, %v1623_v15  ;;  %v9672_v7 = vcombine.low %v1619_v48, %v1623_v15  ;;  %v9674_v31 = vcombine.low %v1620_v56, %v1624_v17  ;;  %v1667_v48 = vld [vmem:[#allocation6 + $0x1500] sm:$0xff] }
 0x217   : > { %7360 = vmatpush1.bf16.msra.mxu0 %v9616_v46  ;;  %v9675_v46 = vcombine.high %v1620_v56, %v1624_v17  ;;  %v1671_v15 = vld [vmem:[#allocation6 + $0x1520] sm:$0xff]  ;;  %v1668_v56 = vld [vmem:[#allocation6 + $0x1508] sm:$0xff] }
 0x218   : > { %7688 = vmatpush1.bf16.msra.mxu1 %v9618_v63  ;;  %7361 = vmatprep.subr.bf16.mxu0 %v9625_v49  ;;  %v1627_v63 = vld [vmem:[#allocation6 + $0x13c0] sm:$0xff]  ;;  %v1672_v17 = vld [vmem:[#allocation6 + $0x1528] sm:$0xff] }
 0x219   : > { %7689 = vmatprep.subr.bf16.mxu1 %v9627_v54  ;;  %v1631_v49 = vld [vmem:[#allocation6 + $0x13e0] sm:$0xff]  ;;  %v929_v54 = vcombine.high %v11483_v28, %v11483_v28  ;;  %v9682_v28 = vcombine.low %v1628_v36, %v1632_v18 }
 0x21a   : > { %v9680_v61 = vcombine.low %v1627_v63, %v1631_v49 }
 0x21b   : > { %7362 = vmatpush1.bf16.msra.mxu0 %v9624_v33  ;;  %v9681_v33 = vcombine.high %v1627_v63, %v1631_v49  ;;  %v11504_v21 = vrot.slane %v929_v54, %v11378_v23  ;;  %v1675_v63 = vld [vmem:[#allocation6 + $0x1540] sm:$0xff]  ;;  %v1676_v54 = vld [vmem:[#allocation6 + $0x1548] sm:$0xff] }
 0x21c   : > { %7690 = vmatpush1.bf16.msra.mxu1 %v9626_v35  ;;  %7363 = vmatprep.subr.bf16.mxu0 %v9633_v27  ;;  %v9683_v35 = vcombine.high %v1628_v36, %v1632_v18  ;;  %v1635_v27 = vld [vmem:[#allocation6 + $0x1400] sm:$0xff]  ;;  %v1680_v36 = vld [vmem:[#allocation6 + $0x1568] sm:$0xff]  ;;  %v9720_v18 = vcombine.low %v1667_v48, %v1671_v15 }
 0x21d   : > { %7691 = vmatprep.subr.bf16.mxu1 %v9635_v2  ;;  %v1639_v2 = vld [vmem:[#allocation6 + $0x1420] sm:$0xff]  ;;  %v945_v25 = vcombine.high %v11504_v21, %v11504_v21 }
 0x21e   : > { %v1679_v49 = vld [vmem:[#allocation6 + $0x1560] sm:$0xff] }
 0x21f   : > { %7364 = vmatpush1.bf16.msra.mxu0 %v9632_v30  ;;  %v9689_v30 = vcombine.high %v1635_v27, %v1639_v2  ;;  %v11512_v3 = vpack.c.bf16 %v945_v25, %v945_v25  ;;  %v1696_v25 = vld [vmem:[#allocation6 + $0x15e8] sm:$0xff] }
 0x220   : > { %7692 = vmatpush1.bf16.msra.mxu1 %v9634_v37  ;;  %7365 = vmatprep.subr.bf16.mxu0 %v9641_v4  ;;  %v9691_v37 = vcombine.high %v1636_v14, %v1640_v24  ;;  %v1643_v4 = vld [vmem:[#allocation6 + $0x1440] sm:$0xff] }
 0x221   : > { %7693 = vmatprep.subr.bf16.mxu1 %v9643_v59  ;;  %v1647_v59 = vld [vmem:[#allocation6 + $0x1460] sm:$0xff] }
 0x222   : > { %v9696_v45 = vcombine.low %v1643_v4, %v1647_v59 }
 0x223   : > { %7366 = vmatpush1.bf16.msra.mxu0 %v9640_v22  ;;  %v9688_v22 = vcombine.low %v1635_v27, %v1639_v2  ;;  %v1687_v27 = vld [vmem:[#allocation6 + $0x15a0] sm:$0xff]  ;;  %v1684_v2 = vld [vmem:[#allocation6 + $0x1588] sm:$0xff] }
 0x224   : > { %7694 = vmatpush1.bf16.msra.mxu1 %v9642_v9  ;;  %7367 = vmatprep.subr.bf16.mxu0 %v9649_v26  ;;  %v9690_v9 = vcombine.low %v1636_v14, %v1640_v24  ;;  %v9697_v26 = vcombine.high %v1643_v4, %v1647_v59  ;;  %v1688_v14 = vld [vmem:[#allocation6 + $0x15a8] sm:$0xff]  ;;  %v9728_v24 = vcombine.low %v1675_v63, %v1679_v49  ;;  %v1695_v4 = vld [vmem:[#allocation6 + $0x15e0] sm:$0xff] }
 0x225   : > { %7695 = vmatprep.subr.bf16.mxu1 %v9651_v50  ;;  %v9699_v50 = vcombine.high %v1644_v1, %v1648_v51  ;;  %v1692_v59 = vld [vmem:[#allocation6 + $0x15c8] sm:$0xff] }
 0x227   : > { %7368 = vmatpush1.bf16.msra.mxu0 %v9648_v16  ;;  %v1656_v16 = vld [vmem:[#allocation6 + $0x14a8] sm:$0xff] }
 0x228   : > { %7696 = vmatpush1.bf16.msra.mxu1 %v9650_v41  ;;  %7369 = vmatprep.subr.bf16.mxu0 %v9657_v57  ;;  %v9698_v41 = vcombine.low %v1644_v1, %v1648_v51  ;;  %v9705_v57 = vcombine.high %v1651_v62, %v1655_v40  ;;  %v9738_v51 = vcombine.low %v1684_v2, %v1688_v14 }
 0x229   : > { %7697 = vmatprep.subr.bf16.mxu1 %v9659_v52  ;;  %v9707_v52 = vcombine.high %v1652_v53, %v1656_v16 }
 0x22b   : > { %7370 = vmatpush1.bf16.msra.mxu0 %v9656_v19  ;;  %v9704_v19 = vcombine.low %v1651_v62, %v1655_v40  ;;  %v1700_v62 = vld [vmem:[#allocation6 + $0x1608] sm:$0xff] }
 0x22c   : > { %7698 = vmatpush1.bf16.msra.mxu1 %v9658_v6  ;;  %7371 = vmatprep.subr.bf16.mxu0 %v9665_v43  ;;  %v9706_v6 = vcombine.low %v1652_v53, %v1656_v16  ;;  %v9713_v43 = vcombine.high %v1659_v29, %v1663_v58  ;;  %v1704_v40 = vld [vmem:[#allocation6 + $0x1628] sm:$0xff]  ;;  %v9746_v16 = vcombine.low %v1692_v59, %v1696_v25 }
 0x22d   : > { %7699 = vmatprep.subr.bf16.mxu1 %v9667_v12  ;;  %v9715_v12 = vcombine.high %v1660_v44, %v1664_v10 }
 0x22f   : > { %7372 = vmatpush1.bf16.msra.mxu0 %v9664_v0  ;;  %v9712_v0 = vcombine.low %v1659_v29, %v1663_v58  ;;  %v1708_v29 = vld [vmem:[#allocation6 + $0x1648] sm:$0xff] }
 0x230   : > { %7700 = vmatpush1.bf16.msra.mxu1 %v9666_v8  ;;  %7373 = vmatprep.subr.bf16.mxu0 %v9673_v11  ;;  %v9714_v8 = vcombine.low %v1660_v44, %v1664_v10  ;;  %v9721_v11 = vcombine.high %v1667_v48, %v1671_v15  ;;  %v1712_v58 = vld [vmem:[#allocation6 + $0x1668] sm:$0xff]  ;;  %v9754_v10 = vcombine.low %v1700_v62, %v1704_v40 }
 0x231   : > { %7701 = vmatprep.subr.bf16.mxu1 %v9675_v46  ;;  %v9723_v46 = vcombine.high %v1668_v56, %v1672_v17  ;;  %v1716_v48 = vld [vmem:[#allocation6 + $0x1688] sm:$0xff] }
 0x232   : > { %v1720_v15 = vld [vmem:[#allocation6 + $0x16a8] sm:$0xff] }
 0x233   : > { %7374 = vmatpush1.bf16.msra.mxu0 %v9672_v7  ;;  %v9722_v7 = vcombine.low %v1668_v56, %v1672_v17  ;;  %v9762_v17 = vcombine.low %v1708_v29, %v1712_v58 }
 0x234   : > { %7702 = vmatpush1.bf16.msra.mxu1 %v9674_v31  ;;  %7375 = vmatprep.subr.bf16.mxu0 %v9681_v33  ;;  %v9729_v31 = vcombine.high %v1675_v63, %v1679_v49  ;;  %v9731_v33 = vcombine.high %v1676_v54, %v1680_v36  ;;  %v1724_v63 = vld [vmem:[#allocation6 + $0x16c8] sm:$0xff] }
 0x235   : > { %7703 = vmatprep.subr.bf16.mxu1 %v9683_v35  ;;  %v1683_v35 = vld [vmem:[#allocation6 + $0x1580] sm:$0xff]  ;;  %v1728_v49 = vld [vmem:[#allocation6 + $0x16e8] sm:$0xff] }
 0x236   : > { %v9736_v1 = vcombine.low %v1683_v35, %v1687_v27 }
 0x237   : > { %7376 = vmatpush1.bf16.msra.mxu0 %v9680_v61  ;;  %v9730_v61 = vcombine.low %v1676_v54, %v1680_v36  ;;  %v9770_v36 = vcombine.low %v1716_v48, %v1720_v15 }
 0x238   : > { %7704 = vmatpush1.bf16.msra.mxu1 %v9682_v28  ;;  %7386 = vmatprep.subr.bf16.mxu0 %v9689_v30  ;;  %v9737_v28 = vcombine.high %v1683_v35, %v1687_v27  ;;  %v9739_v30 = vcombine.high %v1684_v2, %v1688_v14  ;;  %v1732_v35 = vld [vmem:[#allocation6 + $0x1708] sm:$0xff]  ;;  %v9778_v14 = vcombine.low %v1724_v63, %v1728_v49 }
 0x239   : > { %7714 = vmatprep.subr.bf16.mxu1 %v9691_v37  ;;  %v1691_v37 = vld [vmem:[#allocation6 + $0x15c0] sm:$0xff]  ;;  %v1736_v27 = vld [vmem:[#allocation6 + $0x1728] sm:$0xff] }
 0x23a   : > { %7378 = vmatmul.mubr.bf16.vlgmr.msra.gmra.mrb[0].mxu0 %v11510_v55  ;;  %v9744_v53 = vcombine.low %v1691_v37, %v1695_v4 }
 0x23b   : > { %7387 = vmatpush1.bf16.msra.mxu0 %v9688_v22  ;;  %7706 = vmatmul.mubr.bf16.vlgmr.msra.gmra.mrb[0].mxu1 %v11510_v55  ;;  %v9745_v22 = vcombine.high %v1691_v37, %v1695_v4  ;;  %v1740_v37 = vld [vmem:[#allocation6 + $0x1748] sm:$0xff] }
 0x23c   : > { %7715 = vmatpush1.bf16.msra.mxu1 %v9690_v9  ;;  %7388 = vmatprep.subr.bf16.mxu0 %v9697_v26  ;;  %v9747_v9 = vcombine.high %v1692_v59, %v1696_v25  ;;  %v1699_v26 = vld [vmem:[#allocation6 + $0x1600] sm:$0xff]  ;;  %v1744_v4 = vld [vmem:[#allocation6 + $0x1768] sm:$0xff]  ;;  %v9786_v25 = vcombine.low %v1732_v35, %v1736_v27 }
 0x23d   : > { %7716 = vmatprep.subr.bf16.mxu1 %v9699_v50  ;;  %7418 = vmatprep.mubr.bf16.mxu0 %v11512_v3  ;;  %v1703_v50 = vld [vmem:[#allocation6 + $0x1620] sm:$0xff] }
 0x23e   : > { %7746 = vmatprep.mubr.bf16.mxu1 %v11512_v3  ;;  %v9752_v44 = vcombine.low %v1699_v26, %v1703_v50 }
 0x23f   : > { %7389 = vmatpush1.bf16.msra.mxu0 %v9696_v45  ;;  %v9753_v45 = vcombine.high %v1699_v26, %v1703_v50  ;;  %v1748_v26 = vld [vmem:[#allocation6 + $0x1788] sm:$0xff] }
 0x240   : > { %7717 = vmatpush1.bf16.msra.mxu1 %v9698_v41  ;;  %7390 = vmatprep.subr.bf16.mxu0 %v9705_v57  ;;  %v9755_v41 = vcombine.high %v1700_v62, %v1704_v40  ;;  %v1707_v57 = vld [vmem:[#allocation6 + $0x1640] sm:$0xff]  ;;  %v1752_v50 = vld [vmem:[#allocation6 + $0x17a8] sm:$0xff]  ;;  %v886_v62 = vld [vmem:[#allocation2 + $0x18] sm:$0xff] }
 0x241   : > { %7718 = vmatprep.subr.bf16.mxu1 %v9707_v52  ;;  %v1711_v52 = vld [vmem:[#allocation6 + $0x1660] sm:$0xff] }
 0x242   : > { %v9760_v56 = vcombine.low %v1707_v57, %v1711_v52 }
 0x243   : > { %7391 = vmatpush1.bf16.msra.mxu0 %v9704_v19  ;;  %v9761_v19 = vcombine.high %v1707_v57, %v1711_v52  ;;  %v1759_v57 = vld [vmem:[#allocation6 + $0x17e0] sm:$0xff]  ;;  %v11518_v52 = vmul.f32 0.33333334, %v886_v62 }
 0x244   : > { %7719 = vmatpush1.bf16.msra.mxu1 %v9706_v6  ;;  %7392 = vmatprep.subr.bf16.mxu0 %v9713_v43  ;;  %v9763_v6 = vcombine.high %v1708_v29, %v1712_v58  ;;  %v1715_v43 = vld [vmem:[#allocation6 + $0x1680] sm:$0xff]  ;;  %v1756_v29 = vld [vmem:[#allocation6 + $0x17c8] sm:$0xff] }
 0x245   : > { %7720 = vmatprep.subr.bf16.mxu1 %v9715_v12  ;;  %v1719_v12 = vld [vmem:[#allocation6 + $0x16a0] sm:$0xff]  ;;  %v1760_v58 = vld [vmem:[#allocation6 + $0x17e8] sm:$0xff] }
 0x246   : > { %v9768_v54 = vcombine.low %v1715_v43, %v1719_v12  ;;  %v1799_v62 = vld [vmem:[#allocation6 + $0x1920] sm:$0xff] }
 0x247   : > { %7393 = vmatpush1.bf16.msra.mxu0 %v9712_v0  ;;  %v9769_v0 = vcombine.high %v1715_v43, %v1719_v12  ;;  %v1763_v43 = vld [vmem:[#allocation6 + $0x1800] sm:$0xff] }
 0x248   : > { %7721 = vmatpush1.bf16.msra.mxu1 %v9714_v8  ;;  %7394 = vmatprep.subr.bf16.mxu0 %v9721_v11  ;;  %v9771_v8 = vcombine.high %v1716_v48, %v1720_v15  ;;  %v1723_v11 = vld [vmem:[#allocation6 + $0x16c0] sm:$0xff]  ;;  %v11522_v48 = vrot.slane %v11518_v52, %v11378_v23  ;;  %v1764_v15 = vld [vmem:[#allocation6 + $0x1808] sm:$0xff] }
 0x249   : > { %7722 = vmatprep.subr.bf16.mxu1 %v9723_v46  ;;  %v1727_v46 = vld [vmem:[#allocation6 + $0x16e0] sm:$0xff] }
 0x24a   : > { %v9776_v2 = vcombine.low %v1723_v11, %v1727_v46  ;;  %v1767_v12 = vld [vmem:[#allocation6 + $0x1820] sm:$0xff] }
 0x24b   : > { %7395 = vmatpush1.bf16.msra.mxu0 %v9720_v18  ;;  %v9777_v18 = vcombine.high %v1723_v11, %v1727_v46  ;;  %v1771_v46 = vld [vmem:[#allocation6 + $0x1840] sm:$0xff] }
 0x24c   : > { %7723 = vmatpush1.bf16.msra.mxu1 %v9722_v7  ;;  %7396 = vmatprep.subr.bf16.mxu0 %v9729_v31  ;;  %v9779_v7 = vcombine.high %v1724_v63, %v1728_v49  ;;  %v1731_v31 = vld [vmem:[#allocation6 + $0x1700] sm:$0xff]  ;;  %v961_v49 = vcombine.high %v11522_v48, %v11522_v48 }
 0x24d   : > { %7724 = vmatprep.subr.bf16.mxu1 %v9731_v33  ;;  %v1735_v33 = vld [vmem:[#allocation6 + $0x1720] sm:$0xff] }
 0x24e   : > { %v9784_v59 = vcombine.low %v1731_v31, %v1735_v33  ;;  %v1775_v63 = vld [vmem:[#allocation6 + $0x1860] sm:$0xff] }
 0x24f   : > { %7397 = vmatpush1.bf16.msra.mxu0 %v9728_v24  ;;  %v9785_v24 = vcombine.high %v1731_v31, %v1735_v33  ;;  %v9825_v33 = vcombine.high %v1771_v46, %v1775_v63 }
 0x250   : > { %7725 = vmatpush1.bf16.msra.mxu1 %v9730_v61  ;;  %7398 = vmatprep.subr.bf16.mxu0 %v9737_v28  ;;  %v9787_v61 = vcombine.high %v1732_v35, %v1736_v27  ;;  %v1739_v28 = vld [vmem:[#allocation6 + $0x1740] sm:$0xff] }
 0x251   : > { %7726 = vmatprep.subr.bf16.mxu1 %v9739_v30  ;;  %v1743_v30 = vld [vmem:[#allocation6 + $0x1760] sm:$0xff] }
 0x252   : > { %v9792_v40 = vcombine.low %v1739_v28, %v1743_v30  ;;  %v1779_v27 = vld [vmem:[#allocation6 + $0x1880] sm:$0xff] }
 0x253   : > { %7399 = vmatpush1.bf16.msra.mxu0 %v9736_v1  ;;  %v9793_v1 = vcombine.high %v1739_v28, %v1743_v30 }
 0x254   : > { %7727 = vmatpush1.bf16.msra.mxu1 %v9738_v51  ;;  %7400 = vmatprep.subr.bf16.mxu0 %v9745_v22  ;;  %v9795_v51 = vcombine.high %v1740_v37, %v1744_v4  ;;  %v1747_v22 = vld [vmem:[#allocation6 + $0x1780] sm:$0xff] }
 0x255   : > { %7728 = vmatprep.subr.bf16.mxu1 %v9747_v9  ;;  %v1751_v9 = vld [vmem:[#allocation6 + $0x17a0] sm:$0xff] }
 0x257   : > { %7401 = vmatpush1.bf16.msra.mxu0 %v9744_v53  ;;  %v9794_v53 = vcombine.low %v1740_v37, %v1744_v4  ;;  %v1787_v4 = vld [vmem:[#allocation6 + $0x18c0] sm:$0xff] }
 0x258   : > { %7729 = vmatpush1.bf16.msra.mxu1 %v9746_v16  ;;  %7402 = vmatprep.subr.bf16.mxu0 %v9753_v45  ;;  %v9801_v16 = vcombine.high %v1747_v22, %v1751_v9  ;;  %v9803_v45 = vcombine.high %v1748_v26, %v1752_v50 }
 0x259   : > { %7730 = vmatprep.subr.bf16.mxu1 %v9755_v41  ;;  %v1755_v41 = vld [vmem:[#allocation6 + $0x17c0] sm:$0xff] }
 0x25b   : > { %7403 = vmatpush1.bf16.msra.mxu0 %v9752_v44  ;;  %v9800_v44 = vcombine.low %v1747_v22, %v1751_v9 }
 0x25c   : > { %7731 = vmatpush1.bf16.msra.mxu1 %v9754_v10  ;;  %7404 = vmatprep.subr.bf16.mxu0 %v9761_v19  ;;  %v9802_v10 = vcombine.low %v1748_v26, %v1752_v50  ;;  %v9809_v19 = vcombine.high %v1755_v41, %v1759_v57  ;;  %v1795_v50 = vld [vmem:[#allocation6 + $0x1900] sm:$0xff] }
 0x25d   : > { %7732 = vmatprep.subr.bf16.mxu1 %v9763_v6  ;;  %v9811_v6 = vcombine.high %v1756_v29, %v1760_v58 }
 0x25f   : > { %7405 = vmatpush1.bf16.msra.mxu0 %v9760_v56  ;;  %v1768_v56 = vld [vmem:[#allocation6 + $0x1828] sm:$0xff] }
 0x260   : > { %7733 = vmatpush1.bf16.msra.mxu1 %v9762_v17  ;;  %7406 = vmatprep.subr.bf16.mxu0 %v9769_v0  ;;  %v9808_v17 = vcombine.low %v1755_v41, %v1759_v57  ;;  %v9810_v0 = vcombine.low %v1756_v29, %v1760_v58  ;;  %v9819_v11 = vcombine.high %v1764_v15, %v1768_v56  ;;  %v1803_v29 = vld [vmem:[#allocation6 + $0x1940] sm:$0xff] }
 0x261   : > { %7734 = vmatprep.subr.bf16.mxu1 %v9771_v8  ;;  %v9817_v8 = vcombine.high %v1763_v43, %v1767_v12  ;;  %v9818_v31 = vcombine.low %v1764_v15, %v1768_v56  ;;  %v9849_v41 = vcombine.high %v1795_v50, %v1799_v62  ;;  %v1807_v58 = vld [vmem:[#allocation6 + $0x1960] sm:$0xff] }
 0x262   : > { %v1811_v15 = vld [vmem:[#allocation6 + $0x1980] sm:$0xff] }
 0x263   : > { %7407 = vmatpush1.bf16.msra.mxu0 %v9768_v54  ;;  %v11528_v54 = vpack.c.bf16 %v11504_v21, %v11504_v21  ;;  %v9824_v21 = vcombine.low %v1771_v46, %v1775_v63  ;;  %v1815_v56 = vld [vmem:[#allocation6 + $0x19a0] sm:$0xff] }
 0x264   : > { %7735 = vmatpush1.bf16.msra.mxu1 %v9770_v36  ;;  %7408 = vmatprep.subr.bf16.mxu0 %v9777_v18  ;;  %v1772_v36 = vld [vmem:[#allocation6 + $0x1848] sm:$0xff]  ;;  %v9865_v46 = vcombine.high %v1811_v15, %v1815_v56 }
 0x265   : > { %7736 = vmatprep.subr.bf16.mxu1 %v9779_v7  ;;  %v1776_v18 = vld [vmem:[#allocation6 + $0x1868] sm:$0xff]  ;;  %v9816_v7 = vcombine.low %v1763_v43, %v1767_v12  ;;  %v9857_v43 = vcombine.high %v1803_v29, %v1807_v58 }
 0x266   : > { %v9827_v35 = vcombine.high %v1772_v36, %v1776_v18  ;;  %v9826_v28 = vcombine.low %v1772_v36, %v1776_v18  ;;  %v1823_v36 = vld [vmem:[#allocation6 + $0x19e0] sm:$0xff]  ;;  %v1820_v18 = vld [vmem:[#allocation6 + $0x19c8] sm:$0xff] }
 0x267   : > { %7409 = vmatpush1.bf16.msra.mxu0 %v9776_v2  ;;  %v1783_v2 = vld [vmem:[#allocation6 + $0x18a0] sm:$0xff] }
 0x268   : > { %7737 = vmatpush1.bf16.msra.mxu1 %v9778_v14  ;;  %7410 = vmatprep.subr.bf16.mxu0 %v9785_v24  ;;  %v11530_v14 = vpack.c.bf16 %v961_v49, %v961_v49  ;;  %v1780_v24 = vld [vmem:[#allocation6 + $0x1888] sm:$0xff]  ;;  %v9833_v30 = vcombine.high %v1779_v27, %v1783_v2  ;;  %v1819_v49 = vld [vmem:[#allocation6 + $0x19c0] sm:$0xff] }
 0x269   : > { %7738 = vmatprep.subr.bf16.mxu1 %v9787_v61  ;;  %v1784_v61 = vld [vmem:[#allocation6 + $0x18a8] sm:$0xff] }
 0x26a   : > { %v9835_v37 = vcombine.high %v1780_v24, %v1784_v61  ;;  %v9834_v22 = vcombine.low %v1780_v24, %v1784_v61  ;;  %v1831_v24 = vld [vmem:[#allocation6 + $0x1a20] sm:$0xff]  ;;  %v1828_v61 = vld [vmem:[#allocation6 + $0x1a08] sm:$0xff] }
 0x26b   : > { %7411 = vmatpush1.bf16.msra.mxu0 %v9784_v59  ;;  %v1791_v59 = vld [vmem:[#allocation6 + $0x18e0] sm:$0xff] }
 0x26c   : > { %7739 = vmatpush1.bf16.msra.mxu1 %v9786_v25  ;;  %7412 = vmatprep.subr.bf16.mxu0 %v9793_v1  ;;  %v1788_v25 = vld [vmem:[#allocation6 + $0x18c8] sm:$0xff]  ;;  %v9841_v9 = vcombine.high %v1787_v4, %v1791_v59 }
 0x26d   : > { %7740 = vmatprep.subr.bf16.mxu1 %v9795_v51  ;;  %v1792_v1 = vld [vmem:[#allocation6 + $0x18e8] sm:$0xff]  ;;  %v9832_v51 = vcombine.low %v1779_v27, %v1783_v2  ;;  %v1827_v2 = vld [vmem:[#allocation6 + $0x1a00] sm:$0xff] }
 0x26e   : > { %v9843_v26 = vcombine.high %v1788_v25, %v1792_v1 }
 0x26f   : > { %7413 = vmatpush1.bf16.msra.mxu0 %v9792_v40  ;;  %v1796_v40 = vld [vmem:[#allocation6 + $0x1908] sm:$0xff] }
 0x270   : > { %7741 = vmatpush1.bf16.msra.mxu1 %v9794_v53  ;;  %7414 = vmatprep.subr.bf16.mxu0 %v9801_v16  ;;  %v1800_v53 = vld [vmem:[#allocation6 + $0x1928] sm:$0xff]  ;;  %v9840_v16 = vcombine.low %v1787_v4, %v1791_v59  ;;  %v1835_v59 = vld [vmem:[#allocation6 + $0x1a40] sm:$0xff] }
 0x271   : > { %7742 = vmatprep.subr.bf16.mxu1 %v9803_v45  ;;  %v9842_v45 = vcombine.low %v1788_v25, %v1792_v1  ;;  %v9851_v57 = vcombine.high %v1796_v40, %v1800_v53  ;;  %v1839_v25 = vld [vmem:[#allocation6 + $0x1a60] sm:$0xff]  ;;  %v1836_v1 = vld [vmem:[#allocation6 + $0x1a48] sm:$0xff] }
 0x273   : > { %7415 = vmatpush1.bf16.msra.mxu0 %v9800_v44  ;;  %v1804_v44 = vld [vmem:[#allocation6 + $0x1948] sm:$0xff] }
 0x274   : > { %7743 = vmatpush1.bf16.msra.mxu1 %v9802_v10  ;;  %7416 = vmatprep.subr.bf16.mxu0 %v9809_v19  ;;  %v1808_v10 = vld [vmem:[#allocation6 + $0x1968] sm:$0xff]  ;;  %v9848_v19 = vcombine.low %v1795_v50, %v1799_v62  ;;  %v1843_v62 = vld [vmem:[#allocation6 + $0x1a80] sm:$0xff] }
 0x275   : > { %7744 = vmatprep.subr.bf16.mxu1 %v9811_v6  ;;  %v9850_v6 = vcombine.low %v1796_v40, %v1800_v53  ;;  %v9859_v12 = vcombine.high %v1804_v44, %v1808_v10  ;;  %v1847_v40 = vld [vmem:[#allocation6 + $0x1aa0] sm:$0xff]  ;;  %v1844_v53 = vld [vmem:[#allocation6 + $0x1a88] sm:$0xff] }
 0x277   : > { %7417 = vmatpush1.bf16.msra.mxu0 %v9808_v17  ;;  %v1812_v17 = vld [vmem:[#allocation6 + $0x1988] sm:$0xff] }
 0x278   : > { %7745 = vmatpush1.bf16.msra.mxu1 %v9810_v0  ;;  %7427 = vmatprep.subr.bf16.mxu0 %v9817_v8  ;;  %v1816_v0 = vld [vmem:[#allocation6 + $0x19a8] sm:$0xff]  ;;  %v9856_v8 = vcombine.low %v1803_v29, %v1807_v58  ;;  %v1851_v58 = vld [vmem:[#allocation6 + $0x1ac0] sm:$0xff] }
 0x279   : > { %7755 = vmatprep.subr.bf16.mxu1 %v9819_v11  ;;  %v9858_v11 = vcombine.low %v1804_v44, %v1808_v10  ;;  %v9867_v63 = vcombine.high %v1812_v17, %v1816_v0  ;;  %v1855_v44 = vld [vmem:[#allocation6 + $0x1ae0] sm:$0xff]  ;;  %v1852_v10 = vld [vmem:[#allocation6 + $0x1ac8] sm:$0xff] }
 0x27a   : > { %7419 = vmatmul.mubr.bf16.vlgmr.msra.gmra.mrb[0].mxu0 %v11528_v54 }
 0x27b   : > { %7428 = vmatpush1.bf16.msra.mxu0 %v9816_v7  ;;  %7747 = vmatmul.mubr.bf16.vlgmr.msra.gmra.mrb[0].mxu1 %v11528_v54  ;;  %v1824_v7 = vld [vmem:[#allocation6 + $0x19e8] sm:$0xff] }
 0x27c   : > { %7756 = vmatpush1.bf16.msra.mxu1 %v9818_v31  ;;  %7429 = vmatprep.subr.bf16.mxu0 %v9825_v33  ;;  %v9864_v31 = vcombine.low %v1811_v15, %v1815_v56  ;;  %v9866_v33 = vcombine.low %v1812_v17, %v1816_v0  ;;  %v9875_v27 = vcombine.high %v1820_v18, %v1824_v7  ;;  %v1859_v56 = vld [vmem:[#allocation6 + $0x1b00] sm:$0xff]  ;;  %v1860_v0 = vld [vmem:[#allocation6 + $0x1b08] sm:$0xff] }
 0x27d   : > { %7757 = vmatprep.subr.bf16.mxu1 %v9827_v35  ;;  %7459 = vmatprep.mubr.bf16.mxu0 %v11530_v14  ;;  %v9873_v35 = vcombine.high %v1819_v49, %v1823_v36  ;;  %v1863_v17 = vld [vmem:[#allocation6 + $0x1b20] sm:$0xff] }
 0x27e   : > { %7787 = vmatprep.mubr.bf16.mxu1 %v11530_v14 }
 0x27f   : > { %7430 = vmatpush1.bf16.msra.mxu0 %v9824_v21  ;;  %v1832_v21 = vld [vmem:[#allocation6 + $0x1a28] sm:$0xff] }
 0x280   : > { %7758 = vmatpush1.bf16.msra.mxu1 %v9826_v28  ;;  %7431 = vmatprep.subr.bf16.mxu0 %v9833_v30  ;;  %v9872_v28 = vcombine.low %v1819_v49, %v1823_v36  ;;  %v9874_v30 = vcombine.low %v1820_v18, %v1824_v7  ;;  %v9883_v4 = vcombine.high %v1828_v61, %v1832_v21  ;;  %v1867_v36 = vld [vmem:[#allocation6 + $0x1b40] sm:$0xff]  ;;  %v1868_v7 = vld [vmem:[#allocation6 + $0x1b48] sm:$0xff] }
 0x281   : > { %7759 = vmatprep.subr.bf16.mxu1 %v9835_v37  ;;  %v9881_v37 = vcombine.high %v1827_v2, %v1831_v24  ;;  %v1871_v18 = vld [vmem:[#allocation6 + $0x1b60] sm:$0xff] }
 0x283   : > { %7432 = vmatpush1.bf16.msra.mxu0 %v9832_v51  ;;  %v1840_v51 = vld [vmem:[#allocation6 + $0x1a68] sm:$0xff] }
 0x284   : > { %7760 = vmatpush1.bf16.msra.mxu1 %v9834_v22  ;;  %7433 = vmatprep.subr.bf16.mxu0 %v9841_v9  ;;  %v9880_v22 = vcombine.low %v1827_v2, %v1831_v24  ;;  %v9882_v9 = vcombine.low %v1828_v61, %v1832_v21  ;;  %v9891_v50 = vcombine.high %v1836_v1, %v1840_v51  ;;  %v1875_v24 = vld [vmem:[#allocation6 + $0x1b80] sm:$0xff]  ;;  %v1876_v21 = vld [vmem:[#allocation6 + $0x1b88] sm:$0xff] }
 0x285   : > { %7761 = vmatprep.subr.bf16.mxu1 %v9843_v26  ;;  %v9889_v26 = vcombine.high %v1835_v59, %v1839_v25  ;;  %v1879_v61 = vld [vmem:[#allocation6 + $0x1ba0] sm:$0xff] }
 0x287   : > { %7434 = vmatpush1.bf16.msra.mxu0 %v9840_v16  ;;  %v1848_v16 = vld [vmem:[#allocation6 + $0x1aa8] sm:$0xff] }
 0x288   : > { %7762 = vmatpush1.bf16.msra.mxu1 %v9842_v45  ;;  %7435 = vmatprep.subr.bf16.mxu0 %v9849_v41  ;;  %v9888_v45 = vcombine.low %v1835_v59, %v1839_v25  ;;  %v9890_v41 = vcombine.low %v1836_v1, %v1840_v51  ;;  %v9899_v29 = vcombine.high %v1844_v53, %v1848_v16  ;;  %v1883_v25 = vld [vmem:[#allocation6 + $0x1bc0] sm:$0xff] }
 0x289   : > { %7763 = vmatprep.subr.bf16.mxu1 %v9851_v57  ;;  %v9897_v57 = vcombine.high %v1843_v62, %v1847_v40  ;;  %v1887_v1 = vld [vmem:[#allocation6 + $0x1be0] sm:$0xff]  ;;  %v946_v51 = vcombine.high %v11518_v52, %v11518_v52 }
 0x28b   : > { %7436 = vmatpush1.bf16.msra.mxu0 %v9848_v19  ;;  %v1856_v19 = vld [vmem:[#allocation6 + $0x1ae8] sm:$0xff] }
 0x28c   : > { %7764 = vmatpush1.bf16.msra.mxu1 %v9850_v6  ;;  %7437 = vmatprep.subr.bf16.mxu0 %v9857_v43  ;;  %v9896_v6 = vcombine.low %v1843_v62, %v1847_v40  ;;  %v9898_v43 = vcombine.low %v1844_v53, %v1848_v16  ;;  %v9907_v15 = vcombine.high %v1852_v10, %v1856_v19  ;;  %v1891_v53 = vld [vmem:[#allocation6 + $0x1c00] sm:$0xff] }
 0x28d   : > { %7765 = vmatprep.subr.bf16.mxu1 %v9859_v12  ;;  %v9905_v12 = vcombine.high %v1851_v58, %v1855_v44  ;;  %v9937_v62 = vcombine.high %v1883_v25, %v1887_v1  ;;  %v1895_v16 = vld [vmem:[#allocation6 + $0x1c20] sm:$0xff] }
 0x28f   : > { %7438 = vmatpush1.bf16.msra.mxu0 %v9856_v8  ;;  %v1864_v8 = vld [vmem:[#allocation6 + $0x1b28] sm:$0xff] }
 0x290   : > { %7766 = vmatpush1.bf16.msra.mxu1 %v9858_v11  ;;  %7439 = vmatprep.subr.bf16.mxu0 %v9865_v46  ;;  %v9904_v11 = vcombine.low %v1851_v58, %v1855_v44  ;;  %v9906_v46 = vcombine.low %v1852_v10, %v1856_v19  ;;  %v9915_v49 = vcombine.high %v1860_v0, %v1864_v8  ;;  %v1899_v10 = vld [vmem:[#allocation6 + $0x1c40] sm:$0xff] }
 0x291   : > { %7767 = vmatprep.subr.bf16.mxu1 %v9867_v63  ;;  %v9913_v63 = vcombine.high %v1859_v56, %v1863_v17  ;;  %v9945_v58 = vcombine.high %v1891_v53, %v1895_v16  ;;  %v1903_v19 = vld [vmem:[#allocation6 + $0x1c60] sm:$0xff] }
 0x293   : > { %7440 = vmatpush1.bf16.msra.mxu0 %v9864_v31  ;;  %v1872_v31 = vld [vmem:[#allocation6 + $0x1b68] sm:$0xff] }
 0x294   : > { %7768 = vmatpush1.bf16.msra.mxu1 %v9866_v33  ;;  %7441 = vmatprep.subr.bf16.mxu0 %v9873_v35  ;;  %v9912_v33 = vcombine.low %v1859_v56, %v1863_v17  ;;  %v9914_v35 = vcombine.low %v1860_v0, %v1864_v8  ;;  %v9923_v2 = vcombine.high %v1868_v7, %v1872_v31  ;;  %v1907_v8 = vld [vmem:[#allocation6 + $0x1c80] sm:$0xff] }
 0x295   : > { %7769 = vmatprep.subr.bf16.mxu1 %v9875_v27  ;;  %v9921_v27 = vcombine.high %v1867_v36, %v1871_v18  ;;  %v9953_v17 = vcombine.high %v1899_v10, %v1903_v19 }
 0x297   : > { %7442 = vmatpush1.bf16.msra.mxu0 %v9872_v28  ;;  %v1880_v28 = vld [vmem:[#allocation6 + $0x1ba8] sm:$0xff] }
 0x298   : > { %7770 = vmatpush1.bf16.msra.mxu1 %v9874_v30  ;;  %7443 = vmatprep.subr.bf16.mxu0 %v9881_v37  ;;  %v9920_v30 = vcombine.low %v1867_v36, %v1871_v18  ;;  %v9922_v37 = vcombine.low %v1868_v7, %v1872_v31  ;;  %v9931_v59 = vcombine.high %v1876_v21, %v1880_v28  ;;  %v1915_v31 = vld [vmem:[#allocation6 + $0x1cc0] sm:$0xff] }
 0x299   : > { %7771 = vmatprep.subr.bf16.mxu1 %v9883_v4  ;;  %v9929_v4 = vcombine.high %v1875_v24, %v1879_v61 }
 0x29b   : > { %7444 = vmatpush1.bf16.msra.mxu0 %v9880_v22  ;;  %v1884_v22 = vld [vmem:[#allocation6 + $0x1bc8] sm:$0xff] }
 0x29c   : > { %7772 = vmatpush1.bf16.msra.mxu1 %v9882_v9  ;;  %7445 = vmatprep.subr.bf16.mxu0 %v9889_v26  ;;  %v1888_v9 = vld [vmem:[#allocation6 + $0x1be8] sm:$0xff]  ;;  %v9928_v26 = vcombine.low %v1875_v24, %v1879_v61 }
 0x29d   : > { %7773 = vmatprep.subr.bf16.mxu1 %v9891_v50  ;;  %v9930_v50 = vcombine.low %v1876_v21, %v1880_v28  ;;  %v9939_v40 = vcombine.high %v1884_v22, %v1888_v9  ;;  %v9938_v52 = vcombine.low %v1884_v22, %v1888_v9  ;;  %v1923_v28 = vld [vmem:[#allocation6 + $0x1d00] sm:$0xff] }
 0x29e   : > { %v1931_v22 = vld [vmem:[#allocation6 + $0x1d40] sm:$0xff] }
 0x29f   : > { %7446 = vmatpush1.bf16.msra.mxu0 %v9888_v45  ;;  %v11539_v45 = vrot.slane %v946_v51, %v11378_v23  ;;  %v1900_v23 = vld [vmem:[#allocation6 + $0x1c48] sm:$0xff]  ;;  %v1935_v9 = vld [vmem:[#allocation6 + $0x1d60] sm:$0xff] }
 0x2a0   : > { %7774 = vmatpush1.bf16.msra.mxu1 %v9890_v41  ;;  %7447 = vmatprep.subr.bf16.mxu0 %v9897_v57  ;;  %v1892_v41 = vld [vmem:[#allocation6 + $0x1c08] sm:$0xff] }
 0x2a1   : > { %7775 = vmatprep.subr.bf16.mxu1 %v9899_v29  ;;  %v1896_v57 = vld [vmem:[#allocation6 + $0x1c28] sm:$0xff]  ;;  %v9936_v29 = vcombine.low %v1883_v25, %v1887_v1 }
 0x2a2   : > { %v9947_v44 = vcombine.high %v1892_v41, %v1896_v57  ;;  %v9946_v56 = vcombine.low %v1892_v41, %v1896_v57  ;;  %v1939_v41 = vld [vmem:[#allocation6 + $0x1d80] sm:$0xff] }
 0x2a3   : > { %7448 = vmatpush1.bf16.msra.mxu0 %v9896_v6  ;;  %v962_v6 = vcombine.high %v11539_v45, %v11539_v45  ;;  %v1943_v57 = vld [vmem:[#allocation6 + $0x1da0] sm:$0xff] }
 0x2a4   : > { %7776 = vmatpush1.bf16.msra.mxu1 %v9898_v43  ;;  %7449 = vmatprep.subr.bf16.mxu0 %v9905_v12  ;;  %v11545_v43 = vpack.c.bf16 %v11522_v48, %v11522_v48  ;;  %v1904_v12 = vld [vmem:[#allocation6 + $0x1c68] sm:$0xff]  ;;  %v9952_v48 = vcombine.low %v1899_v10, %v1903_v19  ;;  %v9993_v10 = vcombine.high %v1939_v41, %v1943_v57 }
 0x2a5   : > { %7777 = vmatprep.subr.bf16.mxu1 %v9907_v15  ;;  %v9944_v15 = vcombine.low %v1891_v53, %v1895_v16  ;;  %v9955_v0 = vcombine.high %v1900_v23, %v1904_v12  ;;  %v9954_v36 = vcombine.low %v1900_v23, %v1904_v12  ;;  %v9985_v53 = vcombine.high %v1931_v22, %v1935_v9  ;;  %v1951_v23 = vld [vmem:[#allocation6 + $0x1de0] sm:$0xff]  ;;  %v1948_v12 = vld [vmem:[#allocation6 + $0x1dc8] sm:$0xff] }
 0x2a7   : > { %7450 = vmatpush1.bf16.msra.mxu0 %v9904_v11  ;;  %v1911_v11 = vld [vmem:[#allocation6 + $0x1ca0] sm:$0xff] }
 0x2a8   : > { %7778 = vmatpush1.bf16.msra.mxu1 %v9906_v46  ;;  %7451 = vmatprep.subr.bf16.mxu0 %v9913_v63  ;;  %v11547_v46 = vpack.c.bf16 %v962_v6, %v962_v6  ;;  %v1908_v63 = vld [vmem:[#allocation6 + $0x1c88] sm:$0xff]  ;;  %v9961_v18 = vcombine.high %v1907_v8, %v1911_v11  ;;  %v1947_v6 = vld [vmem:[#allocation6 + $0x1dc0] sm:$0xff] }
 0x2a9   : > { %7779 = vmatprep.subr.bf16.mxu1 %v9915_v49  ;;  %v1912_v49 = vld [vmem:[#allocation6 + $0x1ca8] sm:$0xff] }
 0x2aa   : > { %v9963_v7 = vcombine.high %v1908_v63, %v1912_v49  ;;  %v9962_v24 = vcombine.low %v1908_v63, %v1912_v49  ;;  %v1959_v63 = vld [vmem:[#allocation6 + $0x1e20] sm:$0xff]  ;;  %v1956_v49 = vld [vmem:[#allocation6 + $0x1e08] sm:$0xff] }
 0x2ab   : > { %7452 = vmatpush1.bf16.msra.mxu0 %v9912_v33  ;;  %v1919_v33 = vld [vmem:[#allocation6 + $0x1ce0] sm:$0xff] }
 0x2ac   : > { %7780 = vmatpush1.bf16.msra.mxu1 %v9914_v35  ;;  %7453 = vmatprep.subr.bf16.mxu0 %v9921_v27  ;;  %v1916_v35 = vld [vmem:[#allocation6 + $0x1cc8] sm:$0xff]  ;;  %v9969_v61 = vcombine.high %v1915_v31, %v1919_v33 }
 0x2ad   : > { %7781 = vmatprep.subr.bf16.mxu1 %v9923_v2  ;;  %v1920_v27 = vld [vmem:[#allocation6 + $0x1ce8] sm:$0xff]  ;;  %v9960_v2 = vcombine.low %v1907_v8, %v1911_v11  ;;  %v1955_v11 = vld [vmem:[#allocation6 + $0x1e00] sm:$0xff] }
 0x2ae   : > { %v9971_v21 = vcombine.high %v1916_v35, %v1920_v27  ;;  %v9970_v25 = vcombine.low %v1916_v35, %v1920_v27  ;;  %v1967_v35 = vld [vmem:[#allocation6 + $0x1e60] sm:$0xff]  ;;  %v1964_v27 = vld [vmem:[#allocation6 + $0x1e48] sm:$0xff] }
 0x2af   : > { %7454 = vmatpush1.bf16.msra.mxu0 %v9920_v30  ;;  %v1927_v30 = vld [vmem:[#allocation6 + $0x1d20] sm:$0xff] }
 0x2b0   : > { %7782 = vmatpush1.bf16.msra.mxu1 %v9922_v37  ;;  %7455 = vmatprep.subr.bf16.mxu0 %v9929_v4  ;;  %v1924_v37 = vld [vmem:[#allocation6 + $0x1d08] sm:$0xff]  ;;  %v9977_v1 = vcombine.high %v1923_v28, %v1927_v30 }
 0x2b1   : > { %7783 = vmatprep.subr.bf16.mxu1 %v9931_v59  ;;  %v1928_v4 = vld [vmem:[#allocation6 + $0x1d28] sm:$0xff]  ;;  %v9968_v59 = vcombine.low %v1915_v31, %v1919_v33  ;;  %v1963_v33 = vld [vmem:[#allocation6 + $0x1e40] sm:$0xff] }
 0x2b2   : > { %v9979_v51 = vcombine.high %v1924_v37, %v1928_v4 }
 0x2b3   : > { %7456 = vmatpush1.bf16.msra.mxu0 %v9928_v26  ;;  %v1932_v26 = vld [vmem:[#allocation6 + $0x1d48] sm:$0xff] }
 0x2b4   : > { %7784 = vmatpush1.bf16.msra.mxu1 %v9930_v50  ;;  %7457 = vmatprep.subr.bf16.mxu0 %v9937_v62  ;;  %v1936_v50 = vld [vmem:[#allocation6 + $0x1d68] sm:$0xff]  ;;  %v9976_v62 = vcombine.low %v1923_v28, %v1927_v30  ;;  %v1971_v30 = vld [vmem:[#allocation6 + $0x1e80] sm:$0xff] }
 0x2b5   : > { %7785 = vmatprep.subr.bf16.mxu1 %v9939_v40  ;;  %v9978_v40 = vcombine.low %v1924_v37, %v1928_v4  ;;  %v9987_v16 = vcombine.high %v1932_v26, %v1936_v50  ;;  %v1975_v37 = vld [vmem:[#allocation6 + $0x1ea0] sm:$0xff]  ;;  %v1972_v4 = vld [vmem:[#allocation6 + $0x1e88] sm:$0xff] }
 0x2b7   : > { %7458 = vmatpush1.bf16.msra.mxu0 %v9936_v29  ;;  %v1940_v29 = vld [vmem:[#allocation6 + $0x1d88] sm:$0xff] }
 0x2b8   : > { %7786 = vmatpush1.bf16.msra.mxu1 %v9938_v52  ;;  %7468 = vmatprep.subr.bf16.mxu0 %v9945_v58  ;;  %v1944_v52 = vld [vmem:[#allocation6 + $0x1da8] sm:$0xff]  ;;  %v9984_v58 = vcombine.low %v1931_v22, %v1935_v9  ;;  %v1979_v9 = vld [vmem:[#allocation6 + $0x1ec0] sm:$0xff] }
 0x2b9   : > { %7796 = vmatprep.subr.bf16.mxu1 %v9947_v44  ;;  %v9986_v44 = vcombine.low %v1932_v26, %v1936_v50  ;;  %v9995_v19 = vcombine.high %v1940_v29, %v1944_v52  ;;  %v1983_v26 = vld [vmem:[#allocation6 + $0x1ee0] sm:$0xff]  ;;  %v1980_v50 = vld [vmem:[#allocation6 + $0x1ec8] sm:$0xff] }
 0x2ba   : > { %7460 = vmatmul.mubr.bf16.vlgmr.msra.gmra.mrb[0].mxu0 %v11545_v43 }
 0x2bb   : > { %7469 = vmatpush1.bf16.msra.mxu0 %v9944_v15  ;;  %7788 = vmatmul.mubr.bf16.vlgmr.msra.gmra.mrb[0].mxu1 %v11545_v43  ;;  %v1952_v15 = vld [vmem:[#allocation6 + $0x1de8] sm:$0xff] }
 0x2bc   : > { %7797 = vmatpush1.bf16.msra.mxu1 %v9946_v56  ;;  %7470 = vmatprep.subr.bf16.mxu0 %v9953_v17  ;;  %v9992_v56 = vcombine.low %v1939_v41, %v1943_v57  ;;  %v9994_v17 = vcombine.low %v1940_v29, %v1944_v52  ;;  %v10003_v8 = vcombine.high %v1948_v12, %v1952_v15  ;;  %v1987_v57 = vld [vmem:[#allocation6 + $0x1f00] sm:$0xff]  ;;  %v1988_v52 = vld [vmem:[#allocation6 + $0x1f08] sm:$0xff] }
 0x2bd   : > { %7798 = vmatprep.subr.bf16.mxu1 %v9955_v0  ;;  %7500 = vmatprep.mubr.bf16.mxu0 %v11547_v46  ;;  %v10001_v0 = vcombine.high %v1947_v6, %v1951_v23  ;;  %v1991_v29 = vld [vmem:[#allocation6 + $0x1f20] sm:$0xff] }
 0x2be   : > { %7828 = vmatprep.mubr.bf16.mxu1 %v11547_v46 }
 0x2bf   : > { %7471 = vmatpush1.bf16.msra.mxu0 %v9952_v48  ;;  %v1960_v48 = vld [vmem:[#allocation6 + $0x1e28] sm:$0xff] }
 0x2c0   : > { %7799 = vmatpush1.bf16.msra.mxu1 %v9954_v36  ;;  %7472 = vmatprep.subr.bf16.mxu0 %v9961_v18  ;;  %v10000_v36 = vcombine.low %v1947_v6, %v1951_v23  ;;  %v10002_v18 = vcombine.low %v1948_v12, %v1952_v15  ;;  %v10011_v31 = vcombine.high %v1956_v49, %v1960_v48  ;;  %v1995_v23 = vld [vmem:[#allocation6 + $0x1f40] sm:$0xff]  ;;  %v1996_v15 = vld [vmem:[#allocation6 + $0x1f48] sm:$0xff] }
 0x2c1   : > { %7800 = vmatprep.subr.bf16.mxu1 %v9963_v7  ;;  %v10009_v7 = vcombine.high %v1955_v11, %v1959_v63  ;;  %v1999_v12 = vld [vmem:[#allocation6 + $0x1f60] sm:$0xff] }
 0x2c3   : > { %7473 = vmatpush1.bf16.msra.mxu0 %v9960_v2  ;;  %v1968_v2 = vld [vmem:[#allocation6 + $0x1e68] sm:$0xff] }
 0x2c4   : > { %7801 = vmatpush1.bf16.msra.mxu1 %v9962_v24  ;;  %7474 = vmatprep.subr.bf16.mxu0 %v9969_v61  ;;  %v10008_v24 = vcombine.low %v1955_v11, %v1959_v63  ;;  %v10010_v61 = vcombine.low %v1956_v49, %v1960_v48  ;;  %v10019_v28 = vcombine.high %v1964_v27, %v1968_v2  ;;  %v2003_v63 = vld [vmem:[#allocation6 + $0x1f80] sm:$0xff]  ;;  %v2004_v48 = vld [vmem:[#allocation6 + $0x1f88] sm:$0xff] }
 0x2c5   : > { %7802 = vmatprep.subr.bf16.mxu1 %v9971_v21  ;;  %v10017_v21 = vcombine.high %v1963_v33, %v1967_v35  ;;  %v2007_v49 = vld [vmem:[#allocation6 + $0x1fa0] sm:$0xff] }
 0x2c7   : > { %7475 = vmatpush1.bf16.msra.mxu0 %v9968_v59  ;;  %v1976_v59 = vld [vmem:[#allocation6 + $0x1ea8] sm:$0xff] }
 0x2c8   : > { %7803 = vmatpush1.bf16.msra.mxu1 %v9970_v25  ;;  %7476 = vmatprep.subr.bf16.mxu0 %v9977_v1  ;;  %v10016_v25 = vcombine.low %v1963_v33, %v1967_v35  ;;  %v10018_v1 = vcombine.low %v1964_v27, %v1968_v2  ;;  %v10027_v22 = vcombine.high %v1972_v4, %v1976_v59  ;;  %v2011_v35 = vld [vmem:[#allocation6 + $0x1fc0] sm:$0xff]  ;;  %v2012_v2 = vld [vmem:[#allocation6 + $0x1fc8] sm:$0xff] }
 0x2c9   : > { %7804 = vmatprep.subr.bf16.mxu1 %v9979_v51  ;;  %v10025_v51 = vcombine.high %v1971_v30, %v1975_v37  ;;  %v2015_v27 = vld [vmem:[#allocation6 + $0x1fe0] sm:$0xff] }
 0x2cb   : > { %7477 = vmatpush1.bf16.msra.mxu0 %v9976_v62  ;;  %v1984_v62 = vld [vmem:[#allocation6 + $0x1ee8] sm:$0xff] }
 0x2cc   : > { %7805 = vmatpush1.bf16.msra.mxu1 %v9978_v40  ;;  %7478 = vmatprep.subr.bf16.mxu0 %v9985_v53  ;;  %v10024_v40 = vcombine.low %v1971_v30, %v1975_v37  ;;  %v10026_v53 = vcombine.low %v1972_v4, %v1976_v59  ;;  %v10035_v41 = vcombine.high %v1980_v50, %v1984_v62  ;;  %v997_v37 = vld [vmem:[#allocation6 + $0x10] sm:$0xff]  ;;  %v998_v59 = vld [vmem:[#allocation6 + $0x18] sm:$0xff] }
 0x2cd   : > { %7806 = vmatprep.subr.bf16.mxu1 %v9987_v16  ;;  %v10033_v16 = vcombine.high %v1979_v9, %v1983_v26  ;;  %v1001_v4 = vld [vmem:[#allocation6 + $0x30] sm:$0xff] }
 0x2cf   : > { %7479 = vmatpush1.bf16.msra.mxu0 %v9984_v58  ;;  %v1992_v58 = vld [vmem:[#allocation6 + $0x1f28] sm:$0xff] }
 0x2d0   : > { %7807 = vmatpush1.bf16.msra.mxu1 %v9986_v44  ;;  %7480 = vmatprep.subr.bf16.mxu0 %v9993_v10  ;;  %v10032_v44 = vcombine.low %v1979_v9, %v1983_v26  ;;  %v10034_v10 = vcombine.low %v1980_v50, %v1984_v62  ;;  %v10043_v6 = vcombine.high %v1988_v52, %v1992_v58  ;;  %v1005_v26 = vld [vmem:[#allocation6 + $0x50] sm:$0xff] }
 0x2d1   : > { %7808 = vmatprep.subr.bf16.mxu1 %v9995_v19  ;;  %v10041_v19 = vcombine.high %v1987_v57, %v1991_v29  ;;  %v1009_v50 = vld [vmem:[#allocation6 + $0x70] sm:$0xff]  ;;  %v11555_v62 = vpack.c.bf16 %v11539_v45, %v11539_v45 }
 0x2d2   : > { %v9060_v45 = vcombine.low %v1005_v26, %v1009_v50 }
 0x2d3   : > { %7481 = vmatpush1.bf16.msra.mxu0 %v9992_v56  ;;  %v2000_v56 = vld [vmem:[#allocation6 + $0x1f68] sm:$0xff] }
 0x2d4   : > { %7809 = vmatpush1.bf16.msra.mxu1 %v9994_v17  ;;  %7482 = vmatprep.subr.bf16.mxu0 %v10001_v0  ;;  %v10040_v17 = vcombine.low %v1987_v57, %v1991_v29  ;;  %v10042_v0 = vcombine.low %v1988_v52, %v1992_v58  ;;  %v10051_v11 = vcombine.high %v1996_v15, %v2000_v56  ;;  %v1013_v52 = vld [vmem:[#allocation6 + $0x90] sm:$0xff] }
 0x2d5   : > { %7810 = vmatprep.subr.bf16.mxu1 %v10003_v8  ;;  %v10049_v8 = vcombine.high %v1995_v23, %v1999_v12  ;;  %v9061_v57 = vcombine.high %v1005_v26, %v1009_v50  ;;  %v1017_v58 = vld [vmem:[#allocation6 + $0xb0] sm:$0xff] }
 0x2d6   : > { %v1053_v26 = vld [vmem:[#allocation6 + $0x1d0] sm:$0xff] }
 0x2d7   : > { %7483 = vmatpush1.bf16.msra.mxu0 %v10000_v36  ;;  %v2008_v36 = vld [vmem:[#allocation6 + $0x1fa8] sm:$0xff]  ;;  %v1057_v50 = vld [vmem:[#allocation6 + $0x1f0] sm:$0xff] }
 0x2d8   : > { %7811 = vmatpush1.bf16.msra.mxu1 %v10002_v18  ;;  %7484 = vmatprep.subr.bf16.mxu0 %v10009_v7  ;;  %v10048_v18 = vcombine.low %v1995_v23, %v1999_v12  ;;  %v10050_v7 = vcombine.low %v1996_v15, %v2000_v56  ;;  %v10059_v33 = vcombine.high %v2004_v48, %v2008_v36  ;;  %v1021_v12 = vld [vmem:[#allocation6 + $0xd0] sm:$0xff]  ;;  %v1022_v56 = vld [vmem:[#allocation6 + $0xd8] sm:$0xff] }
 0x2d9   : > { %7812 = vmatprep.subr.bf16.mxu1 %v10011_v31  ;;  %v10057_v31 = vcombine.high %v2003_v63, %v2007_v49  ;;  %v1025_v15 = vld [vmem:[#allocation6 + $0xf0] sm:$0xff] }
 0x2db   : > { %7485 = vmatpush1.bf16.msra.mxu0 %v10008_v24  ;;  %v2016_v24 = vld [vmem:[#allocation6 + $0x1fe8] sm:$0xff] }
 0x2dc   : > { %7813 = vmatpush1.bf16.msra.mxu1 %v10010_v61  ;;  %7486 = vmatprep.subr.bf16.mxu0 %v10017_v21  ;;  %v10056_v61 = vcombine.low %v2003_v63, %v2007_v49  ;;  %v10058_v21 = vcombine.low %v2004_v48, %v2008_v36  ;;  %v10067_v30 = vcombine.high %v2012_v2, %v2016_v24  ;;  %v1029_v49 = vld [vmem:[#allocation6 + $0x110] sm:$0xff]  ;;  %v1030_v36 = vld [vmem:[#allocation6 + $0x118] sm:$0xff] }
 0x2dd   : > { %7814 = vmatprep.subr.bf16.mxu1 %v10019_v28  ;;  %v10065_v28 = vcombine.high %v2011_v35, %v2015_v27  ;;  %v1033_v48 = vld [vmem:[#allocation6 + $0x130] sm:$0xff] }
 0x2df   : > { %7487 = vmatpush1.bf16.msra.mxu0 %v10016_v25  ;;  %v1002_v25 = vld [vmem:[#allocation6 + $0x38] sm:$0xff] }
 0x2e0   : > { %7815 = vmatpush1.bf16.msra.mxu1 %v10018_v1  ;;  %7488 = vmatprep.subr.bf16.mxu0 %v10025_v51  ;;  %v10064_v1 = vcombine.low %v2011_v35, %v2015_v27  ;;  %v10066_v51 = vcombine.low %v2012_v2, %v2016_v24  ;;  %v9055_v9 = vcombine.high %v998_v59, %v1002_v25  ;;  %v1037_v35 = vld [vmem:[#allocation6 + $0x150] sm:$0xff]  ;;  %v1038_v2 = vld [vmem:[#allocation6 + $0x158] sm:$0xff] }
 0x2e1   : > { %7816 = vmatprep.subr.bf16.mxu1 %v10027_v22  ;;  %v9053_v22 = vcombine.high %v997_v37, %v1001_v4  ;;  %v1041_v27 = vld [vmem:[#allocation6 + $0x170] sm:$0xff]  ;;  %v1042_v24 = vld [vmem:[#allocation6 + $0x178] sm:$0xff] }
 0x2e3   : > { %7489 = vmatpush1.bf16.msra.mxu0 %v10024_v40  ;;  %v1006_v40 = vld [vmem:[#allocation6 + $0x58] sm:$0xff] }
 0x2e4   : > { %7817 = vmatpush1.bf16.msra.mxu1 %v10026_v53  ;;  %7490 = vmatprep.subr.bf16.mxu0 %v10033_v16  ;;  %v1010_v53 = vld [vmem:[#allocation6 + $0x78] sm:$0xff]  ;;  %v9052_v16 = vcombine.low %v997_v37, %v1001_v4  ;;  %v1045_v37 = vld [vmem:[#allocation6 + $0x190] sm:$0xff] }
 0x2e5   : > { %7818 = vmatprep.subr.bf16.mxu1 %v10035_v41  ;;  %v9054_v41 = vcombine.low %v998_v59, %v1002_v25  ;;  %v9063_v29 = vcombine.high %v1006_v40, %v1010_v53  ;;  %v1049_v4 = vld [vmem:[#allocation6 + $0x1b0] sm:$0xff]  ;;  %v1046_v59 = vld [vmem:[#allocation6 + $0x198] sm:$0xff] }
 0x2e6   : > { %v1050_v25 = vld [vmem:[#allocation6 + $0x1b8] sm:$0xff] }
 0x2e7   : > { %7491 = vmatpush1.bf16.msra.mxu0 %v10032_v44  ;;  %v1014_v44 = vld [vmem:[#allocation6 + $0x98] sm:$0xff] }
 0x2e8   : > { %7819 = vmatpush1.bf16.msra.mxu1 %v10034_v10  ;;  %7492 = vmatprep.subr.bf16.mxu0 %v10041_v19  ;;  %v1018_v10 = vld [vmem:[#allocation6 + $0xb8] sm:$0xff]  ;;  %v9062_v19 = vcombine.low %v1006_v40, %v1010_v53 }
 0x2e9   : > { %7820 = vmatprep.subr.bf16.mxu1 %v10043_v6  ;;  %v9069_v6 = vcombine.high %v1013_v52, %v1017_v58  ;;  %v9071_v23 = vcombine.high %v1014_v44, %v1018_v10  ;;  %v1054_v40 = vld [vmem:[#allocation6 + $0x1d8] sm:$0xff] }
 0x2ea   : > { %v1058_v53 = vld [vmem:[#allocation6 + $0x1f8] sm:$0xff] }
 0x2eb   : > { %7493 = vmatpush1.bf16.msra.mxu0 %v10040_v17  ;;  %v1026_v17 = vld [vmem:[#allocation6 + $0xf8] sm:$0xff] }
 0x2ec   : > { %7821 = vmatpush1.bf16.msra.mxu1 %v10042_v0  ;;  %7494 = vmatprep.subr.bf16.mxu0 %v10049_v8  ;;  %v9068_v0 = vcombine.low %v1013_v52, %v1017_v58  ;;  %v9070_v8 = vcombine.low %v1014_v44, %v1018_v10  ;;  %v9079_v63 = vcombine.high %v1022_v56, %v1026_v17  ;;  %v1061_v52 = vld [vmem:[#allocation6 + $0x210] sm:$0xff]  ;;  %v1062_v44 = vld [vmem:[#allocation6 + $0x218] sm:$0xff] }
 0x2ed   : > { %7822 = vmatprep.subr.bf16.mxu1 %v10051_v11  ;;  %v9077_v11 = vcombine.high %v1021_v12, %v1025_v15  ;;  %v1065_v58 = vld [vmem:[#allocation6 + $0x230] sm:$0xff]  ;;  %v1066_v10 = vld [vmem:[#allocation6 + $0x238] sm:$0xff] }
 0x2ef   : > { %7495 = vmatpush1.bf16.msra.mxu0 %v10048_v18  ;;  %v1034_v18 = vld [vmem:[#allocation6 + $0x138] sm:$0xff] }
 0x2f0   : > { %7823 = vmatpush1.bf16.msra.mxu1 %v10050_v7  ;;  %7496 = vmatprep.subr.bf16.mxu0 %v10057_v31  ;;  %v9076_v7 = vcombine.low %v1021_v12, %v1025_v15  ;;  %v9078_v31 = vcombine.low %v1022_v56, %v1026_v17  ;;  %v1069_v12 = vld [vmem:[#allocation6 + $0x250] sm:$0xff]  ;;  %v1070_v56 = vld [vmem:[#allocation6 + $0x258] sm:$0xff] }
 0x2f1   : > { %7824 = vmatprep.subr.bf16.mxu1 %v10059_v33  ;;  %v9085_v33 = vcombine.high %v1029_v49, %v1033_v48  ;;  %v1073_v15 = vld [vmem:[#allocation6 + $0x270] sm:$0xff]  ;;  %v1074_v17 = vld [vmem:[#allocation6 + $0x278] sm:$0xff] }
 0x2f3   : > { %7497 = vmatpush1.bf16.msra.mxu0 %v10056_v61  ;;  %v9084_v61 = vcombine.low %v1029_v49, %v1033_v48  ;;  %v1077_v49 = vld [vmem:[#allocation6 + $0x290] sm:$0xff] }
 0x2f4   : > { %7825 = vmatpush1.bf16.msra.mxu1 %v10058_v21  ;;  %7498 = vmatprep.subr.bf16.mxu0 %v10065_v28  ;;  %v9086_v21 = vcombine.low %v1030_v36, %v1034_v18  ;;  %v9093_v28 = vcombine.high %v1037_v35, %v1041_v27  ;;  %v1081_v48 = vld [vmem:[#allocation6 + $0x2b0] sm:$0xff] }
 0x2f5   : > { %7826 = vmatprep.subr.bf16.mxu1 %v10067_v30  ;;  %v9095_v30 = vcombine.high %v1038_v2, %v1042_v24 }
 0x2f7   : > { %7499 = vmatpush1.bf16.msra.mxu0 %v10064_v1  ;;  %v9092_v1 = vcombine.low %v1037_v35, %v1041_v27  ;;  %v1085_v35 = vld [vmem:[#allocation6 + $0x2d0] sm:$0xff] }
 0x2f8   : > { %7827 = vmatpush1.bf16.msra.mxu1 %v10066_v51  ;;  %7837 = vmatprep.subr.bf16.mxu0 %v9053_v22  ;;  %v9094_v51 = vcombine.low %v1038_v2, %v1042_v24  ;;  %v9101_v22 = vcombine.high %v1045_v37, %v1049_v4  ;;  %v1089_v27 = vld [vmem:[#allocation6 + $0x2f0] sm:$0xff]  ;;  %v1086_v2 = vld [vmem:[#allocation6 + $0x2d8] sm:$0xff] }
 0x2f9   : > { %8165 = vmatprep.subr.bf16.mxu1 %v9055_v9  ;;  %v9103_v9 = vcombine.high %v1046_v59, %v1050_v25  ;;  %v1090_v24 = vld [vmem:[#allocation6 + $0x2f8] sm:$0xff] }
 0x2fa   : > { %7501 = vmatmul.mubr.bf16.vlgmr.msra.gmra.mrb[0].mxu0 %v11555_v62 }
 0x2fb   : > { %7829 = vmatmul.mubr.bf16.vlgmr.msra.gmra.mrb[0].mxu1 %v11555_v62  ;;  %7838 = vmatpush1.bf16.msra.mxu0 %v9052_v16  ;;  %v9100_v16 = vcombine.low %v1045_v37, %v1049_v4  ;;  %v1093_v37 = vld [vmem:[#allocation6 + $0x310] sm:$0xff] }
 0x2fc   : > { %8166 = vmatpush1.bf16.msra.mxu1 %v9054_v41  ;;  %7839 = vmatprep.subr.bf16.mxu0 %v9061_v57  ;;  %v9102_v41 = vcombine.low %v1046_v59, %v1050_v25  ;;  %v9109_v57 = vcombine.high %v1053_v26, %v1057_v50  ;;  %v1097_v4 = vld [vmem:[#allocation6 + $0x330] sm:$0xff]  ;;  %v1094_v59 = vld [vmem:[#allocation6 + $0x318] sm:$0xff] }
 0x2fd   : > { %8167 = vmatprep.subr.bf16.mxu1 %v9063_v29  ;;  %7869 = vmatprep.mubr.bf16.mxu0 %v11427_v38  ;;  %v9111_v29 = vcombine.high %v1054_v40, %v1058_v53  ;;  %v1098_v25 = vld [vmem:[#allocation6 + $0x338] sm:$0xff] }
 0x2fe   : > { %8197 = vmatprep.mubr.bf16.mxu1 %v11427_v38  ;;  %v9087_v38 = vcombine.high %v1030_v36, %v1034_v18  ;;  %v1078_v36 = vld [vmem:[#allocation6 + $0x298] sm:$0xff] }
 0x2ff   : > { %7840 = vmatpush1.bf16.msra.mxu0 %v9060_v45  ;;  %v9108_v45 = vcombine.low %v1053_v26, %v1057_v50  ;;  %v1082_v18 = vld [vmem:[#allocation6 + $0x2b8] sm:$0xff]  ;;  %v1101_v26 = vld [vmem:[#allocation6 + $0x350] sm:$0xff] }
 0x300   : > { %8168 = vmatpush1.bf16.msra.mxu1 %v9062_v19  ;;  %7841 = vmatprep.subr.bf16.mxu0 %v9069_v6  ;;  %v9110_v19 = vcombine.low %v1054_v40, %v1058_v53  ;;  %v9117_v6 = vcombine.high %v1061_v52, %v1065_v58  ;;  %v1105_v50 = vld [vmem:[#allocation6 + $0x370] sm:$0xff]  ;;  %v1102_v40 = vld [vmem:[#allocation6 + $0x358] sm:$0xff] }
 0x301   : > { %8169 = vmatprep.subr.bf16.mxu1 %v9071_v23  ;;  %v9119_v23 = vcombine.high %v1062_v44, %v1066_v10  ;;  %v1106_v53 = vld [vmem:[#allocation6 + $0x378] sm:$0xff] }
 0x303   : > { %7842 = vmatpush1.bf16.msra.mxu0 %v9068_v0  ;;  %v9116_v0 = vcombine.low %v1061_v52, %v1065_v58  ;;  %v1109_v52 = vld [vmem:[#allocation6 + $0x390] sm:$0xff] }
 0x304   : > { %8170 = vmatpush1.bf16.msra.mxu1 %v9070_v8  ;;  %7843 = vmatprep.subr.bf16.mxu0 %v9077_v11  ;;  %v9118_v8 = vcombine.low %v1062_v44, %v1066_v10  ;;  %v9125_v11 = vcombine.high %v1069_v12, %v1073_v15  ;;  %v1113_v58 = vld [vmem:[#allocation6 + $0x3b0] sm:$0xff]  ;;  %v1110_v44 = vld [vmem:[#allocation6 + $0x398] sm:$0xff] }
 0x305   : > { %8171 = vmatprep.subr.bf16.mxu1 %v9079_v63  ;;  %v9127_v63 = vcombine.high %v1070_v56, %v1074_v17  ;;  %v1114_v10 = vld [vmem:[#allocation6 + $0x3b8] sm:$0xff] }
 0x307   : > { %7844 = vmatpush1.bf16.msra.mxu0 %v9076_v7  ;;  %v9124_v7 = vcombine.low %v1069_v12, %v1073_v15  ;;  %v1117_v12 = vld [vmem:[#allocation6 + $0x3d0] sm:$0xff] }
 0x308   : > { %8172 = vmatpush1.bf16.msra.mxu1 %v9078_v31  ;;  %7845 = vmatprep.subr.bf16.mxu0 %v9085_v33  ;;  %v9126_v31 = vcombine.low %v1070_v56, %v1074_v17  ;;  %v9133_v33 = vcombine.high %v1077_v49, %v1081_v48  ;;  %v1121_v15 = vld [vmem:[#allocation6 + $0x3f0] sm:$0xff]  ;;  %v1118_v56 = vld [vmem:[#allocation6 + $0x3d8] sm:$0xff] }
 0x309   : > { %8173 = vmatprep.subr.bf16.mxu1 %v9087_v38  ;;  %v9135_v38 = vcombine.high %v1078_v36, %v1082_v18  ;;  %v1122_v17 = vld [vmem:[#allocation6 + $0x3f8] sm:$0xff] }
 0x30b   : > { %7846 = vmatpush1.bf16.msra.mxu0 %v9084_v61  ;;  %v9132_v61 = vcombine.low %v1077_v49, %v1081_v48  ;;  %v1125_v49 = vld [vmem:[#allocation6 + $0x410] sm:$0xff] }
 0x30c   : > { %8174 = vmatpush1.bf16.msra.mxu1 %v9086_v21  ;;  %7847 = vmatprep.subr.bf16.mxu0 %v9093_v28  ;;  %v9134_v21 = vcombine.low %v1078_v36, %v1082_v18  ;;  %v9141_v28 = vcombine.high %v1085_v35, %v1089_v27  ;;  %v1129_v48 = vld [vmem:[#allocation6 + $0x430] sm:$0xff]  ;;  %v1126_v36 = vld [vmem:[#allocation6 + $0x418] sm:$0xff] }
 0x30d   : > { %8175 = vmatprep.subr.bf16.mxu1 %v9095_v30  ;;  %v9143_v30 = vcombine.high %v1086_v2, %v1090_v24  ;;  %v1130_v18 = vld [vmem:[#allocation6 + $0x438] sm:$0xff] }
 0x30f   : > { %7848 = vmatpush1.bf16.msra.mxu0 %v9092_v1  ;;  %v9140_v1 = vcombine.low %v1085_v35, %v1089_v27  ;;  %v1133_v35 = vld [vmem:[#allocation6 + $0x450] sm:$0xff] }
 0x310   : > { %8176 = vmatpush1.bf16.msra.mxu1 %v9094_v51  ;;  %7849 = vmatprep.subr.bf16.mxu0 %v9101_v22  ;;  %v9142_v51 = vcombine.low %v1086_v2, %v1090_v24  ;;  %v9149_v22 = vcombine.high %v1093_v37, %v1097_v4  ;;  %v1137_v27 = vld [vmem:[#allocation6 + $0x470] sm:$0xff]  ;;  %v1134_v2 = vld [vmem:[#allocation6 + $0x458] sm:$0xff] }
 0x311   : > { %8177 = vmatprep.subr.bf16.mxu1 %v9103_v9  ;;  %v9151_v9 = vcombine.high %v1094_v59, %v1098_v25  ;;  %v1138_v24 = vld [vmem:[#allocation6 + $0x478] sm:$0xff] }
 0x313   : > { %7850 = vmatpush1.bf16.msra.mxu0 %v9100_v16  ;;  %v9148_v16 = vcombine.low %v1093_v37, %v1097_v4  ;;  %v1141_v37 = vld [vmem:[#allocation6 + $0x490] sm:$0xff] }
 0x314   : > { %8178 = vmatpush1.bf16.msra.mxu1 %v9102_v41  ;;  %7851 = vmatprep.subr.bf16.mxu0 %v9109_v57  ;;  %v9150_v41 = vcombine.low %v1094_v59, %v1098_v25  ;;  %v9157_v57 = vcombine.high %v1101_v26, %v1105_v50  ;;  %v1145_v4 = vld [vmem:[#allocation6 + $0x4b0] sm:$0xff]  ;;  %v1142_v59 = vld [vmem:[#allocation6 + $0x498] sm:$0xff] }
 0x315   : > { %8179 = vmatprep.subr.bf16.mxu1 %v9111_v29  ;;  %v9159_v29 = vcombine.high %v1102_v40, %v1106_v53  ;;  %v1146_v25 = vld [vmem:[#allocation6 + $0x4b8] sm:$0xff] }
 0x317   : > { %7852 = vmatpush1.bf16.msra.mxu0 %v9108_v45  ;;  %v9156_v45 = vcombine.low %v1101_v26, %v1105_v50  ;;  %v1149_v26 = vld [vmem:[#allocation6 + $0x4d0] sm:$0xff] }
 0x318   : > { %8180 = vmatpush1.bf16.msra.mxu1 %v9110_v19  ;;  %7853 = vmatprep.subr.bf16.mxu0 %v9117_v6  ;;  %v9158_v19 = vcombine.low %v1102_v40, %v1106_v53  ;;  %v9165_v6 = vcombine.high %v1109_v52, %v1113_v58  ;;  %v1153_v50 = vld [vmem:[#allocation6 + $0x4f0] sm:$0xff]  ;;  %v1150_v40 = vld [vmem:[#allocation6 + $0x4d8] sm:$0xff] }
 0x319   : > { %8181 = vmatprep.subr.bf16.mxu1 %v9119_v23  ;;  %v9167_v23 = vcombine.high %v1110_v44, %v1114_v10  ;;  %v1154_v53 = vld [vmem:[#allocation6 + $0x4f8] sm:$0xff] }
 0x31b   : > { %7854 = vmatpush1.bf16.msra.mxu0 %v9116_v0  ;;  %v9164_v0 = vcombine.low %v1109_v52, %v1113_v58  ;;  %v1161_v52 = vld [vmem:[#allocation6 + $0x530] sm:$0xff]  ;;  %v1158_v58 = vld [vmem:[#allocation6 + $0x518] sm:$0xff] }
 0x31c   : > { %8182 = vmatpush1.bf16.msra.mxu1 %v9118_v8  ;;  %7855 = vmatprep.subr.bf16.mxu0 %v9125_v11  ;;  %v9166_v8 = vcombine.low %v1110_v44, %v1114_v10  ;;  %v9173_v11 = vcombine.high %v1117_v12, %v1121_v15  ;;  %v1162_v44 = vld [vmem:[#allocation6 + $0x538] sm:$0xff]  ;;  %v9204_v10 = vcombine.low %v1149_v26, %v1153_v50 }
 0x31d   : > { %8183 = vmatprep.subr.bf16.mxu1 %v9127_v63  ;;  %v9175_v63 = vcombine.high %v1118_v56, %v1122_v17 }
 0x31f   : > { %7856 = vmatpush1.bf16.msra.mxu0 %v9124_v7  ;;  %v9172_v7 = vcombine.low %v1117_v12, %v1121_v15  ;;  %v1166_v12 = vld [vmem:[#allocation6 + $0x558] sm:$0xff] }
 0x320   : > { %8184 = vmatpush1.bf16.msra.mxu1 %v9126_v31  ;;  %7857 = vmatprep.subr.bf16.mxu0 %v9133_v33  ;;  %v9174_v31 = vcombine.low %v1118_v56, %v1122_v17  ;;  %v9181_v33 = vcombine.high %v1125_v49, %v1129_v48  ;;  %v1170_v15 = vld [vmem:[#allocation6 + $0x578] sm:$0xff]  ;;  %v9214_v17 = vcombine.low %v1158_v58, %v1162_v44 }
 0x321   : > { %8185 = vmatprep.subr.bf16.mxu1 %v9135_v38  ;;  %v9183_v38 = vcombine.high %v1126_v36, %v1130_v18 }
 0x323   : > { %7858 = vmatpush1.bf16.msra.mxu0 %v9132_v61  ;;  %v9180_v61 = vcombine.low %v1125_v49, %v1129_v48  ;;  %v1174_v49 = vld [vmem:[#allocation6 + $0x598] sm:$0xff] }
 0x324   : > { %8186 = vmatpush1.bf16.msra.mxu1 %v9134_v21  ;;  %7859 = vmatprep.subr.bf16.mxu0 %v9141_v28  ;;  %v9182_v21 = vcombine.low %v1126_v36, %v1130_v18  ;;  %v9189_v28 = vcombine.high %v1133_v35, %v1137_v27  ;;  %v1178_v48 = vld [vmem:[#allocation6 + $0x5b8] sm:$0xff]  ;;  %v9222_v18 = vcombine.low %v1166_v12, %v1170_v15 }
 0x325   : > { %8187 = vmatprep.subr.bf16.mxu1 %v9143_v30  ;;  %v9191_v30 = vcombine.high %v1134_v2, %v1138_v24 }
 0x327   : > { %7860 = vmatpush1.bf16.msra.mxu0 %v9140_v1  ;;  %v9188_v1 = vcombine.low %v1133_v35, %v1137_v27  ;;  %v1182_v35 = vld [vmem:[#allocation6 + $0x5d8] sm:$0xff] }
 0x328   : > { %8188 = vmatpush1.bf16.msra.mxu1 %v9142_v51  ;;  %7861 = vmatprep.subr.bf16.mxu0 %v9149_v22  ;;  %v9190_v51 = vcombine.low %v1134_v2, %v1138_v24  ;;  %v9197_v22 = vcombine.high %v1141_v37, %v1145_v4  ;;  %v1186_v27 = vld [vmem:[#allocation6 + $0x5f8] sm:$0xff]  ;;  %v9230_v24 = vcombine.low %v1174_v49, %v1178_v48 }
 0x329   : > { %8189 = vmatprep.subr.bf16.mxu1 %v9151_v9  ;;  %v9199_v9 = vcombine.high %v1142_v59, %v1146_v25 }
 0x32b   : > { %7862 = vmatpush1.bf16.msra.mxu0 %v9148_v16  ;;  %v9196_v16 = vcombine.low %v1141_v37, %v1145_v4  ;;  %v1190_v37 = vld [vmem:[#allocation6 + $0x618] sm:$0xff] }
 0x32c   : > { %8190 = vmatpush1.bf16.msra.mxu1 %v9150_v41  ;;  %7863 = vmatprep.subr.bf16.mxu0 %v9157_v57  ;;  %v9205_v41 = vcombine.high %v1149_v26, %v1153_v50  ;;  %v9207_v57 = vcombine.high %v1150_v40, %v1154_v53  ;;  %v1194_v4 = vld [vmem:[#allocation6 + $0x638] sm:$0xff] }
 0x32d   : > { %8191 = vmatprep.subr.bf16.mxu1 %v9159_v29  ;;  %v1157_v29 = vld [vmem:[#allocation6 + $0x510] sm:$0xff]  ;;  %v1198_v26 = vld [vmem:[#allocation6 + $0x658] sm:$0xff] }
 0x32e   : > { %v9212_v56 = vcombine.low %v1157_v29, %v1161_v52  ;;  %v1202_v50 = vld [vmem:[#allocation6 + $0x678] sm:$0xff] }
 0x32f   : > { %7864 = vmatpush1.bf16.msra.mxu0 %v9156_v45  ;;  %v9206_v45 = vcombine.low %v1150_v40, %v1154_v53  ;;  %v9246_v53 = vcombine.low %v1190_v37, %v1194_v4 }
 0x330   : > { %8192 = vmatpush1.bf16.msra.mxu1 %v9158_v19  ;;  %7865 = vmatprep.subr.bf16.mxu0 %v9165_v6  ;;  %v9213_v19 = vcombine.high %v1157_v29, %v1161_v52  ;;  %v1165_v6 = vld [vmem:[#allocation6 + $0x550] sm:$0xff]  ;;  %v1206_v29 = vld [vmem:[#allocation6 + $0x698] sm:$0xff] }
 0x331   : > { %8193 = vmatprep.subr.bf16.mxu1 %v9167_v23  ;;  %v1169_v23 = vld [vmem:[#allocation6 + $0x570] sm:$0xff]  ;;  %v1210_v52 = vld [vmem:[#allocation6 + $0x6b8] sm:$0xff] }
 0x332   : > { %v9220_v36 = vcombine.low %v1165_v6, %v1169_v23 }
 0x333   : > { %7866 = vmatpush1.bf16.msra.mxu0 %v9164_v0  ;;  %v9221_v0 = vcombine.high %v1165_v6, %v1169_v23  ;;  %v1214_v6 = vld [vmem:[#allocation6 + $0x6d8] sm:$0xff] }
 0x334   : > { %8194 = vmatpush1.bf16.msra.mxu1 %v9166_v8  ;;  %7867 = vmatprep.subr.bf16.mxu0 %v9173_v11  ;;  %v9223_v8 = vcombine.high %v1166_v12, %v1170_v15  ;;  %v1173_v11 = vld [vmem:[#allocation6 + $0x590] sm:$0xff]  ;;  %v1218_v23 = vld [vmem:[#allocation6 + $0x6f8] sm:$0xff]  ;;  %v9262_v15 = vcombine.low %v1206_v29, %v1210_v52 }
 0x335   : > { %8195 = vmatprep.subr.bf16.mxu1 %v9175_v63  ;;  %v1177_v63 = vld [vmem:[#allocation6 + $0x5b0] sm:$0xff] }
 0x336   : > { %v9228_v2 = vcombine.low %v1173_v11, %v1177_v63 }
 0x337   : > { %7868 = vmatpush1.bf16.msra.mxu0 %v9172_v7  ;;  %v9229_v7 = vcombine.high %v1173_v11, %v1177_v63  ;;  %v1222_v11 = vld [vmem:[#allocation6 + $0x718] sm:$0xff] }
 0x338   : > { %8196 = vmatpush1.bf16.msra.mxu1 %v9174_v31  ;;  %7878 = vmatprep.subr.bf16.mxu0 %v9181_v33  ;;  %v9231_v31 = vcombine.high %v1174_v49, %v1178_v48  ;;  %v1181_v33 = vld [vmem:[#allocation6 + $0x5d0] sm:$0xff]  ;;  %v1226_v63 = vld [vmem:[#allocation6 + $0x738] sm:$0xff]  ;;  %v9270_v48 = vcombine.low %v1214_v6, %v1218_v23 }
 0x339   : > { %8206 = vmatprep.subr.bf16.mxu1 %v9183_v38  ;;  %v1185_v38 = vld [vmem:[#allocation6 + $0x5f0] sm:$0xff] }
 0x33a   : > { %7870 = vmatmul.mubr.bf16.vlgmr.msra.gmra.mrb[4].mxu0 %v11440_v5 }
 0x33b   : > { %7879 = vmatpush1.bf16.msra.mxu0 %v9180_v61  ;;  %8198 = vmatmul.mubr.bf16.vlgmr.msra.gmra.mrb[4].mxu1 %v11440_v5  ;;  %v9198_v5 = vcombine.low %v1142_v59, %v1146_v25  ;;  %v9237_v61 = vcombine.high %v1181_v33, %v1185_v38  ;;  %v9236_v59 = vcombine.low %v1181_v33, %v1185_v38  ;;  %v1230_v33 = vld [vmem:[#allocation6 + $0x758] sm:$0xff] }
 0x33c   : > { %8207 = vmatpush1.bf16.msra.mxu1 %v9182_v21  ;;  %7880 = vmatprep.subr.bf16.mxu0 %v9189_v28  ;;  %v9239_v21 = vcombine.high %v1182_v35, %v1186_v27  ;;  %v1189_v28 = vld [vmem:[#allocation6 + $0x610] sm:$0xff]  ;;  %v9238_v25 = vcombine.low %v1182_v35, %v1186_v27  ;;  %v1234_v38 = vld [vmem:[#allocation6 + $0x778] sm:$0xff]  ;;  %v9278_v27 = vcombine.low %v1222_v11, %v1226_v63 }
 0x33d   : > { %8208 = vmatprep.subr.bf16.mxu1 %v9191_v30  ;;  %7910 = vmatprep.mubr.bf16.mxu0 %v11442_v39  ;;  %v1193_v30 = vld [vmem:[#allocation6 + $0x630] sm:$0xff] }
 0x33e   : > { %8238 = vmatprep.mubr.bf16.mxu1 %v11442_v39  ;;  %v9215_v39 = vcombine.high %v1158_v58, %v1162_v44  ;;  %v9244_v40 = vcombine.low %v1189_v28, %v1193_v30  ;;  %v9254_v44 = vcombine.low %v1198_v26, %v1202_v50 }
 0x33f   : > { %7881 = vmatpush1.bf16.msra.mxu0 %v9188_v1  ;;  %v9245_v1 = vcombine.high %v1189_v28, %v1193_v30  ;;  %v1238_v28 = vld [vmem:[#allocation6 + $0x798] sm:$0xff] }
 0x340   : > { %8209 = vmatpush1.bf16.msra.mxu1 %v9190_v51  ;;  %7882 = vmatprep.subr.bf16.mxu0 %v9197_v22  ;;  %v9247_v51 = vcombine.high %v1190_v37, %v1194_v4  ;;  %v1197_v22 = vld [vmem:[#allocation6 + $0x650] sm:$0xff]  ;;  %v1242_v30 = vld [vmem:[#allocation6 + $0x7b8] sm:$0xff]  ;;  %v9286_v4 = vcombine.low %v1230_v33, %v1234_v38 }
 0x341   : > { %8210 = vmatprep.subr.bf16.mxu1 %v9199_v9  ;;  %v1201_v9 = vld [vmem:[#allocation6 + $0x670] sm:$0xff] }
 0x342   : > { %v9252_v58 = vcombine.low %v1197_v22, %v1201_v9 }
 0x343   : > { %7883 = vmatpush1.bf16.msra.mxu0 %v9196_v16  ;;  %v9253_v16 = vcombine.high %v1197_v22, %v1201_v9  ;;  %v1246_v22 = vld [vmem:[#allocation6 + $0x7d8] sm:$0xff] }
 0x344   : > { %8211 = vmatpush1.bf16.msra.mxu1 %v9198_v5  ;;  %7884 = vmatprep.subr.bf16.mxu0 %v9205_v41  ;;  %v9255_v5 = vcombine.high %v1198_v26, %v1202_v50  ;;  %v1205_v41 = vld [vmem:[#allocation6 + $0x690] sm:$0xff]  ;;  %v1250_v9 = vld [vmem:[#allocation6 + $0x7f8] sm:$0xff]  ;;  %v9294_v50 = vcombine.low %v1238_v28, %v1242_v30 }
 0x345   : > { %8212 = vmatprep.subr.bf16.mxu1 %v9207_v57  ;;  %v1209_v57 = vld [vmem:[#allocation6 + $0x6b0] sm:$0xff] }
 0x346   : > { %v9260_v12 = vcombine.low %v1205_v41, %v1209_v57 }
 0x347   : > { %7885 = vmatpush1.bf16.msra.mxu0 %v9204_v10  ;;  %v9261_v10 = vcombine.high %v1205_v41, %v1209_v57  ;;  %v1254_v41 = vld [vmem:[#allocation6 + $0x818] sm:$0xff] }
 0x348   : > { %8213 = vmatpush1.bf16.msra.mxu1 %v9206_v45  ;;  %7886 = vmatprep.subr.bf16.mxu0 %v9213_v19  ;;  %v9263_v45 = vcombine.high %v1206_v29, %v1210_v52  ;;  %v1213_v19 = vld [vmem:[#allocation6 + $0x6d0] sm:$0xff]  ;;  %v1258_v57 = vld [vmem:[#allocation6 + $0x838] sm:$0xff]  ;;  %v9302_v52 = vcombine.low %v1246_v22, %v1250_v9 }
 0x349   : > { %8214 = vmatprep.subr.bf16.mxu1 %v9215_v39  ;;  %v1217_v39 = vld [vmem:[#allocation6 + $0x6f0] sm:$0xff] }
 0x34a   : > { %v9268_v49 = vcombine.low %v1213_v19, %v1217_v39 }
 0x34b   : > { %7887 = vmatpush1.bf16.msra.mxu0 %v9212_v56  ;;  %v9269_v56 = vcombine.high %v1213_v19, %v1217_v39  ;;  %v1262_v19 = vld [vmem:[#allocation6 + $0x858] sm:$0xff] }
 0x34c   : > { %8215 = vmatpush1.bf16.msra.mxu1 %v9214_v17  ;;  %7888 = vmatprep.subr.bf16.mxu0 %v9221_v0  ;;  %v9271_v17 = vcombine.high %v1214_v6, %v1218_v23  ;;  %v1221_v0 = vld [vmem:[#allocation6 + $0x710] sm:$0xff]  ;;  %v1266_v39 = vld [vmem:[#allocation6 + $0x878] sm:$0xff]  ;;  %v9310_v23 = vcombine.low %v1254_v41, %v1258_v57 }
 0x34d   : > { %8216 = vmatprep.subr.bf16.mxu1 %v9223_v8  ;;  %v1225_v8 = vld [vmem:[#allocation6 + $0x730] sm:$0xff] }
 0x34e   : > { %v9276_v35 = vcombine.low %v1221_v0, %v1225_v8 }
 0x34f   : > { %7889 = vmatpush1.bf16.msra.mxu0 %v9220_v36  ;;  %v9277_v36 = vcombine.high %v1221_v0, %v1225_v8  ;;  %v1270_v0 = vld [vmem:[#allocation6 + $0x898] sm:$0xff] }
 0x350   : > { %8217 = vmatpush1.bf16.msra.mxu1 %v9222_v18  ;;  %7890 = vmatprep.subr.bf16.mxu0 %v9229_v7  ;;  %v9279_v18 = vcombine.high %v1222_v11, %v1226_v63  ;;  %v1229_v7 = vld [vmem:[#allocation6 + $0x750] sm:$0xff]  ;;  %v1274_v8 = vld [vmem:[#allocation6 + $0x8b8] sm:$0xff]  ;;  %v9318_v63 = vcombine.low %v1262_v19, %v1266_v39 }
 0x351   : > { %8218 = vmatprep.subr.bf16.mxu1 %v9231_v31  ;;  %v1233_v31 = vld [vmem:[#allocation6 + $0x770] sm:$0xff] }
 0x352   : > { %v9284_v37 = vcombine.low %v1229_v7, %v1233_v31 }
 0x353   : > { %7891 = vmatpush1.bf16.msra.mxu0 %v9228_v2  ;;  %v9285_v2 = vcombine.high %v1229_v7, %v1233_v31  ;;  %v1278_v7 = vld [vmem:[#allocation6 + $0x8d8] sm:$0xff] }
 0x354   : > { %8219 = vmatpush1.bf16.msra.mxu1 %v9230_v24  ;;  %7892 = vmatprep.subr.bf16.mxu0 %v9237_v61  ;;  %v9287_v24 = vcombine.high %v1230_v33, %v1234_v38  ;;  %v1237_v61 = vld [vmem:[#allocation6 + $0x790] sm:$0xff]  ;;  %v1282_v31 = vld [vmem:[#allocation6 + $0x8f8] sm:$0xff] }
 0x355   : > { %8220 = vmatprep.subr.bf16.mxu1 %v9239_v21  ;;  %v1241_v21 = vld [vmem:[#allocation6 + $0x7b0] sm:$0xff] }
 0x356   : > { %v9292_v26 = vcombine.low %v1237_v61, %v1241_v21 }
 0x357   : > { %7893 = vmatpush1.bf16.msra.mxu0 %v9236_v59  ;;  %v9293_v59 = vcombine.high %v1237_v61, %v1241_v21  ;;  %v1290_v61 = vld [vmem:[#allocation6 + $0x938] sm:$0xff] }
 0x358   : > { %8221 = vmatpush1.bf16.msra.mxu1 %v9238_v25  ;;  %7894 = vmatprep.subr.bf16.mxu0 %v9245_v1  ;;  %v9295_v25 = vcombine.high %v1238_v28, %v1242_v30  ;;  %v1245_v1 = vld [vmem:[#allocation6 + $0x7d0] sm:$0xff]  ;;  %v9334_v28 = vcombine.low %v1278_v7, %v1282_v31 }
 0x359   : > { %8222 = vmatprep.subr.bf16.mxu1 %v9247_v51  ;;  %v1249_v51 = vld [vmem:[#allocation6 + $0x7f0] sm:$0xff] }
 0x35a   : > { %v9300_v29 = vcombine.low %v1245_v1, %v1249_v51 }
 0x35b   : > { %7895 = vmatpush1.bf16.msra.mxu0 %v9244_v40  ;;  %v9301_v40 = vcombine.high %v1245_v1, %v1249_v51 }
 0x35c   : > { %8223 = vmatpush1.bf16.msra.mxu1 %v9246_v53  ;;  %7896 = vmatprep.subr.bf16.mxu0 %v9253_v16  ;;  %v9303_v53 = vcombine.high %v1246_v22, %v1250_v9  ;;  %v1253_v16 = vld [vmem:[#allocation6 + $0x810] sm:$0xff] }
 0x35d   : > { %8224 = vmatprep.subr.bf16.mxu1 %v9255_v5  ;;  %v1257_v5 = vld [vmem:[#allocation6 + $0x830] sm:$0xff] }
 0x35e   : > { %v9308_v6 = vcombine.low %v1253_v16, %v1257_v5 }
 0x35f   : > { %7897 = vmatpush1.bf16.msra.mxu0 %v9252_v58  ;;  %v9309_v58 = vcombine.high %v1253_v16, %v1257_v5 }
 0x360   : > { %8225 = vmatpush1.bf16.msra.mxu1 %v9254_v44  ;;  %7898 = vmatprep.subr.bf16.mxu0 %v9261_v10  ;;  %v9311_v44 = vcombine.high %v1254_v41, %v1258_v57  ;;  %v1261_v10 = vld [vmem:[#allocation6 + $0x850] sm:$0xff] }
 0x361   : > { %8226 = vmatprep.subr.bf16.mxu1 %v9263_v45  ;;  %v1265_v45 = vld [vmem:[#allocation6 + $0x870] sm:$0xff] }
 0x362   : > { %v9316_v11 = vcombine.low %v1261_v10, %v1265_v45 }
 0x363   : > { %7899 = vmatpush1.bf16.msra.mxu0 %v9260_v12  ;;  %v9317_v12 = vcombine.high %v1261_v10, %v1265_v45 }
 0x364   : > { %8227 = vmatpush1.bf16.msra.mxu1 %v9262_v15  ;;  %7900 = vmatprep.subr.bf16.mxu0 %v9269_v56  ;;  %v9319_v15 = vcombine.high %v1262_v19, %v1266_v39  ;;  %v1269_v56 = vld [vmem:[#allocation6 + $0x890] sm:$0xff] }
 0x365   : > { %8228 = vmatprep.subr.bf16.mxu1 %v9271_v17  ;;  %v1273_v17 = vld [vmem:[#allocation6 + $0x8b0] sm:$0xff] }
 0x366   : > { %v9324_v33 = vcombine.low %v1269_v56, %v1273_v17 }
 0x367   : > { %7901 = vmatpush1.bf16.msra.mxu0 %v9268_v49  ;;  %v9325_v49 = vcombine.high %v1269_v56, %v1273_v17 }
 0x368   : > { %8229 = vmatpush1.bf16.msra.mxu1 %v9270_v48  ;;  %7902 = vmatprep.subr.bf16.mxu0 %v9277_v36  ;;  %v9327_v48 = vcombine.high %v1270_v0, %v1274_v8  ;;  %v1277_v36 = vld [vmem:[#allocation6 + $0x8d0] sm:$0xff] }
 0x369   : > { %8230 = vmatprep.subr.bf16.mxu1 %v9279_v18  ;;  %v1281_v18 = vld [vmem:[#allocation6 + $0x8f0] sm:$0xff] }
 0x36a   : > { %v9333_v38 = vcombine.high %v1277_v36, %v1281_v18  ;;  %v9332_v21 = vcombine.low %v1277_v36, %v1281_v18 }
 0x36b   : > { %7903 = vmatpush1.bf16.msra.mxu0 %v9276_v35  ;;  %v9335_v35 = vcombine.high %v1278_v7, %v1282_v31 }
 0x36c   : > { %8231 = vmatpush1.bf16.msra.mxu1 %v9278_v27  ;;  %7904 = vmatprep.subr.bf16.mxu0 %v9285_v2  ;;  %v1285_v27 = vld [vmem:[#allocation6 + $0x910] sm:$0xff] }
 0x36d   : > { %8232 = vmatprep.subr.bf16.mxu1 %v9287_v24  ;;  %v1289_v2 = vld [vmem:[#allocation6 + $0x930] sm:$0xff]  ;;  %v1286_v24 = vld [vmem:[#allocation6 + $0x918] sm:$0xff] }
 0x36e   : > { %v9341_v30 = vcombine.high %v1285_v27, %v1289_v2  ;;  %v9340_v1 = vcombine.low %v1285_v27, %v1289_v2  ;;  %v9342_v51 = vcombine.low %v1286_v24, %v1290_v61 }
 0x36f   : > { %7905 = vmatpush1.bf16.msra.mxu0 %v9284_v37  ;;  %v1293_v37 = vld [vmem:[#allocation6 + $0x950] sm:$0xff] }
 0x370   : > { %8233 = vmatpush1.bf16.msra.mxu1 %v9286_v4  ;;  %7906 = vmatprep.subr.bf16.mxu0 %v9293_v59  ;;  %v1297_v4 = vld [vmem:[#allocation6 + $0x970] sm:$0xff]  ;;  %v1294_v59 = vld [vmem:[#allocation6 + $0x958] sm:$0xff] }
 0x371   : > { %8234 = vmatprep.subr.bf16.mxu1 %v9295_v25  ;;  %v1298_v25 = vld [vmem:[#allocation6 + $0x978] sm:$0xff]  ;;  %v9349_v22 = vcombine.high %v1293_v37, %v1297_v4  ;;  %v9348_v16 = vcombine.low %v1293_v37, %v1297_v4 }
 0x372   : > { %v9351_v9 = vcombine.high %v1294_v59, %v1298_v25  ;;  %v9350_v5 = vcombine.low %v1294_v59, %v1298_v25 }
 0x373   : > { %7907 = vmatpush1.bf16.msra.mxu0 %v9292_v26  ;;  %v1301_v26 = vld [vmem:[#allocation6 + $0x990] sm:$0xff] }
 0x374   : > { %8235 = vmatpush1.bf16.msra.mxu1 %v9294_v50  ;;  %7908 = vmatprep.subr.bf16.mxu0 %v9301_v40  ;;  %v1305_v50 = vld [vmem:[#allocation6 + $0x9b0] sm:$0xff]  ;;  %v1302_v40 = vld [vmem:[#allocation6 + $0x998] sm:$0xff] }
 0x375   : > { %8236 = vmatprep.subr.bf16.mxu1 %v9303_v53  ;;  %v1306_v53 = vld [vmem:[#allocation6 + $0x9b8] sm:$0xff]  ;;  %v9357_v41 = vcombine.high %v1301_v26, %v1305_v50  ;;  %v9356_v10 = vcombine.low %v1301_v26, %v1305_v50 }
 0x376   : > { %v9359_v57 = vcombine.high %v1302_v40, %v1306_v53  ;;  %v9358_v45 = vcombine.low %v1302_v40, %v1306_v53 }
 0x377   : > { %7909 = vmatpush1.bf16.msra.mxu0 %v9300_v29  ;;  %v1309_v29 = vld [vmem:[#allocation6 + $0x9d0] sm:$0xff] }
 0x378   : > { %8237 = vmatpush1.bf16.msra.mxu1 %v9302_v52  ;;  %7919 = vmatprep.subr.bf16.mxu0 %v9309_v58  ;;  %v1313_v52 = vld [vmem:[#allocation6 + $0x9f0] sm:$0xff]  ;;  %v1310_v58 = vld [vmem:[#allocation6 + $0x9d8] sm:$0xff] }
 0x379   : > { %8247 = vmatprep.subr.bf16.mxu1 %v9311_v44  ;;  %v1314_v44 = vld [vmem:[#allocation6 + $0x9f8] sm:$0xff]  ;;  %v9365_v19 = vcombine.high %v1309_v29, %v1313_v52  ;;  %v9364_v56 = vcombine.low %v1309_v29, %v1313_v52 }
 0x37a   : > { %7911 = vmatmul.mubr.bf16.vlgmr.msra.gmra.mrb[4].mxu0 %v11458_v60  ;;  %v9367_v39 = vcombine.high %v1310_v58, %v1314_v44  ;;  %v9366_v17 = vcombine.low %v1310_v58, %v1314_v44 }
 0x37b   : > { %7920 = vmatpush1.bf16.msra.mxu0 %v9308_v6  ;;  %8239 = vmatmul.mubr.bf16.vlgmr.msra.gmra.mrb[4].mxu1 %v11458_v60  ;;  %v9326_v60 = vcombine.low %v1270_v0, %v1274_v8  ;;  %v1317_v6 = vld [vmem:[#allocation6 + $0xa10] sm:$0xff] }
 0x37c   : > { %8248 = vmatpush1.bf16.msra.mxu1 %v9310_v23  ;;  %7921 = vmatprep.subr.bf16.mxu0 %v9317_v12  ;;  %v1321_v23 = vld [vmem:[#allocation6 + $0xa30] sm:$0xff]  ;;  %v1318_v12 = vld [vmem:[#allocation6 + $0xa18] sm:$0xff] }
 0x37d   : > { %8249 = vmatprep.subr.bf16.mxu1 %v9319_v15  ;;  %7951 = vmatprep.mubr.bf16.mxu0 %v11460_v13  ;;  %v1322_v15 = vld [vmem:[#allocation6 + $0xa38] sm:$0xff]  ;;  %v9373_v0 = vcombine.high %v1317_v6, %v1321_v23  ;;  %v9372_v36 = vcombine.low %v1317_v6, %v1321_v23 }
 0x37e   : > { %8279 = vmatprep.mubr.bf16.mxu1 %v11460_v13  ;;  %v9343_v13 = vcombine.high %v1286_v24, %v1290_v61  ;;  %v9375_v8 = vcombine.high %v1318_v12, %v1322_v15  ;;  %v9374_v18 = vcombine.low %v1318_v12, %v1322_v15 }
 0x37f   : > { %7922 = vmatpush1.bf16.msra.mxu0 %v9316_v11  ;;  %v1325_v11 = vld [vmem:[#allocation6 + $0xa50] sm:$0xff] }
 0x380   : > { %8250 = vmatpush1.bf16.msra.mxu1 %v9318_v63  ;;  %7923 = vmatprep.subr.bf16.mxu0 %v9325_v49  ;;  %v1329_v63 = vld [vmem:[#allocation6 + $0xa70] sm:$0xff]  ;;  %v1326_v49 = vld [vmem:[#allocation6 + $0xa58] sm:$0xff] }
 0x381   : > { %8251 = vmatprep.subr.bf16.mxu1 %v9327_v48  ;;  %v1330_v48 = vld [vmem:[#allocation6 + $0xa78] sm:$0xff]  ;;  %v9381_v7 = vcombine.high %v1325_v11, %v1329_v63  ;;  %v9380_v27 = vcombine.low %v1325_v11, %v1329_v63 }
 0x382   : > { %v9383_v31 = vcombine.high %v1326_v49, %v1330_v48  ;;  %v9382_v2 = vcombine.low %v1326_v49, %v1330_v48 }
 0x383   : > { %7924 = vmatpush1.bf16.msra.mxu0 %v9324_v33  ;;  %v1333_v33 = vld [vmem:[#allocation6 + $0xa90] sm:$0xff] }
 0x384   : > { %8252 = vmatpush1.bf16.msra.mxu1 %v9326_v60  ;;  %7925 = vmatprep.subr.bf16.mxu0 %v9333_v38  ;;  %v1337_v60 = vld [vmem:[#allocation6 + $0xab0] sm:$0xff]  ;;  %v1334_v38 = vld [vmem:[#allocation6 + $0xa98] sm:$0xff] }
 0x385   : > { %8253 = vmatprep.subr.bf16.mxu1 %v9335_v35  ;;  %v1338_v35 = vld [vmem:[#allocation6 + $0xab8] sm:$0xff]  ;;  %v9389_v24 = vcombine.high %v1333_v33, %v1337_v60  ;;  %v9388_v37 = vcombine.low %v1333_v33, %v1337_v60 }
 0x386   : > { %v9391_v61 = vcombine.high %v1334_v38, %v1338_v35  ;;  %v9390_v4 = vcombine.low %v1334_v38, %v1338_v35 }
 0x387   : > { %7926 = vmatpush1.bf16.msra.mxu0 %v9332_v21  ;;  %v1341_v21 = vld [vmem:[#allocation6 + $0xad0] sm:$0xff] }
 0x388   : > { %8254 = vmatpush1.bf16.msra.mxu1 %v9334_v28  ;;  %7927 = vmatprep.subr.bf16.mxu0 %v9341_v30  ;;  %v1345_v28 = vld [vmem:[#allocation6 + $0xaf0] sm:$0xff]  ;;  %v1342_v30 = vld [vmem:[#allocation6 + $0xad8] sm:$0xff] }
 0x389   : > { %8255 = vmatprep.subr.bf16.mxu1 %v9343_v13  ;;  %v1346_v13 = vld [vmem:[#allocation6 + $0xaf8] sm:$0xff]  ;;  %v9397_v59 = vcombine.high %v1341_v21, %v1345_v28  ;;  %v9396_v26 = vcombine.low %v1341_v21, %v1345_v28 }
 0x38a   : > { %v9399_v25 = vcombine.high %v1342_v30, %v1346_v13  ;;  %v9398_v50 = vcombine.low %v1342_v30, %v1346_v13 }
 0x38b   : > { %7928 = vmatpush1.bf16.msra.mxu0 %v9340_v1  ;;  %v1349_v1 = vld [vmem:[#allocation6 + $0xb10] sm:$0xff] }
 0x38c   : > { %8256 = vmatpush1.bf16.msra.mxu1 %v9342_v51  ;;  %7929 = vmatprep.subr.bf16.mxu0 %v9349_v22  ;;  %v1353_v51 = vld [vmem:[#allocation6 + $0xb30] sm:$0xff]  ;;  %v1350_v22 = vld [vmem:[#allocation6 + $0xb18] sm:$0xff] }
 0x38d   : > { %8257 = vmatprep.subr.bf16.mxu1 %v9351_v9  ;;  %v1354_v9 = vld [vmem:[#allocation6 + $0xb38] sm:$0xff]  ;;  %v9405_v40 = vcombine.high %v1349_v1, %v1353_v51  ;;  %v9404_v29 = vcombine.low %v1349_v1, %v1353_v51 }
 0x38e   : > { %v9407_v53 = vcombine.high %v1350_v22, %v1354_v9  ;;  %v9406_v52 = vcombine.low %v1350_v22, %v1354_v9 }
 0x38f   : > { %7930 = vmatpush1.bf16.msra.mxu0 %v9348_v16  ;;  %v1357_v16 = vld [vmem:[#allocation6 + $0xb50] sm:$0xff] }
 0x390   : > { %8258 = vmatpush1.bf16.msra.mxu1 %v9350_v5  ;;  %7931 = vmatprep.subr.bf16.mxu0 %v9357_v41  ;;  %v1361_v5 = vld [vmem:[#allocation6 + $0xb70] sm:$0xff]  ;;  %v1358_v41 = vld [vmem:[#allocation6 + $0xb58] sm:$0xff] }
 0x391   : > { %8259 = vmatprep.subr.bf16.mxu1 %v9359_v57  ;;  %v1362_v57 = vld [vmem:[#allocation6 + $0xb78] sm:$0xff]  ;;  %v9413_v58 = vcombine.high %v1357_v16, %v1361_v5  ;;  %v9412_v6 = vcombine.low %v1357_v16, %v1361_v5 }
 0x392   : > { %v9415_v44 = vcombine.high %v1358_v41, %v1362_v57  ;;  %v9414_v23 = vcombine.low %v1358_v41, %v1362_v57  ;;  %v1413_v57 = vld [vmem:[#allocation6 + $0xd10] sm:$0xff] }
 0x393   : > { %7932 = vmatpush1.bf16.msra.mxu0 %v9356_v10  ;;  %v1365_v10 = vld [vmem:[#allocation6 + $0xb90] sm:$0xff] }
 0x394   : > { %8260 = vmatpush1.bf16.msra.mxu1 %v9358_v45  ;;  %7933 = vmatprep.subr.bf16.mxu0 %v9365_v19  ;;  %v1369_v45 = vld [vmem:[#allocation6 + $0xbb0] sm:$0xff]  ;;  %v1366_v19 = vld [vmem:[#allocation6 + $0xb98] sm:$0xff] }
 0x395   : > { %8261 = vmatprep.subr.bf16.mxu1 %v9367_v39  ;;  %v1370_v39 = vld [vmem:[#allocation6 + $0xbb8] sm:$0xff]  ;;  %v9421_v12 = vcombine.high %v1365_v10, %v1369_v45  ;;  %v9420_v11 = vcombine.low %v1365_v10, %v1369_v45 }
 0x396   : > { %v9423_v15 = vcombine.high %v1366_v19, %v1370_v39  ;;  %v9422_v63 = vcombine.low %v1366_v19, %v1370_v39  ;;  %v1421_v19 = vld [vmem:[#allocation6 + $0xd50] sm:$0xff] }
 0x397   : > { %7934 = vmatpush1.bf16.msra.mxu0 %v9364_v56  ;;  %v1373_v56 = vld [vmem:[#allocation6 + $0xbd0] sm:$0xff] }
 0x398   : > { %8262 = vmatpush1.bf16.msra.mxu1 %v9366_v17  ;;  %7935 = vmatprep.subr.bf16.mxu0 %v9373_v0  ;;  %v1377_v17 = vld [vmem:[#allocation6 + $0xbf0] sm:$0xff]  ;;  %v1374_v0 = vld [vmem:[#allocation6 + $0xbd8] sm:$0xff] }
 0x399   : > { %8263 = vmatprep.subr.bf16.mxu1 %v9375_v8  ;;  %v1378_v8 = vld [vmem:[#allocation6 + $0xbf8] sm:$0xff]  ;;  %v9429_v49 = vcombine.high %v1373_v56, %v1377_v17  ;;  %v9428_v33 = vcombine.low %v1373_v56, %v1377_v17  ;;  %v1425_v39 = vld [vmem:[#allocation6 + $0xd70] sm:$0xff] }
 0x39a   : > { %v9431_v48 = vcombine.high %v1374_v0, %v1378_v8  ;;  %v9430_v60 = vcombine.low %v1374_v0, %v1378_v8  ;;  %v9477_v56 = vcombine.high %v1421_v19, %v1425_v39  ;;  %v1429_v0 = vld [vmem:[#allocation6 + $0xd90] sm:$0xff] }
 0x39b   : > { %7936 = vmatpush1.bf16.msra.mxu0 %v9372_v36  ;;  %v1381_v36 = vld [vmem:[#allocation6 + $0xc10] sm:$0xff] }
 0x39c   : > { %8264 = vmatpush1.bf16.msra.mxu1 %v9374_v18  ;;  %7937 = vmatprep.subr.bf16.mxu0 %v9381_v7  ;;  %v1385_v18 = vld [vmem:[#allocation6 + $0xc30] sm:$0xff]  ;;  %v1382_v7 = vld [vmem:[#allocation6 + $0xc18] sm:$0xff] }
 0x39d   : > { %8265 = vmatprep.subr.bf16.mxu1 %v9383_v31  ;;  %v1386_v31 = vld [vmem:[#allocation6 + $0xc38] sm:$0xff]  ;;  %v9437_v38 = vcombine.high %v1381_v36, %v1385_v18  ;;  %v9436_v21 = vcombine.low %v1381_v36, %v1385_v18  ;;  %v1433_v8 = vld [vmem:[#allocation6 + $0xdb0] sm:$0xff] }
 0x39e   : > { %v9439_v35 = vcombine.high %v1382_v7, %v1386_v31  ;;  %v9438_v28 = vcombine.low %v1382_v7, %v1386_v31  ;;  %v9485_v36 = vcombine.high %v1429_v0, %v1433_v8  ;;  %v1437_v31 = vld [vmem:[#allocation6 + $0xdd0] sm:$0xff] }
 0x39f   : > { %7938 = vmatpush1.bf16.msra.mxu0 %v9380_v27  ;;  %v1389_v27 = vld [vmem:[#allocation6 + $0xc50] sm:$0xff] }
 0x3a0   : > { %8266 = vmatpush1.bf16.msra.mxu1 %v9382_v2  ;;  %7939 = vmatprep.subr.bf16.mxu0 %v9389_v24  ;;  %v1393_v2 = vld [vmem:[#allocation6 + $0xc70] sm:$0xff]  ;;  %v1390_v24 = vld [vmem:[#allocation6 + $0xc58] sm:$0xff] }
 0x3a1   : > { %8267 = vmatprep.subr.bf16.mxu1 %v9391_v61  ;;  %v1394_v61 = vld [vmem:[#allocation6 + $0xc78] sm:$0xff]  ;;  %v9445_v30 = vcombine.high %v1389_v27, %v1393_v2  ;;  %v9444_v1 = vcombine.low %v1389_v27, %v1393_v2 }
 0x3a2   : > { %v9447_v13 = vcombine.high %v1390_v24, %v1394_v61  ;;  %v9446_v51 = vcombine.low %v1390_v24, %v1394_v61  ;;  %v1442_v27 = vld [vmem:[#allocation6 + $0xdf8] sm:$0xff]  ;;  %v9484_v61 = vcombine.low %v1429_v0, %v1433_v8 }
 0x3a3   : > { %7940 = vmatpush1.bf16.msra.mxu0 %v9388_v37  ;;  %v1397_v37 = vld [vmem:[#allocation6 + $0xc90] sm:$0xff] }
 0x3a4   : > { %8268 = vmatpush1.bf16.msra.mxu1 %v9390_v4  ;;  %7941 = vmatprep.subr.bf16.mxu0 %v9397_v59  ;;  %v1401_v4 = vld [vmem:[#allocation6 + $0xcb0] sm:$0xff]  ;;  %v1398_v59 = vld [vmem:[#allocation6 + $0xc98] sm:$0xff] }
 0x3a5   : > { %8269 = vmatprep.subr.bf16.mxu1 %v9399_v25  ;;  %v1402_v25 = vld [vmem:[#allocation6 + $0xcb8] sm:$0xff]  ;;  %v9453_v22 = vcombine.high %v1397_v37, %v1401_v4  ;;  %v9452_v16 = vcombine.low %v1397_v37, %v1401_v4 }
 0x3a6   : > { %v9455_v9 = vcombine.high %v1398_v59, %v1402_v25 }
 0x3a7   : > { %7942 = vmatpush1.bf16.msra.mxu0 %v9396_v26  ;;  %v1405_v26 = vld [vmem:[#allocation6 + $0xcd0] sm:$0xff] }
 0x3a8   : > { %8270 = vmatpush1.bf16.msra.mxu1 %v9398_v50  ;;  %7943 = vmatprep.subr.bf16.mxu0 %v9405_v40  ;;  %v1409_v50 = vld [vmem:[#allocation6 + $0xcf0] sm:$0xff]  ;;  %v1406_v40 = vld [vmem:[#allocation6 + $0xcd8] sm:$0xff] }
 0x3a9   : > { %8271 = vmatprep.subr.bf16.mxu1 %v9407_v53  ;;  %v1410_v53 = vld [vmem:[#allocation6 + $0xcf8] sm:$0xff]  ;;  %v9461_v5 = vcombine.high %v1405_v26, %v1409_v50 }
 0x3aa   : > { %v9463_v41 = vcombine.high %v1406_v40, %v1410_v53  ;;  %v9462_v10 = vcombine.low %v1406_v40, %v1410_v53  ;;  %v1453_v40 = vld [vmem:[#allocation6 + $0xe50] sm:$0xff] }
 0x3ab   : > { %7944 = vmatpush1.bf16.msra.mxu0 %v9404_v29  ;;  %v1417_v29 = vld [vmem:[#allocation6 + $0xd30] sm:$0xff] }
 0x3ac   : > { %8272 = vmatpush1.bf16.msra.mxu1 %v9406_v52  ;;  %7945 = vmatprep.subr.bf16.mxu0 %v9413_v58  ;;  %v1414_v52 = vld [vmem:[#allocation6 + $0xd18] sm:$0xff]  ;;  %v9469_v45 = vcombine.high %v1413_v57, %v1417_v29  ;;  %v1457_v53 = vld [vmem:[#allocation6 + $0xe70] sm:$0xff] }
 0x3ad   : > { %8273 = vmatprep.subr.bf16.mxu1 %v9415_v44  ;;  %v1418_v58 = vld [vmem:[#allocation6 + $0xd38] sm:$0xff]  ;;  %v9460_v44 = vcombine.low %v1405_v26, %v1409_v50 }
 0x3af   : > { %7946 = vmatpush1.bf16.msra.mxu0 %v9412_v6  ;;  %v1422_v6 = vld [vmem:[#allocation6 + $0xd58] sm:$0xff] }
 0x3b0   : > { %8274 = vmatpush1.bf16.msra.mxu1 %v9414_v23  ;;  %7947 = vmatprep.subr.bf16.mxu0 %v9421_v12  ;;  %v1426_v23 = vld [vmem:[#allocation6 + $0xd78] sm:$0xff]  ;;  %v9468_v12 = vcombine.low %v1413_v57, %v1417_v29  ;;  %v9509_v57 = vcombine.high %v1453_v40, %v1457_v53 }
 0x3b1   : > { %8275 = vmatprep.subr.bf16.mxu1 %v9423_v15  ;;  %v9470_v15 = vcombine.low %v1414_v52, %v1418_v58  ;;  %v9479_v17 = vcombine.high %v1422_v6, %v1426_v23 }
 0x3b3   : > { %7948 = vmatpush1.bf16.msra.mxu0 %v9420_v11  ;;  %v1430_v11 = vld [vmem:[#allocation6 + $0xd98] sm:$0xff] }
 0x3b4   : > { %8276 = vmatpush1.bf16.msra.mxu1 %v9422_v63  ;;  %7949 = vmatprep.subr.bf16.mxu0 %v9429_v49  ;;  %v1434_v63 = vld [vmem:[#allocation6 + $0xdb8] sm:$0xff]  ;;  %v9476_v49 = vcombine.low %v1421_v19, %v1425_v39 }
 0x3b5   : > { %8277 = vmatprep.subr.bf16.mxu1 %v9431_v48  ;;  %v9478_v48 = vcombine.low %v1422_v6, %v1426_v23  ;;  %v9487_v7 = vcombine.high %v1430_v11, %v1434_v63  ;;  %v1469_v6 = vld [vmem:[#allocation6 + $0xed0] sm:$0xff] }
 0x3b6   : > { %v1473_v23 = vld [vmem:[#allocation6 + $0xef0] sm:$0xff] }
 0x3b7   : > { %7950 = vmatpush1.bf16.msra.mxu0 %v9428_v33  ;;  %v1441_v33 = vld [vmem:[#allocation6 + $0xdf0] sm:$0xff]  ;;  %v9525_v0 = vcombine.high %v1469_v6, %v1473_v23 }
 0x3b8   : > { %8278 = vmatpush1.bf16.msra.mxu1 %v9430_v60  ;;  %7960 = vmatprep.subr.bf16.mxu0 %v9437_v38 }
 0x3b9   : > { %8288 = vmatprep.subr.bf16.mxu1 %v9439_v35  ;;  %v1438_v35 = vld [vmem:[#allocation6 + $0xdd8] sm:$0xff] }
 0x3ba   : > { %7952 = vmatmul.mubr.bf16.vlgmr.msra.gmra.mrb[4].mxu0 %v11475_v34  ;;  %v9495_v4 = vcombine.high %v1438_v35, %v1442_v27 }
 0x3bb   : > { %7961 = vmatpush1.bf16.msra.mxu0 %v9436_v21  ;;  %8280 = vmatmul.mubr.bf16.vlgmr.msra.gmra.mrb[4].mxu1 %v11475_v34  ;;  %v9454_v34 = vcombine.low %v1398_v59, %v1402_v25  ;;  %v1445_v59 = vld [vmem:[#allocation6 + $0xe10] sm:$0xff] }
 0x3bc   : > { %8289 = vmatpush1.bf16.msra.mxu1 %v9438_v28  ;;  %7962 = vmatprep.subr.bf16.mxu0 %v9445_v30  ;;  %v9486_v30 = vcombine.low %v1430_v11, %v1434_v63  ;;  %v1449_v25 = vld [vmem:[#allocation6 + $0xe30] sm:$0xff] }
 0x3bd   : > { %8290 = vmatprep.subr.bf16.mxu1 %v9447_v13  ;;  %7992 = vmatprep.mubr.bf16.mxu0 %v11477_v20  ;;  %v9493_v13 = vcombine.high %v1437_v31, %v1441_v33  ;;  %v9501_v26 = vcombine.high %v1445_v59, %v1449_v25  ;;  %v1477_v11 = vld [vmem:[#allocation6 + $0xf10] sm:$0xff] }
 0x3be   : > { %8320 = vmatprep.mubr.bf16.mxu1 %v11477_v20  ;;  %v9471_v20 = vcombine.high %v1414_v52, %v1418_v58  ;;  %v1461_v52 = vld [vmem:[#allocation6 + $0xe90] sm:$0xff] }
 0x3bf   : > { %7963 = vmatpush1.bf16.msra.mxu0 %v9444_v1  ;;  %v1446_v1 = vld [vmem:[#allocation6 + $0xe18] sm:$0xff]  ;;  %v1465_v58 = vld [vmem:[#allocation6 + $0xeb0] sm:$0xff] }
 0x3c0   : > { %8291 = vmatpush1.bf16.msra.mxu1 %v9446_v51  ;;  %7964 = vmatprep.subr.bf16.mxu0 %v9453_v22  ;;  %v1450_v51 = vld [vmem:[#allocation6 + $0xe38] sm:$0xff]  ;;  %v9492_v22 = vcombine.low %v1437_v31, %v1441_v33  ;;  %v9517_v19 = vcombine.high %v1461_v52, %v1465_v58  ;;  %v1481_v63 = vld [vmem:[#allocation6 + $0xf30] sm:$0xff] }
 0x3c1   : > { %8292 = vmatprep.subr.bf16.mxu1 %v9455_v9  ;;  %v9494_v9 = vcombine.low %v1438_v35, %v1442_v27  ;;  %v9503_v50 = vcombine.high %v1446_v1, %v1450_v51  ;;  %v9533_v31 = vcombine.high %v1477_v11, %v1481_v63  ;;  %v1485_v35 = vld [vmem:[#allocation6 + $0xf50] sm:$0xff] }
 0x3c2   : > { %v1489_v27 = vld [vmem:[#allocation6 + $0xf70] sm:$0xff] }
 0x3c3   : > { %7965 = vmatpush1.bf16.msra.mxu0 %v9452_v16  ;;  %v1454_v16 = vld [vmem:[#allocation6 + $0xe58] sm:$0xff] }
 0x3c4   : > { %8293 = vmatpush1.bf16.msra.mxu1 %v9454_v34  ;;  %7966 = vmatprep.subr.bf16.mxu0 %v9461_v5  ;;  %v1458_v34 = vld [vmem:[#allocation6 + $0xe78] sm:$0xff]  ;;  %v9500_v5 = vcombine.low %v1445_v59, %v1449_v25 }
 0x3c5   : > { %8294 = vmatprep.subr.bf16.mxu1 %v9463_v41  ;;  %v9502_v41 = vcombine.low %v1446_v1, %v1450_v51  ;;  %v9511_v29 = vcombine.high %v1454_v16, %v1458_v34  ;;  %v1494_v59 = vld [vmem:[#allocation6 + $0xf98] sm:$0xff]  ;;  %v9540_v1 = vcombine.low %v1485_v35, %v1489_v27 }
 0x3c6   : > { %v1498_v25 = vld [vmem:[#allocation6 + $0xfb8] sm:$0xff] }
 0x3c7   : > { %7967 = vmatpush1.bf16.msra.mxu0 %v9460_v44  ;;  %v1462_v44 = vld [vmem:[#allocation6 + $0xe98] sm:$0xff] }
 0x3c8   : > { %8295 = vmatpush1.bf16.msra.mxu1 %v9462_v10  ;;  %7968 = vmatprep.subr.bf16.mxu0 %v9469_v45  ;;  %v1466_v10 = vld [vmem:[#allocation6 + $0xeb8] sm:$0xff]  ;;  %v9508_v45 = vcombine.low %v1453_v40, %v1457_v53 }
 0x3c9   : > { %8296 = vmatprep.subr.bf16.mxu1 %v9471_v20  ;;  %v9510_v20 = vcombine.low %v1454_v16, %v1458_v34  ;;  %v9519_v39 = vcombine.high %v1462_v44, %v1466_v10  ;;  %v1502_v40 = vld [vmem:[#allocation6 + $0xfd8] sm:$0xff]  ;;  %v9550_v34 = vcombine.low %v1494_v59, %v1498_v25 }
 0x3ca   : > { %v1506_v53 = vld [vmem:[#allocation6 + $0xff8] sm:$0xff] }
 0x3cb   : > { %7969 = vmatpush1.bf16.msra.mxu0 %v9468_v12  ;;  %v1470_v12 = vld [vmem:[#allocation6 + $0xed8] sm:$0xff] }
 0x3cc   : > { %8297 = vmatpush1.bf16.msra.mxu1 %v9470_v15  ;;  %7970 = vmatprep.subr.bf16.mxu0 %v9477_v56  ;;  %v1474_v15 = vld [vmem:[#allocation6 + $0xef8] sm:$0xff]  ;;  %v9516_v56 = vcombine.low %v1461_v52, %v1465_v58 }
 0x3cd   : > { %v11573_v18 = vpop.f32.mrb[0].mxu0  ;;  %8298 = vmatprep.subr.bf16.mxu1 %v9479_v17  ;;  %v9518_v17 = vcombine.low %v1462_v44, %v1466_v10  ;;  %v9527_v8 = vcombine.high %v1470_v12, %v1474_v15  ;;  %v1510_v52 = vld [vmem:[#allocation6 + $0x1018] sm:$0xff]  ;;  %v9558_v10 = vcombine.low %v1502_v40, %v1506_v53 }
 0x3ce   : > { %v11575_v60 = vpop.f32.mrb[0].mxu1  ;;  %v11577_v38 = vpop.f32.mrb[1].mxu0  ;;  %v1514_v58 = vld [vmem:[#allocation6 + $0x1038] sm:$0xff] }
 0x3cf   : > { %v11579_v2 = vpop.f32.mrb[1].mxu1  ;;  %v7506_v24 = vpop.f32.mrb[2].mxu0  ;;  %7971 = vmatpush1.bf16.msra.mxu0 %v9476_v49  ;;  %v1478_v49 = vld [vmem:[#allocation6 + $0xf18] sm:$0xff] }
 0x3d0   : > { %v7834_v21 = vpop.f32.mrb[2].mxu1  ;;  %8299 = vmatpush1.bf16.msra.mxu1 %v9478_v48  ;;  %v7507_v28 = vpop.f32.mrb[3].mxu0  ;;  %7972 = vmatprep.subr.bf16.mxu0 %v9485_v36  ;;  %v1482_v48 = vld [vmem:[#allocation6 + $0xf38] sm:$0xff]  ;;  %v9524_v36 = vcombine.low %v1469_v6, %v1473_v23 }
 0x3d1   : > { %v7835_v37 = vpop.f32.mrb[3].mxu1  ;;  %8300 = vmatprep.subr.bf16.mxu1 %v9487_v7  ;;  %v9526_v7 = vcombine.low %v1470_v12, %v1474_v15  ;;  %v9535_v33 = vcombine.high %v1478_v49, %v1482_v48  ;;  %v1486_v24 = vld [vmem:[#allocation6 + $0xf58] sm:$0xff]  ;;  %v9532_v21 = vcombine.low %v1477_v11, %v1481_v63  ;;  %v9534_v28 = vcombine.low %v1478_v49, %v1482_v48 }
 0x3d2   : > { %v1493_v37 = vld [vmem:[#allocation6 + $0xf90] sm:$0xff]  ;;  %v1518_v6 = vld [vmem:[#allocation6 + $0x1058] sm:$0xff]  ;;  %v9566_v15 = vcombine.low %v1510_v52, %v1514_v58 }
 0x3d3   : > { %7973 = vmatpush1.bf16.msra.mxu0 %v9484_v61  ;;  %v1490_v61 = vld [vmem:[#allocation6 + $0xf78] sm:$0xff] }
 0x3d4   : > { %8301 = vmatpush1.bf16.msra.mxu1 %v9486_v30  ;;  %7974 = vmatprep.subr.bf16.mxu0 %v9493_v13  ;;  %v9541_v30 = vcombine.high %v1485_v35, %v1489_v27  ;;  %v9543_v13 = vcombine.high %v1486_v24, %v1490_v61  ;;  %v9542_v51 = vcombine.low %v1486_v24, %v1490_v61  ;;  %v1522_v23 = vld [vmem:[#allocation6 + $0x1078] sm:$0xff] }
 0x3d5   : > { %8302 = vmatprep.subr.bf16.mxu1 %v9495_v4  ;;  %v1497_v4 = vld [vmem:[#allocation6 + $0xfb0] sm:$0xff]  ;;  %v1526_v11 = vld [vmem:[#allocation6 + $0x1098] sm:$0xff]  ;;  %v9574_v48 = vcombine.low %v1518_v6, %v1522_v23 }
 0x3d6   : > { %v9548_v16 = vcombine.low %v1493_v37, %v1497_v4  ;;  %v1530_v63 = vld [vmem:[#allocation6 + $0x10b8] sm:$0xff] }
 0x3d7   : > { %7975 = vmatpush1.bf16.msra.mxu0 %v9492_v22  ;;  %v9549_v22 = vcombine.high %v1493_v37, %v1497_v4  ;;  %v1534_v35 = vld [vmem:[#allocation6 + $0x10d8] sm:$0xff] }
 0x3d8   : > { %8303 = vmatpush1.bf16.msra.mxu1 %v9494_v9  ;;  %7976 = vmatprep.subr.bf16.mxu0 %v9501_v26  ;;  %v9551_v9 = vcombine.high %v1494_v59, %v1498_v25  ;;  %v1501_v26 = vld [vmem:[#allocation6 + $0xfd0] sm:$0xff]  ;;  %v1538_v27 = vld [vmem:[#allocation6 + $0x10f8] sm:$0xff] }
 0x3d9   : > { %8304 = vmatprep.subr.bf16.mxu1 %v9503_v50  ;;  %v1505_v50 = vld [vmem:[#allocation6 + $0xff0] sm:$0xff]  ;;  %v1546_v37 = vld [vmem:[#allocation6 + $0x1138] sm:$0xff]  ;;  %v9590_v59 = vcombine.low %v1534_v35, %v1538_v27 }
 0x3da   : > { %v9556_v44 = vcombine.low %v1501_v26, %v1505_v50 }
 0x3db   : > { %7977 = vmatpush1.bf16.msra.mxu0 %v9500_v5  ;;  %v9557_v5 = vcombine.high %v1501_v26, %v1505_v50 }
 0x3dc   : > { %8305 = vmatpush1.bf16.msra.mxu1 %v9502_v41  ;;  %7978 = vmatprep.subr.bf16.mxu0 %v9509_v57  ;;  %v9559_v41 = vcombine.high %v1502_v40, %v1506_v53  ;;  %v1509_v57 = vld [vmem:[#allocation6 + $0x1010] sm:$0xff] }
 0x3dd   : > { %8306 = vmatprep.subr.bf16.mxu1 %v9511_v29  ;;  %v1513_v29 = vld [vmem:[#allocation6 + $0x1030] sm:$0xff] }
 0x3de   : > { %v9564_v12 = vcombine.low %v1509_v57, %v1513_v29 }
 0x3df   : > { %7979 = vmatpush1.bf16.msra.mxu0 %v9508_v45  ;;  %v9565_v45 = vcombine.high %v1509_v57, %v1513_v29 }
 0x3e0   : > { %8307 = vmatpush1.bf16.msra.mxu1 %v9510_v20  ;;  %7980 = vmatprep.subr.bf16.mxu0 %v9517_v19  ;;  %v9567_v20 = vcombine.high %v1510_v52, %v1514_v58  ;;  %v1517_v19 = vld [vmem:[#allocation6 + $0x1050] sm:$0xff] }
 0x3e1   : > { %8308 = vmatprep.subr.bf16.mxu1 %v9519_v39  ;;  %v1521_v39 = vld [vmem:[#allocation6 + $0x1070] sm:$0xff] }
 0x3e2   : > { %v9572_v49 = vcombine.low %v1517_v19, %v1521_v39 }
 0x3e3   : > { %7981 = vmatpush1.bf16.msra.mxu0 %v9516_v56  ;;  %v9573_v56 = vcombine.high %v1517_v19, %v1521_v39 }
 0x3e4   : > { %8309 = vmatpush1.bf16.msra.mxu1 %v9518_v17  ;;  %7982 = vmatprep.subr.bf16.mxu0 %v9525_v0  ;;  %v9575_v17 = vcombine.high %v1518_v6, %v1522_v23  ;;  %v1525_v0 = vld [vmem:[#allocation6 + $0x1090] sm:$0xff] }
 0x3e5   : > { %8310 = vmatprep.subr.bf16.mxu1 %v9527_v8  ;;  %v1529_v8 = vld [vmem:[#allocation6 + $0x10b0] sm:$0xff] }
 0x3e6   : > { %v9580_v24 = vcombine.low %v1525_v0, %v1529_v8 }
 0x3e7   : > { %7983 = vmatpush1.bf16.msra.mxu0 %v9524_v36  ;;  %v9581_v36 = vcombine.high %v1525_v0, %v1529_v8 }
 0x3e8   : > { %8311 = vmatpush1.bf16.msra.mxu1 %v9526_v7  ;;  %7984 = vmatprep.subr.bf16.mxu0 %v9533_v31  ;;  %v9583_v7 = vcombine.high %v1526_v11, %v1530_v63  ;;  %v1533_v31 = vld [vmem:[#allocation6 + $0x10d0] sm:$0xff] }
 0x3e9   : > { %8312 = vmatprep.subr.bf16.mxu1 %v9535_v33  ;;  %v1537_v33 = vld [vmem:[#allocation6 + $0x10f0] sm:$0xff] }
 0x3ea   : > { %v9589_v61 = vcombine.high %v1533_v31, %v1537_v33  ;;  %v9588_v4 = vcombine.low %v1533_v31, %v1537_v33 }
 0x3eb   : > { %7985 = vmatpush1.bf16.msra.mxu0 %v9532_v21  ;;  %v9591_v21 = vcombine.high %v1534_v35, %v1538_v27 }
 0x3ec   : > { %8313 = vmatpush1.bf16.msra.mxu1 %v9534_v28  ;;  %7986 = vmatprep.subr.bf16.mxu0 %v9541_v30  ;;  %v1541_v28 = vld [vmem:[#allocation6 + $0x1110] sm:$0xff] }
 0x3ed   : > { %8314 = vmatprep.subr.bf16.mxu1 %v9543_v13  ;;  %v1545_v30 = vld [vmem:[#allocation6 + $0x1130] sm:$0xff]  ;;  %v1542_v13 = vld [vmem:[#allocation6 + $0x1118] sm:$0xff] }
 0x3ee   : > { %v9597_v25 = vcombine.high %v1541_v28, %v1545_v30  ;;  %v9596_v26 = vcombine.low %v1541_v28, %v1545_v30  ;;  %v9598_v50 = vcombine.low %v1542_v13, %v1546_v37 }
 0x3ef   : > { %7987 = vmatpush1.bf16.msra.mxu0 %v9540_v1  ;;  %v1549_v1 = vld [vmem:[#allocation6 + $0x1150] sm:$0xff] }
 0x3f0   : > { %8315 = vmatpush1.bf16.msra.mxu1 %v9542_v51  ;;  %7988 = vmatprep.subr.bf16.mxu0 %v9549_v22  ;;  %v1553_v51 = vld [vmem:[#allocation6 + $0x1170] sm:$0xff]  ;;  %v1550_v22 = vld [vmem:[#allocation6 + $0x1158] sm:$0xff] }
 0x3f1   : > { %8316 = vmatprep.subr.bf16.mxu1 %v9551_v9  ;;  %v1554_v9 = vld [vmem:[#allocation6 + $0x1178] sm:$0xff]  ;;  %v9605_v40 = vcombine.high %v1549_v1, %v1553_v51  ;;  %v9604_v57 = vcombine.low %v1549_v1, %v1553_v51 }
 0x3f2   : > { %v9607_v53 = vcombine.high %v1550_v22, %v1554_v9  ;;  %v9606_v29 = vcombine.low %v1550_v22, %v1554_v9 }
 0x3f3   : > { %7989 = vmatpush1.bf16.msra.mxu0 %v9548_v16  ;;  %v1557_v16 = vld [vmem:[#allocation6 + $0x1190] sm:$0xff] }
 0x3f4   : > { %8317 = vmatpush1.bf16.msra.mxu1 %v9550_v34  ;;  %7990 = vmatprep.subr.bf16.mxu0 %v9557_v5  ;;  %v1561_v34 = vld [vmem:[#allocation6 + $0x11b0] sm:$0xff]  ;;  %v1558_v5 = vld [vmem:[#allocation6 + $0x1198] sm:$0xff] }
 0x3f5   : > { %8318 = vmatprep.subr.bf16.mxu1 %v9559_v41  ;;  %v1562_v41 = vld [vmem:[#allocation6 + $0x11b8] sm:$0xff]  ;;  %v9613_v52 = vcombine.high %v1557_v16, %v1561_v34  ;;  %v9612_v19 = vcombine.low %v1557_v16, %v1561_v34 }
 0x3f6   : > { %v9615_v58 = vcombine.high %v1558_v5, %v1562_v41  ;;  %v9614_v39 = vcombine.low %v1558_v5, %v1562_v41 }
 0x3f7   : > { %7991 = vmatpush1.bf16.msra.mxu0 %v9556_v44  ;;  %v1565_v44 = vld [vmem:[#allocation6 + $0x11d0] sm:$0xff] }
 0x3f8   : > { %8319 = vmatpush1.bf16.msra.mxu1 %v9558_v10  ;;  %8001 = vmatprep.subr.bf16.mxu0 %v9565_v45  ;;  %v1569_v10 = vld [vmem:[#allocation6 + $0x11f0] sm:$0xff]  ;;  %v1566_v45 = vld [vmem:[#allocation6 + $0x11d8] sm:$0xff] }
 0x3f9   : > { %8329 = vmatprep.subr.bf16.mxu1 %v9567_v20  ;;  %v1570_v20 = vld [vmem:[#allocation6 + $0x11f8] sm:$0xff]  ;;  %v9621_v6 = vcombine.high %v1565_v44, %v1569_v10  ;;  %v9620_v0 = vcombine.low %v1565_v44, %v1569_v10 }
 0x3fa   : > { %7993 = vmatmul.mubr.bf16.vlgmr.msra.gmra.mrb[4].mxu0 %v11493_v32  ;;  %v9623_v23 = vcombine.high %v1566_v45, %v1570_v20  ;;  %v9622_v8 = vcombine.low %v1566_v45, %v1570_v20 }
 0x3fb   : > { %8002 = vmatpush1.bf16.msra.mxu0 %v9564_v12  ;;  %8321 = vmatmul.mubr.bf16.vlgmr.msra.gmra.mrb[4].mxu1 %v11493_v32  ;;  %v9582_v32 = vcombine.low %v1526_v11, %v1530_v63  ;;  %v1573_v12 = vld [vmem:[#allocation6 + $0x1210] sm:$0xff] }
 0x3fc   : > { %8330 = vmatpush1.bf16.msra.mxu1 %v9566_v15  ;;  %8003 = vmatprep.subr.bf16.mxu0 %v9573_v56  ;;  %v1577_v15 = vld [vmem:[#allocation6 + $0x1230] sm:$0xff]  ;;  %v1574_v56 = vld [vmem:[#allocation6 + $0x1218] sm:$0xff] }
 0x3fd   : > { %8331 = vmatprep.subr.bf16.mxu1 %v9575_v17  ;;  %8033 = vmatprep.mubr.bf16.mxu0 %v11495_v47  ;;  %v1578_v17 = vld [vmem:[#allocation6 + $0x1238] sm:$0xff]  ;;  %v9629_v11 = vcombine.high %v1573_v12, %v1577_v15  ;;  %v9628_v31 = vcombine.low %v1573_v12, %v1577_v15 }
 0x3fe   : > { %8361 = vmatprep.mubr.bf16.mxu1 %v11495_v47  ;;  %v9599_v47 = vcombine.high %v1542_v13, %v1546_v37  ;;  %v9631_v63 = vcombine.high %v1574_v56, %v1578_v17  ;;  %v9630_v33 = vcombine.low %v1574_v56, %v1578_v17 }
 0x3ff   : > { %8004 = vmatpush1.bf16.msra.mxu0 %v9572_v49  ;;  %v1581_v49 = vld [vmem:[#allocation6 + $0x1250] sm:$0xff] }
 0x400   : > { %8332 = vmatpush1.bf16.msra.mxu1 %v9574_v48  ;;  %8005 = vmatprep.subr.bf16.mxu0 %v9581_v36  ;;  %v1585_v48 = vld [vmem:[#allocation6 + $0x1270] sm:$0xff]  ;;  %v1582_v36 = vld [vmem:[#allocation6 + $0x1258] sm:$0xff] }
 0x401   : > { %8333 = vmatprep.subr.bf16.mxu1 %v9583_v7  ;;  %v1586_v7 = vld [vmem:[#allocation6 + $0x1278] sm:$0xff]  ;;  %v9637_v35 = vcombine.high %v1581_v49, %v1585_v48  ;;  %v9636_v28 = vcombine.low %v1581_v49, %v1585_v48 }
 0x402   : > { %v9639_v27 = vcombine.high %v1582_v36, %v1586_v7  ;;  %v9638_v30 = vcombine.low %v1582_v36, %v1586_v7 }
 0x403   : > { %8006 = vmatpush1.bf16.msra.mxu0 %v9580_v24  ;;  %v1589_v24 = vld [vmem:[#allocation6 + $0x1290] sm:$0xff] }
 0x404   : > { %8334 = vmatpush1.bf16.msra.mxu1 %v9582_v32  ;;  %8007 = vmatprep.subr.bf16.mxu0 %v9589_v61  ;;  %v1593_v32 = vld [vmem:[#allocation6 + $0x12b0] sm:$0xff]  ;;  %v1590_v61 = vld [vmem:[#allocation6 + $0x1298] sm:$0xff] }
 0x405   : > { %8335 = vmatprep.subr.bf16.mxu1 %v9591_v21  ;;  %v1594_v21 = vld [vmem:[#allocation6 + $0x12b8] sm:$0xff]  ;;  %v9645_v13 = vcombine.high %v1589_v24, %v1593_v32  ;;  %v9644_v1 = vcombine.low %v1589_v24, %v1593_v32 }
 0x406   : > { %v9647_v37 = vcombine.high %v1590_v61, %v1594_v21  ;;  %v9646_v51 = vcombine.low %v1590_v61, %v1594_v21 }
 0x407   : > { %8008 = vmatpush1.bf16.msra.mxu0 %v9588_v4  ;;  %v1597_v4 = vld [vmem:[#allocation6 + $0x12d0] sm:$0xff] }
 0x408   : > { %8336 = vmatpush1.bf16.msra.mxu1 %v9590_v59  ;;  %8009 = vmatprep.subr.bf16.mxu0 %v9597_v25  ;;  %v1601_v59 = vld [vmem:[#allocation6 + $0x12f0] sm:$0xff]  ;;  %v1598_v25 = vld [vmem:[#allocation6 + $0x12d8] sm:$0xff] }
 0x409   : > { %8337 = vmatprep.subr.bf16.mxu1 %v9599_v47  ;;  %v1602_v47 = vld [vmem:[#allocation6 + $0x12f8] sm:$0xff]  ;;  %v9653_v22 = vcombine.high %v1597_v4, %v1601_v59  ;;  %v9652_v16 = vcombine.low %v1597_v4, %v1601_v59 }
 0x40a   : > { %v9655_v9 = vcombine.high %v1598_v25, %v1602_v47  ;;  %v9654_v34 = vcombine.low %v1598_v25, %v1602_v47 }
 0x40b   : > { %8010 = vmatpush1.bf16.msra.mxu0 %v9596_v26  ;;  %v1605_v26 = vld [vmem:[#allocation6 + $0x1310] sm:$0xff] }
 0x40c   : > { %8338 = vmatpush1.bf16.msra.mxu1 %v9598_v50  ;;  %8011 = vmatprep.subr.bf16.mxu0 %v9605_v40  ;;  %v1609_v50 = vld [vmem:[#allocation6 + $0x1330] sm:$0xff]  ;;  %v1606_v40 = vld [vmem:[#allocation6 + $0x1318] sm:$0xff] }
 0x40d   : > { %8339 = vmatprep.subr.bf16.mxu1 %v9607_v53  ;;  %v1610_v53 = vld [vmem:[#allocation6 + $0x1338] sm:$0xff]  ;;  %v9661_v5 = vcombine.high %v1605_v26, %v1609_v50  ;;  %v9660_v44 = vcombine.low %v1605_v26, %v1609_v50 }
 0x40e   : > { %v9663_v41 = vcombine.high %v1606_v40, %v1610_v53  ;;  %v9662_v10 = vcombine.low %v1606_v40, %v1610_v53 }
 0x40f   : > { %8012 = vmatpush1.bf16.msra.mxu0 %v9604_v57  ;;  %v1613_v57 = vld [vmem:[#allocation6 + $0x1350] sm:$0xff] }
 0x410   : > { %8340 = vmatpush1.bf16.msra.mxu1 %v9606_v29  ;;  %8013 = vmatprep.subr.bf16.mxu0 %v9613_v52  ;;  %v1617_v29 = vld [vmem:[#allocation6 + $0x1370] sm:$0xff]  ;;  %v1614_v52 = vld [vmem:[#allocation6 + $0x1358] sm:$0xff] }
 0x411   : > { %8341 = vmatprep.subr.bf16.mxu1 %v9615_v58  ;;  %v1618_v58 = vld [vmem:[#allocation6 + $0x1378] sm:$0xff]  ;;  %v9669_v45 = vcombine.high %v1613_v57, %v1617_v29  ;;  %v9668_v12 = vcombine.low %v1613_v57, %v1617_v29 }
 0x412   : > { %v9671_v20 = vcombine.high %v1614_v52, %v1618_v58  ;;  %v9670_v15 = vcombine.low %v1614_v52, %v1618_v58  ;;  %v1669_v58 = vld [vmem:[#allocation6 + $0x1510] sm:$0xff] }
 0x413   : > { %8014 = vmatpush1.bf16.msra.mxu0 %v9612_v19  ;;  %v1621_v19 = vld [vmem:[#allocation6 + $0x1390] sm:$0xff] }
 0x414   : > { %8342 = vmatpush1.bf16.msra.mxu1 %v9614_v39  ;;  %8015 = vmatprep.subr.bf16.mxu0 %v9621_v6  ;;  %v1625_v39 = vld [vmem:[#allocation6 + $0x13b0] sm:$0xff]  ;;  %v1622_v6 = vld [vmem:[#allocation6 + $0x1398] sm:$0xff] }
 0x415   : > { %8343 = vmatprep.subr.bf16.mxu1 %v9623_v23  ;;  %v1626_v23 = vld [vmem:[#allocation6 + $0x13b8] sm:$0xff]  ;;  %v9677_v56 = vcombine.high %v1621_v19, %v1625_v39  ;;  %v9676_v49 = vcombine.low %v1621_v19, %v1625_v39 }
 0x416   : > { %v9679_v17 = vcombine.high %v1622_v6, %v1626_v23  ;;  %v9678_v48 = vcombine.low %v1622_v6, %v1626_v23  ;;  %v1677_v6 = vld [vmem:[#allocation6 + $0x1550] sm:$0xff] }
 0x417   : > { %8016 = vmatpush1.bf16.msra.mxu0 %v9620_v0  ;;  %v1629_v0 = vld [vmem:[#allocation6 + $0x13d0] sm:$0xff] }
 0x418   : > { %8344 = vmatpush1.bf16.msra.mxu1 %v9622_v8  ;;  %8017 = vmatprep.subr.bf16.mxu0 %v9629_v11  ;;  %v1633_v8 = vld [vmem:[#allocation6 + $0x13f0] sm:$0xff]  ;;  %v1630_v11 = vld [vmem:[#allocation6 + $0x13d8] sm:$0xff] }
 0x419   : > { %8345 = vmatprep.subr.bf16.mxu1 %v9631_v63  ;;  %v1634_v63 = vld [vmem:[#allocation6 + $0x13f8] sm:$0xff]  ;;  %v9685_v36 = vcombine.high %v1629_v0, %v1633_v8  ;;  %v9684_v24 = vcombine.low %v1629_v0, %v1633_v8  ;;  %v1681_v23 = vld [vmem:[#allocation6 + $0x1570] sm:$0xff] }
 0x41a   : > { %v9687_v7 = vcombine.high %v1630_v11, %v1634_v63  ;;  %v9686_v32 = vcombine.low %v1630_v11, %v1634_v63  ;;  %v9733_v0 = vcombine.high %v1677_v6, %v1681_v23  ;;  %v1685_v11 = vld [vmem:[#allocation6 + $0x1590] sm:$0xff] }
 0x41b   : > { %8018 = vmatpush1.bf16.msra.mxu0 %v9628_v31  ;;  %v1637_v31 = vld [vmem:[#allocation6 + $0x1410] sm:$0xff] }
 0x41c   : > { %8346 = vmatpush1.bf16.msra.mxu1 %v9630_v33  ;;  %8019 = vmatprep.subr.bf16.mxu0 %v9637_v35  ;;  %v1641_v33 = vld [vmem:[#allocation6 + $0x1430] sm:$0xff]  ;;  %v1638_v35 = vld [vmem:[#allocation6 + $0x1418] sm:$0xff] }
 0x41d   : > { %8347 = vmatprep.subr.bf16.mxu1 %v9639_v27  ;;  %v1642_v27 = vld [vmem:[#allocation6 + $0x1438] sm:$0xff]  ;;  %v9693_v61 = vcombine.high %v1637_v31, %v1641_v33  ;;  %v9692_v4 = vcombine.low %v1637_v31, %v1641_v33  ;;  %v1689_v63 = vld [vmem:[#allocation6 + $0x15b0] sm:$0xff] }
 0x41e   : > { %v9695_v21 = vcombine.high %v1638_v35, %v1642_v27  ;;  %v9694_v59 = vcombine.low %v1638_v35, %v1642_v27  ;;  %v9741_v31 = vcombine.high %v1685_v11, %v1689_v63  ;;  %v1693_v35 = vld [vmem:[#allocation6 + $0x15d0] sm:$0xff] }
 0x41f   : > { %8020 = vmatpush1.bf16.msra.mxu0 %v9636_v28  ;;  %v1645_v28 = vld [vmem:[#allocation6 + $0x1450] sm:$0xff] }
 0x420   : > { %8348 = vmatpush1.bf16.msra.mxu1 %v9638_v30  ;;  %8021 = vmatprep.subr.bf16.mxu0 %v9645_v13  ;;  %v1649_v30 = vld [vmem:[#allocation6 + $0x1470] sm:$0xff]  ;;  %v1646_v13 = vld [vmem:[#allocation6 + $0x1458] sm:$0xff] }
 0x421   : > { %8349 = vmatprep.subr.bf16.mxu1 %v9647_v37  ;;  %v1650_v37 = vld [vmem:[#allocation6 + $0x1478] sm:$0xff]  ;;  %v9701_v25 = vcombine.high %v1645_v28, %v1649_v30  ;;  %v9700_v26 = vcombine.low %v1645_v28, %v1649_v30  ;;  %v1697_v27 = vld [vmem:[#allocation6 + $0x15f0] sm:$0xff] }
 0x422   : > { %v9703_v47 = vcombine.high %v1646_v13, %v1650_v37  ;;  %v9702_v50 = vcombine.low %v1646_v13, %v1650_v37  ;;  %v9749_v28 = vcombine.high %v1693_v35, %v1697_v27  ;;  %v1701_v13 = vld [vmem:[#allocation6 + $0x1610] sm:$0xff] }
 0x423   : > { %8022 = vmatpush1.bf16.msra.mxu0 %v9644_v1  ;;  %v1653_v1 = vld [vmem:[#allocation6 + $0x1490] sm:$0xff] }
 0x424   : > { %8350 = vmatpush1.bf16.msra.mxu1 %v9646_v51  ;;  %8023 = vmatprep.subr.bf16.mxu0 %v9653_v22  ;;  %v1657_v51 = vld [vmem:[#allocation6 + $0x14b0] sm:$0xff]  ;;  %v1654_v22 = vld [vmem:[#allocation6 + $0x1498] sm:$0xff] }
 0x425   : > { %8351 = vmatprep.subr.bf16.mxu1 %v9655_v9  ;;  %v1658_v9 = vld [vmem:[#allocation6 + $0x14b8] sm:$0xff]  ;;  %v9709_v40 = vcombine.high %v1653_v1, %v1657_v51  ;;  %v9708_v57 = vcombine.low %v1653_v1, %v1657_v51  ;;  %v1705_v37 = vld [vmem:[#allocation6 + $0x1630] sm:$0xff] }
 0x426   : > { %v9711_v53 = vcombine.high %v1654_v22, %v1658_v9  ;;  %v9757_v1 = vcombine.high %v1701_v13, %v1705_v37 }
 0x427   : > { %8024 = vmatpush1.bf16.msra.mxu0 %v9652_v16  ;;  %v1661_v16 = vld [vmem:[#allocation6 + $0x14d0] sm:$0xff] }
 0x428   : > { %8352 = vmatpush1.bf16.msra.mxu1 %v9654_v34  ;;  %8025 = vmatprep.subr.bf16.mxu0 %v9661_v5  ;;  %v1665_v34 = vld [vmem:[#allocation6 + $0x14f0] sm:$0xff]  ;;  %v1662_v5 = vld [vmem:[#allocation6 + $0x14d8] sm:$0xff] }
 0x429   : > { %8353 = vmatprep.subr.bf16.mxu1 %v9663_v41  ;;  %v1666_v41 = vld [vmem:[#allocation6 + $0x14f8] sm:$0xff]  ;;  %v9717_v29 = vcombine.high %v1661_v16, %v1665_v34 }
 0x42a   : > { %v9719_v52 = vcombine.high %v1662_v5, %v1666_v41  ;;  %v9718_v19 = vcombine.low %v1662_v5, %v1666_v41  ;;  %v1717_v5 = vld [vmem:[#allocation6 + $0x1690] sm:$0xff] }
 0x42b   : > { %8026 = vmatpush1.bf16.msra.mxu0 %v9660_v44  ;;  %v1673_v44 = vld [vmem:[#allocation6 + $0x1530] sm:$0xff] }
 0x42c   : > { %8354 = vmatpush1.bf16.msra.mxu1 %v9662_v10  ;;  %8027 = vmatprep.subr.bf16.mxu0 %v9669_v45  ;;  %v1670_v10 = vld [vmem:[#allocation6 + $0x1518] sm:$0xff]  ;;  %v9725_v39 = vcombine.high %v1669_v58, %v1673_v44  ;;  %v1721_v41 = vld [vmem:[#allocation6 + $0x16b0] sm:$0xff] }
 0x42d   : > { %8355 = vmatprep.subr.bf16.mxu1 %v9671_v20  ;;  %v1674_v45 = vld [vmem:[#allocation6 + $0x1538] sm:$0xff]  ;;  %v9716_v20 = vcombine.low %v1661_v16, %v1665_v34 }
 0x42f   : > { %8028 = vmatpush1.bf16.msra.mxu0 %v9668_v12  ;;  %v1678_v12 = vld [vmem:[#allocation6 + $0x1558] sm:$0xff] }
 0x430   : > { %8356 = vmatpush1.bf16.msra.mxu1 %v9670_v15  ;;  %8029 = vmatprep.subr.bf16.mxu0 %v9677_v56  ;;  %v1682_v15 = vld [vmem:[#allocation6 + $0x1578] sm:$0xff]  ;;  %v9724_v56 = vcombine.low %v1669_v58, %v1673_v44  ;;  %v9773_v58 = vcombine.high %v1717_v5, %v1721_v41 }
 0x431   : > { %8357 = vmatprep.subr.bf16.mxu1 %v9679_v17  ;;  %v9726_v17 = vcombine.low %v1670_v10, %v1674_v45  ;;  %v9735_v8 = vcombine.high %v1678_v12, %v1682_v15 }
 0x433   : > { %8030 = vmatpush1.bf16.msra.mxu0 %v9676_v49  ;;  %v1686_v49 = vld [vmem:[#allocation6 + $0x1598] sm:$0xff] }
 0x434   : > { %8358 = vmatpush1.bf16.msra.mxu1 %v9678_v48  ;;  %8031 = vmatprep.subr.bf16.mxu0 %v9685_v36  ;;  %v1690_v48 = vld [vmem:[#allocation6 + $0x15b8] sm:$0xff]  ;;  %v9732_v36 = vcombine.low %v1677_v6, %v1681_v23 }
 0x435   : > { %8359 = vmatprep.subr.bf16.mxu1 %v9687_v7  ;;  %v9734_v7 = vcombine.low %v1678_v12, %v1682_v15  ;;  %v9743_v33 = vcombine.high %v1686_v49, %v1690_v48  ;;  %v1733_v12 = vld [vmem:[#allocation6 + $0x1710] sm:$0xff] }
 0x436   : > { %v1737_v15 = vld [vmem:[#allocation6 + $0x1730] sm:$0xff] }
 0x437   : > { %8032 = vmatpush1.bf16.msra.mxu0 %v9684_v24  ;;  %v1694_v24 = vld [vmem:[#allocation6 + $0x15d8] sm:$0xff] }
 0x438   : > { %8360 = vmatpush1.bf16.msra.mxu1 %v9686_v32  ;;  %8042 = vmatprep.subr.bf16.mxu0 %v9693_v61  ;;  %v1698_v32 = vld [vmem:[#allocation6 + $0x15f8] sm:$0xff]  ;;  %v9740_v61 = vcombine.low %v1685_v11, %v1689_v63  ;;  %v9789_v11 = vcombine.high %v1733_v12, %v1737_v15 }
 0x439   : > { %8370 = vmatprep.subr.bf16.mxu1 %v9695_v21  ;;  %v9742_v21 = vcombine.low %v1686_v49, %v1690_v48  ;;  %v9751_v30 = vcombine.high %v1694_v24, %v1698_v32  ;;  %v1741_v49 = vld [vmem:[#allocation6 + $0x1750] sm:$0xff] }
 0x43a   : > { %8034 = vmatmul.mubr.bf16.vlgmr.msra.gmra.mrb[4].mxu0 %v11510_v55  ;;  %v1745_v48 = vld [vmem:[#allocation6 + $0x1770] sm:$0xff] }
 0x43b   : > { %8043 = vmatpush1.bf16.msra.mxu0 %v9692_v4  ;;  %8362 = vmatmul.mubr.bf16.vlgmr.msra.gmra.mrb[4].mxu1 %v11510_v55  ;;  %v9710_v55 = vcombine.low %v1654_v22, %v1658_v9  ;;  %v1702_v4 = vld [vmem:[#allocation6 + $0x1618] sm:$0xff]  ;;  %v1709_v22 = vld [vmem:[#allocation6 + $0x1650] sm:$0xff] }
 0x43c   : > { %8371 = vmatpush1.bf16.msra.mxu1 %v9694_v59  ;;  %8044 = vmatprep.subr.bf16.mxu0 %v9701_v25  ;;  %v1706_v59 = vld [vmem:[#allocation6 + $0x1638] sm:$0xff]  ;;  %v9748_v25 = vcombine.low %v1693_v35, %v1697_v27  ;;  %v1713_v9 = vld [vmem:[#allocation6 + $0x1670] sm:$0xff]  ;;  %v9797_v35 = vcombine.high %v1741_v49, %v1745_v48 }
 0x43d   : > { %8372 = vmatprep.subr.bf16.mxu1 %v9703_v47  ;;  %8074 = vmatprep.mubr.bf16.mxu0 %v11512_v3  ;;  %v9750_v47 = vcombine.low %v1694_v24, %v1698_v32  ;;  %v9759_v51 = vcombine.high %v1702_v4, %v1706_v59  ;;  %v9765_v16 = vcombine.high %v1709_v22, %v1713_v9  ;;  %v1749_v24 = vld [vmem:[#allocation6 + $0x1790] sm:$0xff] }
 0x43e   : > { %8402 = vmatprep.mubr.bf16.mxu1 %v11512_v3  ;;  %v9727_v3 = vcombine.high %v1670_v10, %v1674_v45  ;;  %v1725_v10 = vld [vmem:[#allocation6 + $0x16d0] sm:$0xff] }
 0x43f   : > { %8045 = vmatpush1.bf16.msra.mxu0 %v9700_v26  ;;  %v1710_v26 = vld [vmem:[#allocation6 + $0x1658] sm:$0xff]  ;;  %v1729_v45 = vld [vmem:[#allocation6 + $0x16f0] sm:$0xff] }
 0x440   : > { %8373 = vmatpush1.bf16.msra.mxu1 %v9702_v50  ;;  %8046 = vmatprep.subr.bf16.mxu0 %v9709_v40  ;;  %v1714_v50 = vld [vmem:[#allocation6 + $0x1678] sm:$0xff]  ;;  %v9756_v40 = vcombine.low %v1701_v13, %v1705_v37  ;;  %v9781_v6 = vcombine.high %v1725_v10, %v1729_v45  ;;  %v1753_v32 = vld [vmem:[#allocation6 + $0x17b0] sm:$0xff] }
 0x441   : > { %8374 = vmatprep.subr.bf16.mxu1 %v9711_v53  ;;  %v9758_v53 = vcombine.low %v1702_v4, %v1706_v59  ;;  %v9767_v34 = vcombine.high %v1710_v26, %v1714_v50  ;;  %v9805_v13 = vcombine.high %v1749_v24, %v1753_v32  ;;  %v1757_v4 = vld [vmem:[#allocation6 + $0x17d0] sm:$0xff] }
 0x442   : > { %v1761_v59 = vld [vmem:[#allocation6 + $0x17f0] sm:$0xff] }
 0x443   : > { %8047 = vmatpush1.bf16.msra.mxu0 %v9708_v57  ;;  %v1718_v57 = vld [vmem:[#allocation6 + $0x1698] sm:$0xff] }
 0x444   : > { %8375 = vmatpush1.bf16.msra.mxu1 %v9710_v55  ;;  %8048 = vmatprep.subr.bf16.mxu0 %v9717_v29  ;;  %v1722_v55 = vld [vmem:[#allocation6 + $0x16b8] sm:$0xff]  ;;  %v9764_v29 = vcombine.low %v1709_v22, %v1713_v9  ;;  %v9813_v22 = vcombine.high %v1757_v4, %v1761_v59 }
 0x445   : > { %8376 = vmatprep.subr.bf16.mxu1 %v9719_v52  ;;  %v9766_v52 = vcombine.low %v1710_v26, %v1714_v50  ;;  %v9775_v44 = vcombine.high %v1718_v57, %v1722_v55  ;;  %v1765_v26 = vld [vmem:[#allocation6 + $0x1810] sm:$0xff] }
 0x446   : > { %v1769_v50 = vld [vmem:[#allocation6 + $0x1830] sm:$0xff] }
 0x447   : > { %8049 = vmatpush1.bf16.msra.mxu0 %v9716_v20  ;;  %v1726_v20 = vld [vmem:[#allocation6 + $0x16d8] sm:$0xff] }
 0x448   : > { %8377 = vmatpush1.bf16.msra.mxu1 %v9718_v19  ;;  %8050 = vmatprep.subr.bf16.mxu0 %v9725_v39  ;;  %v1730_v19 = vld [vmem:[#allocation6 + $0x16f8] sm:$0xff]  ;;  %v9772_v39 = vcombine.low %v1717_v5, %v1721_v41  ;;  %v9821_v5 = vcombine.high %v1765_v26, %v1769_v50 }
 0x449   : > { %8378 = vmatprep.subr.bf16.mxu1 %v9727_v3  ;;  %v9774_v3 = vcombine.low %v1718_v57, %v1722_v55  ;;  %v9783_v23 = vcombine.high %v1726_v20, %v1730_v19  ;;  %v1773_v57 = vld [vmem:[#allocation6 + $0x1850] sm:$0xff] }
 0x44a   : > { %v1777_v55 = vld [vmem:[#allocation6 + $0x1870] sm:$0xff] }
 0x44b   : > { %8051 = vmatpush1.bf16.msra.mxu0 %v9724_v56  ;;  %v1734_v56 = vld [vmem:[#allocation6 + $0x1718] sm:$0xff] }
 0x44c   : > { %8379 = vmatpush1.bf16.msra.mxu1 %v9726_v17  ;;  %8052 = vmatprep.subr.bf16.mxu0 %v9733_v0  ;;  %v1738_v17 = vld [vmem:[#allocation6 + $0x1738] sm:$0xff]  ;;  %v9780_v0 = vcombine.low %v1725_v10, %v1729_v45  ;;  %v9829_v10 = vcombine.high %v1773_v57, %v1777_v55 }
 0x44d   : > { %8380 = vmatprep.subr.bf16.mxu1 %v9735_v8  ;;  %v9782_v8 = vcombine.low %v1726_v20, %v1730_v19  ;;  %v9791_v63 = vcombine.high %v1734_v56, %v1738_v17  ;;  %v1781_v20 = vld [vmem:[#allocation6 + $0x1890] sm:$0xff] }
 0x44e   : > { %v1785_v19 = vld [vmem:[#allocation6 + $0x18b0] sm:$0xff] }
 0x44f   : > { %8053 = vmatpush1.bf16.msra.mxu0 %v9732_v36  ;;  %v1742_v36 = vld [vmem:[#allocation6 + $0x1758] sm:$0xff] }
 0x450   : > { %8381 = vmatpush1.bf16.msra.mxu1 %v9734_v7  ;;  %8054 = vmatprep.subr.bf16.mxu0 %v9741_v31  ;;  %v1746_v7 = vld [vmem:[#allocation6 + $0x1778] sm:$0xff]  ;;  %v9788_v31 = vcombine.low %v1733_v12, %v1737_v15  ;;  %v9837_v12 = vcombine.high %v1781_v20, %v1785_v19 }
 0x451   : > { %8382 = vmatprep.subr.bf16.mxu1 %v9743_v33  ;;  %v9790_v33 = vcombine.low %v1734_v56, %v1738_v17  ;;  %v9799_v27 = vcombine.high %v1742_v36, %v1746_v7  ;;  %v1789_v56 = vld [vmem:[#allocation6 + $0x18d0] sm:$0xff] }
 0x452   : > { %v1793_v17 = vld [vmem:[#allocation6 + $0x18f0] sm:$0xff] }
 0x453   : > { %8055 = vmatpush1.bf16.msra.mxu0 %v9740_v61  ;;  %v1750_v61 = vld [vmem:[#allocation6 + $0x1798] sm:$0xff] }
 0x454   : > { %8383 = vmatpush1.bf16.msra.mxu1 %v9742_v21  ;;  %8056 = vmatprep.subr.bf16.mxu0 %v9749_v28  ;;  %v1754_v21 = vld [vmem:[#allocation6 + $0x17b8] sm:$0xff]  ;;  %v9796_v28 = vcombine.low %v1741_v49, %v1745_v48  ;;  %v1797_v48 = vld [vmem:[#allocation6 + $0x1910] sm:$0xff] }
 0x455   : > { %8384 = vmatprep.subr.bf16.mxu1 %v9751_v30  ;;  %v9798_v30 = vcombine.low %v1742_v36, %v1746_v7  ;;  %v9807_v37 = vcombine.high %v1750_v61, %v1754_v21  ;;  %v1801_v36 = vld [vmem:[#allocation6 + $0x1930] sm:$0xff]  ;;  %v1798_v7 = vld [vmem:[#allocation6 + $0x1918] sm:$0xff] }
 0x457   : > { %8057 = vmatpush1.bf16.msra.mxu0 %v9748_v25  ;;  %v1758_v25 = vld [vmem:[#allocation6 + $0x17d8] sm:$0xff] }
 0x458   : > { %8385 = vmatpush1.bf16.msra.mxu1 %v9750_v47  ;;  %8058 = vmatprep.subr.bf16.mxu0 %v9757_v1  ;;  %v1762_v47 = vld [vmem:[#allocation6 + $0x17f8] sm:$0xff]  ;;  %v9804_v1 = vcombine.low %v1749_v24, %v1753_v32  ;;  %v1805_v24 = vld [vmem:[#allocation6 + $0x1950] sm:$0xff] }
 0x459   : > { %8386 = vmatprep.subr.bf16.mxu1 %v9759_v51  ;;  %v9806_v51 = vcombine.low %v1750_v61, %v1754_v21  ;;  %v9815_v9 = vcombine.high %v1758_v25, %v1762_v47  ;;  %v1809_v32 = vld [vmem:[#allocation6 + $0x1970] sm:$0xff]  ;;  %v1806_v61 = vld [vmem:[#allocation6 + $0x1958] sm:$0xff] }
 0x45a   : > { %v1810_v21 = vld [vmem:[#allocation6 + $0x1978] sm:$0xff] }
 0x45b   : > { %8059 = vmatpush1.bf16.msra.mxu0 %v9756_v40  ;;  %v1766_v40 = vld [vmem:[#allocation6 + $0x1818] sm:$0xff] }
 0x45c   : > { %8387 = vmatpush1.bf16.msra.mxu1 %v9758_v53  ;;  %8060 = vmatprep.subr.bf16.mxu0 %v9765_v16  ;;  %v1770_v53 = vld [vmem:[#allocation6 + $0x1838] sm:$0xff]  ;;  %v9812_v16 = vcombine.low %v1757_v4, %v1761_v59  ;;  %v1813_v4 = vld [vmem:[#allocation6 + $0x1990] sm:$0xff] }
 0x45d   : > { %8388 = vmatprep.subr.bf16.mxu1 %v9767_v34  ;;  %v9814_v34 = vcombine.low %v1758_v25, %v1762_v47  ;;  %v9823_v41 = vcombine.high %v1766_v40, %v1770_v53  ;;  %v1817_v59 = vld [vmem:[#allocation6 + $0x19b0] sm:$0xff]  ;;  %v1814_v25 = vld [vmem:[#allocation6 + $0x1998] sm:$0xff] }
 0x45e   : > { %v1818_v47 = vld [vmem:[#allocation6 + $0x19b8] sm:$0xff] }
 0x45f   : > { %8061 = vmatpush1.bf16.msra.mxu0 %v9764_v29  ;;  %v1774_v29 = vld [vmem:[#allocation6 + $0x1858] sm:$0xff] }
 0x460   : > { %8389 = vmatpush1.bf16.msra.mxu1 %v9766_v52  ;;  %8062 = vmatprep.subr.bf16.mxu0 %v9773_v58  ;;  %v1778_v52 = vld [vmem:[#allocation6 + $0x1878] sm:$0xff]  ;;  %v9820_v58 = vcombine.low %v1765_v26, %v1769_v50  ;;  %v1821_v26 = vld [vmem:[#allocation6 + $0x19d0] sm:$0xff] }
 0x461   : > { %8390 = vmatprep.subr.bf16.mxu1 %v9775_v44  ;;  %v9822_v44 = vcombine.low %v1766_v40, %v1770_v53  ;;  %v9831_v45 = vcombine.high %v1774_v29, %v1778_v52  ;;  %v1825_v50 = vld [vmem:[#allocation6 + $0x19f0] sm:$0xff]  ;;  %v1822_v40 = vld [vmem:[#allocation6 + $0x19d8] sm:$0xff] }
 0x462   : > { %v1826_v53 = vld [vmem:[#allocation6 + $0x19f8] sm:$0xff] }
 0x463   : > { %8063 = vmatpush1.bf16.msra.mxu0 %v9772_v39  ;;  %v1782_v39 = vld [vmem:[#allocation6 + $0x1898] sm:$0xff] }
 0x464   : > { %8391 = vmatpush1.bf16.msra.mxu1 %v9774_v3  ;;  %8064 = vmatprep.subr.bf16.mxu0 %v9781_v6  ;;  %v1786_v3 = vld [vmem:[#allocation6 + $0x18b8] sm:$0xff]  ;;  %v9828_v6 = vcombine.low %v1773_v57, %v1777_v55  ;;  %v1829_v57 = vld [vmem:[#allocation6 + $0x1a10] sm:$0xff] }
 0x465   : > { %8392 = vmatprep.subr.bf16.mxu1 %v9783_v23  ;;  %v9830_v23 = vcombine.low %v1774_v29, %v1778_v52  ;;  %v9839_v15 = vcombine.high %v1782_v39, %v1786_v3  ;;  %v1833_v55 = vld [vmem:[#allocation6 + $0x1a30] sm:$0xff]  ;;  %v1830_v29 = vld [vmem:[#allocation6 + $0x1a18] sm:$0xff] }
 0x466   : > { %v1834_v52 = vld [vmem:[#allocation6 + $0x1a38] sm:$0xff] }
 0x467   : > { %8065 = vmatpush1.bf16.msra.mxu0 %v9780_v0  ;;  %v1790_v0 = vld [vmem:[#allocation6 + $0x18d8] sm:$0xff] }
 0x468   : > { %8393 = vmatpush1.bf16.msra.mxu1 %v9782_v8  ;;  %8066 = vmatprep.subr.bf16.mxu0 %v9789_v11  ;;  %v1794_v8 = vld [vmem:[#allocation6 + $0x18f8] sm:$0xff]  ;;  %v9836_v11 = vcombine.low %v1781_v20, %v1785_v19  ;;  %v1837_v20 = vld [vmem:[#allocation6 + $0x1a50] sm:$0xff] }
 0x469   : > { %8394 = vmatprep.subr.bf16.mxu1 %v9791_v63  ;;  %v9845_v63 = vcombine.high %v1789_v56, %v1793_v17  ;;  %v9847_v49 = vcombine.high %v1790_v0, %v1794_v8  ;;  %v1841_v19 = vld [vmem:[#allocation6 + $0x1a70] sm:$0xff] }
 0x46b   : > { %8067 = vmatpush1.bf16.msra.mxu0 %v9788_v31  ;;  %v1802_v31 = vld [vmem:[#allocation6 + $0x1938] sm:$0xff] }
 0x46c   : > { %8395 = vmatpush1.bf16.msra.mxu1 %v9790_v33  ;;  %8068 = vmatprep.subr.bf16.mxu0 %v9797_v35  ;;  %v9844_v33 = vcombine.low %v1789_v56, %v1793_v17  ;;  %v9846_v35 = vcombine.low %v1790_v0, %v1794_v8  ;;  %v1845_v56 = vld [vmem:[#allocation6 + $0x1a90] sm:$0xff]  ;;  %v1846_v0 = vld [vmem:[#allocation6 + $0x1a98] sm:$0xff] }
 0x46d   : > { %8396 = vmatprep.subr.bf16.mxu1 %v9799_v27  ;;  %v9853_v27 = vcombine.high %v1797_v48, %v1801_v36  ;;  %v1849_v17 = vld [vmem:[#allocation6 + $0x1ab0] sm:$0xff]  ;;  %v1850_v8 = vld [vmem:[#allocation6 + $0x1ab8] sm:$0xff] }
 0x46f   : > { %8069 = vmatpush1.bf16.msra.mxu0 %v9796_v28  ;;  %v9852_v28 = vcombine.low %v1797_v48, %v1801_v36  ;;  %v1853_v48 = vld [vmem:[#allocation6 + $0x1ad0] sm:$0xff] }
 0x470   : > { %8397 = vmatpush1.bf16.msra.mxu1 %v9798_v30  ;;  %8070 = vmatprep.subr.bf16.mxu0 %v9805_v13  ;;  %v9854_v30 = vcombine.low %v1798_v7, %v1802_v31  ;;  %v9861_v13 = vcombine.high %v1805_v24, %v1809_v32  ;;  %v1857_v36 = vld [vmem:[#allocation6 + $0x1af0] sm:$0xff] }
 0x471   : > { %8398 = vmatprep.subr.bf16.mxu1 %v9807_v37  ;;  %v9863_v37 = vcombine.high %v1806_v61, %v1810_v21 }
 0x473   : > { %8071 = vmatpush1.bf16.msra.mxu0 %v9804_v1  ;;  %v9860_v1 = vcombine.low %v1805_v24, %v1809_v32  ;;  %v1861_v24 = vld [vmem:[#allocation6 + $0x1b10] sm:$0xff] }
 0x474   : > { %8399 = vmatpush1.bf16.msra.mxu1 %v9806_v51  ;;  %8072 = vmatprep.subr.bf16.mxu0 %v9813_v22  ;;  %v9862_v51 = vcombine.low %v1806_v61, %v1810_v21  ;;  %v9869_v22 = vcombine.high %v1813_v4, %v1817_v59  ;;  %v1865_v32 = vld [vmem:[#allocation6 + $0x1b30] sm:$0xff]  ;;  %v1862_v61 = vld [vmem:[#allocation6 + $0x1b18] sm:$0xff] }
 0x475   : > { %8400 = vmatprep.subr.bf16.mxu1 %v9815_v9  ;;  %v9871_v9 = vcombine.high %v1814_v25, %v1818_v47  ;;  %v1866_v21 = vld [vmem:[#allocation6 + $0x1b38] sm:$0xff] }
 0x477   : > { %8073 = vmatpush1.bf16.msra.mxu0 %v9812_v16  ;;  %v9868_v16 = vcombine.low %v1813_v4, %v1817_v59  ;;  %v1869_v4 = vld [vmem:[#allocation6 + $0x1b50] sm:$0xff] }
 0x478   : > { %8401 = vmatpush1.bf16.msra.mxu1 %v9814_v34  ;;  %8083 = vmatprep.subr.bf16.mxu0 %v9821_v5  ;;  %v9870_v34 = vcombine.low %v1814_v25, %v1818_v47  ;;  %v9877_v5 = vcombine.high %v1821_v26, %v1825_v50  ;;  %v1873_v59 = vld [vmem:[#allocation6 + $0x1b70] sm:$0xff]  ;;  %v1870_v25 = vld [vmem:[#allocation6 + $0x1b58] sm:$0xff] }
 0x479   : > { %8411 = vmatprep.subr.bf16.mxu1 %v9823_v41  ;;  %v9879_v41 = vcombine.high %v1822_v40, %v1826_v53  ;;  %v1874_v47 = vld [vmem:[#allocation6 + $0x1b78] sm:$0xff] }
 0x47a   : > { %8075 = vmatmul.mubr.bf16.vlgmr.msra.gmra.mrb[4].mxu0 %v11528_v54 }
 0x47b   : > { %8084 = vmatpush1.bf16.msra.mxu0 %v9820_v58  ;;  %8403 = vmatmul.mubr.bf16.vlgmr.msra.gmra.mrb[4].mxu1 %v11528_v54  ;;  %v9838_v54 = vcombine.low %v1782_v39, %v1786_v3  ;;  %v9876_v58 = vcombine.low %v1821_v26, %v1825_v50  ;;  %v1838_v39 = vld [vmem:[#allocation6 + $0x1a58] sm:$0xff]  ;;  %v1877_v26 = vld [vmem:[#allocation6 + $0x1b90] sm:$0xff] }
 0x47c   : > { %8412 = vmatpush1.bf16.msra.mxu1 %v9822_v44  ;;  %8085 = vmatprep.subr.bf16.mxu0 %v9829_v10  ;;  %v9878_v44 = vcombine.low %v1822_v40, %v1826_v53  ;;  %v9885_v10 = vcombine.high %v1829_v57, %v1833_v55  ;;  %v1842_v3 = vld [vmem:[#allocation6 + $0x1a78] sm:$0xff]  ;;  %v1881_v50 = vld [vmem:[#allocation6 + $0x1bb0] sm:$0xff] }
 0x47d   : > { %8413 = vmatprep.subr.bf16.mxu1 %v9831_v45  ;;  %8115 = vmatprep.mubr.bf16.mxu0 %v11530_v14  ;;  %v9887_v45 = vcombine.high %v1830_v29, %v1834_v52  ;;  %v1878_v40 = vld [vmem:[#allocation6 + $0x1b98] sm:$0xff] }
 0x47e   : > { %8443 = vmatprep.mubr.bf16.mxu1 %v11530_v14  ;;  %v9855_v14 = vcombine.high %v1798_v7, %v1802_v31  ;;  %v1854_v7 = vld [vmem:[#allocation6 + $0x1ad8] sm:$0xff] }
 0x47f   : > { %8086 = vmatpush1.bf16.msra.mxu0 %v9828_v6  ;;  %v9884_v6 = vcombine.low %v1829_v57, %v1833_v55  ;;  %v1858_v31 = vld [vmem:[#allocation6 + $0x1af8] sm:$0xff]  ;;  %v1885_v57 = vld [vmem:[#allocation6 + $0x1bd0] sm:$0xff] }
 0x480   : > { %8414 = vmatpush1.bf16.msra.mxu1 %v9830_v23  ;;  %8087 = vmatprep.subr.bf16.mxu0 %v9837_v12  ;;  %v9886_v23 = vcombine.low %v1830_v29, %v1834_v52  ;;  %v9893_v12 = vcombine.high %v1837_v20, %v1841_v19  ;;  %v1882_v53 = vld [vmem:[#allocation6 + $0x1bb8] sm:$0xff]  ;;  %v1889_v55 = vld [vmem:[#allocation6 + $0x1bf0] sm:$0xff] }
 0x481   : > { %8415 = vmatprep.subr.bf16.mxu1 %v9839_v15  ;;  %v9895_v15 = vcombine.high %v1838_v39, %v1842_v3  ;;  %v1886_v29 = vld [vmem:[#allocation6 + $0x1bd8] sm:$0xff] }
 0x482   : > { %v1890_v52 = vld [vmem:[#allocation6 + $0x1bf8] sm:$0xff] }
 0x483   : > { %8088 = vmatpush1.bf16.msra.mxu0 %v9836_v11  ;;  %v9892_v11 = vcombine.low %v1837_v20, %v1841_v19  ;;  %v1893_v20 = vld [vmem:[#allocation6 + $0x1c10] sm:$0xff] }
 0x484   : > { %8416 = vmatpush1.bf16.msra.mxu1 %v9838_v54  ;;  %8089 = vmatprep.subr.bf16.mxu0 %v9845_v63  ;;  %v9894_v54 = vcombine.low %v1838_v39, %v1842_v3  ;;  %v9901_v63 = vcombine.high %v1845_v56, %v1849_v17  ;;  %v1897_v19 = vld [vmem:[#allocation6 + $0x1c30] sm:$0xff]  ;;  %v1894_v39 = vld [vmem:[#allocation6 + $0x1c18] sm:$0xff] }
 0x485   : > { %8417 = vmatprep.subr.bf16.mxu1 %v9847_v49  ;;  %v9903_v49 = vcombine.high %v1846_v0, %v1850_v8  ;;  %v1898_v3 = vld [vmem:[#allocation6 + $0x1c38] sm:$0xff] }
 0x487   : > { %8090 = vmatpush1.bf16.msra.mxu0 %v9844_v33  ;;  %v9900_v33 = vcombine.low %v1845_v56, %v1849_v17  ;;  %v1901_v56 = vld [vmem:[#allocation6 + $0x1c50] sm:$0xff] }
 0x488   : > { %8418 = vmatpush1.bf16.msra.mxu1 %v9846_v35  ;;  %8091 = vmatprep.subr.bf16.mxu0 %v9853_v27  ;;  %v9902_v35 = vcombine.low %v1846_v0, %v1850_v8  ;;  %v9909_v27 = vcombine.high %v1853_v48, %v1857_v36  ;;  %v1905_v17 = vld [vmem:[#allocation6 + $0x1c70] sm:$0xff]  ;;  %v1902_v0 = vld [vmem:[#allocation6 + $0x1c58] sm:$0xff] }
 0x489   : > { %8419 = vmatprep.subr.bf16.mxu1 %v9855_v14  ;;  %v9911_v14 = vcombine.high %v1854_v7, %v1858_v31  ;;  %v1906_v8 = vld [vmem:[#allocation6 + $0x1c78] sm:$0xff] }
 0x48b   : > { %8092 = vmatpush1.bf16.msra.mxu0 %v9852_v28  ;;  %v9908_v28 = vcombine.low %v1853_v48, %v1857_v36  ;;  %v1909_v48 = vld [vmem:[#allocation6 + $0x1c90] sm:$0xff] }
 0x48c   : > { %8420 = vmatpush1.bf16.msra.mxu1 %v9854_v30  ;;  %8093 = vmatprep.subr.bf16.mxu0 %v9861_v13  ;;  %v9910_v30 = vcombine.low %v1854_v7, %v1858_v31  ;;  %v9917_v13 = vcombine.high %v1861_v24, %v1865_v32  ;;  %v1913_v36 = vld [vmem:[#allocation6 + $0x1cb0] sm:$0xff]  ;;  %v1910_v7 = vld [vmem:[#allocation6 + $0x1c98] sm:$0xff] }
 0x48d   : > { %8421 = vmatprep.subr.bf16.mxu1 %v9863_v37  ;;  %v9919_v37 = vcombine.high %v1862_v61, %v1866_v21  ;;  %v1914_v31 = vld [vmem:[#allocation6 + $0x1cb8] sm:$0xff] }
 0x48f   : > { %8094 = vmatpush1.bf16.msra.mxu0 %v9860_v1  ;;  %v9916_v1 = vcombine.low %v1861_v24, %v1865_v32  ;;  %v1917_v24 = vld [vmem:[#allocation6 + $0x1cd0] sm:$0xff] }
 0x490   : > { %8422 = vmatpush1.bf16.msra.mxu1 %v9862_v51  ;;  %8095 = vmatprep.subr.bf16.mxu0 %v9869_v22  ;;  %v9918_v51 = vcombine.low %v1862_v61, %v1866_v21  ;;  %v9925_v22 = vcombine.high %v1869_v4, %v1873_v59  ;;  %v1921_v32 = vld [vmem:[#allocation6 + $0x1cf0] sm:$0xff]  ;;  %v1918_v61 = vld [vmem:[#allocation6 + $0x1cd8] sm:$0xff] }
 0x491   : > { %8423 = vmatprep.subr.bf16.mxu1 %v9871_v9  ;;  %v9927_v9 = vcombine.high %v1870_v25, %v1874_v47  ;;  %v1922_v21 = vld [vmem:[#allocation6 + $0x1cf8] sm:$0xff] }
 0x493   : > { %8096 = vmatpush1.bf16.msra.mxu0 %v9868_v16  ;;  %v9924_v16 = vcombine.low %v1869_v4, %v1873_v59  ;;  %v1929_v4 = vld [vmem:[#allocation6 + $0x1d30] sm:$0xff]  ;;  %v1926_v59 = vld [vmem:[#allocation6 + $0x1d18] sm:$0xff] }
 0x494   : > { %8424 = vmatpush1.bf16.msra.mxu1 %v9870_v34  ;;  %8097 = vmatprep.subr.bf16.mxu0 %v9877_v5  ;;  %v9926_v34 = vcombine.low %v1870_v25, %v1874_v47  ;;  %v9933_v5 = vcombine.high %v1877_v26, %v1881_v50  ;;  %v1930_v25 = vld [vmem:[#allocation6 + $0x1d38] sm:$0xff]  ;;  %v9972_v47 = vcombine.low %v1917_v24, %v1921_v32 }
 0x495   : > { %8425 = vmatprep.subr.bf16.mxu1 %v9879_v41  ;;  %v9935_v41 = vcombine.high %v1878_v40, %v1882_v53 }
 0x497   : > { %8098 = vmatpush1.bf16.msra.mxu0 %v9876_v58  ;;  %v9932_v58 = vcombine.low %v1877_v26, %v1881_v50  ;;  %v1934_v26 = vld [vmem:[#allocation6 + $0x1d58] sm:$0xff] }
 0x498   : > { %8426 = vmatpush1.bf16.msra.mxu1 %v9878_v44  ;;  %8099 = vmatprep.subr.bf16.mxu0 %v9885_v10  ;;  %v9934_v44 = vcombine.low %v1878_v40, %v1882_v53  ;;  %v9941_v10 = vcombine.high %v1885_v57, %v1889_v55  ;;  %v1938_v50 = vld [vmem:[#allocation6 + $0x1d78] sm:$0xff]  ;;  %v9982_v53 = vcombine.low %v1926_v59, %v1930_v25 }
 0x499   : > { %8427 = vmatprep.subr.bf16.mxu1 %v9887_v45  ;;  %v9943_v45 = vcombine.high %v1886_v29, %v1890_v52 }
 0x49b   : > { %8100 = vmatpush1.bf16.msra.mxu0 %v9884_v6  ;;  %v9940_v6 = vcombine.low %v1885_v57, %v1889_v55  ;;  %v1942_v57 = vld [vmem:[#allocation6 + $0x1d98] sm:$0xff] }
 0x49c   : > { %8428 = vmatpush1.bf16.msra.mxu1 %v9886_v23  ;;  %8101 = vmatprep.subr.bf16.mxu0 %v9893_v12  ;;  %v9942_v23 = vcombine.low %v1886_v29, %v1890_v52  ;;  %v9949_v12 = vcombine.high %v1893_v20, %v1897_v19  ;;  %v1946_v55 = vld [vmem:[#allocation6 + $0x1db8] sm:$0xff]  ;;  %v9990_v52 = vcombine.low %v1934_v26, %v1938_v50 }
 0x49d   : > { %8429 = vmatprep.subr.bf16.mxu1 %v9895_v15  ;;  %v9951_v15 = vcombine.high %v1894_v39, %v1898_v3 }
 0x49f   : > { %8102 = vmatpush1.bf16.msra.mxu0 %v9892_v11  ;;  %v9948_v11 = vcombine.low %v1893_v20, %v1897_v19  ;;  %v1950_v20 = vld [vmem:[#allocation6 + $0x1dd8] sm:$0xff] }
 0x4a0   : > { %8430 = vmatpush1.bf16.msra.mxu1 %v9894_v54  ;;  %8103 = vmatprep.subr.bf16.mxu0 %v9901_v63  ;;  %v9950_v54 = vcombine.low %v1894_v39, %v1898_v3  ;;  %v9957_v63 = vcombine.high %v1901_v56, %v1905_v17  ;;  %v1954_v19 = vld [vmem:[#allocation6 + $0x1df8] sm:$0xff]  ;;  %v9998_v3 = vcombine.low %v1942_v57, %v1946_v55 }
 0x4a1   : > { %8431 = vmatprep.subr.bf16.mxu1 %v9903_v49  ;;  %v9959_v49 = vcombine.high %v1902_v0, %v1906_v8 }
 0x4a3   : > { %8104 = vmatpush1.bf16.msra.mxu0 %v9900_v33  ;;  %v9956_v33 = vcombine.low %v1901_v56, %v1905_v17  ;;  %v1958_v56 = vld [vmem:[#allocation6 + $0x1e18] sm:$0xff] }
 0x4a4   : > { %8432 = vmatpush1.bf16.msra.mxu1 %v9902_v35  ;;  %8105 = vmatprep.subr.bf16.mxu0 %v9909_v27  ;;  %v9958_v35 = vcombine.low %v1902_v0, %v1906_v8  ;;  %v9965_v27 = vcombine.high %v1909_v48, %v1913_v36  ;;  %v1962_v17 = vld [vmem:[#allocation6 + $0x1e38] sm:$0xff]  ;;  %v10006_v8 = vcombine.low %v1950_v20, %v1954_v19 }
 0x4a5   : > { %8433 = vmatprep.subr.bf16.mxu1 %v9911_v14  ;;  %v9967_v14 = vcombine.high %v1910_v7, %v1914_v31 }
 0x4a7   : > { %8106 = vmatpush1.bf16.msra.mxu0 %v9908_v28  ;;  %v9964_v28 = vcombine.low %v1909_v48, %v1913_v36  ;;  %v1966_v48 = vld [vmem:[#allocation6 + $0x1e58] sm:$0xff] }
 0x4a8   : > { %8434 = vmatpush1.bf16.msra.mxu1 %v9910_v30  ;;  %8107 = vmatprep.subr.bf16.mxu0 %v9917_v13  ;;  %v9973_v30 = vcombine.high %v1917_v24, %v1921_v32  ;;  %v9975_v13 = vcombine.high %v1918_v61, %v1922_v21  ;;  %v1970_v36 = vld [vmem:[#allocation6 + $0x1e78] sm:$0xff] }
 0x4a9   : > { %8435 = vmatprep.subr.bf16.mxu1 %v9919_v37  ;;  %v1925_v37 = vld [vmem:[#allocation6 + $0x1d10] sm:$0xff]  ;;  %v1974_v24 = vld [vmem:[#allocation6 + $0x1e98] sm:$0xff] }
 0x4aa   : > { %v9980_v40 = vcombine.low %v1925_v37, %v1929_v4  ;;  %v1978_v32 = vld [vmem:[#allocation6 + $0x1eb8] sm:$0xff] }
 0x4ab   : > { %8108 = vmatpush1.bf16.msra.mxu0 %v9916_v1  ;;  %v9974_v1 = vcombine.low %v1918_v61, %v1922_v21  ;;  %v10022_v21 = vcombine.low %v1966_v48, %v1970_v36 }
 0x4ac   : > { %8436 = vmatpush1.bf16.msra.mxu1 %v9918_v51  ;;  %8109 = vmatprep.subr.bf16.mxu0 %v9925_v22  ;;  %v9981_v51 = vcombine.high %v1925_v37, %v1929_v4  ;;  %v1933_v22 = vld [vmem:[#allocation6 + $0x1d50] sm:$0xff]  ;;  %v1982_v37 = vld [vmem:[#allocation6 + $0x1ed8] sm:$0xff] }
 0x4ad   : > { %8437 = vmatprep.subr.bf16.mxu1 %v9927_v9  ;;  %v1937_v9 = vld [vmem:[#allocation6 + $0x1d70] sm:$0xff]  ;;  %v1986_v4 = vld [vmem:[#allocation6 + $0x1ef8] sm:$0xff] }
 0x4ae   : > { %v9988_v29 = vcombine.low %v1933_v22, %v1937_v9 }
 0x4af   : > { %8110 = vmatpush1.bf16.msra.mxu0 %v9924_v16  ;;  %v9989_v16 = vcombine.high %v1933_v22, %v1937_v9  ;;  %v1990_v22 = vld [vmem:[#allocation6 + $0x1f18] sm:$0xff] }
 0x4b0   : > { %8438 = vmatpush1.bf16.msra.mxu1 %v9926_v34  ;;  %8111 = vmatprep.subr.bf16.mxu0 %v9933_v5  ;;  %v9991_v34 = vcombine.high %v1934_v26, %v1938_v50  ;;  %v1941_v5 = vld [vmem:[#allocation6 + $0x1d90] sm:$0xff]  ;;  %v1994_v9 = vld [vmem:[#allocation6 + $0x1f38] sm:$0xff]  ;;  %v10038_v50 = vcombine.low %v1982_v37, %v1986_v4 }
 0x4b1   : > { %8439 = vmatprep.subr.bf16.mxu1 %v9935_v41  ;;  %v1945_v41 = vld [vmem:[#allocation6 + $0x1db0] sm:$0xff] }
 0x4b2   : > { %v9996_v39 = vcombine.low %v1941_v5, %v1945_v41 }
 0x4b3   : > { %8112 = vmatpush1.bf16.msra.mxu0 %v9932_v58  ;;  %v9997_v58 = vcombine.high %v1941_v5, %v1945_v41  ;;  %v1998_v5 = vld [vmem:[#allocation6 + $0x1f58] sm:$0xff] }
 0x4b4   : > { %8440 = vmatpush1.bf16.msra.mxu1 %v9934_v44  ;;  %8113 = vmatprep.subr.bf16.mxu0 %v9941_v10  ;;  %v9999_v44 = vcombine.high %v1942_v57, %v1946_v55  ;;  %v1949_v10 = vld [vmem:[#allocation6 + $0x1dd0] sm:$0xff]  ;;  %v2002_v41 = vld [vmem:[#allocation6 + $0x1f78] sm:$0xff]  ;;  %v10046_v55 = vcombine.low %v1990_v22, %v1994_v9 }
 0x4b5   : > { %8441 = vmatprep.subr.bf16.mxu1 %v9943_v45  ;;  %v1953_v45 = vld [vmem:[#allocation6 + $0x1df0] sm:$0xff] }
 0x4b6   : > { %v10004_v0 = vcombine.low %v1949_v10, %v1953_v45 }
 0x4b7   : > { %8114 = vmatpush1.bf16.msra.mxu0 %v9940_v6  ;;  %v10005_v6 = vcombine.high %v1949_v10, %v1953_v45  ;;  %v2006_v10 = vld [vmem:[#allocation6 + $0x1f98] sm:$0xff] }
 0x4b8   : > { %8442 = vmatpush1.bf16.msra.mxu1 %v9942_v23  ;;  %8124 = vmatprep.subr.bf16.mxu0 %v9949_v12  ;;  %v10007_v23 = vcombine.high %v1950_v20, %v1954_v19  ;;  %v1957_v12 = vld [vmem:[#allocation6 + $0x1e10] sm:$0xff]  ;;  %v2010_v45 = vld [vmem:[#allocation6 + $0x1fb8] sm:$0xff]  ;;  %v10054_v19 = vcombine.low %v1998_v5, %v2002_v41 }
 0x4b9   : > { %8452 = vmatprep.subr.bf16.mxu1 %v9951_v15  ;;  %v1961_v15 = vld [vmem:[#allocation6 + $0x1e30] sm:$0xff] }
 0x4ba   : > { %8116 = vmatmul.mubr.bf16.vlgmr.msra.gmra.mrb[4].mxu0 %v11545_v43 }
 0x4bb   : > { %8125 = vmatpush1.bf16.msra.mxu0 %v9948_v11  ;;  %8444 = vmatmul.mubr.bf16.vlgmr.msra.gmra.mrb[4].mxu1 %v11545_v43  ;;  %v9966_v43 = vcombine.low %v1910_v7, %v1914_v31  ;;  %v10013_v11 = vcombine.high %v1957_v12, %v1961_v15  ;;  %v10012_v7 = vcombine.low %v1957_v12, %v1961_v15  ;;  %v2027_v12 = vsub.s32 1, %v11361_v42  ;;  %v2014_v15 = vld [vmem:[#allocation6 + $0x1fd8] sm:$0xff] }
 0x4bc   : > { %8453 = vmatpush1.bf16.msra.mxu1 %v9950_v54  ;;  %8126 = vmatprep.subr.bf16.mxu0 %v9957_v63  ;;  %v10015_v54 = vcombine.high %v1958_v56, %v1962_v17  ;;  %v1965_v63 = vld [vmem:[#allocation6 + $0x1e50] sm:$0xff]  ;;  %v10014_v31 = vcombine.low %v1958_v56, %v1962_v17  ;;  %v2018_v56 = vld [vmem:[#allocation6 + $0x1ff8] sm:$0xff]  ;;  %v11598_v17 = vld [vmem:[#allocation8] sm:$0xff] }
 0x4bd   : > { %8454 = vmatprep.subr.bf16.mxu1 %v9959_v49  ;;  %8156 = vmatprep.mubr.bf16.mxu0 %v11547_v46  ;;  %v1969_v49 = vld [vmem:[#allocation6 + $0x1e70] sm:$0xff] }
 0x4be   : > { %8484 = vmatprep.mubr.bf16.mxu1 %v11547_v46  ;;  %v9983_v46 = vcombine.high %v1926_v59, %v1930_v25  ;;  %v10020_v61 = vcombine.low %v1965_v63, %v1969_v49  ;;  %v10030_v25 = vcombine.low %v1974_v24, %v1978_v32 }
 0x4bf   : > { %8127 = vmatpush1.bf16.msra.mxu0 %v9956_v33  ;;  %v10021_v33 = vcombine.high %v1965_v63, %v1969_v49  ;;  %v10071_v63 = vcombine.high %v2014_v15, %v2018_v56  ;;  %v8517_v49 = vld [vmem:[#allocation9 + $0x80] sm:$0xff] }
 0x4c0   : > { %8455 = vmatpush1.bf16.msra.mxu1 %v9958_v35  ;;  %8128 = vmatprep.subr.bf16.mxu0 %v9965_v27  ;;  %v10023_v35 = vcombine.high %v1966_v48, %v1970_v36  ;;  %v1973_v27 = vld [vmem:[#allocation6 + $0x1e90] sm:$0xff]  ;;  %v2028_v36 = vrot.slane %v11598_v17, %v2027_v12 }
 0x4c1   : > { %8456 = vmatprep.subr.bf16.mxu1 %v9967_v14  ;;  %v1977_v14 = vld [vmem:[#allocation6 + $0x1eb0] sm:$0xff] }
 0x4c2   : > { %v10028_v59 = vcombine.low %v1973_v27, %v1977_v14  ;;  %v8518_v48 = vld [vmem:[#allocation9 + $0x88] sm:$0xff] }
 0x4c3   : > { %8129 = vmatpush1.bf16.msra.mxu0 %v9964_v28  ;;  %v10029_v28 = vcombine.high %v1973_v27, %v1977_v14  ;;  %v10070_v27 = vcombine.low %v2014_v15, %v2018_v56  ;;  %v10218_v14 = vpack.c.bf16 %v8518_v48, %v8517_v49  ;;  %v8540_v15 = vld [vmem:[#allocation9 + $0x138] sm:$0xff]  ;;  %v8525_v56 = vld [vmem:[#allocation9 + $0xc0] sm:$0xff] }
 0x4c4   : > { %8457 = vmatpush1.bf16.msra.mxu1 %v9966_v43  ;;  %8130 = vmatprep.subr.bf16.mxu0 %v9973_v30  ;;  %v10031_v43 = vcombine.high %v1974_v24, %v1978_v32  ;;  %v1981_v30 = vld [vmem:[#allocation6 + $0x1ed0] sm:$0xff]  ;;  %v8501_v24 = vld [vmem:[#allocation9] sm:$0xff] }
 0x4c5   : > { %8458 = vmatprep.subr.bf16.mxu1 %v9975_v13  ;;  %v1985_v13 = vld [vmem:[#allocation6 + $0x1ef0] sm:$0xff]  ;;  %v8509_v48 = vld [vmem:[#allocation9 + $0x40] sm:$0xff] }
 0x4c6   : > { %v10036_v26 = vcombine.low %v1981_v30, %v1985_v13  ;;  %v8502_v32 = vld [vmem:[#allocation9 + $0x8] sm:$0xff] }
 0x4c7   : > { %8131 = vmatpush1.bf16.msra.mxu0 %v9972_v47  ;;  %v10037_v47 = vcombine.high %v1981_v30, %v1985_v13  ;;  %v8519_v30 = vld [vmem:[#allocation9 + $0x90] sm:$0xff]  ;;  %v8520_v13 = vld [vmem:[#allocation9 + $0x98] sm:$0xff] }
 0x4c8   : > { %8459 = vmatpush1.bf16.msra.mxu1 %v9974_v1  ;;  %8132 = vmatprep.subr.bf16.mxu0 %v9981_v51  ;;  %v10039_v1 = vcombine.high %v1982_v37, %v1986_v4  ;;  %v1989_v51 = vld [vmem:[#allocation6 + $0x1f10] sm:$0xff]  ;;  %v10220_v4 = vpack.c.bf16 %v8502_v32, %v8501_v24  ;;  %v8560_v24 = vld [vmem:[#allocation9 + $0x1d8] sm:$0xff] }
 0x4c9   : > { %8460 = vmatprep.subr.bf16.mxu1 %v9983_v46  ;;  %v1993_v46 = vld [vmem:[#allocation6 + $0x1f30] sm:$0xff] }
 0x4ca   : > { %v10044_v57 = vcombine.low %v1989_v51, %v1993_v46 }
 0x4cb   : > { %8133 = vmatpush1.bf16.msra.mxu0 %v9980_v40  ;;  %v10045_v40 = vcombine.high %v1989_v51, %v1993_v46  ;;  %v8504_v51 = vld [vmem:[#allocation9 + $0x18] sm:$0xff]  ;;  %v8535_v46 = vld [vmem:[#allocation9 + $0x110] sm:$0xff] }
 0x4cc   : > { %8461 = vmatpush1.bf16.msra.mxu1 %v9982_v53  ;;  %8134 = vmatprep.subr.bf16.mxu0 %v9989_v16  ;;  %v10047_v53 = vcombine.high %v1990_v22, %v1994_v9  ;;  %v1997_v16 = vld [vmem:[#allocation6 + $0x1f50] sm:$0xff]  ;;  %v10222_v22 = vpack.c.bf16 %v8520_v13, %v8519_v30  ;;  %v8536_v9 = vld [vmem:[#allocation9 + $0x118] sm:$0xff]  ;;  %v8543_v30 = vld [vmem:[#allocation9 + $0x150] sm:$0xff] }
 0x4cd   : > { %8462 = vmatprep.subr.bf16.mxu1 %v9991_v34  ;;  %v2001_v34 = vld [vmem:[#allocation6 + $0x1f70] sm:$0xff] }
 0x4ce   : > { %v10052_v20 = vcombine.low %v1997_v16, %v2001_v34 }
 0x4cf   : > { %8135 = vmatpush1.bf16.msra.mxu0 %v9988_v29  ;;  %v10053_v29 = vcombine.high %v1997_v16, %v2001_v34 }
 0x4d0   : > { %8463 = vmatpush1.bf16.msra.mxu1 %v9990_v52  ;;  %8136 = vmatprep.subr.bf16.mxu0 %v9997_v58  ;;  %v10055_v52 = vcombine.high %v1998_v5, %v2002_v41  ;;  %v2005_v58 = vld [vmem:[#allocation6 + $0x1f90] sm:$0xff]  ;;  %v10256_v5 = vpack.c.bf16 %v8536_v9, %v8535_v46  ;;  %v8513_v9 = vld [vmem:[#allocation9 + $0x60] sm:$0xff] }
 0x4d1   : > { %8464 = vmatprep.subr.bf16.mxu1 %v9999_v44  ;;  %v2009_v44 = vld [vmem:[#allocation6 + $0x1fb0] sm:$0xff] }
 0x4d3   : > { %8137 = vmatpush1.bf16.msra.mxu0 %v9996_v39  ;;  %v10061_v39 = vcombine.high %v2005_v58, %v2009_v44 }
 0x4d4   : > { %8465 = vmatpush1.bf16.msra.mxu1 %v9998_v3  ;;  %8138 = vmatprep.subr.bf16.mxu0 %v10005_v6  ;;  %v10063_v3 = vcombine.high %v2006_v10, %v2010_v45  ;;  %v2013_v6 = vld [vmem:[#allocation6 + $0x1fd0] sm:$0xff] }
 0x4d5   : > { %8466 = vmatprep.subr.bf16.mxu1 %v10007_v23  ;;  %v2017_v23 = vld [vmem:[#allocation6 + $0x1ff0] sm:$0xff] }
 0x4d7   : > { %8139 = vmatpush1.bf16.msra.mxu0 %v10004_v0  ;;  %v2035_v0 = vsub.s32 3, %v11361_v42 }
 0x4d8   : > { %8467 = vmatpush1.bf16.msra.mxu1 %v10006_v8  ;;  %8140 = vmatprep.subr.bf16.mxu0 %v10013_v11  ;;  %v10060_v8 = vcombine.low %v2005_v58, %v2009_v44  ;;  %v10062_v11 = vcombine.low %v2006_v10, %v2010_v45  ;;  %v8538_v58 = vld [vmem:[#allocation9 + $0x128] sm:$0xff]  ;;  %v8523_v44 = vld [vmem:[#allocation9 + $0xb0] sm:$0xff]  ;;  %v8524_v10 = vld [vmem:[#allocation9 + $0xb8] sm:$0xff] }
 0x4d9   : > { %8468 = vmatprep.subr.bf16.mxu1 %v10015_v54  ;;  %v10069_v54 = vcombine.high %v2013_v6, %v2017_v23  ;;  %v8555_v45 = vld [vmem:[#allocation9 + $0x1b0] sm:$0xff] }
 0x4db   : > { %8141 = vmatpush1.bf16.msra.mxu0 %v10012_v7  ;;  %v8549_v7 = vld [vmem:[#allocation9 + $0x180] sm:$0xff] }
 0x4dc   : > { %8469 = vmatpush1.bf16.msra.mxu1 %v10014_v31  ;;  %8142 = vmatprep.subr.bf16.mxu0 %v10021_v33  ;;  %v8550_v31 = vld [vmem:[#allocation9 + $0x188] sm:$0xff]  ;;  %v2036_v33 = vrot.slane %v11598_v17, %v2035_v0 }
 0x4dd   : > { %8470 = vmatprep.subr.bf16.mxu1 %v10023_v35  ;;  %v10068_v35 = vcombine.low %v2013_v6, %v2017_v23  ;;  %v8508_v6 = vld [vmem:[#allocation9 + $0x38] sm:$0xff]  ;;  %v8539_v23 = vld [vmem:[#allocation9 + $0x130] sm:$0xff]  ;;  %v8526_v0 = vld [vmem:[#allocation9 + $0xc8] sm:$0xff] }
 0x4de   : > { %v10349_v37 = vadd.f32 %v11579_v2, %v2036_v33  ;;  %v8553_v2 = vld [vmem:[#allocation9 + $0x1a0] sm:$0xff]  ;;  %v10234_v49 = vpack.c.bf16 %v8526_v0, %v8525_v56  ;;  %v8542_v33 = vld [vmem:[#allocation9 + $0x148] sm:$0xff] }
 0x4df   : > { %8143 = vmatpush1.bf16.msra.mxu0 %v10020_v61  ;;  %v10250_v61 = vpack.c.bf16 %v8550_v31, %v8549_v7  ;;  %v8541_v7 = vld [vmem:[#allocation9 + $0x140] sm:$0xff]  ;;  %v8566_v0 = vld [vmem:[#allocation9 + $0x208] sm:$0xff] }
 0x4e0   : > { %8471 = vmatpush1.bf16.msra.mxu1 %v10022_v21  ;;  %8144 = vmatprep.subr.bf16.mxu0 %v10029_v28  ;;  %v8533_v21 = vld [vmem:[#allocation9 + $0x100] sm:$0xff]  ;;  %v8534_v28 = vld [vmem:[#allocation9 + $0x108] sm:$0xff]  ;;  %v8496_v16 = vmax.f32 %v10349_v37, 0.0  ;;  %v8544_v37 = vld [vmem:[#allocation9 + $0x158] sm:$0xff] }
 0x4e1   : > { %8472 = vmatprep.subr.bf16.mxu1 %v10031_v43  ;;  %v10347_v43 = vadd.f32 %v11577_v38, %v2028_v36  ;;  %v8510_v36 = vld [vmem:[#allocation9 + $0x48] sm:$0xff]  ;;  %v10272_v46 = vpack.c.bf16 %v8544_v37, %v8543_v30  ;;  %v8565_v56 = vld [vmem:[#allocation9 + $0x200] sm:$0xff] }
 0x4e2   : > { %v10236_v32 = vpack.c.bf16 %v8510_v36, %v8509_v48  ;;  %v8584_v48 = vld [vmem:[#allocation9 + $0x298] sm:$0xff]  ;;  %v8615_v36 = vld [vmem:[#allocation9 + $0x390] sm:$0xff]  ;;  %v8618_v30 = vld [vmem:[#allocation9 + $0x3a8] sm:$0xff] }
 0x4e3   : > { %8145 = vmatpush1.bf16.msra.mxu0 %v10028_v59  ;;  %v8551_v59 = vld [vmem:[#allocation9 + $0x190] sm:$0xff]  ;;  %v8494_v38 = vmax.f32 %v10347_v43, 0.0  ;;  %v8512_v43 = vld [vmem:[#allocation9 + $0x58] sm:$0xff] }
 0x4e4   : > { %8473 = vmatpush1.bf16.msra.mxu1 %v10030_v25  ;;  %8146 = vmatprep.subr.bf16.mxu0 %v10037_v47  ;;  %v8552_v25 = vld [vmem:[#allocation9 + $0x198] sm:$0xff]  ;;  %v10252_v47 = vpack.c.bf16 %v8534_v28, %v8533_v21  ;;  %v8511_v28 = vld [vmem:[#allocation9 + $0x50] sm:$0xff] }
 0x4e5   : > { %8474 = vmatprep.subr.bf16.mxu1 %v10039_v1  ;;  %v8503_v1 = vld [vmem:[#allocation9 + $0x10] sm:$0xff] }
 0x4e6   : > { %v10224_v34 = vpack.c.bf16 %v8504_v51, %v8503_v1  ;;  %v10240_v1 = vpack.c.bf16 %v8512_v43, %v8511_v28  ;;  %v2023_v51 = vsub.s32 0, %v11361_v42  ;;  %v8586_v28 = vld [vmem:[#allocation9 + $0x2a8] sm:$0xff]  ;;  %v8617_v43 = vld [vmem:[#allocation9 + $0x3a0] sm:$0xff] }
 0x4e7   : > { %8147 = vmatpush1.bf16.msra.mxu0 %v10036_v26  ;;  %v8521_v26 = vld [vmem:[#allocation9 + $0xa0] sm:$0xff] }
 0x4e8   : > { %8475 = vmatpush1.bf16.msra.mxu1 %v10038_v50  ;;  %8148 = vmatprep.subr.bf16.mxu0 %v10045_v40  ;;  %v8522_v50 = vld [vmem:[#allocation9 + $0xa8] sm:$0xff]  ;;  %v10254_v40 = vpack.c.bf16 %v8552_v25, %v8551_v59  ;;  %v8561_v25 = vld [vmem:[#allocation9 + $0x1e0] sm:$0xff] }
 0x4e9   : > { %8476 = vmatprep.subr.bf16.mxu1 %v10047_v53  ;;  %v8554_v53 = vld [vmem:[#allocation9 + $0x1a8] sm:$0xff]  ;;  %v10226_v41 = vpack.c.bf16 %v8522_v50, %v8521_v26  ;;  %v8545_v50 = vld [vmem:[#allocation9 + $0x160] sm:$0xff] }
 0x4ea   : > { %v8530_v59 = vld [vmem:[#allocation9 + $0xe8] sm:$0xff] }
 0x4eb   : > { %8149 = vmatpush1.bf16.msra.mxu0 %v10044_v57  ;;  %v8505_v57 = vld [vmem:[#allocation9 + $0x20] sm:$0xff]  ;;  %v8514_v26 = vld [vmem:[#allocation9 + $0x68] sm:$0xff] }
 0x4ec   : > { %8477 = vmatpush1.bf16.msra.mxu1 %v10046_v55  ;;  %8150 = vmatprep.subr.bf16.mxu0 %v10053_v29  ;;  %v8506_v55 = vld [vmem:[#allocation9 + $0x28] sm:$0xff]  ;;  %v8537_v29 = vld [vmem:[#allocation9 + $0x120] sm:$0xff] }
 0x4ed   : > { %8478 = vmatprep.subr.bf16.mxu1 %v10055_v52  ;;  %v10258_v52 = vpack.c.bf16 %v8554_v53, %v8553_v2  ;;  %v8546_v2 = vld [vmem:[#allocation9 + $0x168] sm:$0xff]  ;;  %v8531_v53 = vld [vmem:[#allocation9 + $0xf0] sm:$0xff] }
 0x4ef   : > { %8151 = vmatpush1.bf16.msra.mxu0 %v10052_v20  ;;  %v8556_v20 = vld [vmem:[#allocation9 + $0x1b8] sm:$0xff] }
 0x4f0   : > { %8479 = vmatpush1.bf16.msra.mxu1 %v10054_v19  ;;  %8152 = vmatprep.subr.bf16.mxu0 %v10061_v39  ;;  %v10260_v19 = vpack.c.bf16 %v8538_v58, %v8537_v29  ;;  %v10230_v39 = vpack.c.bf16 %v8524_v10, %v8523_v44  ;;  %v10262_v12 = vpack.c.bf16 %v8556_v20, %v8555_v45  ;;  %v8516_v58 = vld [vmem:[#allocation9 + $0x78] sm:$0xff]  ;;  %v8547_v44 = vld [vmem:[#allocation9 + $0x170] sm:$0xff] }
 0x4f1   : > { %8480 = vmatprep.subr.bf16.mxu1 %v10063_v3  ;;  %v8507_v3 = vld [vmem:[#allocation9 + $0x30] sm:$0xff]  ;;  %v8548_v20 = vld [vmem:[#allocation9 + $0x178] sm:$0xff] }
 0x4f3   : > { %8153 = vmatpush1.bf16.msra.mxu0 %v10060_v8  ;;  %v8557_v8 = vld [vmem:[#allocation9 + $0x1c0] sm:$0xff] }
 0x4f4   : > { %8481 = vmatpush1.bf16.msra.mxu1 %v10062_v11  ;;  %8154 = vmatprep.subr.bf16.mxu0 %v10069_v54  ;;  %v8558_v11 = vld [vmem:[#allocation9 + $0x1c8] sm:$0xff]  ;;  %v10232_v54 = vpack.c.bf16 %v8508_v6, %v8507_v3 }
 0x4f5   : > { %8482 = vmatprep.subr.bf16.mxu1 %v10071_v63  ;;  %v10264_v63 = vpack.c.bf16 %v8540_v15, %v8539_v23  ;;  %v10266_v31 = vpack.c.bf16 %v8558_v11, %v8557_v8  ;;  %v8614_v3 = vld [vmem:[#allocation9 + $0x388] sm:$0xff]  ;;  %v8597_v8 = vld [vmem:[#allocation9 + $0x300] sm:$0xff] }
 0x4f7   : > { %8155 = vmatpush1.bf16.msra.mxu0 %v10068_v35  ;;  %v8527_v35 = vld [vmem:[#allocation9 + $0xd0] sm:$0xff] }
 0x4f8   : > { %8483 = vmatpush1.bf16.msra.mxu1 %v10070_v27  ;;  %10219 = vmatprep.subr.bf16.mxu0 %v10218_v14  ;;  %v8528_v27 = vld [vmem:[#allocation9 + $0xd8] sm:$0xff]  ;;  %v8559_v14 = vld [vmem:[#allocation9 + $0x1d0] sm:$0xff] }
 0x4f9   : > { %10251 = vmatprep.subr.bf16.mxu1 %v10250_v61  ;;  %v10268_v61 = vpack.c.bf16 %v8542_v33, %v8541_v7  ;;  %v10238_v21 = vpack.c.bf16 %v8528_v27, %v8527_v35  ;;  %v10270_v13 = vpack.c.bf16 %v8560_v24, %v8559_v14  ;;  %v8616_v7 = vld [vmem:[#allocation9 + $0x398] sm:$0xff]  ;;  %v8567_v27 = vld [vmem:[#allocation9 + $0x210] sm:$0xff] }
 0x4fa   : > { %8157 = vmatmul.mubr.bf16.vlgmr.msra.gmra.mrb[4].mxu0 %v11555_v62  ;;  %v8568_v14 = vld [vmem:[#allocation9 + $0x218] sm:$0xff]  ;;  %v8599_v24 = vld [vmem:[#allocation9 + $0x310] sm:$0xff] }
 0x4fb   : > { %8485 = vmatmul.mubr.bf16.vlgmr.msra.gmra.mrb[4].mxu1 %v11555_v62  ;;  %10221 = vmatpush3.bf16.msra.mxu0 %v10220_v4  ;;  %v10228_v62 = vpack.c.bf16 %v8506_v55, %v8505_v57  ;;  %v8529_v4 = vld [vmem:[#allocation9 + $0xe0] sm:$0xff]  ;;  %v2024_v57 = vrot.slane %v11598_v17, %v2023_v51  ;;  %v10276_v55 = vpack.c.bf16 %v8546_v2, %v8545_v50  ;;  %v8602_v51 = vld [vmem:[#allocation9 + $0x328] sm:$0xff]  ;;  %v8571_v2 = vld [vmem:[#allocation9 + $0x230] sm:$0xff] }
 0x4fc   : > { %8700 = vmatprep.mubr.f32.mxu0 %v8494_v38  ;;  %10253 = vmatpush3.bf16.msra.mxu1 %v10252_v47  ;;  %v8562_v47 = vld [vmem:[#allocation9 + $0x1e8] sm:$0xff]  ;;  %v2031_v38 = vsub.s32 2, %v11361_v42 }
 0x4fd   : > { %8770 = vmatprep.mubr.f32.mxu1 %v8496_v16  ;;  %10223 = vmatprep.subr.bf16.mxu0 %v10222_v22  ;;  %v10242_v22 = vpack.c.bf16 %v8530_v59, %v8529_v4  ;;  %v8532_v16 = vld [vmem:[#allocation9 + $0xf8] sm:$0xff]  ;;  %v10346_v23 = vadd.f32 %v11573_v18, %v2024_v57  ;;  %v8569_v59 = vld [vmem:[#allocation9 + $0x220] sm:$0xff]  ;;  %v8590_v57 = vld [vmem:[#allocation9 + $0x2c8] sm:$0xff] }
 0x4fe   : > { %10255 = vmatprep.subr.bf16.mxu1 %v10254_v40  ;;  %v10274_v40 = vpack.c.bf16 %v8562_v47, %v8561_v25  ;;  %v10246_v29 = vpack.c.bf16 %v8532_v16, %v8531_v53  ;;  %v2032_v10 = vrot.slane %v11598_v17, %v2031_v38  ;;  %v8570_v25 = vld [vmem:[#allocation9 + $0x228] sm:$0xff]  ;;  %v8601_v47 = vld [vmem:[#allocation9 + $0x320] sm:$0xff]  ;;  %v8572_v53 = vld [vmem:[#allocation9 + $0x238] sm:$0xff] }
 0x4ff   : > { %10225 = vmatpush3.bf16.msra.mxu0 %v10224_v34  ;;  %v8563_v34 = vld [vmem:[#allocation9 + $0x1f0] sm:$0xff]  ;;  %v8493_v33 = vmax.f32 %v10346_v23, 0.0  ;;  %v10292_v50 = vpack.c.bf16 %v8570_v25, %v8569_v59  ;;  %v10324_v38 = vpack.c.bf16 %v8602_v51, %v8601_v47  ;;  %v8624_v23 = vld [vmem:[#allocation9 + $0x3d8] sm:$0xff] }
 0x500   : > { %10257 = vmatpush3.bf16.msra.mxu1 %v10256_v5  ;;  %10227 = vmatprep.subr.bf16.mxu0 %v10226_v41  ;;  %v8564_v5 = vld [vmem:[#allocation9 + $0x1f8] sm:$0xff]  ;;  %v10244_v41 = vpack.c.bf16 %v8514_v26, %v8513_v9  ;;  %v10348_v11 = vadd.f32 %v11575_v60, %v2032_v10  ;;  %v10318_v60 = vpack.c.bf16 %v8616_v7, %v8615_v36  ;;  %v8619_v9 = vld [vmem:[#allocation9 + $0x3b0] sm:$0xff]  ;;  %v8573_v10 = vld [vmem:[#allocation9 + $0x240] sm:$0xff] }
 0x501   : > { %10259 = vmatprep.subr.bf16.mxu1 %v10258_v52  ;;  %v8515_v52 = vld [vmem:[#allocation9 + $0x70] sm:$0xff]  ;;  %v10278_v45 = vpack.c.bf16 %v8564_v5, %v8563_v34  ;;  %v8620_v26 = vld [vmem:[#allocation9 + $0x3b8] sm:$0xff]  ;;  %v8625_v36 = vld [vmem:[#allocation9 + $0x3e0] sm:$0xff] }
 0x502   : > { %v10248_v6 = vpack.c.bf16 %v8516_v58, %v8515_v52  ;;  %v8603_v16 = vld [vmem:[#allocation9 + $0x330] sm:$0xff]  ;;  %v10326_v34 = vpack.c.bf16 %v8620_v26, %v8619_v9  ;;  %v8604_v5 = vld [vmem:[#allocation9 + $0x338] sm:$0xff]  ;;  %v10296_v52 = vpack.c.bf16 %v8572_v53, %v8571_v2  ;;  %v8626_v7 = vld [vmem:[#allocation9 + $0x3e8] sm:$0xff]  ;;  %v2043_v9 = vsub.s32 5, %v11361_v42 }
 0x503   : > { %10229 = vmatpush3.bf16.msra.mxu0 %v10228_v62  ;;  %v8581_v62 = vld [vmem:[#allocation9 + $0x280] sm:$0xff]  ;;  %v10328_v58 = vpack.c.bf16 %v8604_v5, %v8603_v16  ;;  %v8611_v47 = vld [vmem:[#allocation9 + $0x370] sm:$0xff]  ;;  %v2051_v26 = vsub.s32 7, %v11361_v42 }
 0x504   : > { %10261 = vmatpush3.bf16.msra.mxu1 %v10260_v19  ;;  %10231 = vmatprep.subr.bf16.mxu0 %v10230_v39  ;;  %v8582_v19 = vld [vmem:[#allocation9 + $0x288] sm:$0xff]  ;;  %v8613_v39 = vld [vmem:[#allocation9 + $0x380] sm:$0xff] }
 0x505   : > { %10263 = vmatprep.subr.bf16.mxu1 %v10262_v12  ;;  %v10280_v12 = vpack.c.bf16 %v8548_v20, %v8547_v44  ;;  %v10282_v15 = vpack.c.bf16 %v8582_v19, %v8581_v62  ;;  %v8605_v20 = vld [vmem:[#allocation9 + $0x340] sm:$0xff]  ;;  %v8606_v19 = vld [vmem:[#allocation9 + $0x348] sm:$0xff]  ;;  %v2052_v2 = vrot.slane %v11598_v17, %v2051_v26 }
 0x507   : > { %10233 = vmatpush3.bf16.msra.mxu0 %v10232_v54  ;;  %v10314_v54 = vpack.c.bf16 %v8614_v3, %v8613_v39  ;;  %v8591_v39 = vld [vmem:[#allocation9 + $0x2d0] sm:$0xff]  ;;  %v8592_v3 = vld [vmem:[#allocation9 + $0x2d8] sm:$0xff] }
 0x508   : > { %10265 = vmatpush3.bf16.msra.mxu1 %v10264_v63  ;;  %10235 = vmatprep.subr.bf16.mxu0 %v10234_v49  ;;  %v8598_v63 = vld [vmem:[#allocation9 + $0x308] sm:$0xff]  ;;  %v8583_v49 = vld [vmem:[#allocation9 + $0x290] sm:$0xff] }
 0x509   : > { %10267 = vmatprep.subr.bf16.mxu1 %v10266_v31  ;;  %v10284_v31 = vpack.c.bf16 %v8566_v0, %v8565_v56  ;;  %v10316_v18 = vpack.c.bf16 %v8598_v63, %v8597_v8  ;;  %v10286_v35 = vpack.c.bf16 %v8584_v48, %v8583_v49  ;;  %v10302_v56 = vpack.c.bf16 %v8592_v3, %v8591_v39  ;;  %v8575_v0 = vld [vmem:[#allocation9 + $0x250] sm:$0xff]  ;;  %v8576_v8 = vld [vmem:[#allocation9 + $0x258] sm:$0xff]  ;;  %v8593_v49 = vld [vmem:[#allocation9 + $0x2e0] sm:$0xff] }
 0x50a   : > { %v8608_v63 = vld [vmem:[#allocation9 + $0x358] sm:$0xff]  ;;  %v8594_v48 = vld [vmem:[#allocation9 + $0x2e8] sm:$0xff]  ;;  %v10072_v39 = vld [vmem:[#allocation11] ss:$0 sm:$0xff] }
 0x50b   : > { %10237 = vmatpush3.bf16.msra.mxu0 %v10236_v32  ;;  %v8495_v32 = vmax.f32 %v10348_v11, 0.0  ;;  %v8607_v11 = vld [vmem:[#allocation9 + $0x350] sm:$0xff] }
 0x50c   : > { %10269 = vmatpush3.bf16.msra.mxu1 %v10268_v61  ;;  %10239 = vmatprep.subr.bf16.mxu0 %v10238_v21  ;;  %v8600_v61 = vld [vmem:[#allocation9 + $0x318] sm:$0xff]  ;;  %v8585_v21 = vld [vmem:[#allocation9 + $0x2a0] sm:$0xff] }
 0x50d   : > { %10271 = vmatprep.subr.bf16.mxu1 %v10270_v13  ;;  %v10288_v13 = vpack.c.bf16 %v8568_v14, %v8567_v27  ;;  %v10320_v37 = vpack.c.bf16 %v8600_v61, %v8599_v24  ;;  %v10290_v4 = vpack.c.bf16 %v8586_v28, %v8585_v21  ;;  %v8577_v27 = vld [vmem:[#allocation9 + $0x260] sm:$0xff]  ;;  %v8578_v14 = vld [vmem:[#allocation9 + $0x268] sm:$0xff]  ;;  %v8595_v21 = vld [vmem:[#allocation9 + $0x2f0] sm:$0xff] }
 0x50e   : > { %v8609_v24 = vld [vmem:[#allocation9 + $0x360] sm:$0xff]  ;;  %v8596_v28 = vld [vmem:[#allocation9 + $0x2f8] sm:$0xff] }
 0x50f   : > { %10241 = vmatpush3.bf16.msra.mxu0 %v10240_v1  ;;  %v10322_v1 = vpack.c.bf16 %v8618_v30, %v8617_v43  ;;  %v8627_v43 = vld [vmem:[#allocation9 + $0x3f0] sm:$0xff]  ;;  %v10310_v30 = vpack.c.bf16 %v8596_v28, %v8595_v21 }
 0x510   : > { %10273 = vmatpush3.bf16.msra.mxu1 %v10272_v46  ;;  %10243 = vmatprep.subr.bf16.mxu0 %v10242_v22  ;;  %v8587_v46 = vld [vmem:[#allocation9 + $0x2b0] sm:$0xff]  ;;  %v8588_v22 = vld [vmem:[#allocation9 + $0x2b8] sm:$0xff] }
 0x511   : > { %10275 = vmatprep.subr.bf16.mxu1 %v10274_v40  ;;  %v10294_v40 = vpack.c.bf16 %v8588_v22, %v8587_v46  ;;  %v2039_v46 = vsub.s32 4, %v11361_v42  ;;  %v2047_v22 = vsub.s32 6, %v11361_v42 }
 0x513   : > { %10245 = vmatpush3.bf16.msra.mxu0 %v10244_v41  ;;  %v8589_v41 = vld [vmem:[#allocation9 + $0x2c0] sm:$0xff] }
 0x514   : > { %10277 = vmatpush3.bf16.msra.mxu1 %v10276_v55  ;;  %10247 = vmatprep.subr.bf16.mxu0 %v10246_v29  ;;  %v8621_v55 = vld [vmem:[#allocation9 + $0x3c0] sm:$0xff]  ;;  %v8622_v29 = vld [vmem:[#allocation9 + $0x3c8] sm:$0xff]  ;;  %v10298_v44 = vpack.c.bf16 %v8590_v57, %v8589_v41 }
 0x515   : > { %10279 = vmatprep.subr.bf16.mxu1 %v10278_v45  ;;  %v8574_v45 = vld [vmem:[#allocation9 + $0x248] sm:$0xff]  ;;  %v10330_v62 = vpack.c.bf16 %v8622_v29, %v8621_v55 }
 0x517   : > { %10249 = vmatpush3.bf16.msra.mxu0 %v10248_v6  ;;  %v8623_v6 = vld [vmem:[#allocation9 + $0x3d0] sm:$0xff] }
 0x518   : > { %10281 = vmatpush3.bf16.msra.mxu1 %v10280_v12  ;;  %10283 = vmatprep.subr.bf16.mxu0 %v10282_v15  ;;  %v10300_v12 = vpack.c.bf16 %v8574_v45, %v8573_v10  ;;  %v10332_v15 = vpack.c.bf16 %v8606_v19, %v8605_v20 }
 0x519   : > { %10315 = vmatprep.subr.bf16.mxu1 %v10314_v54  ;;  %v10334_v54 = vpack.c.bf16 %v8624_v23, %v8623_v6 }
 0x51a   : > { %8701 = vmatmul.mubr.f32.vlgmr.msra.gmra.mrb[8].mxu0 %v8493_v33  ;;  %v10336_v33 = vpack.c.bf16 %v8608_v63, %v8607_v11 }
 0x51b   : > { %8771 = vmatmul.mubr.f32.vlgmr.msra.gmra.mrb[8].mxu1 %v8495_v32  ;;  %10285 = vmatpush3.bf16.msra.mxu0 %v10284_v31  ;;  %v10304_v31 = vpack.c.bf16 %v8576_v8, %v8575_v0  ;;  %v10308_v32 = vpack.c.bf16 %v8578_v14, %v8577_v27 }
 0x51c   : > { %10317 = vmatpush3.bf16.msra.mxu1 %v10316_v18  ;;  %10287 = vmatprep.subr.bf16.mxu0 %v10286_v35  ;;  %v10306_v18 = vpack.c.bf16 %v8594_v48, %v8593_v49  ;;  %v10338_v35 = vpack.c.bf16 %v8626_v7, %v8625_v36 }
 0x51d   : > { %10319 = vmatprep.subr.bf16.mxu1 %v10318_v60  ;;  %v8610_v60 = vld [vmem:[#allocation9 + $0x368] sm:$0xff] }
 0x51e   : > { %v10340_v61 = vpack.c.bf16 %v8610_v60, %v8609_v24 }
 0x51f   : > { %10289 = vmatpush3.bf16.msra.mxu0 %v10288_v13  ;;  %v8628_v13 = vld [vmem:[#allocation9 + $0x3f8] sm:$0xff] }
 0x520   : > { %10321 = vmatpush3.bf16.msra.mxu1 %v10320_v37  ;;  %10291 = vmatprep.subr.bf16.mxu0 %v10290_v4  ;;  %v8579_v37 = vld [vmem:[#allocation9 + $0x270] sm:$0xff]  ;;  %v8580_v4 = vld [vmem:[#allocation9 + $0x278] sm:$0xff]  ;;  %v10342_v59 = vpack.c.bf16 %v8628_v13, %v8627_v43 }
 0x521   : > { %10323 = vmatprep.subr.bf16.mxu1 %v10322_v1  ;;  %v10312_v25 = vpack.c.bf16 %v8580_v4, %v8579_v37  ;;  %v8612_v1 = vld [vmem:[#allocation9 + $0x378] sm:$0xff] }
 0x522   : > { %v10344_v51 = vpack.c.bf16 %v8612_v1, %v8611_v47 }
 0x523   : > { %10293 = vmatpush3.bf16.msra.mxu0 %v10292_v50  ;;  %v2040_v50 = vrot.slane %v11598_v17, %v2039_v46 }
 0x524   : > { %10325 = vmatpush3.bf16.msra.mxu1 %v10324_v38  ;;  %10295 = vmatprep.subr.bf16.mxu0 %v10294_v40  ;;  %v2048_v38 = vrot.slane %v11598_v17, %v2047_v22  ;;  %v2044_v40 = vrot.slane %v11598_v17, %v2043_v9 }
 0x525   : > { %10327 = vmatprep.subr.bf16.mxu1 %v10326_v34 }
 0x527   : > { %10297 = vmatpush3.bf16.msra.mxu0 %v10296_v52 }
 0x528   : > { %10329 = vmatpush3.bf16.msra.mxu1 %v10328_v58  ;;  %10299 = vmatprep.subr.bf16.mxu0 %v10298_v44 }
 0x529   : > { %10331 = vmatprep.subr.bf16.mxu1 %v10330_v62 }
 0x52b   : > { %10301 = vmatpush3.bf16.msra.mxu0 %v10300_v12 }
 0x52c   : > { %10333 = vmatpush3.bf16.msra.mxu1 %v10332_v15  ;;  %10303 = vmatprep.subr.bf16.mxu0 %v10302_v56 }
 0x52d   : > { %10335 = vmatprep.subr.bf16.mxu1 %v10334_v54 }
 0x52f   : > { %10305 = vmatpush3.bf16.msra.mxu0 %v10304_v31 }
 0x530   : > { %10337 = vmatpush3.bf16.msra.mxu1 %v10336_v33  ;;  %10307 = vmatprep.subr.bf16.mxu0 %v10306_v18 }
 0x531   : > { %10339 = vmatprep.subr.bf16.mxu1 %v10338_v35 }
 0x533   : > { %10309 = vmatpush3.bf16.msra.mxu0 %v10308_v32 }
 0x534   : > { %10341 = vmatpush3.bf16.msra.mxu1 %v10340_v61  ;;  %10311 = vmatprep.subr.bf16.mxu0 %v10310_v30 }
 0x535   : > { %10343 = vmatprep.subr.bf16.mxu1 %v10342_v59 }
 0x537   : > { %10313 = vmatpush3.bf16.msra.mxu0 %v10312_v25 }
 0x538   : > { %10345 = vmatpush3.bf16.msra.mxu1 %v10344_v51 }
 0x5cd   : > { %v8158_v53 = vpop.f32.mrb[4].mxu0 }
 0x5ce   : > { %v10350_v16 = vadd.f32 %v8158_v53, %v2040_v50  ;;  %v8486_v34 = vpop.f32.mrb[4].mxu1  ;;  %v8160_v5 = vpop.f32.mrb[5].mxu0 }
 0x5cf   : > { %v10352_v41 = vadd.f32 %v8486_v34, %v2048_v38  ;;  %v10351_v57 = vadd.f32 %v8160_v5, %v2044_v40  ;;  %v8488_v55 = vpop.f32.mrb[5].mxu1  ;;  %v8162_v29 = vpop.f32.mrb[6].mxu0 }
 0x5d0   : > { %v10353_v52 = vadd.f32 %v8488_v55, %v2052_v2  ;;  %v8490_v58 = vpop.f32.mrb[6].mxu1  ;;  %v8163_v44 = vpop.f32.mrb[7].mxu0  ;;  %v8497_v45 = vmax.f32 %v10350_v16, 0.0 }
 0x5d1   : > { %v8498_v42 = vmax.f32 %v10351_v57, 0.0  ;;  %v8491_v10 = vpop.f32.mrb[7].mxu1  ;;  %v8499_v62 = vmax.f32 %v10352_v41, 0.0 }
 0x5d2   : > { %v8500_v20 = vmax.f32 %v10353_v52, 0.0 }
 0x5d3   : > { %8840 = vmatprep.mubr.f32.mxu0 %v8498_v42 }
 0x5d4   : > { %8910 = vmatprep.mubr.f32.mxu1 %v8500_v20  ;;  %8841 = vmatmul.mubr.f32.vlgmr.msra.gmra.mrb[10].mxu0 %v8497_v45 }
 0x5d5   : > { %8911 = vmatmul.mubr.f32.vlgmr.msra.gmra.mrb[10].mxu1 %v8499_v62 }
 0x5ed   : > { %v10110_v17 = vpop.f32.mrb[8].mxu0 }
 0x5ee   : > { %v10145_v19 = vpop.f32.mrb[8].mxu1  ;;  %v10111_v3 = vpop.f32.mrb[9].mxu0 }
 0x5ef   : > { %v10112_v6 = vadd.f32 %v10111_v3, %v10110_v17  ;;  %v10146_v23 = vpop.f32.mrb[9].mxu1 }
 0x5f0   : > { %v10147_v12 = vadd.f32 %v10146_v23, %v10145_v19 }
 0x5f1   : > { %v8703_v15 = vadd.f32 %v10112_v6, %v10072_v39 }
 0x5f3   : > { %v8773_v56 = vadd.f32 %v10147_v12, %v8703_v15 }
 0x6a7   : > { %v10180_v0 = vpop.f32.mrb[10].mxu0 }
 0x6a8   : > { %v10215_v8 = vpop.f32.mrb[10].mxu1  ;;  %v10181_v11 = vpop.f32.mrb[11].mxu0 }
 0x6a9   : > { %v10182_v54 = vadd.f32 %v10181_v11, %v10180_v0  ;;  %v10216_v63 = vpop.f32.mrb[11].mxu1 }
 0x6aa   : > { %v10217_v49 = vadd.f32 %v10216_v63, %v10215_v8 }
 0x6ab   : > { %v8843_v48 = vadd.f32 %v10182_v54, %v8773_v56 }
 0x6ad   : > { %v8913_v36 = vadd.f32 %v10217_v49, %v8843_v48 }
 0x6af   : > { %8916 = vst [vmem:[#allocation12] sm:$0x3] %v8913_v36 }
 0x6b0 PF: > { %s11740_s21 = sadd.s32 4294967295, %s10783_s23   ;;  %s10801_s29 = smov [#allocation12]  }
 0x6b1   : > { %p11623_p1 = scmp.eq.s32.totalorder %s11740_s21, 2  ;;  %s8926_s30 = sshll.u32 %s10801_s29, 4  ;;  %s8927_s30 = int_to_ptr.vmem [resolvable:$true] %s8926_s30 }
 0x6b2   : > { %s10695_s7 = scalar_lea.vmem %s8927_s30, 32  ;;  %p10702_p7 = scmp.lt.s32.totalorder %s8927_s30, %s8927_s30 }
 0x6b3   : > { %p10696_p2 = scmp.ne.s32.totalorder %s8927_s30, %s10695_s7  ;;  %p10703_p9 = scmp.lt.s32.totalorder %s10695_s7, %s10695_s7 }
 0x6b5   : > { %p10697_p4 = pnand %p10696_p2, %p11623_p1  ;;  %p10704_p11 = por %p10703_p9, %p10702_p7 }
 0x6b7   : > { %p10698_p6 = pneg %p10697_p4 }
 0x6b9   : > { %p10705_p13 = pnand %p10704_p11, %p10698_p6 }
 0x6bb   : > { %10708 = shalt.err (!%p10705_p13)
}
 0x6bc   : > { %s11742_s5 = sld [smem:[#allocation23_spill]] }
 0x6c2   : > { %s10709_s6 = scalar_lea.hbm %s11742_s5, 32 }
 0x6c3   : > { %p10710_p0 = scmp.ne.s32.totalorder %s11742_s5, %s10709_s6  ;;  %p10715_p3 = scmp.lt.u32.totalorder %s10709_s6, %s11742_s5 }
 0x6c5   : > { %p10711_p12 = pnand %p10710_p0, %p11623_p1 }
 0x6c7   : > { %p10712_p5 = pneg %p10711_p12 }
 0x6c9   : > { %p10717_p8 = pnand %p10715_p3, %p10712_p5 }
 0x6cb   : > { %10720 = shalt.err (!%p10717_p8)
}
 0x6cc   : > { %10492 = dma.vmem_to_hbm [thread:$0]  (%p11623_p1), %s8927_s30, 32, %s11742_s5, [#allocation5]  }
 0x6cd   : > { %10758 = dma.done.wait (%p11623_p1), [#allocation5], 32  }
 0x6ce   : > { %10760 = vsyncadd (%p11623_p1), [#allocation5], 4294967264 }
 0x6cf PF: > { %s21_s23 = sadd.s32 1, %s10783_s23   ;;  %s11743_s15 = sld [smem:[#allocation21_spill]] }
 0x6d0   : > { %p18_p10 = scmp.ge.s32.totalorder %s21_s23, 5   ;;  %s11744_s28 = sld [smem:[#allocation20_spill]] }
 0x6d1   : > { %s11745_s18 = smov %s10767_s19  ;;  %s11746_s19 = smov %s10771_s20 }
 0x6d2   : > { %s11748_s21 = smov %s10779_s22  ;;  %20 = sbr.rel (!%p18_p10) target bundleno = 10 (0xa), region = 107 }
 0x6d5   : > { %s11747_s20 = smov %s11743_s15 }
 0x6d6   : > { %s11749_s22 = smov %s11744_s28 }
 0x6d9   :  { %8939 = vsyncpa [#allocation4], 1 }
 0x6da   :  { %8941 = vsyncpa [#allocation4 + $0x1], 1 }
 0x6db   :  { %8942 = vsyncpa [#allocation7], 1 }
 0x6dc   :  { %8943 = vsyncpa [#allocation10], 1 }
 0x6dd   :  { %8944 = vsyncpa [#allocation5], 1 }
 0x6de   :  { %8946 = vsyncpa [#allocation5 + $0x1], 1 }

</bundles_post_ra>
